<compile_context>
chip_gen: v5e
topology: v5e:2x2
jax: 0.10.0
libtpu: 0.0.40
codegen_flags: <defaults>
</compile_context>

<pallas_src>
import functools

import jax
import jax.numpy as jnp
from jax import lax
from jax.experimental import pallas as pl
from jax.experimental.pallas import tpu as pltpu


# ---------------------------------------------------------------------------
# Fused conv + bias + InstanceNorm + GELU Pallas kernel
# ---------------------------------------------------------------------------

def _conv_in_gelu_kernel(x_ref, w_ref, b_ref, o_ref, *, k, s, cin, ho, wo, wph):
    """One (batch, Cout-tile) grid step.

    x_ref: (1, s*s*cin, L)    flattened polyphase planes of the padded input (f32)
    w_ref: (k*k, TC, cin)     bf16 conv weights, tap-major
    b_ref: (TC, 1)            f32 bias column
    o_ref: (1, TC, ho*wph)    f32 normalised + GELU output (overscanned width)
    """
    w_out = ho * wph                       # lane width of the accumulator
    tc = w_ref.shape[1]

    acc = jnp.zeros((tc, w_out), jnp.float32)
    for ki in range(k):
        for kj in range(k):
            p = (ki % s) * s + (kj % s)            # polyphase plane index
            start = (ki // s) * wph + (kj // s)    # unit-stride flattened offset
            win = x_ref[0, p * cin:(p + 1) * cin, start:start + w_out]
            acc = acc + jnp.dot(w_ref[ki * k + kj],
                                win.astype(jnp.bfloat16),
                                preferred_element_type=jnp.float32)
    acc = acc + b_ref[...]

    # InstanceNorm statistics in f32 over the *valid* spatial columns only
    # (overscan columns with wo_idx >= wo are masked out of the reduction).
    col = lax.broadcasted_iota(jnp.int32, (tc, w_out), 1)
    valid = (col % wph) < wo
    n = jnp.float32(ho * wo)
    mean = jnp.sum(jnp.where(valid, acc, 0.0), axis=-1, keepdims=True) / n
    diff = jnp.where(valid, acc - mean, 0.0)
    var = jnp.sum(diff * diff, axis=-1, keepdims=True) / n
    xhat = (acc - mean) * lax.rsqrt(var + 1e-5)

    # exact GELU (matches torch.nn.GELU(approximate='none'))
    y = 0.5 * xhat * (1.0 + lax.erf(xhat * jnp.float32(0.7071067811865476)))
    o_ref[0] = y.astype(o_ref.dtype)


def _pick_cout_block(cout, lane_width, budget_bytes=8 * 1024 * 1024):
    """Largest multiple-of-8 divisor of cout whose f32 accumulator plus the
    (double-buffered) f32 output block fit a per-grid-step VMEM budget."""
    if cout % 8 != 0:
        return cout
    per_channel = 3 * lane_width * 4          # acc + 2x output block, f32
    tc = 8
    for cand in range(cout, 7, -8):
        if cout % cand == 0:
            tc = cand
            if cand * per_channel <= budget_bytes:
                break
    return tc


# ---------------------------------------------------------------------------
# Wrapper: pad (XLA glue) + polyphase split + fused Pallas kernel
# ---------------------------------------------------------------------------

def conv_in_gelu(x, w, b, *, stride, pad, pad_mode):
    """Conv2d(w, b, stride, pad) + InstanceNorm2d + GELU on an NCHW input."""
    B, cin, H, W = x.shape
    cout, _, k, _ = w.shape
    s = stride

    mode = "reflect" if pad_mode == "reflect" else "constant"
    xp = jnp.pad(x, ((0, 0), (0, 0), (pad, pad), (pad, pad)), mode=mode)
    Hp, Wp = H + 2 * pad, W + 2 * pad
    ho = (Hp - k) // s + 1
    wo = (Wp - k) // s + 1
    d = (k - 1) // s                       # max per-phase tap offset
    hph, wph = ho + d, wo + d

    # Polyphase split (XLA glue): absorbs the conv stride so the kernel only
    # needs unit-stride slices of its VMEM block.
    if s == 1:
        phases = xp                                           # (B, cin, Hp, Wp)
    else:
        planes = []
        for pi in range(s):
            for pj in range(s):
                ph = xp[:, :, pi::s, pj::s][:, :, :hph, :wph]
                ph = jnp.pad(ph, ((0, 0), (0, 0),
                                  (0, hph - ph.shape[2]),
                                  (0, wph - ph.shape[3])))
                planes.append(ph)
        phases = jnp.concatenate(planes, axis=1)              # (B, s*s*cin, hph, wph)
    p_planes = s * s

    # Flatten spatial; pad by d so every tap's unit-stride window is in-bounds.
    xflat = phases.reshape(B, p_planes * cin, hph * wph)
    xflat = jnp.pad(xflat, ((0, 0), (0, 0), (0, d)))
    L = hph * wph + d

    # Weights tap-major, bf16 for the MXU; bias as an f32 column.
    w_taps = jnp.transpose(w, (2, 3, 0, 1)).reshape(k * k, cout, cin)
    w_taps = w_taps.astype(jnp.bfloat16)
    b_col = b.reshape(cout, 1).astype(jnp.float32)

    lane_w = ho * wph
    tc = _pick_cout_block(cout, lane_w)

    kernel = functools.partial(_conv_in_gelu_kernel,
                               k=k, s=s, cin=cin, ho=ho, wo=wo, wph=wph)
    y = pl.pallas_call(
        kernel,
        out_shape=jax.ShapeDtypeStruct((B, cout, lane_w), jnp.float32),
        grid=(B, cout // tc),
        in_specs=[
            pl.BlockSpec((1, p_planes * cin, L), lambda bi, ci: (bi, 0, 0)),
            pl.BlockSpec((k * k, tc, cin), lambda bi, ci: (0, ci, 0)),
            pl.BlockSpec((tc, 1), lambda bi, ci: (ci, 0)),
        ],
        out_specs=pl.BlockSpec((1, tc, lane_w), lambda bi, ci: (bi, ci, 0)),
        compiler_params=pltpu.CompilerParams(
            dimension_semantics=("parallel", "parallel"),
            vmem_limit_bytes=48 * 1024 * 1024),
    )(xflat, w_taps, b_col)

    # Drop the overscan columns; reshape back to NCHW (no transpose needed).
    return y.reshape(B, cout, ho, wph)[:, :, :, :wo]


# ---------------------------------------------------------------------------
# ITTRStem forward
# ---------------------------------------------------------------------------

def make_params(input_nc, ngf, key):
    ks = jax.random.split(key, 6)
    params = {}
    # stage 0: 7x7 conv, reflection pad 3
    params["w0"] = 0.1 * jax.random.normal(ks[0], (ngf, input_nc, 7, 7), jnp.float32)
    params["b0"] = 0.1 * jax.random.normal(ks[1], (ngf,), jnp.float32)
    # stage 1: 3x3 stride-2 conv
    params["w1"] = 0.1 * jax.random.normal(ks[2], (ngf * 2, ngf, 3, 3), jnp.float32)
    params["b1"] = 0.1 * jax.random.normal(ks[3], (ngf * 2,), jnp.float32)
    # stage 2: 3x3 stride-2 conv
    params["w2"] = 0.1 * jax.random.normal(ks[4], (ngf * 4, ngf * 2, 3, 3), jnp.float32)
    params["b2"] = 0.1 * jax.random.normal(ks[5], (ngf * 4,), jnp.float32)
    return params


@jax.jit
def ittr_stem_forward(x, params):
    h = conv_in_gelu(x, params["w0"], params["b0"], stride=1, pad=3, pad_mode="reflect")
    h = conv_in_gelu(h, params["w1"], params["b1"], stride=2, pad=1, pad_mode="zero")
    h = conv_in_gelu(h, params["w2"], params["b2"], stride=2, pad=1, pad_mode="zero")
    return h


if __name__ == "__main__":
    input_nc, ngf = 4, 8
    B, H, W = 2, 16, 16

    key = jax.random.PRNGKey(0)
    kx, kp = jax.random.split(key)
    x = jax.random.normal(kx, (B, input_nc, H, W), jnp.float32)
    params = make_params(input_nc, ngf, kp)

    out = ittr_stem_forward(x, params)
    out = jax.block_until_ready(out)

    expected_shape = (B, ngf * 4, H // 4, W // 4)
    assert out.shape == expected_shape, (out.shape, expected_shape)
    assert bool(jnp.all(jnp.isfinite(out)))
    print("KERNEL_OK")
</pallas_src>

<mosaic_0001>
module attributes {stable_mosaic.version = 11 : i64} {
  func.func @_conv_in_gelu_kernel(%arg0: i32, %arg1: i32, %arg2: memref<1x4x490xf32, #tpu.memory_space<vmem>>, %arg3: memref<49x8x4xbf16, #tpu.memory_space<vmem>>, %arg4: memref<8x1xf32, #tpu.memory_space<vmem>>, %arg5: memref<1x8x352xf32, #tpu.memory_space<vmem>>) attributes {dimension_semantics = [#tpu.dimension_semantics<parallel>, #tpu.dimension_semantics<parallel>], iteration_bounds = array<i64: 2, 1>, scalar_prefetch = 0 : i64, scratch_operands = 0 : i64, tpu.core_type = #tpu.core_type<tc>, window_params = [{transform_indices = @transform_0, window_bounds = array<i64: 1, 4, 490>}, {transform_indices = @transform_1, window_bounds = array<i64: 49, 8, 4>}, {transform_indices = @transform_2, window_bounds = array<i64: 8, 1>}, {transform_indices = @transform_3, window_bounds = array<i64: 1, 8, 352>}]} {
    %cst = arith.constant 0.000000e+00 : f32
    %0 = vector.broadcast %cst : f32 to vector<8x352xf32>
    %c0 = arith.constant 0 : index
    %c0_0 = arith.constant 0 : index
    %c0_1 = arith.constant 0 : index
    %1 = vector.load %arg2[%c0, %c0_0, %c0_1] : memref<1x4x490xf32, #tpu.memory_space<vmem>>, vector<1x4x352xf32>
    %2 = vector.shape_cast %1 : vector<1x4x352xf32> to vector<4x352xf32>
    %c0_2 = arith.constant 0 : index
    %c0_3 = arith.constant 0 : index
    %c0_4 = arith.constant 0 : index
    %3 = vector.load %arg3[%c0_2, %c0_3, %c0_4] : memref<49x8x4xbf16, #tpu.memory_space<vmem>>, vector<1x8x4xbf16>
    %4 = vector.shape_cast %3 : vector<1x8x4xbf16> to vector<8x4xbf16>
    %5 = arith.truncf %2 : vector<4x352xf32> to vector<4x352xbf16>
    %cst_5 = arith.constant dense<0.000000e+00> : vector<8x352xf32>
    %6 = tpu.matmul %4, %5, %cst_5 {dimension_numbers = #tpu.dot_dimension_numbers<[1], [0], [0], [1], [0, 0, 1, 1], [], []>} : vector<8x4xbf16>, vector<4x352xbf16>, vector<8x352xf32> -> vector<8x352xf32>
    %7 = arith.addf %0, %6 : vector<8x352xf32>
    %c0_6 = arith.constant 0 : index
    %c0_7 = arith.constant 0 : index
    %c1 = arith.constant 1 : index
    %8 = vector.load %arg2[%c0_6, %c0_7, %c1] : memref<1x4x490xf32, #tpu.memory_space<vmem>>, vector<1x4x352xf32>
    %9 = vector.shape_cast %8 : vector<1x4x352xf32> to vector<4x352xf32>
    %c1_8 = arith.constant 1 : index
    %c0_9 = arith.constant 0 : index
    %c0_10 = arith.constant 0 : index
    %10 = vector.load %arg3[%c1_8, %c0_9, %c0_10] : memref<49x8x4xbf16, #tpu.memory_space<vmem>>, vector<1x8x4xbf16>
    %11 = vector.shape_cast %10 : vector<1x8x4xbf16> to vector<8x4xbf16>
    %12 = arith.truncf %9 : vector<4x352xf32> to vector<4x352xbf16>
    %cst_11 = arith.constant dense<0.000000e+00> : vector<8x352xf32>
    %13 = tpu.matmul %11, %12, %cst_11 {dimension_numbers = #tpu.dot_dimension_numbers<[1], [0], [0], [1], [0, 0, 1, 1], [], []>} : vector<8x4xbf16>, vector<4x352xbf16>, vector<8x352xf32> -> vector<8x352xf32>
    %14 = arith.addf %7, %13 : vector<8x352xf32>
    %c0_12 = arith.constant 0 : index
    %c0_13 = arith.constant 0 : index
    %c2 = arith.constant 2 : index
    %15 = vector.load %arg2[%c0_12, %c0_13, %c2] : memref<1x4x490xf32, #tpu.memory_space<vmem>>, vector<1x4x352xf32>
    %16 = vector.shape_cast %15 : vector<1x4x352xf32> to vector<4x352xf32>
    %c2_14 = arith.constant 2 : index
    %c0_15 = arith.constant 0 : index
    %c0_16 = arith.constant 0 : index
    %17 = vector.load %arg3[%c2_14, %c0_15, %c0_16] : memref<49x8x4xbf16, #tpu.memory_space<vmem>>, vector<1x8x4xbf16>
    %18 = vector.shape_cast %17 : vector<1x8x4xbf16> to vector<8x4xbf16>
    %19 = arith.truncf %16 : vector<4x352xf32> to vector<4x352xbf16>
    %cst_17 = arith.constant dense<0.000000e+00> : vector<8x352xf32>
    %20 = tpu.matmul %18, %19, %cst_17 {dimension_numbers = #tpu.dot_dimension_numbers<[1], [0], [0], [1], [0, 0, 1, 1], [], []>} : vector<8x4xbf16>, vector<4x352xbf16>, vector<8x352xf32> -> vector<8x352xf32>
    %21 = arith.addf %14, %20 : vector<8x352xf32>
    %c0_18 = arith.constant 0 : index
    %c0_19 = arith.constant 0 : index
    %c3 = arith.constant 3 : index
    %22 = vector.load %arg2[%c0_18, %c0_19, %c3] : memref<1x4x490xf32, #tpu.memory_space<vmem>>, vector<1x4x352xf32>
    %23 = vector.shape_cast %22 : vector<1x4x352xf32> to vector<4x352xf32>
    %c3_20 = arith.constant 3 : index
    %c0_21 = arith.constant 0 : index
    %c0_22 = arith.constant 0 : index
    %24 = vector.load %arg3[%c3_20, %c0_21, %c0_22] : memref<49x8x4xbf16, #tpu.memory_space<vmem>>, vector<1x8x4xbf16>
    %25 = vector.shape_cast %24 : vector<1x8x4xbf16> to vector<8x4xbf16>
    %26 = arith.truncf %23 : vector<4x352xf32> to vector<4x352xbf16>
    %cst_23 = arith.constant dense<0.000000e+00> : vector<8x352xf32>
    %27 = tpu.matmul %25, %26, %cst_23 {dimension_numbers = #tpu.dot_dimension_numbers<[1], [0], [0], [1], [0, 0, 1, 1], [], []>} : vector<8x4xbf16>, vector<4x352xbf16>, vector<8x352xf32> -> vector<8x352xf32>
    %28 = arith.addf %21, %27 : vector<8x352xf32>
    %c0_24 = arith.constant 0 : index
    %c0_25 = arith.constant 0 : index
    %c4 = arith.constant 4 : index
    %29 = vector.load %arg2[%c0_24, %c0_25, %c4] : memref<1x4x490xf32, #tpu.memory_space<vmem>>, vector<1x4x352xf32>
    %30 = vector.shape_cast %29 : vector<1x4x352xf32> to vector<4x352xf32>
    %c4_26 = arith.constant 4 : index
    %c0_27 = arith.constant 0 : index
    %c0_28 = arith.constant 0 : index
    %31 = vector.load %arg3[%c4_26, %c0_27, %c0_28] : memref<49x8x4xbf16, #tpu.memory_space<vmem>>, vector<1x8x4xbf16>
    %32 = vector.shape_cast %31 : vector<1x8x4xbf16> to vector<8x4xbf16>
    %33 = arith.truncf %30 : vector<4x352xf32> to vector<4x352xbf16>
    %cst_29 = arith.constant dense<0.000000e+00> : vector<8x352xf32>
    %34 = tpu.matmul %32, %33, %cst_29 {dimension_numbers = #tpu.dot_dimension_numbers<[1], [0], [0], [1], [0, 0, 1, 1], [], []>} : vector<8x4xbf16>, vector<4x352xbf16>, vector<8x352xf32> -> vector<8x352xf32>
    %35 = arith.addf %28, %34 : vector<8x352xf32>
    %c0_30 = arith.constant 0 : index
    %c0_31 = arith.constant 0 : index
    %c5 = arith.constant 5 : index
    %36 = vector.load %arg2[%c0_30, %c0_31, %c5] : memref<1x4x490xf32, #tpu.memory_space<vmem>>, vector<1x4x352xf32>
    %37 = vector.shape_cast %36 : vector<1x4x352xf32> to vector<4x352xf32>
    %c5_32 = arith.constant 5 : index
    %c0_33 = arith.constant 0 : index
    %c0_34 = arith.constant 0 : index
    %38 = vector.load %arg3[%c5_32, %c0_33, %c0_34] : memref<49x8x4xbf16, #tpu.memory_space<vmem>>, vector<1x8x4xbf16>
    %39 = vector.shape_cast %38 : vector<1x8x4xbf16> to vector<8x4xbf16>
    %40 = arith.truncf %37 : vector<4x352xf32> to vector<4x352xbf16>
    %cst_35 = arith.constant dense<0.000000e+00> : vector<8x352xf32>
    %41 = tpu.matmul %39, %40, %cst_35 {dimension_numbers = #tpu.dot_dimension_numbers<[1], [0], [0], [1], [0, 0, 1, 1], [], []>} : vector<8x4xbf16>, vector<4x352xbf16>, vector<8x352xf32> -> vector<8x352xf32>
    %42 = arith.addf %35, %41 : vector<8x352xf32>
    %c0_36 = arith.constant 0 : index
    %c0_37 = arith.constant 0 : index
    %c6 = arith.constant 6 : index
    %43 = vector.load %arg2[%c0_36, %c0_37, %c6] : memref<1x4x490xf32, #tpu.memory_space<vmem>>, vector<1x4x352xf32>
    %44 = vector.shape_cast %43 : vector<1x4x352xf32> to vector<4x352xf32>
    %c6_38 = arith.constant 6 : index
    %c0_39 = arith.constant 0 : index
    %c0_40 = arith.constant 0 : index
    %45 = vector.load %arg3[%c6_38, %c0_39, %c0_40] : memref<49x8x4xbf16, #tpu.memory_space<vmem>>, vector<1x8x4xbf16>
    %46 = vector.shape_cast %45 : vector<1x8x4xbf16> to vector<8x4xbf16>
    %47 = arith.truncf %44 : vector<4x352xf32> to vector<4x352xbf16>
    %cst_41 = arith.constant dense<0.000000e+00> : vector<8x352xf32>
    %48 = tpu.matmul %46, %47, %cst_41 {dimension_numbers = #tpu.dot_dimension_numbers<[1], [0], [0], [1], [0, 0, 1, 1], [], []>} : vector<8x4xbf16>, vector<4x352xbf16>, vector<8x352xf32> -> vector<8x352xf32>
    %49 = arith.addf %42, %48 : vector<8x352xf32>
    %c0_42 = arith.constant 0 : index
    %c0_43 = arith.constant 0 : index
    %c22 = arith.constant 22 : index
    %50 = vector.load %arg2[%c0_42, %c0_43, %c22] : memref<1x4x490xf32, #tpu.memory_space<vmem>>, vector<1x4x352xf32>
    %51 = vector.shape_cast %50 : vector<1x4x352xf32> to vector<4x352xf32>
    %c7 = arith.constant 7 : index
    %c0_44 = arith.constant 0 : index
    %c0_45 = arith.constant 0 : index
    %52 = vector.load %arg3[%c7, %c0_44, %c0_45] : memref<49x8x4xbf16, #tpu.memory_space<vmem>>, vector<1x8x4xbf16>
    %53 = vector.shape_cast %52 : vector<1x8x4xbf16> to vector<8x4xbf16>
    %54 = arith.truncf %51 : vector<4x352xf32> to vector<4x352xbf16>
    %cst_46 = arith.constant dense<0.000000e+00> : vector<8x352xf32>
    %55 = tpu.matmul %53, %54, %cst_46 {dimension_numbers = #tpu.dot_dimension_numbers<[1], [0], [0], [1], [0, 0, 1, 1], [], []>} : vector<8x4xbf16>, vector<4x352xbf16>, vector<8x352xf32> -> vector<8x352xf32>
    %56 = arith.addf %49, %55 : vector<8x352xf32>
    %c0_47 = arith.constant 0 : index
    %c0_48 = arith.constant 0 : index
    %c23 = arith.constant 23 : index
    %57 = vector.load %arg2[%c0_47, %c0_48, %c23] : memref<1x4x490xf32, #tpu.memory_space<vmem>>, vector<1x4x352xf32>
    %58 = vector.shape_cast %57 : vector<1x4x352xf32> to vector<4x352xf32>
    %c8 = arith.constant 8 : index
    %c0_49 = arith.constant 0 : index
    %c0_50 = arith.constant 0 : index
    %59 = vector.load %arg3[%c8, %c0_49, %c0_50] : memref<49x8x4xbf16, #tpu.memory_space<vmem>>, vector<1x8x4xbf16>
    %60 = vector.shape_cast %59 : vector<1x8x4xbf16> to vector<8x4xbf16>
    %61 = arith.truncf %58 : vector<4x352xf32> to vector<4x352xbf16>
    %cst_51 = arith.constant dense<0.000000e+00> : vector<8x352xf32>
    %62 = tpu.matmul %60, %61, %cst_51 {dimension_numbers = #tpu.dot_dimension_numbers<[1], [0], [0], [1], [0, 0, 1, 1], [], []>} : vector<8x4xbf16>, vector<4x352xbf16>, vector<8x352xf32> -> vector<8x352xf32>
    %63 = arith.addf %56, %62 : vector<8x352xf32>
    %c0_52 = arith.constant 0 : index
    %c0_53 = arith.constant 0 : index
    %c24 = arith.constant 24 : index
    %64 = vector.load %arg2[%c0_52, %c0_53, %c24] : memref<1x4x490xf32, #tpu.memory_space<vmem>>, vector<1x4x352xf32>
    %65 = vector.shape_cast %64 : vector<1x4x352xf32> to vector<4x352xf32>
    %c9 = arith.constant 9 : index
    %c0_54 = arith.constant 0 : index
    %c0_55 = arith.constant 0 : index
    %66 = vector.load %arg3[%c9, %c0_54, %c0_55] : memref<49x8x4xbf16, #tpu.memory_space<vmem>>, vector<1x8x4xbf16>
    %67 = vector.shape_cast %66 : vector<1x8x4xbf16> to vector<8x4xbf16>
    %68 = arith.truncf %65 : vector<4x352xf32> to vector<4x352xbf16>
    %cst_56 = arith.constant dense<0.000000e+00> : vector<8x352xf32>
    %69 = tpu.matmul %67, %68, %cst_56 {dimension_numbers = #tpu.dot_dimension_numbers<[1], [0], [0], [1], [0, 0, 1, 1], [], []>} : vector<8x4xbf16>, vector<4x352xbf16>, vector<8x352xf32> -> vector<8x352xf32>
    %70 = arith.addf %63, %69 : vector<8x352xf32>
    %c0_57 = arith.constant 0 : index
    %c0_58 = arith.constant 0 : index
    %c25 = arith.constant 25 : index
    %71 = vector.load %arg2[%c0_57, %c0_58, %c25] : memref<1x4x490xf32, #tpu.memory_space<vmem>>, vector<1x4x352xf32>
    %72 = vector.shape_cast %71 : vector<1x4x352xf32> to vector<4x352xf32>
    %c10 = arith.constant 10 : index
    %c0_59 = arith.constant 0 : index
    %c0_60 = arith.constant 0 : index
    %73 = vector.load %arg3[%c10, %c0_59, %c0_60] : memref<49x8x4xbf16, #tpu.memory_space<vmem>>, vector<1x8x4xbf16>
    %74 = vector.shape_cast %73 : vector<1x8x4xbf16> to vector<8x4xbf16>
    %75 = arith.truncf %72 : vector<4x352xf32> to vector<4x352xbf16>
    %cst_61 = arith.constant dense<0.000000e+00> : vector<8x352xf32>
    %76 = tpu.matmul %74, %75, %cst_61 {dimension_numbers = #tpu.dot_dimension_numbers<[1], [0], [0], [1], [0, 0, 1, 1], [], []>} : vector<8x4xbf16>, vector<4x352xbf16>, vector<8x352xf32> -> vector<8x352xf32>
    %77 = arith.addf %70, %76 : vector<8x352xf32>
    %c0_62 = arith.constant 0 : index
    %c0_63 = arith.constant 0 : index
    %c26 = arith.constant 26 : index
    %78 = vector.load %arg2[%c0_62, %c0_63, %c26] : memref<1x4x490xf32, #tpu.memory_space<vmem>>, vector<1x4x352xf32>
    %79 = vector.shape_cast %78 : vector<1x4x352xf32> to vector<4x352xf32>
    %c11 = arith.constant 11 : index
    %c0_64 = arith.constant 0 : index
    %c0_65 = arith.constant 0 : index
    %80 = vector.load %arg3[%c11, %c0_64, %c0_65] : memref<49x8x4xbf16, #tpu.memory_space<vmem>>, vector<1x8x4xbf16>
    %81 = vector.shape_cast %80 : vector<1x8x4xbf16> to vector<8x4xbf16>
    %82 = arith.truncf %79 : vector<4x352xf32> to vector<4x352xbf16>
    %cst_66 = arith.constant dense<0.000000e+00> : vector<8x352xf32>
    %83 = tpu.matmul %81, %82, %cst_66 {dimension_numbers = #tpu.dot_dimension_numbers<[1], [0], [0], [1], [0, 0, 1, 1], [], []>} : vector<8x4xbf16>, vector<4x352xbf16>, vector<8x352xf32> -> vector<8x352xf32>
    %84 = arith.addf %77, %83 : vector<8x352xf32>
    %c0_67 = arith.constant 0 : index
    %c0_68 = arith.constant 0 : index
    %c27 = arith.constant 27 : index
    %85 = vector.load %arg2[%c0_67, %c0_68, %c27] : memref<1x4x490xf32, #tpu.memory_space<vmem>>, vector<1x4x352xf32>
    %86 = vector.shape_cast %85 : vector<1x4x352xf32> to vector<4x352xf32>
    %c12 = arith.constant 12 : index
    %c0_69 = arith.constant 0 : index
    %c0_70 = arith.constant 0 : index
    %87 = vector.load %arg3[%c12, %c0_69, %c0_70] : memref<49x8x4xbf16, #tpu.memory_space<vmem>>, vector<1x8x4xbf16>
    %88 = vector.shape_cast %87 : vector<1x8x4xbf16> to vector<8x4xbf16>
    %89 = arith.truncf %86 : vector<4x352xf32> to vector<4x352xbf16>
    %cst_71 = arith.constant dense<0.000000e+00> : vector<8x352xf32>
    %90 = tpu.matmul %88, %89, %cst_71 {dimension_numbers = #tpu.dot_dimension_numbers<[1], [0], [0], [1], [0, 0, 1, 1], [], []>} : vector<8x4xbf16>, vector<4x352xbf16>, vector<8x352xf32> -> vector<8x352xf32>
    %91 = arith.addf %84, %90 : vector<8x352xf32>
    %c0_72 = arith.constant 0 : index
    %c0_73 = arith.constant 0 : index
    %c28 = arith.constant 28 : index
    %92 = vector.load %arg2[%c0_72, %c0_73, %c28] : memref<1x4x490xf32, #tpu.memory_space<vmem>>, vector<1x4x352xf32>
    %93 = vector.shape_cast %92 : vector<1x4x352xf32> to vector<4x352xf32>
    %c13 = arith.constant 13 : index
    %c0_74 = arith.constant 0 : index
    %c0_75 = arith.constant 0 : index
    %94 = vector.load %arg3[%c13, %c0_74, %c0_75] : memref<49x8x4xbf16, #tpu.memory_space<vmem>>, vector<1x8x4xbf16>
    %95 = vector.shape_cast %94 : vector<1x8x4xbf16> to vector<8x4xbf16>
    %96 = arith.truncf %93 : vector<4x352xf32> to vector<4x352xbf16>
    %cst_76 = arith.constant dense<0.000000e+00> : vector<8x352xf32>
    %97 = tpu.matmul %95, %96, %cst_76 {dimension_numbers = #tpu.dot_dimension_numbers<[1], [0], [0], [1], [0, 0, 1, 1], [], []>} : vector<8x4xbf16>, vector<4x352xbf16>, vector<8x352xf32> -> vector<8x352xf32>
    %98 = arith.addf %91, %97 : vector<8x352xf32>
    %c0_77 = arith.constant 0 : index
    %c0_78 = arith.constant 0 : index
    %c44 = arith.constant 44 : index
    %99 = vector.load %arg2[%c0_77, %c0_78, %c44] : memref<1x4x490xf32, #tpu.memory_space<vmem>>, vector<1x4x352xf32>
    %100 = vector.shape_cast %99 : vector<1x4x352xf32> to vector<4x352xf32>
    %c14 = arith.constant 14 : index
    %c0_79 = arith.constant 0 : index
    %c0_80 = arith.constant 0 : index
    %101 = vector.load %arg3[%c14, %c0_79, %c0_80] : memref<49x8x4xbf16, #tpu.memory_space<vmem>>, vector<1x8x4xbf16>
    %102 = vector.shape_cast %101 : vector<1x8x4xbf16> to vector<8x4xbf16>
    %103 = arith.truncf %100 : vector<4x352xf32> to vector<4x352xbf16>
    %cst_81 = arith.constant dense<0.000000e+00> : vector<8x352xf32>
    %104 = tpu.matmul %102, %103, %cst_81 {dimension_numbers = #tpu.dot_dimension_numbers<[1], [0], [0], [1], [0, 0, 1, 1], [], []>} : vector<8x4xbf16>, vector<4x352xbf16>, vector<8x352xf32> -> vector<8x352xf32>
    %105 = arith.addf %98, %104 : vector<8x352xf32>
    %c0_82 = arith.constant 0 : index
    %c0_83 = arith.constant 0 : index
    %c45 = arith.constant 45 : index
    %106 = vector.load %arg2[%c0_82, %c0_83, %c45] : memref<1x4x490xf32, #tpu.memory_space<vmem>>, vector<1x4x352xf32>
    %107 = vector.shape_cast %106 : vector<1x4x352xf32> to vector<4x352xf32>
    %c15 = arith.constant 15 : index
    %c0_84 = arith.constant 0 : index
    %c0_85 = arith.constant 0 : index
    %108 = vector.load %arg3[%c15, %c0_84, %c0_85] : memref<49x8x4xbf16, #tpu.memory_space<vmem>>, vector<1x8x4xbf16>
    %109 = vector.shape_cast %108 : vector<1x8x4xbf16> to vector<8x4xbf16>
    %110 = arith.truncf %107 : vector<4x352xf32> to vector<4x352xbf16>
    %cst_86 = arith.constant dense<0.000000e+00> : vector<8x352xf32>
    %111 = tpu.matmul %109, %110, %cst_86 {dimension_numbers = #tpu.dot_dimension_numbers<[1], [0], [0], [1], [0, 0, 1, 1], [], []>} : vector<8x4xbf16>, vector<4x352xbf16>, vector<8x352xf32> -> vector<8x352xf32>
    %112 = arith.addf %105, %111 : vector<8x352xf32>
    %c0_87 = arith.constant 0 : index
    %c0_88 = arith.constant 0 : index
    %c46 = arith.constant 46 : index
    %113 = vector.load %arg2[%c0_87, %c0_88, %c46] : memref<1x4x490xf32, #tpu.memory_space<vmem>>, vector<1x4x352xf32>
    %114 = vector.shape_cast %113 : vector<1x4x352xf32> to vector<4x352xf32>
    %c16 = arith.constant 16 : index
    %c0_89 = arith.constant 0 : index
    %c0_90 = arith.constant 0 : index
    %115 = vector.load %arg3[%c16, %c0_89, %c0_90] : memref<49x8x4xbf16, #tpu.memory_space<vmem>>, vector<1x8x4xbf16>
    %116 = vector.shape_cast %115 : vector<1x8x4xbf16> to vector<8x4xbf16>
    %117 = arith.truncf %114 : vector<4x352xf32> to vector<4x352xbf16>
    %cst_91 = arith.constant dense<0.000000e+00> : vector<8x352xf32>
    %118 = tpu.matmul %116, %117, %cst_91 {dimension_numbers = #tpu.dot_dimension_numbers<[1], [0], [0], [1], [0, 0, 1, 1], [], []>} : vector<8x4xbf16>, vector<4x352xbf16>, vector<8x352xf32> -> vector<8x352xf32>
    %119 = arith.addf %112, %118 : vector<8x352xf32>
    %c0_92 = arith.constant 0 : index
    %c0_93 = arith.constant 0 : index
    %c47 = arith.constant 47 : index
    %120 = vector.load %arg2[%c0_92, %c0_93, %c47] : memref<1x4x490xf32, #tpu.memory_space<vmem>>, vector<1x4x352xf32>
    %121 = vector.shape_cast %120 : vector<1x4x352xf32> to vector<4x352xf32>
    %c17 = arith.constant 17 : index
    %c0_94 = arith.constant 0 : index
    %c0_95 = arith.constant 0 : index
    %122 = vector.load %arg3[%c17, %c0_94, %c0_95] : memref<49x8x4xbf16, #tpu.memory_space<vmem>>, vector<1x8x4xbf16>
    %123 = vector.shape_cast %122 : vector<1x8x4xbf16> to vector<8x4xbf16>
    %124 = arith.truncf %121 : vector<4x352xf32> to vector<4x352xbf16>
    %cst_96 = arith.constant dense<0.000000e+00> : vector<8x352xf32>
    %125 = tpu.matmul %123, %124, %cst_96 {dimension_numbers = #tpu.dot_dimension_numbers<[1], [0], [0], [1], [0, 0, 1, 1], [], []>} : vector<8x4xbf16>, vector<4x352xbf16>, vector<8x352xf32> -> vector<8x352xf32>
    %126 = arith.addf %119, %125 : vector<8x352xf32>
    %c0_97 = arith.constant 0 : index
    %c0_98 = arith.constant 0 : index
    %c48 = arith.constant 48 : index
    %127 = vector.load %arg2[%c0_97, %c0_98, %c48] : memref<1x4x490xf32, #tpu.memory_space<vmem>>, vector<1x4x352xf32>
    %128 = vector.shape_cast %127 : vector<1x4x352xf32> to vector<4x352xf32>
    %c18 = arith.constant 18 : index
    %c0_99 = arith.constant 0 : index
    %c0_100 = arith.constant 0 : index
    %129 = vector.load %arg3[%c18, %c0_99, %c0_100] : memref<49x8x4xbf16, #tpu.memory_space<vmem>>, vector<1x8x4xbf16>
    %130 = vector.shape_cast %129 : vector<1x8x4xbf16> to vector<8x4xbf16>
    %131 = arith.truncf %128 : vector<4x352xf32> to vector<4x352xbf16>
    %cst_101 = arith.constant dense<0.000000e+00> : vector<8x352xf32>
    %132 = tpu.matmul %130, %131, %cst_101 {dimension_numbers = #tpu.dot_dimension_numbers<[1], [0], [0], [1], [0, 0, 1, 1], [], []>} : vector<8x4xbf16>, vector<4x352xbf16>, vector<8x352xf32> -> vector<8x352xf32>
    %133 = arith.addf %126, %132 : vector<8x352xf32>
    %c0_102 = arith.constant 0 : index
    %c0_103 = arith.constant 0 : index
    %c49 = arith.constant 49 : index
    %134 = vector.load %arg2[%c0_102, %c0_103, %c49] : memref<1x4x490xf32, #tpu.memory_space<vmem>>, vector<1x4x352xf32>
    %135 = vector.shape_cast %134 : vector<1x4x352xf32> to vector<4x352xf32>
    %c19 = arith.constant 19 : index
    %c0_104 = arith.constant 0 : index
    %c0_105 = arith.constant 0 : index
    %136 = vector.load %arg3[%c19, %c0_104, %c0_105] : memref<49x8x4xbf16, #tpu.memory_space<vmem>>, vector<1x8x4xbf16>
    %137 = vector.shape_cast %136 : vector<1x8x4xbf16> to vector<8x4xbf16>
    %138 = arith.truncf %135 : vector<4x352xf32> to vector<4x352xbf16>
    %cst_106 = arith.constant dense<0.000000e+00> : vector<8x352xf32>
    %139 = tpu.matmul %137, %138, %cst_106 {dimension_numbers = #tpu.dot_dimension_numbers<[1], [0], [0], [1], [0, 0, 1, 1], [], []>} : vector<8x4xbf16>, vector<4x352xbf16>, vector<8x352xf32> -> vector<8x352xf32>
    %140 = arith.addf %133, %139 : vector<8x352xf32>
    %c0_107 = arith.constant 0 : index
    %c0_108 = arith.constant 0 : index
    %c50 = arith.constant 50 : index
    %141 = vector.load %arg2[%c0_107, %c0_108, %c50] : memref<1x4x490xf32, #tpu.memory_space<vmem>>, vector<1x4x352xf32>
    %142 = vector.shape_cast %141 : vector<1x4x352xf32> to vector<4x352xf32>
    %c20 = arith.constant 20 : index
    %c0_109 = arith.constant 0 : index
    %c0_110 = arith.constant 0 : index
    %143 = vector.load %arg3[%c20, %c0_109, %c0_110] : memref<49x8x4xbf16, #tpu.memory_space<vmem>>, vector<1x8x4xbf16>
    %144 = vector.shape_cast %143 : vector<1x8x4xbf16> to vector<8x4xbf16>
    %145 = arith.truncf %142 : vector<4x352xf32> to vector<4x352xbf16>
    %cst_111 = arith.constant dense<0.000000e+00> : vector<8x352xf32>
    %146 = tpu.matmul %144, %145, %cst_111 {dimension_numbers = #tpu.dot_dimension_numbers<[1], [0], [0], [1], [0, 0, 1, 1], [], []>} : vector<8x4xbf16>, vector<4x352xbf16>, vector<8x352xf32> -> vector<8x352xf32>
    %147 = arith.addf %140, %146 : vector<8x352xf32>
    %c0_112 = arith.constant 0 : index
    %c0_113 = arith.constant 0 : index
    %c66 = arith.constant 66 : index
    %148 = vector.load %arg2[%c0_112, %c0_113, %c66] : memref<1x4x490xf32, #tpu.memory_space<vmem>>, vector<1x4x352xf32>
    %149 = vector.shape_cast %148 : vector<1x4x352xf32> to vector<4x352xf32>
    %c21 = arith.constant 21 : index
    %c0_114 = arith.constant 0 : index
    %c0_115 = arith.constant 0 : index
    %150 = vector.load %arg3[%c21, %c0_114, %c0_115] : memref<49x8x4xbf16, #tpu.memory_space<vmem>>, vector<1x8x4xbf16>
    %151 = vector.shape_cast %150 : vector<1x8x4xbf16> to vector<8x4xbf16>
    %152 = arith.truncf %149 : vector<4x352xf32> to vector<4x352xbf16>
    %cst_116 = arith.constant dense<0.000000e+00> : vector<8x352xf32>
    %153 = tpu.matmul %151, %152, %cst_116 {dimension_numbers = #tpu.dot_dimension_numbers<[1], [0], [0], [1], [0, 0, 1, 1], [], []>} : vector<8x4xbf16>, vector<4x352xbf16>, vector<8x352xf32> -> vector<8x352xf32>
    %154 = arith.addf %147, %153 : vector<8x352xf32>
    %c0_117 = arith.constant 0 : index
    %c0_118 = arith.constant 0 : index
    %c67 = arith.constant 67 : index
    %155 = vector.load %arg2[%c0_117, %c0_118, %c67] : memref<1x4x490xf32, #tpu.memory_space<vmem>>, vector<1x4x352xf32>
    %156 = vector.shape_cast %155 : vector<1x4x352xf32> to vector<4x352xf32>
    %c22_119 = arith.constant 22 : index
    %c0_120 = arith.constant 0 : index
    %c0_121 = arith.constant 0 : index
    %157 = vector.load %arg3[%c22_119, %c0_120, %c0_121] : memref<49x8x4xbf16, #tpu.memory_space<vmem>>, vector<1x8x4xbf16>
    %158 = vector.shape_cast %157 : vector<1x8x4xbf16> to vector<8x4xbf16>
    %159 = arith.truncf %156 : vector<4x352xf32> to vector<4x352xbf16>
    %cst_122 = arith.constant dense<0.000000e+00> : vector<8x352xf32>
    %160 = tpu.matmul %158, %159, %cst_122 {dimension_numbers = #tpu.dot_dimension_numbers<[1], [0], [0], [1], [0, 0, 1, 1], [], []>} : vector<8x4xbf16>, vector<4x352xbf16>, vector<8x352xf32> -> vector<8x352xf32>
    %161 = arith.addf %154, %160 : vector<8x352xf32>
    %c0_123 = arith.constant 0 : index
    %c0_124 = arith.constant 0 : index
    %c68 = arith.constant 68 : index
    %162 = vector.load %arg2[%c0_123, %c0_124, %c68] : memref<1x4x490xf32, #tpu.memory_space<vmem>>, vector<1x4x352xf32>
    %163 = vector.shape_cast %162 : vector<1x4x352xf32> to vector<4x352xf32>
    %c23_125 = arith.constant 23 : index
    %c0_126 = arith.constant 0 : index
    %c0_127 = arith.constant 0 : index
    %164 = vector.load %arg3[%c23_125, %c0_126, %c0_127] : memref<49x8x4xbf16, #tpu.memory_space<vmem>>, vector<1x8x4xbf16>
    %165 = vector.shape_cast %164 : vector<1x8x4xbf16> to vector<8x4xbf16>
    %166 = arith.truncf %163 : vector<4x352xf32> to vector<4x352xbf16>
    %cst_128 = arith.constant dense<0.000000e+00> : vector<8x352xf32>
    %167 = tpu.matmul %165, %166, %cst_128 {dimension_numbers = #tpu.dot_dimension_numbers<[1], [0], [0], [1], [0, 0, 1, 1], [], []>} : vector<8x4xbf16>, vector<4x352xbf16>, vector<8x352xf32> -> vector<8x352xf32>
    %168 = arith.addf %161, %167 : vector<8x352xf32>
    %c0_129 = arith.constant 0 : index
    %c0_130 = arith.constant 0 : index
    %c69 = arith.constant 69 : index
    %169 = vector.load %arg2[%c0_129, %c0_130, %c69] : memref<1x4x490xf32, #tpu.memory_space<vmem>>, vector<1x4x352xf32>
    %170 = vector.shape_cast %169 : vector<1x4x352xf32> to vector<4x352xf32>
    %c24_131 = arith.constant 24 : index
    %c0_132 = arith.constant 0 : index
    %c0_133 = arith.constant 0 : index
    %171 = vector.load %arg3[%c24_131, %c0_132, %c0_133] : memref<49x8x4xbf16, #tpu.memory_space<vmem>>, vector<1x8x4xbf16>
    %172 = vector.shape_cast %171 : vector<1x8x4xbf16> to vector<8x4xbf16>
    %173 = arith.truncf %170 : vector<4x352xf32> to vector<4x352xbf16>
    %cst_134 = arith.constant dense<0.000000e+00> : vector<8x352xf32>
    %174 = tpu.matmul %172, %173, %cst_134 {dimension_numbers = #tpu.dot_dimension_numbers<[1], [0], [0], [1], [0, 0, 1, 1], [], []>} : vector<8x4xbf16>, vector<4x352xbf16>, vector<8x352xf32> -> vector<8x352xf32>
    %175 = arith.addf %168, %174 : vector<8x352xf32>
    %c0_135 = arith.constant 0 : index
    %c0_136 = arith.constant 0 : index
    %c70 = arith.constant 70 : index
    %176 = vector.load %arg2[%c0_135, %c0_136, %c70] : memref<1x4x490xf32, #tpu.memory_space<vmem>>, vector<1x4x352xf32>
    %177 = vector.shape_cast %176 : vector<1x4x352xf32> to vector<4x352xf32>
    %c25_137 = arith.constant 25 : index
    %c0_138 = arith.constant 0 : index
    %c0_139 = arith.constant 0 : index
    %178 = vector.load %arg3[%c25_137, %c0_138, %c0_139] : memref<49x8x4xbf16, #tpu.memory_space<vmem>>, vector<1x8x4xbf16>
    %179 = vector.shape_cast %178 : vector<1x8x4xbf16> to vector<8x4xbf16>
    %180 = arith.truncf %177 : vector<4x352xf32> to vector<4x352xbf16>
    %cst_140 = arith.constant dense<0.000000e+00> : vector<8x352xf32>
    %181 = tpu.matmul %179, %180, %cst_140 {dimension_numbers = #tpu.dot_dimension_numbers<[1], [0], [0], [1], [0, 0, 1, 1], [], []>} : vector<8x4xbf16>, vector<4x352xbf16>, vector<8x352xf32> -> vector<8x352xf32>
    %182 = arith.addf %175, %181 : vector<8x352xf32>
    %c0_141 = arith.constant 0 : index
    %c0_142 = arith.constant 0 : index
    %c71 = arith.constant 71 : index
    %183 = vector.load %arg2[%c0_141, %c0_142, %c71] : memref<1x4x490xf32, #tpu.memory_space<vmem>>, vector<1x4x352xf32>
    %184 = vector.shape_cast %183 : vector<1x4x352xf32> to vector<4x352xf32>
    %c26_143 = arith.constant 26 : index
    %c0_144 = arith.constant 0 : index
    %c0_145 = arith.constant 0 : index
    %185 = vector.load %arg3[%c26_143, %c0_144, %c0_145] : memref<49x8x4xbf16, #tpu.memory_space<vmem>>, vector<1x8x4xbf16>
    %186 = vector.shape_cast %185 : vector<1x8x4xbf16> to vector<8x4xbf16>
    %187 = arith.truncf %184 : vector<4x352xf32> to vector<4x352xbf16>
    %cst_146 = arith.constant dense<0.000000e+00> : vector<8x352xf32>
    %188 = tpu.matmul %186, %187, %cst_146 {dimension_numbers = #tpu.dot_dimension_numbers<[1], [0], [0], [1], [0, 0, 1, 1], [], []>} : vector<8x4xbf16>, vector<4x352xbf16>, vector<8x352xf32> -> vector<8x352xf32>
    %189 = arith.addf %182, %188 : vector<8x352xf32>
    %c0_147 = arith.constant 0 : index
    %c0_148 = arith.constant 0 : index
    %c72 = arith.constant 72 : index
    %190 = vector.load %arg2[%c0_147, %c0_148, %c72] : memref<1x4x490xf32, #tpu.memory_space<vmem>>, vector<1x4x352xf32>
    %191 = vector.shape_cast %190 : vector<1x4x352xf32> to vector<4x352xf32>
    %c27_149 = arith.constant 27 : index
    %c0_150 = arith.constant 0 : index
    %c0_151 = arith.constant 0 : index
    %192 = vector.load %arg3[%c27_149, %c0_150, %c0_151] : memref<49x8x4xbf16, #tpu.memory_space<vmem>>, vector<1x8x4xbf16>
    %193 = vector.shape_cast %192 : vector<1x8x4xbf16> to vector<8x4xbf16>
    %194 = arith.truncf %191 : vector<4x352xf32> to vector<4x352xbf16>
    %cst_152 = arith.constant dense<0.000000e+00> : vector<8x352xf32>
    %195 = tpu.matmul %193, %194, %cst_152 {dimension_numbers = #tpu.dot_dimension_numbers<[1], [0], [0], [1], [0, 0, 1, 1], [], []>} : vector<8x4xbf16>, vector<4x352xbf16>, vector<8x352xf32> -> vector<8x352xf32>
    %196 = arith.addf %189, %195 : vector<8x352xf32>
    %c0_153 = arith.constant 0 : index
    %c0_154 = arith.constant 0 : index
    %c88 = arith.constant 88 : index
    %197 = vector.load %arg2[%c0_153, %c0_154, %c88] : memref<1x4x490xf32, #tpu.memory_space<vmem>>, vector<1x4x352xf32>
    %198 = vector.shape_cast %197 : vector<1x4x352xf32> to vector<4x352xf32>
    %c28_155 = arith.constant 28 : index
    %c0_156 = arith.constant 0 : index
    %c0_157 = arith.constant 0 : index
    %199 = vector.load %arg3[%c28_155, %c0_156, %c0_157] : memref<49x8x4xbf16, #tpu.memory_space<vmem>>, vector<1x8x4xbf16>
    %200 = vector.shape_cast %199 : vector<1x8x4xbf16> to vector<8x4xbf16>
    %201 = arith.truncf %198 : vector<4x352xf32> to vector<4x352xbf16>
    %cst_158 = arith.constant dense<0.000000e+00> : vector<8x352xf32>
    %202 = tpu.matmul %200, %201, %cst_158 {dimension_numbers = #tpu.dot_dimension_numbers<[1], [0], [0], [1], [0, 0, 1, 1], [], []>} : vector<8x4xbf16>, vector<4x352xbf16>, vector<8x352xf32> -> vector<8x352xf32>
    %203 = arith.addf %196, %202 : vector<8x352xf32>
    %c0_159 = arith.constant 0 : index
    %c0_160 = arith.constant 0 : index
    %c89 = arith.constant 89 : index
    %204 = vector.load %arg2[%c0_159, %c0_160, %c89] : memref<1x4x490xf32, #tpu.memory_space<vmem>>, vector<1x4x352xf32>
    %205 = vector.shape_cast %204 : vector<1x4x352xf32> to vector<4x352xf32>
    %c29 = arith.constant 29 : index
    %c0_161 = arith.constant 0 : index
    %c0_162 = arith.constant 0 : index
    %206 = vector.load %arg3[%c29, %c0_161, %c0_162] : memref<49x8x4xbf16, #tpu.memory_space<vmem>>, vector<1x8x4xbf16>
    %207 = vector.shape_cast %206 : vector<1x8x4xbf16> to vector<8x4xbf16>
    %208 = arith.truncf %205 : vector<4x352xf32> to vector<4x352xbf16>
    %cst_163 = arith.constant dense<0.000000e+00> : vector<8x352xf32>
    %209 = tpu.matmul %207, %208, %cst_163 {dimension_numbers = #tpu.dot_dimension_numbers<[1], [0], [0], [1], [0, 0, 1, 1], [], []>} : vector<8x4xbf16>, vector<4x352xbf16>, vector<8x352xf32> -> vector<8x352xf32>
    %210 = arith.addf %203, %209 : vector<8x352xf32>
    %c0_164 = arith.constant 0 : index
    %c0_165 = arith.constant 0 : index
    %c90 = arith.constant 90 : index
    %211 = vector.load %arg2[%c0_164, %c0_165, %c90] : memref<1x4x490xf32, #tpu.memory_space<vmem>>, vector<1x4x352xf32>
    %212 = vector.shape_cast %211 : vector<1x4x352xf32> to vector<4x352xf32>
    %c30 = arith.constant 30 : index
    %c0_166 = arith.constant 0 : index
    %c0_167 = arith.constant 0 : index
    %213 = vector.load %arg3[%c30, %c0_166, %c0_167] : memref<49x8x4xbf16, #tpu.memory_space<vmem>>, vector<1x8x4xbf16>
    %214 = vector.shape_cast %213 : vector<1x8x4xbf16> to vector<8x4xbf16>
    %215 = arith.truncf %212 : vector<4x352xf32> to vector<4x352xbf16>
    %cst_168 = arith.constant dense<0.000000e+00> : vector<8x352xf32>
    %216 = tpu.matmul %214, %215, %cst_168 {dimension_numbers = #tpu.dot_dimension_numbers<[1], [0], [0], [1], [0, 0, 1, 1], [], []>} : vector<8x4xbf16>, vector<4x352xbf16>, vector<8x352xf32> -> vector<8x352xf32>
    %217 = arith.addf %210, %216 : vector<8x352xf32>
    %c0_169 = arith.constant 0 : index
    %c0_170 = arith.constant 0 : index
    %c91 = arith.constant 91 : index
    %218 = vector.load %arg2[%c0_169, %c0_170, %c91] : memref<1x4x490xf32, #tpu.memory_space<vmem>>, vector<1x4x352xf32>
    %219 = vector.shape_cast %218 : vector<1x4x352xf32> to vector<4x352xf32>
    %c31 = arith.constant 31 : index
    %c0_171 = arith.constant 0 : index
    %c0_172 = arith.constant 0 : index
    %220 = vector.load %arg3[%c31, %c0_171, %c0_172] : memref<49x8x4xbf16, #tpu.memory_space<vmem>>, vector<1x8x4xbf16>
    %221 = vector.shape_cast %220 : vector<1x8x4xbf16> to vector<8x4xbf16>
    %222 = arith.truncf %219 : vector<4x352xf32> to vector<4x352xbf16>
    %cst_173 = arith.constant dense<0.000000e+00> : vector<8x352xf32>
    %223 = tpu.matmul %221, %222, %cst_173 {dimension_numbers = #tpu.dot_dimension_numbers<[1], [0], [0], [1], [0, 0, 1, 1], [], []>} : vector<8x4xbf16>, vector<4x352xbf16>, vector<8x352xf32> -> vector<8x352xf32>
    %224 = arith.addf %217, %223 : vector<8x352xf32>
    %c0_174 = arith.constant 0 : index
    %c0_175 = arith.constant 0 : index
    %c92 = arith.constant 92 : index
    %225 = vector.load %arg2[%c0_174, %c0_175, %c92] : memref<1x4x490xf32, #tpu.memory_space<vmem>>, vector<1x4x352xf32>
    %226 = vector.shape_cast %225 : vector<1x4x352xf32> to vector<4x352xf32>
    %c32 = arith.constant 32 : index
    %c0_176 = arith.constant 0 : index
    %c0_177 = arith.constant 0 : index
    %227 = vector.load %arg3[%c32, %c0_176, %c0_177] : memref<49x8x4xbf16, #tpu.memory_space<vmem>>, vector<1x8x4xbf16>
    %228 = vector.shape_cast %227 : vector<1x8x4xbf16> to vector<8x4xbf16>
    %229 = arith.truncf %226 : vector<4x352xf32> to vector<4x352xbf16>
    %cst_178 = arith.constant dense<0.000000e+00> : vector<8x352xf32>
    %230 = tpu.matmul %228, %229, %cst_178 {dimension_numbers = #tpu.dot_dimension_numbers<[1], [0], [0], [1], [0, 0, 1, 1], [], []>} : vector<8x4xbf16>, vector<4x352xbf16>, vector<8x352xf32> -> vector<8x352xf32>
    %231 = arith.addf %224, %230 : vector<8x352xf32>
    %c0_179 = arith.constant 0 : index
    %c0_180 = arith.constant 0 : index
    %c93 = arith.constant 93 : index
    %232 = vector.load %arg2[%c0_179, %c0_180, %c93] : memref<1x4x490xf32, #tpu.memory_space<vmem>>, vector<1x4x352xf32>
    %233 = vector.shape_cast %232 : vector<1x4x352xf32> to vector<4x352xf32>
    %c33 = arith.constant 33 : index
    %c0_181 = arith.constant 0 : index
    %c0_182 = arith.constant 0 : index
    %234 = vector.load %arg3[%c33, %c0_181, %c0_182] : memref<49x8x4xbf16, #tpu.memory_space<vmem>>, vector<1x8x4xbf16>
    %235 = vector.shape_cast %234 : vector<1x8x4xbf16> to vector<8x4xbf16>
    %236 = arith.truncf %233 : vector<4x352xf32> to vector<4x352xbf16>
    %cst_183 = arith.constant dense<0.000000e+00> : vector<8x352xf32>
    %237 = tpu.matmul %235, %236, %cst_183 {dimension_numbers = #tpu.dot_dimension_numbers<[1], [0], [0], [1], [0, 0, 1, 1], [], []>} : vector<8x4xbf16>, vector<4x352xbf16>, vector<8x352xf32> -> vector<8x352xf32>
    %238 = arith.addf %231, %237 : vector<8x352xf32>
    %c0_184 = arith.constant 0 : index
    %c0_185 = arith.constant 0 : index
    %c94 = arith.constant 94 : index
    %239 = vector.load %arg2[%c0_184, %c0_185, %c94] : memref<1x4x490xf32, #tpu.memory_space<vmem>>, vector<1x4x352xf32>
    %240 = vector.shape_cast %239 : vector<1x4x352xf32> to vector<4x352xf32>
    %c34 = arith.constant 34 : index
    %c0_186 = arith.constant 0 : index
    %c0_187 = arith.constant 0 : index
    %241 = vector.load %arg3[%c34, %c0_186, %c0_187] : memref<49x8x4xbf16, #tpu.memory_space<vmem>>, vector<1x8x4xbf16>
    %242 = vector.shape_cast %241 : vector<1x8x4xbf16> to vector<8x4xbf16>
    %243 = arith.truncf %240 : vector<4x352xf32> to vector<4x352xbf16>
    %cst_188 = arith.constant dense<0.000000e+00> : vector<8x352xf32>
    %244 = tpu.matmul %242, %243, %cst_188 {dimension_numbers = #tpu.dot_dimension_numbers<[1], [0], [0], [1], [0, 0, 1, 1], [], []>} : vector<8x4xbf16>, vector<4x352xbf16>, vector<8x352xf32> -> vector<8x352xf32>
    %245 = arith.addf %238, %244 : vector<8x352xf32>
    %c0_189 = arith.constant 0 : index
    %c0_190 = arith.constant 0 : index
    %c110 = arith.constant 110 : index
    %246 = vector.load %arg2[%c0_189, %c0_190, %c110] : memref<1x4x490xf32, #tpu.memory_space<vmem>>, vector<1x4x352xf32>
    %247 = vector.shape_cast %246 : vector<1x4x352xf32> to vector<4x352xf32>
    %c35 = arith.constant 35 : index
    %c0_191 = arith.constant 0 : index
    %c0_192 = arith.constant 0 : index
    %248 = vector.load %arg3[%c35, %c0_191, %c0_192] : memref<49x8x4xbf16, #tpu.memory_space<vmem>>, vector<1x8x4xbf16>
    %249 = vector.shape_cast %248 : vector<1x8x4xbf16> to vector<8x4xbf16>
    %250 = arith.truncf %247 : vector<4x352xf32> to vector<4x352xbf16>
    %cst_193 = arith.constant dense<0.000000e+00> : vector<8x352xf32>
    %251 = tpu.matmul %249, %250, %cst_193 {dimension_numbers = #tpu.dot_dimension_numbers<[1], [0], [0], [1], [0, 0, 1, 1], [], []>} : vector<8x4xbf16>, vector<4x352xbf16>, vector<8x352xf32> -> vector<8x352xf32>
    %252 = arith.addf %245, %251 : vector<8x352xf32>
    %c0_194 = arith.constant 0 : index
    %c0_195 = arith.constant 0 : index
    %c111 = arith.constant 111 : index
    %253 = vector.load %arg2[%c0_194, %c0_195, %c111] : memref<1x4x490xf32, #tpu.memory_space<vmem>>, vector<1x4x352xf32>
    %254 = vector.shape_cast %253 : vector<1x4x352xf32> to vector<4x352xf32>
    %c36 = arith.constant 36 : index
    %c0_196 = arith.constant 0 : index
    %c0_197 = arith.constant 0 : index
    %255 = vector.load %arg3[%c36, %c0_196, %c0_197] : memref<49x8x4xbf16, #tpu.memory_space<vmem>>, vector<1x8x4xbf16>
    %256 = vector.shape_cast %255 : vector<1x8x4xbf16> to vector<8x4xbf16>
    %257 = arith.truncf %254 : vector<4x352xf32> to vector<4x352xbf16>
    %cst_198 = arith.constant dense<0.000000e+00> : vector<8x352xf32>
    %258 = tpu.matmul %256, %257, %cst_198 {dimension_numbers = #tpu.dot_dimension_numbers<[1], [0], [0], [1], [0, 0, 1, 1], [], []>} : vector<8x4xbf16>, vector<4x352xbf16>, vector<8x352xf32> -> vector<8x352xf32>
    %259 = arith.addf %252, %258 : vector<8x352xf32>
    %c0_199 = arith.constant 0 : index
    %c0_200 = arith.constant 0 : index
    %c112 = arith.constant 112 : index
    %260 = vector.load %arg2[%c0_199, %c0_200, %c112] : memref<1x4x490xf32, #tpu.memory_space<vmem>>, vector<1x4x352xf32>
    %261 = vector.shape_cast %260 : vector<1x4x352xf32> to vector<4x352xf32>
    %c37 = arith.constant 37 : index
    %c0_201 = arith.constant 0 : index
    %c0_202 = arith.constant 0 : index
    %262 = vector.load %arg3[%c37, %c0_201, %c0_202] : memref<49x8x4xbf16, #tpu.memory_space<vmem>>, vector<1x8x4xbf16>
    %263 = vector.shape_cast %262 : vector<1x8x4xbf16> to vector<8x4xbf16>
    %264 = arith.truncf %261 : vector<4x352xf32> to vector<4x352xbf16>
    %cst_203 = arith.constant dense<0.000000e+00> : vector<8x352xf32>
    %265 = tpu.matmul %263, %264, %cst_203 {dimension_numbers = #tpu.dot_dimension_numbers<[1], [0], [0], [1], [0, 0, 1, 1], [], []>} : vector<8x4xbf16>, vector<4x352xbf16>, vector<8x352xf32> -> vector<8x352xf32>
    %266 = arith.addf %259, %265 : vector<8x352xf32>
    %c0_204 = arith.constant 0 : index
    %c0_205 = arith.constant 0 : index
    %c113 = arith.constant 113 : index
    %267 = vector.load %arg2[%c0_204, %c0_205, %c113] : memref<1x4x490xf32, #tpu.memory_space<vmem>>, vector<1x4x352xf32>
    %268 = vector.shape_cast %267 : vector<1x4x352xf32> to vector<4x352xf32>
    %c38 = arith.constant 38 : index
    %c0_206 = arith.constant 0 : index
    %c0_207 = arith.constant 0 : index
    %269 = vector.load %arg3[%c38, %c0_206, %c0_207] : memref<49x8x4xbf16, #tpu.memory_space<vmem>>, vector<1x8x4xbf16>
    %270 = vector.shape_cast %269 : vector<1x8x4xbf16> to vector<8x4xbf16>
    %271 = arith.truncf %268 : vector<4x352xf32> to vector<4x352xbf16>
    %cst_208 = arith.constant dense<0.000000e+00> : vector<8x352xf32>
    %272 = tpu.matmul %270, %271, %cst_208 {dimension_numbers = #tpu.dot_dimension_numbers<[1], [0], [0], [1], [0, 0, 1, 1], [], []>} : vector<8x4xbf16>, vector<4x352xbf16>, vector<8x352xf32> -> vector<8x352xf32>
    %273 = arith.addf %266, %272 : vector<8x352xf32>
    %c0_209 = arith.constant 0 : index
    %c0_210 = arith.constant 0 : index
    %c114 = arith.constant 114 : index
    %274 = vector.load %arg2[%c0_209, %c0_210, %c114] : memref<1x4x490xf32, #tpu.memory_space<vmem>>, vector<1x4x352xf32>
    %275 = vector.shape_cast %274 : vector<1x4x352xf32> to vector<4x352xf32>
    %c39 = arith.constant 39 : index
    %c0_211 = arith.constant 0 : index
    %c0_212 = arith.constant 0 : index
    %276 = vector.load %arg3[%c39, %c0_211, %c0_212] : memref<49x8x4xbf16, #tpu.memory_space<vmem>>, vector<1x8x4xbf16>
    %277 = vector.shape_cast %276 : vector<1x8x4xbf16> to vector<8x4xbf16>
    %278 = arith.truncf %275 : vector<4x352xf32> to vector<4x352xbf16>
    %cst_213 = arith.constant dense<0.000000e+00> : vector<8x352xf32>
    %279 = tpu.matmul %277, %278, %cst_213 {dimension_numbers = #tpu.dot_dimension_numbers<[1], [0], [0], [1], [0, 0, 1, 1], [], []>} : vector<8x4xbf16>, vector<4x352xbf16>, vector<8x352xf32> -> vector<8x352xf32>
    %280 = arith.addf %273, %279 : vector<8x352xf32>
    %c0_214 = arith.constant 0 : index
    %c0_215 = arith.constant 0 : index
    %c115 = arith.constant 115 : index
    %281 = vector.load %arg2[%c0_214, %c0_215, %c115] : memref<1x4x490xf32, #tpu.memory_space<vmem>>, vector<1x4x352xf32>
    %282 = vector.shape_cast %281 : vector<1x4x352xf32> to vector<4x352xf32>
    %c40 = arith.constant 40 : index
    %c0_216 = arith.constant 0 : index
    %c0_217 = arith.constant 0 : index
    %283 = vector.load %arg3[%c40, %c0_216, %c0_217] : memref<49x8x4xbf16, #tpu.memory_space<vmem>>, vector<1x8x4xbf16>
    %284 = vector.shape_cast %283 : vector<1x8x4xbf16> to vector<8x4xbf16>
    %285 = arith.truncf %282 : vector<4x352xf32> to vector<4x352xbf16>
    %cst_218 = arith.constant dense<0.000000e+00> : vector<8x352xf32>
    %286 = tpu.matmul %284, %285, %cst_218 {dimension_numbers = #tpu.dot_dimension_numbers<[1], [0], [0], [1], [0, 0, 1, 1], [], []>} : vector<8x4xbf16>, vector<4x352xbf16>, vector<8x352xf32> -> vector<8x352xf32>
    %287 = arith.addf %280, %286 : vector<8x352xf32>
    %c0_219 = arith.constant 0 : index
    %c0_220 = arith.constant 0 : index
    %c116 = arith.constant 116 : index
    %288 = vector.load %arg2[%c0_219, %c0_220, %c116] : memref<1x4x490xf32, #tpu.memory_space<vmem>>, vector<1x4x352xf32>
    %289 = vector.shape_cast %288 : vector<1x4x352xf32> to vector<4x352xf32>
    %c41 = arith.constant 41 : index
    %c0_221 = arith.constant 0 : index
    %c0_222 = arith.constant 0 : index
    %290 = vector.load %arg3[%c41, %c0_221, %c0_222] : memref<49x8x4xbf16, #tpu.memory_space<vmem>>, vector<1x8x4xbf16>
    %291 = vector.shape_cast %290 : vector<1x8x4xbf16> to vector<8x4xbf16>
    %292 = arith.truncf %289 : vector<4x352xf32> to vector<4x352xbf16>
    %cst_223 = arith.constant dense<0.000000e+00> : vector<8x352xf32>
    %293 = tpu.matmul %291, %292, %cst_223 {dimension_numbers = #tpu.dot_dimension_numbers<[1], [0], [0], [1], [0, 0, 1, 1], [], []>} : vector<8x4xbf16>, vector<4x352xbf16>, vector<8x352xf32> -> vector<8x352xf32>
    %294 = arith.addf %287, %293 : vector<8x352xf32>
    %c0_224 = arith.constant 0 : index
    %c0_225 = arith.constant 0 : index
    %c132 = arith.constant 132 : index
    %295 = vector.load %arg2[%c0_224, %c0_225, %c132] : memref<1x4x490xf32, #tpu.memory_space<vmem>>, vector<1x4x352xf32>
    %296 = vector.shape_cast %295 : vector<1x4x352xf32> to vector<4x352xf32>
    %c42 = arith.constant 42 : index
    %c0_226 = arith.constant 0 : index
    %c0_227 = arith.constant 0 : index
    %297 = vector.load %arg3[%c42, %c0_226, %c0_227] : memref<49x8x4xbf16, #tpu.memory_space<vmem>>, vector<1x8x4xbf16>
    %298 = vector.shape_cast %297 : vector<1x8x4xbf16> to vector<8x4xbf16>
    %299 = arith.truncf %296 : vector<4x352xf32> to vector<4x352xbf16>
    %cst_228 = arith.constant dense<0.000000e+00> : vector<8x352xf32>
    %300 = tpu.matmul %298, %299, %cst_228 {dimension_numbers = #tpu.dot_dimension_numbers<[1], [0], [0], [1], [0, 0, 1, 1], [], []>} : vector<8x4xbf16>, vector<4x352xbf16>, vector<8x352xf32> -> vector<8x352xf32>
    %301 = arith.addf %294, %300 : vector<8x352xf32>
    %c0_229 = arith.constant 0 : index
    %c0_230 = arith.constant 0 : index
    %c133 = arith.constant 133 : index
    %302 = vector.load %arg2[%c0_229, %c0_230, %c133] : memref<1x4x490xf32, #tpu.memory_space<vmem>>, vector<1x4x352xf32>
    %303 = vector.shape_cast %302 : vector<1x4x352xf32> to vector<4x352xf32>
    %c43 = arith.constant 43 : index
    %c0_231 = arith.constant 0 : index
    %c0_232 = arith.constant 0 : index
    %304 = vector.load %arg3[%c43, %c0_231, %c0_232] : memref<49x8x4xbf16, #tpu.memory_space<vmem>>, vector<1x8x4xbf16>
    %305 = vector.shape_cast %304 : vector<1x8x4xbf16> to vector<8x4xbf16>
    %306 = arith.truncf %303 : vector<4x352xf32> to vector<4x352xbf16>
    %cst_233 = arith.constant dense<0.000000e+00> : vector<8x352xf32>
    %307 = tpu.matmul %305, %306, %cst_233 {dimension_numbers = #tpu.dot_dimension_numbers<[1], [0], [0], [1], [0, 0, 1, 1], [], []>} : vector<8x4xbf16>, vector<4x352xbf16>, vector<8x352xf32> -> vector<8x352xf32>
    %308 = arith.addf %301, %307 : vector<8x352xf32>
    %c0_234 = arith.constant 0 : index
    %c0_235 = arith.constant 0 : index
    %c134 = arith.constant 134 : index
    %309 = vector.load %arg2[%c0_234, %c0_235, %c134] : memref<1x4x490xf32, #tpu.memory_space<vmem>>, vector<1x4x352xf32>
    %310 = vector.shape_cast %309 : vector<1x4x352xf32> to vector<4x352xf32>
    %c44_236 = arith.constant 44 : index
    %c0_237 = arith.constant 0 : index
    %c0_238 = arith.constant 0 : index
    %311 = vector.load %arg3[%c44_236, %c0_237, %c0_238] : memref<49x8x4xbf16, #tpu.memory_space<vmem>>, vector<1x8x4xbf16>
    %312 = vector.shape_cast %311 : vector<1x8x4xbf16> to vector<8x4xbf16>
    %313 = arith.truncf %310 : vector<4x352xf32> to vector<4x352xbf16>
    %cst_239 = arith.constant dense<0.000000e+00> : vector<8x352xf32>
    %314 = tpu.matmul %312, %313, %cst_239 {dimension_numbers = #tpu.dot_dimension_numbers<[1], [0], [0], [1], [0, 0, 1, 1], [], []>} : vector<8x4xbf16>, vector<4x352xbf16>, vector<8x352xf32> -> vector<8x352xf32>
    %315 = arith.addf %308, %314 : vector<8x352xf32>
    %c0_240 = arith.constant 0 : index
    %c0_241 = arith.constant 0 : index
    %c135 = arith.constant 135 : index
    %316 = vector.load %arg2[%c0_240, %c0_241, %c135] : memref<1x4x490xf32, #tpu.memory_space<vmem>>, vector<1x4x352xf32>
    %317 = vector.shape_cast %316 : vector<1x4x352xf32> to vector<4x352xf32>
    %c45_242 = arith.constant 45 : index
    %c0_243 = arith.constant 0 : index
    %c0_244 = arith.constant 0 : index
    %318 = vector.load %arg3[%c45_242, %c0_243, %c0_244] : memref<49x8x4xbf16, #tpu.memory_space<vmem>>, vector<1x8x4xbf16>
    %319 = vector.shape_cast %318 : vector<1x8x4xbf16> to vector<8x4xbf16>
    %320 = arith.truncf %317 : vector<4x352xf32> to vector<4x352xbf16>
    %cst_245 = arith.constant dense<0.000000e+00> : vector<8x352xf32>
    %321 = tpu.matmul %319, %320, %cst_245 {dimension_numbers = #tpu.dot_dimension_numbers<[1], [0], [0], [1], [0, 0, 1, 1], [], []>} : vector<8x4xbf16>, vector<4x352xbf16>, vector<8x352xf32> -> vector<8x352xf32>
    %322 = arith.addf %315, %321 : vector<8x352xf32>
    %c0_246 = arith.constant 0 : index
    %c0_247 = arith.constant 0 : index
    %c136 = arith.constant 136 : index
    %323 = vector.load %arg2[%c0_246, %c0_247, %c136] : memref<1x4x490xf32, #tpu.memory_space<vmem>>, vector<1x4x352xf32>
    %324 = vector.shape_cast %323 : vector<1x4x352xf32> to vector<4x352xf32>
    %c46_248 = arith.constant 46 : index
    %c0_249 = arith.constant 0 : index
    %c0_250 = arith.constant 0 : index
    %325 = vector.load %arg3[%c46_248, %c0_249, %c0_250] : memref<49x8x4xbf16, #tpu.memory_space<vmem>>, vector<1x8x4xbf16>
    %326 = vector.shape_cast %325 : vector<1x8x4xbf16> to vector<8x4xbf16>
    %327 = arith.truncf %324 : vector<4x352xf32> to vector<4x352xbf16>
    %cst_251 = arith.constant dense<0.000000e+00> : vector<8x352xf32>
    %328 = tpu.matmul %326, %327, %cst_251 {dimension_numbers = #tpu.dot_dimension_numbers<[1], [0], [0], [1], [0, 0, 1, 1], [], []>} : vector<8x4xbf16>, vector<4x352xbf16>, vector<8x352xf32> -> vector<8x352xf32>
    %329 = arith.addf %322, %328 : vector<8x352xf32>
    %c0_252 = arith.constant 0 : index
    %c0_253 = arith.constant 0 : index
    %c137 = arith.constant 137 : index
    %330 = vector.load %arg2[%c0_252, %c0_253, %c137] : memref<1x4x490xf32, #tpu.memory_space<vmem>>, vector<1x4x352xf32>
    %331 = vector.shape_cast %330 : vector<1x4x352xf32> to vector<4x352xf32>
    %c47_254 = arith.constant 47 : index
    %c0_255 = arith.constant 0 : index
    %c0_256 = arith.constant 0 : index
    %332 = vector.load %arg3[%c47_254, %c0_255, %c0_256] : memref<49x8x4xbf16, #tpu.memory_space<vmem>>, vector<1x8x4xbf16>
    %333 = vector.shape_cast %332 : vector<1x8x4xbf16> to vector<8x4xbf16>
    %334 = arith.truncf %331 : vector<4x352xf32> to vector<4x352xbf16>
    %cst_257 = arith.constant dense<0.000000e+00> : vector<8x352xf32>
    %335 = tpu.matmul %333, %334, %cst_257 {dimension_numbers = #tpu.dot_dimension_numbers<[1], [0], [0], [1], [0, 0, 1, 1], [], []>} : vector<8x4xbf16>, vector<4x352xbf16>, vector<8x352xf32> -> vector<8x352xf32>
    %336 = arith.addf %329, %335 : vector<8x352xf32>
    %c0_258 = arith.constant 0 : index
    %c0_259 = arith.constant 0 : index
    %c138 = arith.constant 138 : index
    %337 = vector.load %arg2[%c0_258, %c0_259, %c138] : memref<1x4x490xf32, #tpu.memory_space<vmem>>, vector<1x4x352xf32>
    %338 = vector.shape_cast %337 : vector<1x4x352xf32> to vector<4x352xf32>
    %c48_260 = arith.constant 48 : index
    %c0_261 = arith.constant 0 : index
    %c0_262 = arith.constant 0 : index
    %339 = vector.load %arg3[%c48_260, %c0_261, %c0_262] : memref<49x8x4xbf16, #tpu.memory_space<vmem>>, vector<1x8x4xbf16>
    %340 = vector.shape_cast %339 : vector<1x8x4xbf16> to vector<8x4xbf16>
    %341 = arith.truncf %338 : vector<4x352xf32> to vector<4x352xbf16>
    %cst_263 = arith.constant dense<0.000000e+00> : vector<8x352xf32>
    %342 = tpu.matmul %340, %341, %cst_263 {dimension_numbers = #tpu.dot_dimension_numbers<[1], [0], [0], [1], [0, 0, 1, 1], [], []>} : vector<8x4xbf16>, vector<4x352xbf16>, vector<8x352xf32> -> vector<8x352xf32>
    %343 = arith.addf %336, %342 : vector<8x352xf32>
    %c0_264 = arith.constant 0 : index
    %c0_265 = arith.constant 0 : index
    %344 = vector.load %arg4[%c0_264, %c0_265] : memref<8x1xf32, #tpu.memory_space<vmem>>, vector<8x1xf32>
    %345 = vector.broadcast %344 : vector<8x1xf32> to vector<8x352xf32>
    %346 = arith.addf %343, %345 : vector<8x352xf32>
    %347 = tpu.iota {dimensions = array<i32: 1>} : vector<8x352xi32>
    %c22_i32 = arith.constant 22 : i32
    %c0_i32 = arith.constant 0 : i32
    %348 = arith.cmpi eq, %c22_i32, %c0_i32 : i32
    %c1_i32 = arith.constant 1 : i32
    %349 = arith.select %348, %c1_i32, %c22_i32 : i32
    %350 = vector.broadcast %349 : i32 to vector<8x352xi32>
    %351 = arith.remsi %347, %350 : vector<8x352xi32>
    %c0_i32_266 = arith.constant 0 : i32
    %352 = vector.broadcast %c0_i32_266 : i32 to vector<8x352xi32>
    %353 = arith.cmpi ne, %351, %352 : vector<8x352xi32>
    %c0_i32_267 = arith.constant 0 : i32
    %354 = vector.broadcast %c0_i32_267 : i32 to vector<8x352xi32>
    %355 = arith.cmpi slt, %351, %354 : vector<8x352xi32>
    %c0_i32_268 = arith.constant 0 : i32
    %356 = arith.cmpi slt, %349, %c0_i32_268 : i32
    %357 = vector.broadcast %356 : i1 to vector<8x352xi1>
    %358 = vector.broadcast %357 : vector<8x352xi1> to vector<8x352xi1>
    %359 = arith.xori %355, %358 : vector<8x352xi1>
    %360 = arith.andi %359, %353 : vector<8x352xi1>
    %361 = vector.broadcast %349 : i32 to vector<8x352xi32>
    %362 = arith.addi %351, %361 : vector<8x352xi32>
    %363 = arith.select %360, %362, %351 : vector<8x352xi1>, vector<8x352xi32>
    %c16_i32 = arith.constant 16 : i32
    %364 = vector.broadcast %c16_i32 : i32 to vector<8x352xi32>
    %365 = arith.cmpi slt, %363, %364 : vector<8x352xi32>
    %cst_269 = arith.constant 0.000000e+00 : f32
    %366 = vector.broadcast %cst_269 : f32 to vector<8x352xf32>
    %367 = arith.select %365, %346, %366 : vector<8x352xi1>, vector<8x352xf32>
    %cst_270 = arith.constant dense<0.000000e+00> : vector<8xf32>
    %368 = vector.multi_reduction <add>, %367, %cst_270 [1] : vector<8x352xf32> to vector<8xf32>
    %369 = vector.shape_cast %368 : vector<8xf32> to vector<8x1xf32>
    %cst_271 = arith.constant 2.560000e+02 : f32
    %370 = vector.broadcast %cst_271 : f32 to vector<8x1xf32>
    %371 = arith.divf %369, %370 : vector<8x1xf32>
    %372 = vector.broadcast %371 : vector<8x1xf32> to vector<8x352xf32>
    %373 = arith.subf %346, %372 : vector<8x352xf32>
    %cst_272 = arith.constant 0.000000e+00 : f32
    %374 = vector.broadcast %cst_272 : f32 to vector<8x352xf32>
    %375 = arith.select %365, %373, %374 : vector<8x352xi1>, vector<8x352xf32>
    %376 = arith.mulf %375, %375 : vector<8x352xf32>
    %cst_273 = arith.constant dense<0.000000e+00> : vector<8xf32>
    %377 = vector.multi_reduction <add>, %376, %cst_273 [1] : vector<8x352xf32> to vector<8xf32>
    %378 = vector.shape_cast %377 : vector<8xf32> to vector<8x1xf32>
    %cst_274 = arith.constant 2.560000e+02 : f32
    %379 = vector.broadcast %cst_274 : f32 to vector<8x1xf32>
    %380 = arith.divf %378, %379 : vector<8x1xf32>
    %381 = vector.broadcast %371 : vector<8x1xf32> to vector<8x352xf32>
    %382 = arith.subf %346, %381 : vector<8x352xf32>
    %cst_275 = arith.constant 9.99999974E-6 : f32
    %383 = vector.broadcast %cst_275 : f32 to vector<8x1xf32>
    %384 = arith.addf %380, %383 : vector<8x1xf32>
    %385 = math.rsqrt %384 : vector<8x1xf32>
    %386 = vector.broadcast %385 : vector<8x1xf32> to vector<8x352xf32>
    %387 = arith.mulf %382, %386 : vector<8x352xf32>
    %cst_276 = arith.constant 5.000000e-01 : f32
    %388 = vector.broadcast %cst_276 : f32 to vector<8x352xf32>
    %389 = arith.mulf %388, %387 : vector<8x352xf32>
    %cst_277 = arith.constant 0.707106769 : f32
    %390 = vector.broadcast %cst_277 : f32 to vector<8x352xf32>
    %391 = arith.mulf %387, %390 : vector<8x352xf32>
    %392 = math.erf %391 : vector<8x352xf32>
    %cst_278 = arith.constant 1.000000e+00 : f32
    %393 = vector.broadcast %cst_278 : f32 to vector<8x352xf32>
    %394 = arith.addf %393, %392 : vector<8x352xf32>
    %395 = arith.mulf %389, %394 : vector<8x352xf32>
    %c0_279 = arith.constant 0 : index
    %c0_280 = arith.constant 0 : index
    %c0_281 = arith.constant 0 : index
    %396 = vector.load %arg5[%c0_279, %c0_280, %c0_281] : memref<1x8x352xf32, #tpu.memory_space<vmem>>, vector<1x8x352xf32>
    %397 = vector.shape_cast %396 : vector<1x8x352xf32> to vector<8x352xf32>
    %398 = vector.shape_cast %395 : vector<8x352xf32> to vector<1x8x352xf32>
    tpu.vector_store %arg5[%c0_279, %c0_280, %c0_281], %398 {strides = array<i32>} : memref<1x8x352xf32, #tpu.memory_space<vmem>>, vector<1x8x352xf32>,
    return
  }
  func.func @transform_0(%arg0: i32, %arg1: i32) -> (i32, i32, i32) {
    %c0_i32 = arith.constant 0 : i32
    %c0_i32_0 = arith.constant 0 : i32
    %c0_i32_1 = arith.constant 0 : i32
    return %arg0, %c0_i32, %c0_i32_0 : i32, i32, i32
  }
  func.func @transform_1(%arg0: i32, %arg1: i32) -> (i32, i32, i32) {
    %c0_i32 = arith.constant 0 : i32
    %c0_i32_0 = arith.constant 0 : i32
    %c0_i32_1 = arith.constant 0 : i32
    return %c0_i32, %arg1, %c0_i32_0 : i32, i32, i32
  }
  func.func @transform_2(%arg0: i32, %arg1: i32) -> (i32, i32) {
    %c0_i32 = arith.constant 0 : i32
    %c0_i32_0 = arith.constant 0 : i32
    return %arg1, %c0_i32 : i32, i32
  }
  func.func @transform_3(%arg0: i32, %arg1: i32) -> (i32, i32, i32) {
    %c0_i32 = arith.constant 0 : i32
    %c0_i32_0 = arith.constant 0 : i32
    return %arg0, %arg1, %c0_i32 : i32, i32, i32
  }
}

module attributes {stable_mosaic.version = 11 : i64} {
  func.func @_conv_in_gelu_kernel(%arg0: i32, %arg1: i32, %arg2: memref<1x32x82xf32, #tpu.memory_space<vmem>>, %arg3: memref<9x16x8xbf16, #tpu.memory_space<vmem>>, %arg4: memref<16x1xf32, #tpu.memory_space<vmem>>, %arg5: memref<1x16x72xf32, #tpu.memory_space<vmem>>) attributes {dimension_semantics = [#tpu.dimension_semantics<parallel>, #tpu.dimension_semantics<parallel>], iteration_bounds = array<i64: 2, 1>, scalar_prefetch = 0 : i64, scratch_operands = 0 : i64, tpu.core_type = #tpu.core_type<tc>, window_params = [{transform_indices = @transform_0, window_bounds = array<i64: 1, 32, 82>}, {transform_indices = @transform_1, window_bounds = array<i64: 9, 16, 8>}, {transform_indices = @transform_2, window_bounds = array<i64: 16, 1>}, {transform_indices = @transform_3, window_bounds = array<i64: 1, 16, 72>}]} {
    %cst = arith.constant 0.000000e+00 : f32
    %0 = vector.broadcast %cst : f32 to vector<16x72xf32>
    %c0 = arith.constant 0 : index
    %c0_0 = arith.constant 0 : index
    %c0_1 = arith.constant 0 : index
    %1 = vector.load %arg2[%c0, %c0_0, %c0_1] : memref<1x32x82xf32, #tpu.memory_space<vmem>>, vector<1x8x72xf32>
    %2 = vector.shape_cast %1 : vector<1x8x72xf32> to vector<8x72xf32>
    %c0_2 = arith.constant 0 : index
    %c0_3 = arith.constant 0 : index
    %c0_4 = arith.constant 0 : index
    %3 = vector.load %arg3[%c0_2, %c0_3, %c0_4] : memref<9x16x8xbf16, #tpu.memory_space<vmem>>, vector<1x16x8xbf16>
    %4 = vector.shape_cast %3 : vector<1x16x8xbf16> to vector<16x8xbf16>
    %5 = arith.truncf %2 : vector<8x72xf32> to vector<8x72xbf16>
    %cst_5 = arith.constant dense<0.000000e+00> : vector<16x72xf32>
    %6 = tpu.matmul %4, %5, %cst_5 {dimension_numbers = #tpu.dot_dimension_numbers<[1], [0], [0], [1], [0, 0, 1, 1], [], []>} : vector<16x8xbf16>, vector<8x72xbf16>, vector<16x72xf32> -> vector<16x72xf32>
    %7 = arith.addf %0, %6 : vector<16x72xf32>
    %c0_6 = arith.constant 0 : index
    %c8 = arith.constant 8 : index
    %c0_7 = arith.constant 0 : index
    %8 = vector.load %arg2[%c0_6, %c8, %c0_7] : memref<1x32x82xf32, #tpu.memory_space<vmem>>, vector<1x8x72xf32>
    %9 = vector.shape_cast %8 : vector<1x8x72xf32> to vector<8x72xf32>
    %c1 = arith.constant 1 : index
    %c0_8 = arith.constant 0 : index
    %c0_9 = arith.constant 0 : index
    %10 = vector.load %arg3[%c1, %c0_8, %c0_9] : memref<9x16x8xbf16, #tpu.memory_space<vmem>>, vector<1x16x8xbf16>
    %11 = vector.shape_cast %10 : vector<1x16x8xbf16> to vector<16x8xbf16>
    %12 = arith.truncf %9 : vector<8x72xf32> to vector<8x72xbf16>
    %cst_10 = arith.constant dense<0.000000e+00> : vector<16x72xf32>
    %13 = tpu.matmul %11, %12, %cst_10 {dimension_numbers = #tpu.dot_dimension_numbers<[1], [0], [0], [1], [0, 0, 1, 1], [], []>} : vector<16x8xbf16>, vector<8x72xbf16>, vector<16x72xf32> -> vector<16x72xf32>
    %14 = arith.addf %7, %13 : vector<16x72xf32>
    %c0_11 = arith.constant 0 : index
    %c0_12 = arith.constant 0 : index
    %c1_13 = arith.constant 1 : index
    %15 = vector.load %arg2[%c0_11, %c0_12, %c1_13] : memref<1x32x82xf32, #tpu.memory_space<vmem>>, vector<1x8x72xf32>
    %16 = vector.shape_cast %15 : vector<1x8x72xf32> to vector<8x72xf32>
    %c2 = arith.constant 2 : index
    %c0_14 = arith.constant 0 : index
    %c0_15 = arith.constant 0 : index
    %17 = vector.load %arg3[%c2, %c0_14, %c0_15] : memref<9x16x8xbf16, #tpu.memory_space<vmem>>, vector<1x16x8xbf16>
    %18 = vector.shape_cast %17 : vector<1x16x8xbf16> to vector<16x8xbf16>
    %19 = arith.truncf %16 : vector<8x72xf32> to vector<8x72xbf16>
    %cst_16 = arith.constant dense<0.000000e+00> : vector<16x72xf32>
    %20 = tpu.matmul %18, %19, %cst_16 {dimension_numbers = #tpu.dot_dimension_numbers<[1], [0], [0], [1], [0, 0, 1, 1], [], []>} : vector<16x8xbf16>, vector<8x72xbf16>, vector<16x72xf32> -> vector<16x72xf32>
    %21 = arith.addf %14, %20 : vector<16x72xf32>
    %c0_17 = arith.constant 0 : index
    %c16 = arith.constant 16 : index
    %c0_18 = arith.constant 0 : index
    %22 = vector.load %arg2[%c0_17, %c16, %c0_18] : memref<1x32x82xf32, #tpu.memory_space<vmem>>, vector<1x8x72xf32>
    %23 = vector.shape_cast %22 : vector<1x8x72xf32> to vector<8x72xf32>
    %c3 = arith.constant 3 : index
    %c0_19 = arith.constant 0 : index
    %c0_20 = arith.constant 0 : index
    %24 = vector.load %arg3[%c3, %c0_19, %c0_20] : memref<9x16x8xbf16, #tpu.memory_space<vmem>>, vector<1x16x8xbf16>
    %25 = vector.shape_cast %24 : vector<1x16x8xbf16> to vector<16x8xbf16>
    %26 = arith.truncf %23 : vector<8x72xf32> to vector<8x72xbf16>
    %cst_21 = arith.constant dense<0.000000e+00> : vector<16x72xf32>
    %27 = tpu.matmul %25, %26, %cst_21 {dimension_numbers = #tpu.dot_dimension_numbers<[1], [0], [0], [1], [0, 0, 1, 1], [], []>} : vector<16x8xbf16>, vector<8x72xbf16>, vector<16x72xf32> -> vector<16x72xf32>
    %28 = arith.addf %21, %27 : vector<16x72xf32>
    %c0_22 = arith.constant 0 : index
    %c24 = arith.constant 24 : index
    %c0_23 = arith.constant 0 : index
    %29 = vector.load %arg2[%c0_22, %c24, %c0_23] : memref<1x32x82xf32, #tpu.memory_space<vmem>>, vector<1x8x72xf32>
    %30 = vector.shape_cast %29 : vector<1x8x72xf32> to vector<8x72xf32>
    %c4 = arith.constant 4 : index
    %c0_24 = arith.constant 0 : index
    %c0_25 = arith.constant 0 : index
    %31 = vector.load %arg3[%c4, %c0_24, %c0_25] : memref<9x16x8xbf16, #tpu.memory_space<vmem>>, vector<1x16x8xbf16>
    %32 = vector.shape_cast %31 : vector<1x16x8xbf16> to vector<16x8xbf16>
    %33 = arith.truncf %30 : vector<8x72xf32> to vector<8x72xbf16>
    %cst_26 = arith.constant dense<0.000000e+00> : vector<16x72xf32>
    %34 = tpu.matmul %32, %33, %cst_26 {dimension_numbers = #tpu.dot_dimension_numbers<[1], [0], [0], [1], [0, 0, 1, 1], [], []>} : vector<16x8xbf16>, vector<8x72xbf16>, vector<16x72xf32> -> vector<16x72xf32>
    %35 = arith.addf %28, %34 : vector<16x72xf32>
    %c0_27 = arith.constant 0 : index
    %c16_28 = arith.constant 16 : index
    %c1_29 = arith.constant 1 : index
    %36 = vector.load %arg2[%c0_27, %c16_28, %c1_29] : memref<1x32x82xf32, #tpu.memory_space<vmem>>, vector<1x8x72xf32>
    %37 = vector.shape_cast %36 : vector<1x8x72xf32> to vector<8x72xf32>
    %c5 = arith.constant 5 : index
    %c0_30 = arith.constant 0 : index
    %c0_31 = arith.constant 0 : index
    %38 = vector.load %arg3[%c5, %c0_30, %c0_31] : memref<9x16x8xbf16, #tpu.memory_space<vmem>>, vector<1x16x8xbf16>
    %39 = vector.shape_cast %38 : vector<1x16x8xbf16> to vector<16x8xbf16>
    %40 = arith.truncf %37 : vector<8x72xf32> to vector<8x72xbf16>
    %cst_32 = arith.constant dense<0.000000e+00> : vector<16x72xf32>
    %41 = tpu.matmul %39, %40, %cst_32 {dimension_numbers = #tpu.dot_dimension_numbers<[1], [0], [0], [1], [0, 0, 1, 1], [], []>} : vector<16x8xbf16>, vector<8x72xbf16>, vector<16x72xf32> -> vector<16x72xf32>
    %42 = arith.addf %35, %41 : vector<16x72xf32>
    %c0_33 = arith.constant 0 : index
    %c0_34 = arith.constant 0 : index
    %c9 = arith.constant 9 : index
    %43 = vector.load %arg2[%c0_33, %c0_34, %c9] : memref<1x32x82xf32, #tpu.memory_space<vmem>>, vector<1x8x72xf32>
    %44 = vector.shape_cast %43 : vector<1x8x72xf32> to vector<8x72xf32>
    %c6 = arith.constant 6 : index
    %c0_35 = arith.constant 0 : index
    %c0_36 = arith.constant 0 : index
    %45 = vector.load %arg3[%c6, %c0_35, %c0_36] : memref<9x16x8xbf16, #tpu.memory_space<vmem>>, vector<1x16x8xbf16>
    %46 = vector.shape_cast %45 : vector<1x16x8xbf16> to vector<16x8xbf16>
    %47 = arith.truncf %44 : vector<8x72xf32> to vector<8x72xbf16>
    %cst_37 = arith.constant dense<0.000000e+00> : vector<16x72xf32>
    %48 = tpu.matmul %46, %47, %cst_37 {dimension_numbers = #tpu.dot_dimension_numbers<[1], [0], [0], [1], [0, 0, 1, 1], [], []>} : vector<16x8xbf16>, vector<8x72xbf16>, vector<16x72xf32> -> vector<16x72xf32>
    %49 = arith.addf %42, %48 : vector<16x72xf32>
    %c0_38 = arith.constant 0 : index
    %c8_39 = arith.constant 8 : index
    %c9_40 = arith.constant 9 : index
    %50 = vector.load %arg2[%c0_38, %c8_39, %c9_40] : memref<1x32x82xf32, #tpu.memory_space<vmem>>, vector<1x8x72xf32>
    %51 = vector.shape_cast %50 : vector<1x8x72xf32> to vector<8x72xf32>
    %c7 = arith.constant 7 : index
    %c0_41 = arith.constant 0 : index
    %c0_42 = arith.constant 0 : index
    %52 = vector.load %arg3[%c7, %c0_41, %c0_42] : memref<9x16x8xbf16, #tpu.memory_space<vmem>>, vector<1x16x8xbf16>
    %53 = vector.shape_cast %52 : vector<1x16x8xbf16> to vector<16x8xbf16>
    %54 = arith.truncf %51 : vector<8x72xf32> to vector<8x72xbf16>
    %cst_43 = arith.constant dense<0.000000e+00> : vector<16x72xf32>
    %55 = tpu.matmul %53, %54, %cst_43 {dimension_numbers = #tpu.dot_dimension_numbers<[1], [0], [0], [1], [0, 0, 1, 1], [], []>} : vector<16x8xbf16>, vector<8x72xbf16>, vector<16x72xf32> -> vector<16x72xf32>
    %56 = arith.addf %49, %55 : vector<16x72xf32>
    %c0_44 = arith.constant 0 : index
    %c0_45 = arith.constant 0 : index
    %c10 = arith.constant 10 : index
    %57 = vector.load %arg2[%c0_44, %c0_45, %c10] : memref<1x32x82xf32, #tpu.memory_space<vmem>>, vector<1x8x72xf32>
    %58 = vector.shape_cast %57 : vector<1x8x72xf32> to vector<8x72xf32>
    %c8_46 = arith.constant 8 : index
    %c0_47 = arith.constant 0 : index
    %c0_48 = arith.constant 0 : index
    %59 = vector.load %arg3[%c8_46, %c0_47, %c0_48] : memref<9x16x8xbf16, #tpu.memory_space<vmem>>, vector<1x16x8xbf16>
    %60 = vector.shape_cast %59 : vector<1x16x8xbf16> to vector<16x8xbf16>
    %61 = arith.truncf %58 : vector<8x72xf32> to vector<8x72xbf16>
    %cst_49 = arith.constant dense<0.000000e+00> : vector<16x72xf32>
    %62 = tpu.matmul %60, %61, %cst_49 {dimension_numbers = #tpu.dot_dimension_numbers<[1], [0], [0], [1], [0, 0, 1, 1], [], []>} : vector<16x8xbf16>, vector<8x72xbf16>, vector<16x72xf32> -> vector<16x72xf32>
    %63 = arith.addf %56, %62 : vector<16x72xf32>
    %c0_50 = arith.constant 0 : index
    %c0_51 = arith.constant 0 : index
    %64 = vector.load %arg4[%c0_50, %c0_51] : memref<16x1xf32, #tpu.memory_space<vmem>>, vector<16x1xf32>
    %65 = vector.broadcast %64 : vector<16x1xf32> to vector<16x72xf32>
    %66 = arith.addf %63, %65 : vector<16x72xf32>
    %67 = tpu.iota {dimensions = array<i32: 1>} : vector<16x72xi32>
    %c9_i32 = arith.constant 9 : i32
    %c0_i32 = arith.constant 0 : i32
    %68 = arith.cmpi eq, %c9_i32, %c0_i32 : i32
    %c1_i32 = arith.constant 1 : i32
    %69 = arith.select %68, %c1_i32, %c9_i32 : i32
    %70 = vector.broadcast %69 : i32 to vector<16x72xi32>
    %71 = arith.remsi %67, %70 : vector<16x72xi32>
    %c0_i32_52 = arith.constant 0 : i32
    %72 = vector.broadcast %c0_i32_52 : i32 to vector<16x72xi32>
    %73 = arith.cmpi ne, %71, %72 : vector<16x72xi32>
    %c0_i32_53 = arith.constant 0 : i32
    %74 = vector.broadcast %c0_i32_53 : i32 to vector<16x72xi32>
    %75 = arith.cmpi slt, %71, %74 : vector<16x72xi32>
    %c0_i32_54 = arith.constant 0 : i32
    %76 = arith.cmpi slt, %69, %c0_i32_54 : i32
    %77 = vector.broadcast %76 : i1 to vector<16x72xi1>
    %78 = vector.broadcast %77 : vector<16x72xi1> to vector<16x72xi1>
    %79 = arith.xori %75, %78 : vector<16x72xi1>
    %80 = arith.andi %79, %73 : vector<16x72xi1>
    %81 = vector.broadcast %69 : i32 to vector<16x72xi32>
    %82 = arith.addi %71, %81 : vector<16x72xi32>
    %83 = arith.select %80, %82, %71 : vector<16x72xi1>, vector<16x72xi32>
    %c8_i32 = arith.constant 8 : i32
    %84 = vector.broadcast %c8_i32 : i32 to vector<16x72xi32>
    %85 = arith.cmpi slt, %83, %84 : vector<16x72xi32>
    %cst_55 = arith.constant 0.000000e+00 : f32
    %86 = vector.broadcast %cst_55 : f32 to vector<16x72xf32>
    %87 = arith.select %85, %66, %86 : vector<16x72xi1>, vector<16x72xf32>
    %cst_56 = arith.constant dense<0.000000e+00> : vector<16xf32>
    %88 = vector.multi_reduction <add>, %87, %cst_56 [1] : vector<16x72xf32> to vector<16xf32>
    %89 = vector.shape_cast %88 : vector<16xf32> to vector<16x1xf32>
    %cst_57 = arith.constant 6.400000e+01 : f32
    %90 = vector.broadcast %cst_57 : f32 to vector<16x1xf32>
    %91 = arith.divf %89, %90 : vector<16x1xf32>
    %92 = vector.broadcast %91 : vector<16x1xf32> to vector<16x72xf32>
    %93 = arith.subf %66, %92 : vector<16x72xf32>
    %cst_58 = arith.constant 0.000000e+00 : f32
    %94 = vector.broadcast %cst_58 : f32 to vector<16x72xf32>
    %95 = arith.select %85, %93, %94 : vector<16x72xi1>, vector<16x72xf32>
    %96 = arith.mulf %95, %95 : vector<16x72xf32>
    %cst_59 = arith.constant dense<0.000000e+00> : vector<16xf32>
    %97 = vector.multi_reduction <add>, %96, %cst_59 [1] : vector<16x72xf32> to vector<16xf32>
    %98 = vector.shape_cast %97 : vector<16xf32> to vector<16x1xf32>
    %cst_60 = arith.constant 6.400000e+01 : f32
    %99 = vector.broadcast %cst_60 : f32 to vector<16x1xf32>
    %100 = arith.divf %98, %99 : vector<16x1xf32>
    %101 = vector.broadcast %91 : vector<16x1xf32> to vector<16x72xf32>
    %102 = arith.subf %66, %101 : vector<16x72xf32>
    %cst_61 = arith.constant 9.99999974E-6 : f32
    %103 = vector.broadcast %cst_61 : f32 to vector<16x1xf32>
    %104 = arith.addf %100, %103 : vector<16x1xf32>
    %105 = math.rsqrt %104 : vector<16x1xf32>
    %106 = vector.broadcast %105 : vector<16x1xf32> to vector<16x72xf32>
    %107 = arith.mulf %102, %106 : vector<16x72xf32>
    %cst_62 = arith.constant 5.000000e-01 : f32
    %108 = vector.broadcast %cst_62 : f32 to vector<16x72xf32>
    %109 = arith.mulf %108, %107 : vector<16x72xf32>
    %cst_63 = arith.constant 0.707106769 : f32
    %110 = vector.broadcast %cst_63 : f32 to vector<16x72xf32>
    %111 = arith.mulf %107, %110 : vector<16x72xf32>
    %112 = math.erf %111 : vector<16x72xf32>
    %cst_64 = arith.constant 1.000000e+00 : f32
    %113 = vector.broadcast %cst_64 : f32 to vector<16x72xf32>
    %114 = arith.addf %113, %112 : vector<16x72xf32>
    %115 = arith.mulf %109, %114 : vector<16x72xf32>
    %c0_65 = arith.constant 0 : index
    %c0_66 = arith.constant 0 : index
    %c0_67 = arith.constant 0 : index
    %116 = vector.load %arg5[%c0_65, %c0_66, %c0_67] : memref<1x16x72xf32, #tpu.memory_space<vmem>>, vector<1x16x72xf32>
    %117 = vector.shape_cast %116 : vector<1x16x72xf32> to vector<16x72xf32>
    %118 = vector.shape_cast %115 : vector<16x72xf32> to vector<1x16x72xf32>
    tpu.vector_store %arg5[%c0_65, %c0_66, %c0_67], %118 {strides = array<i32>} : memref<1x16x72xf32, #tpu.memory_space<vmem>>, vector<1x16x72xf32>,
    return
  }
  func.func @transform_0(%arg0: i32, %arg1: i32) -> (i32, i32, i32) {
    %c0_i32 = arith.constant 0 : i32
    %c0_i32_0 = arith.constant 0 : i32
    %c0_i32_1 = arith.constant 0 : i32
    return %arg0, %c0_i32, %c0_i32_0 : i32, i32, i32
  }
  func.func @transform_1(%arg0: i32, %arg1: i32) -> (i32, i32, i32) {
    %c0_i32 = arith.constant 0 : i32
    %c0_i32_0 = arith.constant 0 : i32
    %c0_i32_1 = arith.constant 0 : i32
    return %c0_i32, %arg1, %c0_i32_0 : i32, i32, i32
  }
  func.func @transform_2(%arg0: i32, %arg1: i32) -> (i32, i32) {
    %c0_i32 = arith.constant 0 : i32
    %c0_i32_0 = arith.constant 0 : i32
    return %arg1, %c0_i32 : i32, i32
  }
  func.func @transform_3(%arg0: i32, %arg1: i32) -> (i32, i32, i32) {
    %c0_i32 = arith.constant 0 : i32
    %c0_i32_0 = arith.constant 0 : i32
    return %arg0, %arg1, %c0_i32 : i32, i32, i32
  }
}

module attributes {stable_mosaic.version = 11 : i64} {
  func.func @_conv_in_gelu_kernel(%arg0: i32, %arg1: i32, %arg2: memref<1x64x26xf32, #tpu.memory_space<vmem>>, %arg3: memref<9x32x16xbf16, #tpu.memory_space<vmem>>, %arg4: memref<32x1xf32, #tpu.memory_space<vmem>>, %arg5: memref<1x32x20xf32, #tpu.memory_space<vmem>>) attributes {dimension_semantics = [#tpu.dimension_semantics<parallel>, #tpu.dimension_semantics<parallel>], iteration_bounds = array<i64: 2, 1>, scalar_prefetch = 0 : i64, scratch_operands = 0 : i64, tpu.core_type = #tpu.core_type<tc>, window_params = [{transform_indices = @transform_0, window_bounds = array<i64: 1, 64, 26>}, {transform_indices = @transform_1, window_bounds = array<i64: 9, 32, 16>}, {transform_indices = @transform_2, window_bounds = array<i64: 32, 1>}, {transform_indices = @transform_3, window_bounds = array<i64: 1, 32, 20>}]} {
    %cst = arith.constant 0.000000e+00 : f32
    %0 = vector.broadcast %cst : f32 to vector<32x20xf32>
    %c0 = arith.constant 0 : index
    %c0_0 = arith.constant 0 : index
    %c0_1 = arith.constant 0 : index
    %1 = vector.load %arg2[%c0, %c0_0, %c0_1] : memref<1x64x26xf32, #tpu.memory_space<vmem>>, vector<1x16x20xf32>
    %2 = vector.shape_cast %1 : vector<1x16x20xf32> to vector<16x20xf32>
    %c0_2 = arith.constant 0 : index
    %c0_3 = arith.constant 0 : index
    %c0_4 = arith.constant 0 : index
    %3 = vector.load %arg3[%c0_2, %c0_3, %c0_4] : memref<9x32x16xbf16, #tpu.memory_space<vmem>>, vector<1x32x16xbf16>
    %4 = vector.shape_cast %3 : vector<1x32x16xbf16> to vector<32x16xbf16>
    %5 = arith.truncf %2 : vector<16x20xf32> to vector<16x20xbf16>
    %cst_5 = arith.constant dense<0.000000e+00> : vector<32x20xf32>
    %6 = tpu.matmul %4, %5, %cst_5 {dimension_numbers = #tpu.dot_dimension_numbers<[1], [0], [0], [1], [0, 0, 1, 1], [], []>} : vector<32x16xbf16>, vector<16x20xbf16>, vector<32x20xf32> -> vector<32x20xf32>
    %7 = arith.addf %0, %6 : vector<32x20xf32>
    %c0_6 = arith.constant 0 : index
    %c16 = arith.constant 16 : index
    %c0_7 = arith.constant 0 : index
    %8 = vector.load %arg2[%c0_6, %c16, %c0_7] : memref<1x64x26xf32, #tpu.memory_space<vmem>>, vector<1x16x20xf32>
    %9 = vector.shape_cast %8 : vector<1x16x20xf32> to vector<16x20xf32>
    %c1 = arith.constant 1 : index
    %c0_8 = arith.constant 0 : index
    %c0_9 = arith.constant 0 : index
    %10 = vector.load %arg3[%c1, %c0_8, %c0_9] : memref<9x32x16xbf16, #tpu.memory_space<vmem>>, vector<1x32x16xbf16>
    %11 = vector.shape_cast %10 : vector<1x32x16xbf16> to vector<32x16xbf16>
    %12 = arith.truncf %9 : vector<16x20xf32> to vector<16x20xbf16>
    %cst_10 = arith.constant dense<0.000000e+00> : vector<32x20xf32>
    %13 = tpu.matmul %11, %12, %cst_10 {dimension_numbers = #tpu.dot_dimension_numbers<[1], [0], [0], [1], [0, 0, 1, 1], [], []>} : vector<32x16xbf16>, vector<16x20xbf16>, vector<32x20xf32> -> vector<32x20xf32>
    %14 = arith.addf %7, %13 : vector<32x20xf32>
    %c0_11 = arith.constant 0 : index
    %c0_12 = arith.constant 0 : index
    %c1_13 = arith.constant 1 : index
    %15 = vector.load %arg2[%c0_11, %c0_12, %c1_13] : memref<1x64x26xf32, #tpu.memory_space<vmem>>, vector<1x16x20xf32>
    %16 = vector.shape_cast %15 : vector<1x16x20xf32> to vector<16x20xf32>
    %c2 = arith.constant 2 : index
    %c0_14 = arith.constant 0 : index
    %c0_15 = arith.constant 0 : index
    %17 = vector.load %arg3[%c2, %c0_14, %c0_15] : memref<9x32x16xbf16, #tpu.memory_space<vmem>>, vector<1x32x16xbf16>
    %18 = vector.shape_cast %17 : vector<1x32x16xbf16> to vector<32x16xbf16>
    %19 = arith.truncf %16 : vector<16x20xf32> to vector<16x20xbf16>
    %cst_16 = arith.constant dense<0.000000e+00> : vector<32x20xf32>
    %20 = tpu.matmul %18, %19, %cst_16 {dimension_numbers = #tpu.dot_dimension_numbers<[1], [0], [0], [1], [0, 0, 1, 1], [], []>} : vector<32x16xbf16>, vector<16x20xbf16>, vector<32x20xf32> -> vector<32x20xf32>
    %21 = arith.addf %14, %20 : vector<32x20xf32>
    %c0_17 = arith.constant 0 : index
    %c32 = arith.constant 32 : index
    %c0_18 = arith.constant 0 : index
    %22 = vector.load %arg2[%c0_17, %c32, %c0_18] : memref<1x64x26xf32, #tpu.memory_space<vmem>>, vector<1x16x20xf32>
    %23 = vector.shape_cast %22 : vector<1x16x20xf32> to vector<16x20xf32>
    %c3 = arith.constant 3 : index
    %c0_19 = arith.constant 0 : index
    %c0_20 = arith.constant 0 : index
    %24 = vector.load %arg3[%c3, %c0_19, %c0_20] : memref<9x32x16xbf16, #tpu.memory_space<vmem>>, vector<1x32x16xbf16>
    %25 = vector.shape_cast %24 : vector<1x32x16xbf16> to vector<32x16xbf16>
    %26 = arith.truncf %23 : vector<16x20xf32> to vector<16x20xbf16>
    %cst_21 = arith.constant dense<0.000000e+00> : vector<32x20xf32>
    %27 = tpu.matmul %25, %26, %cst_21 {dimension_numbers = #tpu.dot_dimension_numbers<[1], [0], [0], [1], [0, 0, 1, 1], [], []>} : vector<32x16xbf16>, vector<16x20xbf16>, vector<32x20xf32> -> vector<32x20xf32>
    %28 = arith.addf %21, %27 : vector<32x20xf32>
    %c0_22 = arith.constant 0 : index
    %c48 = arith.constant 48 : index
    %c0_23 = arith.constant 0 : index
    %29 = vector.load %arg2[%c0_22, %c48, %c0_23] : memref<1x64x26xf32, #tpu.memory_space<vmem>>, vector<1x16x20xf32>
    %30 = vector.shape_cast %29 : vector<1x16x20xf32> to vector<16x20xf32>
    %c4 = arith.constant 4 : index
    %c0_24 = arith.constant 0 : index
    %c0_25 = arith.constant 0 : index
    %31 = vector.load %arg3[%c4, %c0_24, %c0_25] : memref<9x32x16xbf16, #tpu.memory_space<vmem>>, vector<1x32x16xbf16>
    %32 = vector.shape_cast %31 : vector<1x32x16xbf16> to vector<32x16xbf16>
    %33 = arith.truncf %30 : vector<16x20xf32> to vector<16x20xbf16>
    %cst_26 = arith.constant dense<0.000000e+00> : vector<32x20xf32>
    %34 = tpu.matmul %32, %33, %cst_26 {dimension_numbers = #tpu.dot_dimension_numbers<[1], [0], [0], [1], [0, 0, 1, 1], [], []>} : vector<32x16xbf16>, vector<16x20xbf16>, vector<32x20xf32> -> vector<32x20xf32>
    %35 = arith.addf %28, %34 : vector<32x20xf32>
    %c0_27 = arith.constant 0 : index
    %c32_28 = arith.constant 32 : index
    %c1_29 = arith.constant 1 : index
    %36 = vector.load %arg2[%c0_27, %c32_28, %c1_29] : memref<1x64x26xf32, #tpu.memory_space<vmem>>, vector<1x16x20xf32>
    %37 = vector.shape_cast %36 : vector<1x16x20xf32> to vector<16x20xf32>
    %c5 = arith.constant 5 : index
    %c0_30 = arith.constant 0 : index
    %c0_31 = arith.constant 0 : index
    %38 = vector.load %arg3[%c5, %c0_30, %c0_31] : memref<9x32x16xbf16, #tpu.memory_space<vmem>>, vector<1x32x16xbf16>
    %39 = vector.shape_cast %38 : vector<1x32x16xbf16> to vector<32x16xbf16>
    %40 = arith.truncf %37 : vector<16x20xf32> to vector<16x20xbf16>
    %cst_32 = arith.constant dense<0.000000e+00> : vector<32x20xf32>
    %41 = tpu.matmul %39, %40, %cst_32 {dimension_numbers = #tpu.dot_dimension_numbers<[1], [0], [0], [1], [0, 0, 1, 1], [], []>} : vector<32x16xbf16>, vector<16x20xbf16>, vector<32x20xf32> -> vector<32x20xf32>
    %42 = arith.addf %35, %41 : vector<32x20xf32>
    %c0_33 = arith.constant 0 : index
    %c0_34 = arith.constant 0 : index
    %c5_35 = arith.constant 5 : index
    %43 = vector.load %arg2[%c0_33, %c0_34, %c5_35] : memref<1x64x26xf32, #tpu.memory_space<vmem>>, vector<1x16x20xf32>
    %44 = vector.shape_cast %43 : vector<1x16x20xf32> to vector<16x20xf32>
    %c6 = arith.constant 6 : index
    %c0_36 = arith.constant 0 : index
    %c0_37 = arith.constant 0 : index
    %45 = vector.load %arg3[%c6, %c0_36, %c0_37] : memref<9x32x16xbf16, #tpu.memory_space<vmem>>, vector<1x32x16xbf16>
    %46 = vector.shape_cast %45 : vector<1x32x16xbf16> to vector<32x16xbf16>
    %47 = arith.truncf %44 : vector<16x20xf32> to vector<16x20xbf16>
    %cst_38 = arith.constant dense<0.000000e+00> : vector<32x20xf32>
    %48 = tpu.matmul %46, %47, %cst_38 {dimension_numbers = #tpu.dot_dimension_numbers<[1], [0], [0], [1], [0, 0, 1, 1], [], []>} : vector<32x16xbf16>, vector<16x20xbf16>, vector<32x20xf32> -> vector<32x20xf32>
    %49 = arith.addf %42, %48 : vector<32x20xf32>
    %c0_39 = arith.constant 0 : index
    %c16_40 = arith.constant 16 : index
    %c5_41 = arith.constant 5 : index
    %50 = vector.load %arg2[%c0_39, %c16_40, %c5_41] : memref<1x64x26xf32, #tpu.memory_space<vmem>>, vector<1x16x20xf32>
    %51 = vector.shape_cast %50 : vector<1x16x20xf32> to vector<16x20xf32>
    %c7 = arith.constant 7 : index
    %c0_42 = arith.constant 0 : index
    %c0_43 = arith.constant 0 : index
    %52 = vector.load %arg3[%c7, %c0_42, %c0_43] : memref<9x32x16xbf16, #tpu.memory_space<vmem>>, vector<1x32x16xbf16>
    %53 = vector.shape_cast %52 : vector<1x32x16xbf16> to vector<32x16xbf16>
    %54 = arith.truncf %51 : vector<16x20xf32> to vector<16x20xbf16>
    %cst_44 = arith.constant dense<0.000000e+00> : vector<32x20xf32>
    %55 = tpu.matmul %53, %54, %cst_44 {dimension_numbers = #tpu.dot_dimension_numbers<[1], [0], [0], [1], [0, 0, 1, 1], [], []>} : vector<32x16xbf16>, vector<16x20xbf16>, vector<32x20xf32> -> vector<32x20xf32>
    %56 = arith.addf %49, %55 : vector<32x20xf32>
    %c0_45 = arith.constant 0 : index
    %c0_46 = arith.constant 0 : index
    %c6_47 = arith.constant 6 : index
    %57 = vector.load %arg2[%c0_45, %c0_46, %c6_47] : memref<1x64x26xf32, #tpu.memory_space<vmem>>, vector<1x16x20xf32>
    %58 = vector.shape_cast %57 : vector<1x16x20xf32> to vector<16x20xf32>
    %c8 = arith.constant 8 : index
    %c0_48 = arith.constant 0 : index
    %c0_49 = arith.constant 0 : index
    %59 = vector.load %arg3[%c8, %c0_48, %c0_49] : memref<9x32x16xbf16, #tpu.memory_space<vmem>>, vector<1x32x16xbf16>
    %60 = vector.shape_cast %59 : vector<1x32x16xbf16> to vector<32x16xbf16>
    %61 = arith.truncf %58 : vector<16x20xf32> to vector<16x20xbf16>
    %cst_50 = arith.constant dense<0.000000e+00> : vector<32x20xf32>
    %62 = tpu.matmul %60, %61, %cst_50 {dimension_numbers = #tpu.dot_dimension_numbers<[1], [0], [0], [1], [0, 0, 1, 1], [], []>} : vector<32x16xbf16>, vector<16x20xbf16>, vector<32x20xf32> -> vector<32x20xf32>
    %63 = arith.addf %56, %62 : vector<32x20xf32>
    %c0_51 = arith.constant 0 : index
    %c0_52 = arith.constant 0 : index
    %64 = vector.load %arg4[%c0_51, %c0_52] : memref<32x1xf32, #tpu.memory_space<vmem>>, vector<32x1xf32>
    %65 = vector.broadcast %64 : vector<32x1xf32> to vector<32x20xf32>
    %66 = arith.addf %63, %65 : vector<32x20xf32>
    %67 = tpu.iota {dimensions = array<i32: 1>} : vector<32x20xi32>
    %c5_i32 = arith.constant 5 : i32
    %c0_i32 = arith.constant 0 : i32
    %68 = arith.cmpi eq, %c5_i32, %c0_i32 : i32
    %c1_i32 = arith.constant 1 : i32
    %69 = arith.select %68, %c1_i32, %c5_i32 : i32
    %70 = vector.broadcast %69 : i32 to vector<32x20xi32>
    %71 = arith.remsi %67, %70 : vector<32x20xi32>
    %c0_i32_53 = arith.constant 0 : i32
    %72 = vector.broadcast %c0_i32_53 : i32 to vector<32x20xi32>
    %73 = arith.cmpi ne, %71, %72 : vector<32x20xi32>
    %c0_i32_54 = arith.constant 0 : i32
    %74 = vector.broadcast %c0_i32_54 : i32 to vector<32x20xi32>
    %75 = arith.cmpi slt, %71, %74 : vector<32x20xi32>
    %c0_i32_55 = arith.constant 0 : i32
    %76 = arith.cmpi slt, %69, %c0_i32_55 : i32
    %77 = vector.broadcast %76 : i1 to vector<32x20xi1>
    %78 = vector.broadcast %77 : vector<32x20xi1> to vector<32x20xi1>
    %79 = arith.xori %75, %78 : vector<32x20xi1>
    %80 = arith.andi %79, %73 : vector<32x20xi1>
    %81 = vector.broadcast %69 : i32 to vector<32x20xi32>
    %82 = arith.addi %71, %81 : vector<32x20xi32>
    %83 = arith.select %80, %82, %71 : vector<32x20xi1>, vector<32x20xi32>
    %c4_i32 = arith.constant 4 : i32
    %84 = vector.broadcast %c4_i32 : i32 to vector<32x20xi32>
    %85 = arith.cmpi slt, %83, %84 : vector<32x20xi32>
    %cst_56 = arith.constant 0.000000e+00 : f32
    %86 = vector.broadcast %cst_56 : f32 to vector<32x20xf32>
    %87 = arith.select %85, %66, %86 : vector<32x20xi1>, vector<32x20xf32>
    %cst_57 = arith.constant dense<0.000000e+00> : vector<32xf32>
    %88 = vector.multi_reduction <add>, %87, %cst_57 [1] : vector<32x20xf32> to vector<32xf32>
    %89 = vector.shape_cast %88 : vector<32xf32> to vector<32x1xf32>
    %cst_58 = arith.constant 1.600000e+01 : f32
    %90 = vector.broadcast %cst_58 : f32 to vector<32x1xf32>
    %91 = arith.divf %89, %90 : vector<32x1xf32>
    %92 = vector.broadcast %91 : vector<32x1xf32> to vector<32x20xf32>
    %93 = arith.subf %66, %92 : vector<32x20xf32>
    %cst_59 = arith.constant 0.000000e+00 : f32
    %94 = vector.broadcast %cst_59 : f32 to vector<32x20xf32>
    %95 = arith.select %85, %93, %94 : vector<32x20xi1>, vector<32x20xf32>
    %96 = arith.mulf %95, %95 : vector<32x20xf32>
    %cst_60 = arith.constant dense<0.000000e+00> : vector<32xf32>
    %97 = vector.multi_reduction <add>, %96, %cst_60 [1] : vector<32x20xf32> to vector<32xf32>
    %98 = vector.shape_cast %97 : vector<32xf32> to vector<32x1xf32>
    %cst_61 = arith.constant 1.600000e+01 : f32
    %99 = vector.broadcast %cst_61 : f32 to vector<32x1xf32>
    %100 = arith.divf %98, %99 : vector<32x1xf32>
    %101 = vector.broadcast %91 : vector<32x1xf32> to vector<32x20xf32>
    %102 = arith.subf %66, %101 : vector<32x20xf32>
    %cst_62 = arith.constant 9.99999974E-6 : f32
    %103 = vector.broadcast %cst_62 : f32 to vector<32x1xf32>
    %104 = arith.addf %100, %103 : vector<32x1xf32>
    %105 = math.rsqrt %104 : vector<32x1xf32>
    %106 = vector.broadcast %105 : vector<32x1xf32> to vector<32x20xf32>
    %107 = arith.mulf %102, %106 : vector<32x20xf32>
    %cst_63 = arith.constant 5.000000e-01 : f32
    %108 = vector.broadcast %cst_63 : f32 to vector<32x20xf32>
    %109 = arith.mulf %108, %107 : vector<32x20xf32>
    %cst_64 = arith.constant 0.707106769 : f32
    %110 = vector.broadcast %cst_64 : f32 to vector<32x20xf32>
    %111 = arith.mulf %107, %110 : vector<32x20xf32>
    %112 = math.erf %111 : vector<32x20xf32>
    %cst_65 = arith.constant 1.000000e+00 : f32
    %113 = vector.broadcast %cst_65 : f32 to vector<32x20xf32>
    %114 = arith.addf %113, %112 : vector<32x20xf32>
    %115 = arith.mulf %109, %114 : vector<32x20xf32>
    %c0_66 = arith.constant 0 : index
    %c0_67 = arith.constant 0 : index
    %c0_68 = arith.constant 0 : index
    %116 = vector.load %arg5[%c0_66, %c0_67, %c0_68] : memref<1x32x20xf32, #tpu.memory_space<vmem>>, vector<1x32x20xf32>
    %117 = vector.shape_cast %116 : vector<1x32x20xf32> to vector<32x20xf32>
    %118 = vector.shape_cast %115 : vector<32x20xf32> to vector<1x32x20xf32>
    tpu.vector_store %arg5[%c0_66, %c0_67, %c0_68], %118 {strides = array<i32>} : memref<1x32x20xf32, #tpu.memory_space<vmem>>, vector<1x32x20xf32>,
    return
  }
  func.func @transform_0(%arg0: i32, %arg1: i32) -> (i32, i32, i32) {
    %c0_i32 = arith.constant 0 : i32
    %c0_i32_0 = arith.constant 0 : i32
    %c0_i32_1 = arith.constant 0 : i32
    return %arg0, %c0_i32, %c0_i32_0 : i32, i32, i32
  }
  func.func @transform_1(%arg0: i32, %arg1: i32) -> (i32, i32, i32) {
    %c0_i32 = arith.constant 0 : i32
    %c0_i32_0 = arith.constant 0 : i32
    %c0_i32_1 = arith.constant 0 : i32
    return %c0_i32, %arg1, %c0_i32_0 : i32, i32, i32
  }
  func.func @transform_2(%arg0: i32, %arg1: i32) -> (i32, i32) {
    %c0_i32 = arith.constant 0 : i32
    %c0_i32_0 = arith.constant 0 : i32
    return %arg1, %c0_i32 : i32, i32
  }
  func.func @transform_3(%arg0: i32, %arg1: i32) -> (i32, i32, i32) {
    %c0_i32 = arith.constant 0 : i32
    %c0_i32_0 = arith.constant 0 : i32
    return %arg0, %arg1, %c0_i32 : i32, i32, i32
  }
}

</mosaic_0001>

<bundles_post_ra>
// kernel: ittr_stem_forward.4
= control target key start
LH: loop header
LB: loop body
LE: loop exit
PB: predicated region body
PF: predicated region fallthrough
CT: control target
= control target key end

     0   :  { %s1012_s12 = smov 0   ;;  %s1014_s13 = smov 0   ;;  %s1136_s0 = inlined_call_operand.vmem [shape: f32[2,32,82], index: 0, kind: input, shape index: {}]   ;;  %s1137_s1 = inlined_call_operand.vmem [shape: bf16[9,16,8], index: 1, kind: input, shape index: {}]   ;;  %s1138_s2 = inlined_call_operand.vmem [shape: f32[16,1], index: 2, kind: input, shape index: {}]   ;;  %s1139_s3 = inlined_call_operand.vmem [shape: f32[2,16,72], index: 3, kind: output, shape index: {}]  }
   0x1   :  { %s1016_s14 = smov 0  }
   0x2 LB: > { %s25_s15 = sadd.s32 1, %s981_s13  ;;  %p841_p0 = scmp.ge.s32.totalorder %s985_s14, 1  ;;  %s985_s14 = sphi %s1016_s14, %s13_s14   ;;  %s981_s13 = sphi %s1014_s13, %s1143_s13   ;;  %s977_s12 = sphi %s1012_s12, %s1142_s12  }
   0x3   : > { %p27_p1 = scmp.ge.s32.totalorder %s25_s15, 2  ;;  %p173_p2 = scmp.lt.s32.totalorder %s985_s14, 3 }
   0x5   : > { %s1145_s15 = smov (%p27_p1, %s25_s15), 0  ;;  %p174_p3 = pnand %p841_p0, %p173_p2 }
   0x6   : > { %p211_p4 = scmp.lt.s32.totalorder (!%p174_p3), %s977_s12, 1  ;;  %s987_s20 = smov (!%p174_p3), 127  }
   0x7   : > { %177 = sbr.rel (%p174_p3) target bundleno = 619 (0x26b), region = 32  ;;  %s988_s21 = smov (!%p174_p3), 119  }
   0x8   : > { %s989_s24 = smov (!%p174_p3), 118  }
   0xc   : > { %s1147_s12 = smov (!%p211_p4, %s977_s12), 1  ;;  %vm257_vm0 = vcmask 1043456   ;;  %v914_v6 = vld [vmem:[%s1137_s1 + $0x8] sm:$0xff]  ;;  %vm253_vm1 = vcmask 64512   ;;  %v913_v8 = vld [vmem:[%s1137_s1] sm:$0xff]  ;;  %v916_v11 = vld [vmem:[%s1137_s1 + $0x18] sm:$0xff]  ;;  %v541_v34 = vlaneseq }
   0xd   : > { %s911_s16 = sshll.u32 %s1147_s12, 5  ;;  %v917_v15 = vld [vmem:[%s1137_s1 + $0x20] sm:$0xff]  ;;  %v528_v19 = vld [vmem:[%s1138_s2 + $0x8] sm:$0xff]  ;;  %v990_v21 = vmov 0   ;;  %v915_v25 = vld [vmem:[%s1137_s1 + $0x10] sm:$0xff]  ;;  %vm580_vm8 = vcmask 588800  }
   0xe   : > { %s215_s19 = scalar_lea.vmem %s1136_s0, %s911_s16  ;;  %v921_v18 = vld [vmem:[%s1137_s1 + $0x40] sm:$0xff]  ;;  %952 = vset.pattern.permute.xlu0 %v990_v21  ;;  %951 = vset.pattern.permute.xlu2 %v990_v21  ;;  %v920_v27 = vld [vmem:[%s1137_s1 + $0x38] sm:$0xff]  ;;  %v918_v32 = vld [vmem:[%s1137_s1 + $0x28] sm:$0xff]  ;;  %v542_v35 = vand.u32 127, %v541_v34  ;;  %s912_s22 = sshll.u32 %s1147_s12, 4 }
   0xf   : > { %v239_v0 = vld [vmem:[%s215_s19] sm:$0xff]  ;;  %v243_v1 = vld [vmem:[%s215_s19 + $0x8] sm:$0xff]  ;;  %v333_v7 = vld [vmem:[%s215_s19 + $0x10] sm:$0xff]  ;;  %s236_s25 = scalar_lea.vmem %s1139_s3, %s912_s22 }
  0x10   : > { %v242_v2 = vpack.c.bf16 %v239_v0, %v239_v0  ;;  %v247_v3 = vpack.c.bf16 %v243_v1, %v243_v1  ;;  %v337_v9 = vpack.c.bf16 %v333_v7, %v333_v7  ;;  %v365_v12 = vld [vmem:[%s215_s19 + $0x18] sm:$0xff]  ;;  %v527_v20 = vld [vmem:[%s1138_s2] sm:$0xff]  ;;  %v919_v33 = vld [vmem:[%s1137_s1 + $0x30] sm:$0xff]  ;;  %v546_v36 = vand.u32 65535, %v542_v35 }
  0x11   : > { %v369_v13 = vpack.c.bf16 %v365_v12, %v365_v12  ;;  %v547_v37 = vshrl.u32 %v542_v35, 16 }
  0x12   : > { %309 = vrot.lane.b32.xlu0 %v242_v2, %s987_s20  ;;  %471 = vrot.lane.b32.xlu1 %v247_v3, %s988_s21  ;;  %v259_v4 = vsel %vm257_vm0, %v247_v3, 0  ;;  %v284_v5 = vsel %vm257_vm0, %v242_v2, 0  ;;  %v347_v10 = vsel %vm257_vm0, %v337_v9, 0  ;;  %v550_v38 = vmul.u32 58254, %v546_v36 }
  0x13   : > { %503 = vrot.lane.b32.xlu2 %v242_v2, %s989_s24  ;;  %268 = vmatpush.bf16.msra.mxu0 %v259_v4  ;;  %v379_v14 = vsel %vm257_vm0, %v369_v13, 0  ;;  %v549_v39 = vmul.u32 14564, %v546_v36  ;;  %v551_v40 = vmul.u32 14564, %v547_v37  ;;  %v552_v45 = vmul.u32 58254, %v547_v37 }
  0x14   : > { %293 = vmatpush.bf16.msra.mxu1 %v284_v5  ;;  %356 = vmatpush.bf16.msra.mxu3 %v347_v10  ;;  %v553_v41 = vshll.u32 %v550_v38, 16  ;;  %v554_v50 = vshrl.u32 %v550_v38, 16  ;;  %v991_v37 = vmov 64.0  }
  0x15   : > { %v555_v43 = vshll.u32 %v551_v40, 16  ;;  %v556_v53 = vshrl.u32 %v551_v40, 16  ;;  %953 = vrcp.f32 %v991_v37 }
  0x16   : > { %852 = vmatmul.msk.bf16.vlgmr.msra.gmra.mxu0 %vm253_vm1, %v914_v6  ;;  %vm557_vm2 = vc.u32 %v549_v39, %v553_v41  ;;  %v559_v44 = vadd.s32 %v553_v41, %v549_v39 }
  0x17   : > { %857 = vmatmul.msk.bf16.vlgmr.msra.gmra.mxu1 %vm253_vm1, %v913_v8  ;;  %871 = vmatmul.msk.bf16.vlgmr.msra.gmra.mxu3 %vm253_vm1, %v916_v11  ;;  %v558_v46 = vsel %vm557_vm2, 1, %v990_v21 }
  0x18   : > { %388 = vmatpush.bf16.msrb.mxu0 %v379_v14  ;;  %vm561_vm3 = vc.u32 %v559_v44, %v555_v43  ;;  %v560_v47 = vadd.s32 %v558_v46, %v552_v45 }
  0x19   : > { %v562_v48 = vsel %vm561_vm3, 1, %v990_v21 }
  0x1a   : > { %438 = vrot.lane.b32.xlu0 %v242_v2, %s988_s21  ;;  %406 = vrot.lane.b32.xlu1 %v337_v9, %s987_s20  ;;  %v564_v51 = vadd.s32 %v562_v48, %v560_v47 }
  0x1b   : > { %531 = vperm.xlu2 %951, %v527_v20   ;;  %v954_v38 = vpop.eup %953 }
  0x1c   : > { %v565_v54 = vadd.s32 %v564_v51, %v554_v50  ;;  %v588_v39 = vmul.f32 64.0, %v954_v38  ;;  %vm592_vm9 = vweird.f32 %v954_v38 }
  0x1e   : > { %v566_v56 = vadd.s32 %v565_v54, %v556_v53  ;;  %v589_v40 = vsub.f32 1.0, %v588_v39 }
  0x20   : > { %v567_v59 = vshrl.u32 %v566_v56, 3  ;;  %v590_v41 = vmul.f32 %v954_v38, %v589_v40 }
  0x22   : > { %536 = vperm.xlu0 %952, %v528_v19   ;;  %v568_v63 = vmul.u32 9, %v567_v59 }
  0x24   : > { %v569_v5 = vsub.s32 %v542_v35, %v568_v63 }
  0x26   : > { %878 = vmatmul.msk.bf16.vlgmr.msrb.gmra.mxu0 %vm253_vm1, %v917_v15  ;;  %vm572_vm4 = vcmp.ne.s32.totalorder %v569_v5, 0  ;;  %vm573_vm5 = vcmp.lt.s32.totalorder %v569_v5, 0  ;;  %v575_v11 = vadd.s32 9, %v569_v5 }
  0x27   : > { %vm574_vm6 = vmand %vm573_vm5, %vm572_vm4 }
  0x6d   : > { %v504_v16 = vpop.permute.xlu2 %503 }
  0x6e   : > { %v509_v17 = vsel %vm257_vm0, %v504_v16, 0 }
  0x6f   : > { %518 = vmatpush.bf16.msra.mxu0 %v509_v17 }
  0x72   : > { %906 = vmatmul.msk.bf16.vlgmr.msra.gmra.mxu0 %vm253_vm1, %v921_v18  ;;  %v576_v18 = vsel %vm574_vm6, %v575_v11, %v569_v5 }
  0x73   : > { %vm1087_vm7 = vcmp.lt.s32.totalorder %v576_v18, 8 }
  0x75   : > { %v532_v20 = vpop.permute.xlu2 %531 }
  0x84   : > { %v310_v22 = vpop.permute.xlu0 %309  ;;  %v472_v23 = vpop.permute.xlu1 %471 }
  0x85   : > { %v315_v24 = vsel %vm257_vm0, %v310_v22, 0  ;;  %v477_v26 = vsel %vm257_vm0, %v472_v23, 0 }
  0x86   : > { %324 = vmatpush.bf16.msra.mxu2 %v315_v24  ;;  %486 = vmatpush.bf16.msrb.mxu3 %v477_v26 }
  0x89   : > { %864 = vmatmul.msk.bf16.vlgmr.msra.gmra.mxu2 %vm253_vm1, %v915_v25  ;;  %899 = vmatmul.msk.bf16.vlgmr.msrb.gmra.mxu3 %vm253_vm1, %v920_v27 }
  0x8c   : > { %v439_v28 = vpop.permute.xlu0 %438  ;;  %v407_v29 = vpop.permute.xlu1 %406 }
  0x8d   : > { %v444_v30 = vsel %vm257_vm0, %v439_v28, 0  ;;  %v412_v31 = vsel %vm257_vm0, %v407_v29, 0 }
  0x8e   : > { %453 = vmatpush.bf16.msrb.mxu2 %v444_v30  ;;  %421 = vmatpush.bf16.msrb.mxu1 %v412_v31 }
  0x91   : > { %885 = vmatmul.msk.bf16.vlgmr.msrb.gmra.mxu1 %vm253_vm1, %v918_v32 }
  0x93   : > { %v270_v42 = vpop.f32.mrf.mxu0 }
  0x94   : > { %v295_v52 = vpop.f32.mrf.mxu1  ;;  %v537_v32 = vpop.permute.xlu0 %536 }
  0x95   : > { %v296_v60 = vadd.f32 %v295_v52, %v270_v42  ;;  %v591_v42 = vadd.f32 %v954_v38, %v590_v41 }
  0x97   : > { %v593_v43 = vsel %vm592_vm9, %v954_v38, %v591_v42 }
  0x99   : > { %892 = vmatmul.msk.bf16.vlgmr.msrb.gmra.mxu2 %vm253_vm1, %v919_v33 }
  0x9a   : > { %v358_v55 = vpop.f32.mrf.mxu3 }
  0x9b   : > { %v272_v49 = vpop.f32.mrf.mxu0 }
  0x9c   : > { %v297_v61 = vpop.f32.mrf.mxu1 }
  0x9d   : > { %v298_v4 = vadd.f32 %v297_v61, %v272_v49 }
  0xa2   : > { %v360_v0 = vpop.f32.mrf.mxu3 }
  0xa3   : > { %v390_v57 = vpop.f32.mrf.mxu0 }
  0xab   : > { %v392_v3 = vpop.f32.mrf.mxu0 }
  0xef   : > { %v520_v15 = vpop.f32.mrf.mxu0 }
  0xf7   : > { %v522_v31 = vpop.f32.mrf.mxu0 }
 0x10c   : > { %v326_v58 = vpop.f32.mrf.mxu2  ;;  %v488_v12 = vpop.f32.mrf.mxu3 }
 0x10d   : > { %v331_v62 = vadd.f32 %v326_v58, %v296_v60 }
 0x10e   : > { %v423_v6 = vpop.f32.mrf.mxu1 }
 0x10f   : > { %v363_v1 = vadd.f32 %v358_v55, %v331_v62 }
 0x111   : > { %v395_v7 = vadd.f32 %v390_v57, %v363_v1 }
 0x113   : > { %v428_v9 = vadd.f32 %v423_v6, %v395_v7 }
 0x114   : > { %v328_v2 = vpop.f32.mrf.mxu2  ;;  %v490_v28 = vpop.f32.mrf.mxu3 }
 0x115   : > { %v332_v8 = vadd.f32 %v328_v2, %v298_v4 }
 0x116   : > { %v425_v19 = vpop.f32.mrf.mxu1 }
 0x117   : > { %v364_v10 = vadd.f32 %v360_v0, %v332_v8 }
 0x119   : > { %v396_v16 = vadd.f32 %v392_v3, %v364_v10 }
 0x11b   : > { %v429_v23 = vadd.f32 %v425_v19, %v396_v16 }
 0x11c   : > { %v455_v13 = vpop.f32.mrf.mxu2 }
 0x11d   : > { %v460_v14 = vadd.f32 %v455_v13, %v428_v9 }
 0x11f   : > { %v493_v17 = vadd.f32 %v488_v12, %v460_v14 }
 0x121   : > { %v525_v21 = vadd.f32 %v520_v15, %v493_v17 }
 0x123   : > { %v539_v24 = vadd.f32 %v532_v20, %v525_v21 }
 0x124   : > { %v457_v25 = vpop.f32.mrf.mxu2 }
 0x125   : > { %v461_v26 = vadd.f32 %v457_v25, %v429_v23  ;;  %v578_v27 = vsel %vm1087_vm7, %v539_v24, 0.0 }
 0x126   : > { %v581_v29 = vsel %vm580_vm8, %v578_v27, 0.0 }
 0x127   : > { %v494_v30 = vadd.f32 %v490_v28, %v461_v26  ;;  %582 = vadd.xlane.f32.xlu1 %v581_v29 }
 0x129   : > { %v526_v33 = vadd.f32 %v522_v31, %v494_v30 }
 0x12b   : > { %v540_v34 = vadd.f32 %v537_v32, %v526_v33 }
 0x12d   : > { %v579_v35 = vsel %vm1087_vm7, %v540_v34, 0.0 }
 0x12e   : > { %v584_v36 = vsel %vm580_vm8, %v579_v35, 0.0 }
 0x12f   : > { %585 = vadd.xlane.f32.xlu2 %v584_v36 }
 0x19a   : > { %v583_v44 = vpop.xlane.xlu1 %582 }
 0x19b   : > { %v594_v45 = vmul.f32 %v593_v43, %v583_v44 }
 0x19d   : > { %v596_v46 = vsub.f32 %v539_v24, %v594_v45 }
 0x19f   : > { %v598_v47 = vsel %vm1087_vm7, %v596_v46, 0.0 }
 0x1a0   : > { %v600_v48 = vmul.f32 %v598_v47, %v598_v47 }
 0x1a2   : > { %v586_v49 = vpop.xlane.xlu2 %585  ;;  %v602_v50 = vsel %vm580_vm8, %v600_v48, 0.0 }
 0x1a3   : > { %v595_v51 = vmul.f32 %v593_v43, %v586_v49  ;;  %603 = vadd.xlane.f32.xlu0 %v602_v50 }
 0x1a5   : > { %v597_v52 = vsub.f32 %v540_v34, %v595_v51 }
 0x1a7   : > { %v599_v53 = vsel %vm1087_vm7, %v597_v52, 0.0 }
 0x1a8   : > { %v601_v54 = vmul.f32 %v599_v53, %v599_v53 }
 0x1aa   : > { %v605_v55 = vsel %vm580_vm8, %v601_v54, 0.0 }
 0x1ab   : > { %606 = vadd.xlane.f32.xlu2 %v605_v55 }
 0x216   : > { %v604_v56 = vpop.xlane.xlu0 %603 }
 0x217   : > { %v608_v57 = vmul.f32 %v604_v56, %v593_v43 }
 0x219   : > { %v610_v58 = vadd.f32 1e-05, %v608_v57 }
 0x21b   : > { %955 = vrsqrt.f32 %v610_v58  ;;  %vm618_vm11 = vweird.f32 %v610_v58 }
 0x21e   : > { %v607_v59 = vpop.xlane.xlu2 %606 }
 0x21f   : > { %v609_v60 = vmul.f32 %v607_v59, %v593_v43 }
 0x221   : > { %v956_v61 = vpop.eup %955  ;;  %v611_v62 = vadd.f32 1e-05, %v609_v60 }
 0x222   : > { %v613_v63 = vmul.f32 %v956_v61, %v610_v58  ;;  %vm619_vm10 = vweird.f32 %v956_v61 }
 0x223   : > { %957 = vrsqrt.f32 %v611_v62  ;;  %vm620_vm12 = vmor %vm618_vm11, %vm619_vm10  ;;  %vm628_vm14 = vweird.f32 %v611_v62 }
 0x224   : > { %v614_v0 = vmul.f32 %v956_v61, %v613_v63 }
 0x226   : > { %v615_v1 = vmul.f32 0.5, %v614_v0 }
 0x228   : > { %v616_v2 = vsub.f32 1.5, %v615_v1 }
 0x229   : > { %v958_v3 = vpop.eup %957 }
 0x22a   : > { %v617_v4 = vmul.f32 %v956_v61, %v616_v2  ;;  %v623_v5 = vmul.f32 %v958_v3, %v611_v62  ;;  %vm629_vm13 = vweird.f32 %v958_v3 }
 0x22b   : > { %vm630_vm15 = vmor %vm628_vm14, %vm629_vm13 }
 0x22c   : > { %v621_v6 = vsel %vm620_vm12, %v956_v61, %v617_v4  ;;  %v624_v7 = vmul.f32 %v958_v3, %v623_v5 }
 0x22d   : > { %v1103_v8 = vmul.f32 %v621_v6, %v596_v46 }
 0x22e   : > { %v625_v9 = vmul.f32 0.5, %v624_v7 }
 0x22f   : > { %v1106_v10 = vmul.f32 0.70710677, %v1103_v8 }
 0x230   : > { %v626_v11 = vsub.f32 1.5, %v625_v9 }
 0x231   : > { %v638_v12 = vmul.f32 %v1106_v10, %v1106_v10 }
 0x232   : > { %v627_v13 = vmul.f32 %v958_v3, %v626_v11 }
 0x233   : > { %v639_v14 = vmin.f32 %v638_v12, 16.0 }
 0x234   : > { %v631_v15 = vsel %vm630_vm15, %v958_v3, %v627_v13 }
 0x235   : > { %v640_v16 = vmul.f32 2.1237322e-06, %v639_v14  ;;  %v651_v17 = vmul.f32 3.8918573e-05, %v639_v14  ;;  %v1110_v18 = vmul.f32 %v631_v15, %v597_v52 }
 0x237   : > { %v641_v19 = vadd.f32 0.00028619796, %v640_v16  ;;  %v652_v20 = vadd.f32 0.001143296, %v651_v17  ;;  %v1113_v21 = vmul.f32 0.70710677, %v1110_v18 }
 0x238   : > { %v634_v17 = vmul.f32 0.5, %v1103_v8  ;;  %v635_v8 = vmul.f32 0.5, %v1110_v18 }
 0x239   : > { %v642_v22 = vmul.f32 %v641_v19, %v639_v14  ;;  %v653_v23 = vmul.f32 %v652_v20, %v639_v14  ;;  %v678_v24 = vmul.f32 %v1113_v21, %v1113_v21 }
 0x23b   : > { %v654_v25 = vadd.f32 0.014752088, %v653_v23  ;;  %v643_v26 = vadd.f32 0.0036580483, %v642_v22  ;;  %v679_v27 = vmin.f32 %v678_v24, 16.0 }
 0x23d   : > { %v655_v28 = vmul.f32 %v654_v25, %v639_v14  ;;  %v680_v29 = vmul.f32 2.1237322e-06, %v679_v27  ;;  %v691_v30 = vmul.f32 3.8918573e-05, %v679_v27  ;;  %v644_v32 = vmul.f32 %v643_v26, %v639_v14 }
 0x23f   : > { %v656_v31 = vadd.f32 0.112945676, %v655_v28  ;;  %v681_v33 = vadd.f32 0.00028619796, %v680_v29  ;;  %v692_v34 = vadd.f32 0.001143296, %v691_v30 }
 0x240   : > { %v645_v39 = vadd.f32 0.05243302, %v644_v32 }
 0x241   : > { %v657_v35 = vmul.f32 %v656_v31, %v639_v14  ;;  %v682_v36 = vmul.f32 %v681_v33, %v679_v27  ;;  %v693_v37 = vmul.f32 %v692_v34, %v679_v27 }
 0x242   : > { %v646_v45 = vmul.f32 %v645_v39, %v639_v14 }
 0x243   : > { %v658_v38 = vadd.f32 0.4994258, %v657_v35  ;;  %v694_v40 = vadd.f32 0.014752088, %v693_v37  ;;  %v683_v42 = vadd.f32 0.0036580483, %v682_v36 }
 0x244   : > { %v647_v49 = vadd.f32 0.18741608, %v646_v45 }
 0x245   : > { %v659_v41 = vmul.f32 %v658_v38, %v639_v14  ;;  %v695_v43 = vmul.f32 %v694_v40, %v679_v27  ;;  %v684_v47 = vmul.f32 %v683_v42, %v679_v27 }
 0x246   : > { %v648_v54 = vmul.f32 %v647_v49, %v639_v14 }
 0x247   : > { %v660_v44 = vadd.f32 1.0, %v659_v41  ;;  %v696_v46 = vadd.f32 0.112945676, %v695_v43  ;;  %v685_v51 = vadd.f32 0.05243302, %v684_v47 }
 0x248   : > { %v649_v60 = vadd.f32 1.1283791, %v648_v54 }
 0x249   : > { %959 = vrcp.f32 %v660_v44  ;;  %v697_v48 = vmul.f32 %v696_v46, %v679_v27  ;;  %v686_v57 = vmul.f32 %v685_v51, %v679_v27  ;;  %v672_v59 = vand.u32 2147483648, %v660_v44 }
 0x24a   : > { %v670_v62 = vand.u32 2147483647, %v660_v44  ;;  %vm666_vm1 = vweird.f32 %v660_v44  ;;  %v650_v3 = vmul.f32 %v649_v60, %v1106_v10 }
 0x24b   : > { %v698_v50 = vadd.f32 0.4994258, %v697_v48  ;;  %v687_v63 = vadd.f32 0.18741608, %v686_v57  ;;  %v673_v1 = vor.u32 1.1754944e-38, %v672_v59 }
 0x24c   : > { %vm671_vm3 = vcmp.eq.f32.partialorder %v670_v62, 8.507059e+37 }
 0x24d   : > { %v699_v52 = vmul.f32 %v698_v50, %v679_v27  ;;  %v688_v6 = vmul.f32 %v687_v63, %v679_v27 }
 0x24f   : > { %v960_v53 = vpop.eup %959  ;;  %v700_v56 = vadd.f32 1.0, %v699_v52  ;;  %v689_v14 = vadd.f32 1.1283791, %v688_v6 }
 0x250   : > { %v662_v55 = vmul.f32 %v960_v53, %v660_v44  ;;  %vm667_vm0 = vweird.f32 %v960_v53 }
 0x251   : > { %961 = vrcp.f32 %v700_v56  ;;  %vm668_vm2 = vmor %vm666_vm1, %vm667_vm0  ;;  %v712_v13 = vand.u32 2147483648, %v700_v56  ;;  %v710_v16 = vand.u32 2147483647, %v700_v56  ;;  %vm706_vm5 = vweird.f32 %v700_v56 }
 0x252   : > { %v663_v58 = vsub.f32 1.0, %v662_v55  ;;  %v690_v23 = vmul.f32 %v689_v14, %v1113_v21 }
 0x253   : > { %v713_v22 = vor.u32 1.1754944e-38, %v712_v13  ;;  %vm711_vm7 = vcmp.eq.f32.partialorder %v710_v16, 8.507059e+37 }
 0x254   : > { %v664_v61 = vmul.f32 %v960_v53, %v663_v58 }
 0x256   : > { %v665_v0 = vadd.f32 %v960_v53, %v664_v61 }
 0x257   : > { %v962_v2 = vpop.eup %961 }
 0x258   : > { %v669_v4 = vsel %vm668_vm2, %v960_v53, %v665_v0  ;;  %v702_v7 = vmul.f32 %v962_v2, %v700_v56  ;;  %vm707_vm4 = vweird.f32 %v962_v2 }
 0x259   : > { %v674_v5 = vsel %vm671_vm3, %v673_v1, %v669_v4  ;;  %vm708_vm6 = vmor %vm706_vm5, %vm707_vm4 }
 0x25a   : > { %v675_v9 = vmul.f32 %v674_v5, %v650_v3  ;;  %v703_v11 = vsub.f32 1.0, %v702_v7 }
 0x25c   : > { %v907_v12 = vclamps-f32 %v675_v9, 1.0  ;;  %v704_v15 = vmul.f32 %v962_v2, %v703_v11 }
 0x25e   : > { %v718_v19 = vadd.f32 1.0, %v907_v12  ;;  %v705_v10 = vadd.f32 %v962_v2, %v704_v15 }
 0x260   : > { %v720_v20 = vmul.f32 %v718_v19, %v634_v17  ;;  %v709_v24 = vsel %vm708_vm6, %v962_v2, %v705_v10 }
 0x261   : > { %v714_v25 = vsel %vm711_vm7, %v713_v22, %v709_v24 }
 0x262   : > { %722 = vst.msk [vmem:[%s236_s25] sm:$0xff] %vm580_vm8, %v720_v20  ;;  %v715_v26 = vmul.f32 %v714_v25, %v690_v23 }
 0x264   : > { %v908_v27 = vclamps-f32 %v715_v26, 1.0 }
 0x266   : > { %v719_v28 = vadd.f32 1.0, %v908_v27 }
 0x268   : > { %v721_v29 = vmul.f32 %v719_v28, %v635_v8 }
 0x26a   : > { %723 = vst.msk [vmem:[%s236_s25 + $0x8] sm:$0xff] %vm580_vm8, %v721_v29 }
 0x26b PF: > { %s13_s14 = sadd.s32 1, %s985_s14   ;;  %s1142_s12 = smov %s981_s13 }
 0x26c   : > { %p10_p5 = scmp.ge.s32.totalorder %s13_s14, 4   ;;  %s1143_s13 = smov %s1145_s15 }
 0x26e   :  { %12 = sbr.rel (!%p10_p5) target bundleno = 2 (0x2), region = 76 }

// kernel: ittr_stem_forward.3
= control target key start
LH: loop header
LB: loop body
LE: loop exit
PB: predicated region body
PF: predicated region fallthrough
CT: control target
= control target key end

     0   :  { %s5319_s12 = smov 0   ;;  %s5321_s13 = smov 0   ;;  %s6730_s0 = inlined_call_operand.vmem [shape: f32[2,4,490], index: 0, kind: input, shape index: {}]   ;;  %s6731_s1 = inlined_call_operand.vmem [shape: bf16[49,8,4], index: 1, kind: input, shape index: {}]   ;;  %s6732_s2 = inlined_call_operand.vmem [shape: f32[8,1], index: 2, kind: input, shape index: {}]   ;;  %s6733_s3 = inlined_call_operand.vmem [shape: f32[2,8,352], index: 3, kind: output, shape index: {}]  }
   0x1   :  { %s5323_s14 = smov 0  }
   0x2 LB: > { %s25_s15 = sadd.s32 1, %s5246_s13  ;;  %p4939_p0 = scmp.ge.s32.totalorder %s5250_s14, 1  ;;  %s5250_s14 = sphi %s5323_s14, %s13_s14   ;;  %s5246_s13 = sphi %s5321_s13, %s6747_s13   ;;  %s5242_s12 = sphi %s5319_s12, %s6746_s12  }
   0x3   : > { %p27_p1 = scmp.ge.s32.totalorder %s25_s15, 2  ;;  %p169_p2 = scmp.lt.s32.totalorder %s5250_s14, 3 }
   0x5   : > { %s6749_s15 = smov (%p27_p1, %s25_s15), 0  ;;  %p170_p3 = pnand %p4939_p0, %p169_p2 }
   0x6   : > { %p205_p4 = scmp.lt.s32.totalorder (!%p170_p3), %s5242_s12, 1  ;;  %s5252_s20 = smov (!%p170_p3), 127  }
   0x7   : > { %173 = sbr.rel (%p170_p3) target bundleno = 1194 (0x4aa), region = 32  ;;  %s5253_s21 = smov (!%p170_p3), 126  }
   0x8   : > { %s5254_s22 = smov (!%p170_p3), 125   ;;  %s5255_s23 = smov (!%p170_p3), 124  }
   0x9   : > { %s5256_s24 = smov (!%p170_p3), 123   ;;  %s5257_s25 = smov (!%p170_p3), 122  }
   0xa   : > { %s5258_s26 = smov (!%p170_p3), 106   ;;  %s5259_s27 = smov (!%p170_p3), 105  }
   0xb   : > { %s5260_s28 = smov (!%p170_p3), 104   ;;  %s5261_s29 = smov (!%p170_p3), 103  }
   0xc   : > { %s6751_s12 = smov (!%p205_p4, %s5242_s12), 1  ;;  %vm279_vm0 = vcmask 1041408   ;;  %vm275_vm1 = vcmask 31744   ;;  %s5262_s5 = smov 102   ;;  %vm406_vm2 = vcmask 1031168   ;;  %vm272_vm3 = vcmask 1039360  }
   0xd   : > { %s5143_s16 = sshll.u32 %s6751_s12, 4  ;;  %s5263_s6 = smov 101   ;;  %vm490_vm4 = vcmask 1022976   ;;  %vm574_vm5 = vcmask 1014784   ;;  %vm658_vm6 = vcmask 1006592   ;;  %vm742_vm7 = vcmask 998400  }
   0xe   : > { %s5343_s19 = scalar_lea.vmem %s6730_s0, %s5143_s16  ;;  %s5264_s9 = smov 100   ;;  %vm826_vm8 = vcmask 867328   ;;  %vm910_vm9 = vcmask 859136   ;;  %vm994_vm10 = vcmask 850944   ;;  %vm1078_vm11 = vcmask 842752  }
   0xf   : > { %v229_v0 = vld [vmem:[%s5343_s19 + $0x8] sm:$0xf]  ;;  %v5347_v1 = vld [vmem:[%s5343_s19] sm:$0xff]  ;;  %s5265_s16 = smov 84   ;;  %s5266_s17 = smov 83   ;;  %vm1162_vm12 = vcmask 834560  }
  0x10   : > { %235 = vst [vmem:[#allocation1 + $0x10] ss:$2 sm:$0xff] %v229_v0  ;;  %v246_v2 = vld [vmem:[%s5343_s19 + $0x8] sm:$0xf]  ;;  %s5269_s30 = smov 80   ;;  %vm1246_vm13 = vcmask 826368  }
  0x11   : > { %233 = vst [vmem:[#allocation1] ss:$2 sm:$0xff] %v5347_v1  ;;  %v380_v6 = vld [vmem:[%s5343_s19 + $0x8] sm:$0xf]  ;;  %vm1330_vm14 = vcmask 818176   ;;  %vm1420_vm15 = vcmask 687104  }
  0x12   : > { %v464_v12 = vld [vmem:[%s5343_s19 + $0x8] sm:$0xf]  ;;  %s5276_s7 = smov 58   ;;  %s5277_s10 = smov 57  }
  0x13   : > { %v548_v19 = vld [vmem:[%s5343_s19 + $0x8] sm:$0xf]  ;;  %s5278_s11 = smov 56   ;;  %s5279_s18 = smov 40  }
  0x14   : > { %v632_v26 = vld [vmem:[%s5343_s19 + $0x8] sm:$0xf]  ;;  %s5282_s4 = smov 37   ;;  %s5289_s8 = smov 15  }
  0x15   : > { %v716_v33 = vld [vmem:[%s5343_s19 + $0x8] sm:$0xf] }
  0x16   : > { %v800_v40 = vld [vmem:[%s5343_s19 + $0x8] sm:$0xf] }
  0x17   : > { %v5351_v3 = vld.sshfl [vmem:[#allocation1 + $0x10] sm:$0xff pattern:$0x75316420]  ;;  %v884_v47 = vld [vmem:[%s5343_s19 + $0x8] sm:$0xf] }
  0x18   : > { %253 = vst [vmem:[#allocation1 + $0x10] ss:$2 sm:$0xff] %v246_v2  ;;  %v5353_v4 = vld.sshfl [vmem:[#allocation1] sm:$0xff pattern:$0x75316420] }
  0x19   : > { %v5355_v5 = vld.sshfl [vmem:[#allocation1 + $0x8] sm:$0xff pattern:$0x75316420] }
  0x1a   : > { %251 = vst [vmem:[#allocation1] ss:$2 sm:$0xff] %v5347_v1  ;;  %v968_v54 = vld [vmem:[%s5343_s19 + $0x8] sm:$0xf] }
  0x1f   : > { %v256_v7 = vld.sshfl [vmem:[#allocation1 + $0x10] sm:$0xff pattern:$0x75316420] }
  0x20   : > { %v262_v8 = vpack.c.bf16 %v256_v7, %v256_v7  ;;  %387 = vst [vmem:[#allocation1 + $0x10] ss:$2 sm:$0xff] %v380_v6 }
  0x21   : > { %v255_v9 = vld.sshfl [vmem:[#allocation1 + $0x8] sm:$0xff pattern:$0x75316420]  ;;  %v254_v10 = vld.sshfl [vmem:[#allocation1] sm:$0xff pattern:$0x75316420] }
  0x22   : > { %270 = vrot.lane.b32.xlu0 %v262_v8, %s5252_s20  ;;  %v261_v11 = vpack.c.bf16 %v255_v9, %v255_v9  ;;  %385 = vst [vmem:[#allocation1] ss:$2 sm:$0xff] %v5347_v1  ;;  %v260_v13 = vpack.c.bf16 %v254_v10, %v254_v10  ;;  %v1052_v10 = vld [vmem:[%s5343_s19 + $0x8] sm:$0xf] }
  0x24   : > { %268 = vrot.lane.b32.xlu1 %v261_v11, %s5252_s20 }
  0x27   : > { %v390_v14 = vld.sshfl [vmem:[#allocation1 + $0x10] sm:$0xff pattern:$0x75316420] }
  0x28   : > { %471 = vst [vmem:[#allocation1 + $0x10] ss:$2 sm:$0xff] %v464_v12  ;;  %v396_v24 = vpack.c.bf16 %v390_v14, %v390_v14  ;;  %v1136_v14 = vld [vmem:[%s5343_s19 + $0x8] sm:$0xf] }
  0x29   : > { %v388_v15 = vld.sshfl [vmem:[#allocation1] sm:$0xff pattern:$0x75316420]  ;;  %v389_v16 = vld.sshfl [vmem:[#allocation1 + $0x8] sm:$0xff pattern:$0x75316420] }
  0x2a   : > { %v394_v17 = vpack.c.bf16 %v388_v15, %v388_v15  ;;  %266 = vrot.lane.b32.xlu0 %v260_v13, %s5252_s20  ;;  %v395_v18 = vpack.c.bf16 %v389_v16, %v389_v16  ;;  %469 = vst [vmem:[#allocation1] ss:$2 sm:$0xff] %v5347_v1  ;;  %v242_v13 = vpack.c.bf16 %v5353_v4, %v5353_v4  ;;  %s5273_s20 = smov 61  }
  0x2c   : > { %400 = vrot.lane.b32.xlu1 %v394_v17, %s5253_s21  ;;  %402 = vrot.lane.b32.xlu2 %v395_v18, %s5253_s21  ;;  %v332_v15 = vsel %vm279_vm0, %v242_v13, 0  ;;  %v5394_v17 = vld [vmem:[%s6731_s1] sm:$0xf] }
  0x2d   : > { %347 = vmatpush.bf16.msra.mxu3 %v332_v15 }
  0x2f   : > { %v474_v20 = vld.sshfl [vmem:[#allocation1 + $0x10] sm:$0xff pattern:$0x75316420] }
  0x30   : > { %v480_v21 = vpack.c.bf16 %v474_v20, %v474_v20  ;;  %555 = vst [vmem:[#allocation1 + $0x10] ss:$2 sm:$0xff] %v548_v19  ;;  %4947 = vmatmul.msk.bf16.vlgmr.msra.gmra.mxu3 %vm275_vm1, %v5394_v17 }
  0x31   : > { %v472_v22 = vld.sshfl [vmem:[#allocation1] sm:$0xff pattern:$0x75316420]  ;;  %v473_v23 = vld.sshfl [vmem:[#allocation1 + $0x8] sm:$0xff pattern:$0x75316420] }
  0x32   : > { %v479_v25 = vpack.c.bf16 %v473_v23, %v473_v23  ;;  %553 = vst [vmem:[#allocation1] ss:$2 sm:$0xff] %v5347_v1  ;;  %v478_v31 = vpack.c.bf16 %v472_v22, %v472_v22  ;;  %v1220_v23 = vld [vmem:[%s5343_s19 + $0x8] sm:$0xf] }
  0x34   : > { %488 = vrot.lane.b32.xlu1 %v480_v21, %s5254_s22  ;;  %486 = vrot.lane.b32.xlu0 %v479_v25, %s5254_s22 }
  0x35   : > { %404 = vrot.lane.b32.xlu2 %v396_v24, %s5253_s21  ;;  %s5267_s21 = smov 82  }
  0x37   : > { %v558_v27 = vld.sshfl [vmem:[#allocation1 + $0x10] sm:$0xff pattern:$0x75316420] }
  0x38   : > { %v564_v28 = vpack.c.bf16 %v558_v27, %v558_v27  ;;  %639 = vst [vmem:[#allocation1 + $0x10] ss:$2 sm:$0xff] %v632_v26 }
  0x39   : > { %v556_v29 = vld.sshfl [vmem:[#allocation1] sm:$0xff pattern:$0x75316420]  ;;  %v557_v30 = vld.sshfl [vmem:[#allocation1 + $0x8] sm:$0xff pattern:$0x75316420] }
  0x3a   : > { %v562_v32 = vpack.c.bf16 %v556_v29, %v556_v29  ;;  %637 = vst [vmem:[#allocation1] ss:$2 sm:$0xff] %v5347_v1  ;;  %v563_v37 = vpack.c.bf16 %v557_v30, %v557_v30 }
  0x3c   : > { %568 = vrot.lane.b32.xlu1 %v562_v32, %s5255_s23  ;;  %572 = vrot.lane.b32.xlu0 %v564_v28, %s5255_s23 }
  0x3d   : > { %484 = vrot.lane.b32.xlu2 %v478_v31, %s5254_s22  ;;  %s5280_s22 = smov 39  }
  0x3f   : > { %v642_v34 = vld.sshfl [vmem:[#allocation1 + $0x10] sm:$0xff pattern:$0x75316420] }
  0x40   : > { %723 = vst [vmem:[#allocation1 + $0x10] ss:$2 sm:$0xff] %v716_v33  ;;  %v648_v42 = vpack.c.bf16 %v642_v34, %v642_v34 }
  0x41   : > { %v641_v35 = vld.sshfl [vmem:[#allocation1 + $0x8] sm:$0xff pattern:$0x75316420]  ;;  %v640_v36 = vld.sshfl [vmem:[#allocation1] sm:$0xff pattern:$0x75316420] }
  0x42   : > { %v647_v38 = vpack.c.bf16 %v641_v35, %v641_v35  ;;  %v646_v39 = vpack.c.bf16 %v640_v36, %v640_v36  ;;  %721 = vst [vmem:[#allocation1] ss:$2 sm:$0xff] %v5347_v1  ;;  %v244_v36 = vpack.c.bf16 %v5351_v3, %v5351_v3 }
  0x44   : > { %654 = vrot.lane.b32.xlu1 %v647_v38, %s5256_s24  ;;  %652 = vrot.lane.b32.xlu0 %v646_v39, %s5256_s24  ;;  %v1304_v39 = vld [vmem:[%s5343_s19 + $0x8] sm:$0xf] }
  0x45   : > { %570 = vrot.lane.b32.xlu2 %v563_v37, %s5255_s23 }
  0x47   : > { %v726_v41 = vld.sshfl [vmem:[#allocation1 + $0x10] sm:$0xff pattern:$0x75316420] }
  0x48   : > { %807 = vst [vmem:[#allocation1 + $0x10] ss:$2 sm:$0xff] %v800_v40  ;;  %v732_v52 = vpack.c.bf16 %v726_v41, %v726_v41  ;;  %v5417_v41 = vld [vmem:[%s6731_s1 + $0x8] sm:$0xf] }
  0x49   : > { %v725_v43 = vld.sshfl [vmem:[#allocation1 + $0x8] sm:$0xff pattern:$0x75316420]  ;;  %v724_v44 = vld.sshfl [vmem:[#allocation1] sm:$0xff pattern:$0x75316420] }
  0x4a   : > { %v731_v45 = vpack.c.bf16 %v725_v43, %v725_v43  ;;  %v730_v46 = vpack.c.bf16 %v724_v44, %v724_v44  ;;  %805 = vst [vmem:[#allocation1] ss:$2 sm:$0xff] %v5347_v1  ;;  %v4943_v43 = vld [vmem:[%s6731_s1 + $0x4] sm:$0xf] }
  0x4c   : > { %656 = vrot.lane.b32.xlu1 %v648_v42, %s5256_s24  ;;  %738 = vrot.lane.b32.xlu0 %v731_v45, %s5257_s25  ;;  %v338_v45 = vsel %vm279_vm0, %v244_v36, 0 }
  0x4d   : > { %736 = vrot.lane.b32.xlu2 %v730_v46, %s5257_s25 }
  0x4f   : > { %v810_v48 = vld.sshfl [vmem:[#allocation1 + $0x10] sm:$0xff pattern:$0x75316420] }
  0x50   : > { %v816_v49 = vpack.c.bf16 %v810_v48, %v810_v48  ;;  %891 = vst [vmem:[#allocation1 + $0x10] ss:$2 sm:$0xff] %v884_v47  ;;  %v243_v47 = vpack.c.bf16 %v5355_v5, %v5355_v5 }
  0x51   : > { %v808_v50 = vld.sshfl [vmem:[#allocation1] sm:$0xff pattern:$0x75316420]  ;;  %v809_v51 = vld.sshfl [vmem:[#allocation1 + $0x8] sm:$0xff pattern:$0x75316420] }
  0x52   : > { %v815_v53 = vpack.c.bf16 %v809_v51, %v809_v51  ;;  %889 = vst [vmem:[#allocation1] ss:$2 sm:$0xff] %v5347_v1  ;;  %v814_v59 = vpack.c.bf16 %v808_v50, %v808_v50 }
  0x54   : > { %824 = vrot.lane.b32.xlu1 %v816_v49, %s5258_s26  ;;  %822 = vrot.lane.b32.xlu0 %v815_v53, %s5258_s26 }
  0x55   : > { %740 = vrot.lane.b32.xlu2 %v732_v52, %s5257_s25 }
  0x57   : > { %v894_v55 = vld.sshfl [vmem:[#allocation1 + $0x10] sm:$0xff pattern:$0x75316420] }
  0x58   : > { %v900_v56 = vpack.c.bf16 %v894_v55, %v894_v55  ;;  %975 = vst [vmem:[#allocation1 + $0x10] ss:$2 sm:$0xff] %v968_v54  ;;  %v5434_v55 = vld [vmem:[%s5343_s19 + $0x8] sm:$0xff] }
  0x59   : > { %v892_v57 = vld.sshfl [vmem:[#allocation1] sm:$0xff pattern:$0x75316420]  ;;  %v893_v58 = vld.sshfl [vmem:[#allocation1 + $0x8] sm:$0xff pattern:$0x75316420] }
  0x5a   : > { %v898_v60 = vpack.c.bf16 %v892_v57, %v892_v57  ;;  %973 = vst [vmem:[#allocation1] ss:$2 sm:$0xff] %v5347_v1  ;;  %v899_v63 = vpack.c.bf16 %v893_v58, %v893_v58  ;;  %v335_v57 = vsel %vm279_vm0, %v243_v47, 0 }
  0x5c   : > { %904 = vrot.lane.b32.xlu1 %v898_v60, %s5259_s27  ;;  %908 = vrot.lane.b32.xlu0 %v900_v56, %s5259_s27 }
  0x5d   : > { %820 = vrot.lane.b32.xlu2 %v814_v59, %s5258_s26  ;;  %s5274_s26 = smov 60  }
  0x5f   : > { %v978_v6 = vld.sshfl [vmem:[#allocation1 + $0x10] sm:$0xff pattern:$0x75316420] }
  0x60   : > { %v984_v7 = vpack.c.bf16 %v978_v6, %v978_v6  ;;  %1059 = vst [vmem:[#allocation1 + $0x10] ss:$2 sm:$0xff] %v1052_v10 }
  0x61   : > { %v977_v61 = vld.sshfl [vmem:[#allocation1 + $0x8] sm:$0xff pattern:$0x75316420]  ;;  %v976_v62 = vld.sshfl [vmem:[#allocation1] sm:$0xff pattern:$0x75316420] }
  0x62   : > { %v983_v0 = vpack.c.bf16 %v977_v61, %v977_v61  ;;  %v982_v2 = vpack.c.bf16 %v976_v62, %v976_v62  ;;  %1057 = vst [vmem:[#allocation1] ss:$2 sm:$0xff] %v5347_v1 }
  0x64   : > { %990 = vrot.lane.b32.xlu1 %v983_v0, %s5260_s28  ;;  %988 = vrot.lane.b32.xlu0 %v982_v2, %s5260_s28 }
  0x65   : > { %906 = vrot.lane.b32.xlu2 %v899_v63, %s5259_s27  ;;  %s5268_s27 = smov 81  }
  0x67   : > { %v1062_v12 = vld.sshfl [vmem:[#allocation1 + $0x10] sm:$0xff pattern:$0x75316420] }
  0x68   : > { %1143 = vst [vmem:[#allocation1 + $0x10] ss:$2 sm:$0xff] %v1136_v14  ;;  %v1068_v21 = vpack.c.bf16 %v1062_v12, %v1062_v12 }
  0x69   : > { %v1061_v8 = vld.sshfl [vmem:[#allocation1 + $0x8] sm:$0xff pattern:$0x75316420]  ;;  %v1060_v11 = vld.sshfl [vmem:[#allocation1] sm:$0xff pattern:$0x75316420] }
  0x6a   : > { %v1067_v9 = vpack.c.bf16 %v1061_v8, %v1061_v8  ;;  %1141 = vst [vmem:[#allocation1] ss:$2 sm:$0xff] %v5347_v1  ;;  %v1066_v16 = vpack.c.bf16 %v1060_v11, %v1060_v11 }
  0x6c   : > { %992 = vrot.lane.b32.xlu1 %v984_v7, %s5260_s28  ;;  %1074 = vrot.lane.b32.xlu0 %v1067_v9, %s5261_s29  ;;  %s5281_s28 = smov 38  }
  0x6d   : > { %1072 = vrot.lane.b32.xlu2 %v1066_v16, %s5261_s29  ;;  %v4954_v16 = vld [vmem:[%s6731_s1 + $0xc] sm:$0xf] }
  0x6f   : > { %v1146_v4 = vld.sshfl [vmem:[#allocation1 + $0x10] sm:$0xff pattern:$0x75316420] }
  0x70   : > { %v1152_v18 = vpack.c.bf16 %v1146_v4, %v1146_v4  ;;  %1227 = vst [vmem:[#allocation1 + $0x10] ss:$2 sm:$0xff] %v1220_v23 }
  0x71   : > { %v1144_v19 = vld.sshfl [vmem:[#allocation1] sm:$0xff pattern:$0x75316420]  ;;  %v1145_v20 = vld.sshfl [vmem:[#allocation1 + $0x8] sm:$0xff pattern:$0x75316420] }
  0x72   : > { %v1151_v22 = vpack.c.bf16 %v1145_v20, %v1145_v20  ;;  %1225 = vst [vmem:[#allocation1] ss:$2 sm:$0xff] %v5347_v1  ;;  %v1150_v30 = vpack.c.bf16 %v1144_v19, %v1144_v19 }
  0x74   : > { %1160 = vrot.lane.b32.xlu1 %v1152_v18, %s5262_s5  ;;  %1158 = vrot.lane.b32.xlu0 %v1151_v22, %s5262_s5 }
  0x75   : > { %1076 = vrot.lane.b32.xlu2 %v1068_v21, %s5261_s29  ;;  %s5275_s29 = smov 59  }
  0x77   : > { %v1230_v28 = vld.sshfl [vmem:[#allocation1 + $0x10] sm:$0xff pattern:$0x75316420] }
  0x78   : > { %v1236_v29 = vpack.c.bf16 %v1230_v28, %v1230_v28  ;;  %1311 = vst [vmem:[#allocation1 + $0x10] ss:$2 sm:$0xff] %v1304_v39  ;;  %v5486_v39 = vld [vmem:[%s6731_s1 + $0x14] sm:$0xf] }
  0x79   : > { %v1228_v25 = vld.sshfl [vmem:[#allocation1] sm:$0xff pattern:$0x75316420]  ;;  %v1229_v26 = vld.sshfl [vmem:[#allocation1 + $0x8] sm:$0xff pattern:$0x75316420] }
  0x7a   : > { %v1234_v27 = vpack.c.bf16 %v1228_v25, %v1228_v25  ;;  %1309 = vst [vmem:[#allocation1] ss:$2 sm:$0xff] %v5347_v1  ;;  %v1235_v54 = vpack.c.bf16 %v1229_v26, %v1229_v26 }
  0x7c   : > { %1240 = vrot.lane.b32.xlu1 %v1234_v27, %s5263_s6  ;;  %1244 = vrot.lane.b32.xlu0 %v1236_v29, %s5263_s6 }
  0x7d   : > { %1156 = vrot.lane.b32.xlu2 %v1150_v30, %s5262_s5  ;;  %s5288_s5 = smov 16  }
  0x7f   : > { %v1314_v50 = vld.sshfl [vmem:[#allocation1 + $0x10] sm:$0xff pattern:$0x75316420] }
  0x80   : > { %v1320_v53 = vpack.c.bf16 %v1314_v50, %v1314_v50  ;;  %1395 = vst [vmem:[#allocation1 + $0x10] ss:$2 sm:$0xff] %v5434_v55 }
  0x81   : > { %v1313_v34 = vld.sshfl [vmem:[#allocation1 + $0x8] sm:$0xff pattern:$0x75316420]  ;;  %v1312_v35 = vld.sshfl [vmem:[#allocation1] sm:$0xff pattern:$0x75316420] }
  0x82   : > { %v1319_v37 = vpack.c.bf16 %v1313_v34, %v1313_v34  ;;  %v1318_v38 = vpack.c.bf16 %v1312_v35, %v1312_v35  ;;  %1393 = vst [vmem:[#allocation1] ss:$2 sm:$0xff] %v5347_v1 }
  0x84   : > { %1326 = vrot.lane.b32.xlu1 %v1319_v37, %s5264_s9  ;;  %1324 = vrot.lane.b32.xlu0 %v1318_v38, %s5264_s9 }
  0x85   : > { %1242 = vrot.lane.b32.xlu2 %v1235_v54, %s5263_s6  ;;  %s5270_s6 = smov 79  }
  0x86   : > { %v5401_v24 = vpop.permute.xlu2 %402 }
  0x87   : > { %v1398_v2 = vld.sshfl [vmem:[#allocation1 + $0x10] sm:$0xff pattern:$0x75316420]  ;;  %v5447_v6 = vld.sshfl [vmem:[#allocation1 + $0x18] sm:$0xff pattern:$0x75316420] }
  0x88   : > { %1486 = vst [vmem:[#allocation1 + $0x10] ss:$2 sm:$0xff] %v5434_v55  ;;  %v1406_v27 = vpack.c.bf16 %v1398_v2, %v1398_v2 }
  0x89   : > { %v1396_v48 = vld.sshfl [vmem:[#allocation1] sm:$0xff pattern:$0x75316420]  ;;  %v1397_v49 = vld.sshfl [vmem:[#allocation1 + $0x8] sm:$0xff pattern:$0x75316420] }
  0x8a   : > { %v1405_v51 = vpack.c.bf16 %v1397_v49, %v1397_v49  ;;  %1484 = vst [vmem:[#allocation1] ss:$2 sm:$0xff] %v5347_v1  ;;  %v1404_v15 = vpack.c.bf16 %v1396_v48, %v1396_v48 }
  0x8c   : > { %1328 = vrot.lane.b32.xlu1 %v1320_v53, %s5264_s9  ;;  %1414 = vrot.lane.b32.xlu0 %v1405_v51, %s5265_s16  ;;  %s5271_s9 = smov 78  }
  0x8d   : > { %1412 = vrot.lane.b32.xlu2 %v1404_v15, %s5265_s16 }
  0x8f   : > { %v405_v31 = vpop.permute.xlu2 %404  ;;  %v1489_v19 = vld.sshfl [vmem:[#allocation1 + $0x10] sm:$0xff pattern:$0x75316420]  ;;  %v1490_v20 = vld.sshfl [vmem:[#allocation1 + $0x18] sm:$0xff pattern:$0x75316420] }
  0x90   : > { %v408_v32 = vsel %vm406_vm2, %v5401_v24, %v405_v31  ;;  %v419_v61 = vsel %vm279_vm0, %v405_v31, 0  ;;  %v1497_v21 = vpack.c.bf16 %v1489_v19, %v1489_v19  ;;  %1577 = vst [vmem:[#allocation1 + $0x10] ss:$2 sm:$0xff] %v5434_v55 }
  0x91   : > { %v416_v33 = vsel %vm279_vm0, %v408_v32, 0  ;;  %v1488_v63 = vld.sshfl [vmem:[#allocation1 + $0x8] sm:$0xff pattern:$0x75316420] }
  0x92   : > { %441 = vmatpush.bf16.msrb.mxu3 %v416_v33  ;;  %v1496_v0 = vpack.c.bf16 %v1488_v63, %v1488_v63  ;;  %v1487_v7 = vld.sshfl [vmem:[#allocation1] sm:$0xff pattern:$0x75316420]  ;;  %v1498_v33 = vpack.c.bf16 %v1490_v20, %v1490_v20 }
  0x93   : > { %1575 = vst [vmem:[#allocation1] ss:$2 sm:$0xff] %v5347_v1  ;;  %v1495_v18 = vpack.c.bf16 %v1487_v7, %v1487_v7 }
  0x94   : > { %v271_v40 = vpop.permute.xlu0 %270  ;;  %1505 = vrot.lane.b32.xlu0 %v1496_v0, %s5266_s17  ;;  %1507 = vrot.lane.b32.xlu1 %v1497_v21, %s5266_s17 }
  0x95   : > { %v287_v42 = vsel %vm279_vm0, %v271_v40, 0  ;;  %4952 = vmatmul.msk.bf16.vlgmr.msrb.gmra.mxu3 %vm275_vm1, %v5417_v41  ;;  %1416 = vrot.lane.b32.xlu2 %v1406_v27, %s5265_s16 }
  0x96   : > { %v269_v3 = vpop.permute.xlu1 %268  ;;  %322 = vmatpush.bf16.msra.mxu2 %v287_v42 }
  0x97   : > { %v274_v44 = vsel %vm272_vm3, %v269_v3, %v271_v40  ;;  %v485_v62 = vpop.permute.xlu2 %484  ;;  %v1581_v34 = vld.sshfl [vmem:[#allocation1 + $0x18] sm:$0xff pattern:$0x75316420] }
  0x98   : > { %v284_v46 = vsel %vm279_vm0, %v274_v44, 0  ;;  %v1589_v35 = vpack.c.bf16 %v1581_v34, %v1581_v34  ;;  %v1407_v44 = vpack.c.bf16 %v5447_v6, %v5447_v6  ;;  %v4970_v34 = vld [vmem:[%s6731_s1 + $0x1c] sm:$0xf] }
  0x99   : > { %309 = vmatpush.bf16.msra.mxu1 %v284_v46  ;;  %4946 = vmatmul.msk.bf16.vlgmr.msra.gmra.mxu2 %vm275_vm1, %v4943_v43 }
  0x9a   : > { %v1578_v31 = vld.sshfl [vmem:[#allocation1] sm:$0xff pattern:$0x75316420]  ;;  %v5474_v32 = vld.sshfl [vmem:[#allocation1 + $0x8] sm:$0xff pattern:$0x75316420] }
  0x9b   : > { %1666 = vst [vmem:[#allocation1] ss:$2 sm:$0xff] %v5347_v1  ;;  %v1586_v42 = vpack.c.bf16 %v1578_v31, %v1578_v31 }
  0x9c   : > { %4945 = vmatmul.msk.bf16.vlgmr.msra.gmra.mxu1 %vm275_vm1, %v4943_v43  ;;  %v267_v52 = vpop.permute.xlu0 %266  ;;  %1503 = vrot.lane.b32.xlu0 %v1495_v18, %s5266_s17 }
  0x9d   : > { %373 = vmatpush.bf16.msrb.mxu1 %v338_v45  ;;  %v273_v56 = vsel %vm272_vm3, %v267_v52, %v269_v3  ;;  %1509 = vrot.lane.b32.xlu1 %v1498_v33, %s5266_s17  ;;  %vm1602_vm3 = vcmask 670720   ;;  %s5285_s17 = smov 34  }
  0x9e   : > { %v401_v5 = vpop.permute.xlu1 %400  ;;  %v281_v58 = vsel %vm279_vm0, %v273_v56, 0  ;;  %1418 = vrot.lane.b32.xlu2 %v1407_v44, %s5265_s16  ;;  %v1580_v56 = vld.sshfl [vmem:[#allocation1 + $0x10] sm:$0xff pattern:$0x75316420]  ;;  %s5272_s16 = smov 62  }
  0x9f   : > { %296 = vmatpush.bf16.msra.mxu0 %v281_v58  ;;  %v407_v59 = vsel %vm406_vm2, %v401_v5, %v5401_v24  ;;  %v571_v4 = vpop.permute.xlu2 %570  ;;  %v1588_v5 = vpack.c.bf16 %v1580_v56, %v1580_v56  ;;  %1668 = vst [vmem:[#allocation1 + $0x10] ss:$2 sm:$0xff] %v5434_v55  ;;  %vm1511_vm2 = vcmask 678912  }
  0xa0   : > { %v413_v60 = vsel %vm279_vm0, %v407_v59, 0 }
  0xa1   : > { %428 = vmatpush.bf16.msrb.mxu2 %v413_v60 }
  0xa2   : > { %4944 = vmatmul.msk.bf16.vlgmr.msra.gmra.mxu0 %vm275_vm1, %v4943_v43  ;;  %v1669_v40 = vld.sshfl [vmem:[#allocation1] sm:$0xff pattern:$0x75316420]  ;;  %v1670_v45 = vld.sshfl [vmem:[#allocation1 + $0x8] sm:$0xff pattern:$0x75316420] }
  0xa3   : > { %360 = vmatpush.bf16.msrb.mxu0 %v335_v57  ;;  %v1677_v3 = vpack.c.bf16 %v1669_v40, %v1669_v40  ;;  %1757 = vst [vmem:[#allocation1] ss:$2 sm:$0xff] %v5347_v1  ;;  %v1678_v57 = vpack.c.bf16 %v1670_v45, %v1670_v45 }
  0xa4   : > { %1600 = vrot.lane.b32.xlu0 %v1589_v35, %s5267_s21 }
  0xa5   : > { %1594 = vrot.lane.b32.xlu1 %v1586_v42, %s5267_s21 }
  0xa6   : > { %v489_v8 = vpop.permute.xlu1 %488  ;;  %v487_v9 = vpop.permute.xlu0 %486  ;;  %1598 = vrot.lane.b32.xlu2 %v1588_v5, %s5267_s21 }
  0xa7   : > { %454 = vmatpush.bf16.msra.mxu0 %v419_v61  ;;  %v491_v10 = vsel %vm490_vm4, %v485_v62, %v487_v9  ;;  %v492_v11 = vsel %vm490_vm4, %v487_v9, %v489_v8  ;;  %v503_v12 = vsel %vm279_vm0, %v489_v8, 0  ;;  %v737_v30 = vpop.permute.xlu2 %736  ;;  %v4958_v62 = vld [vmem:[%s6731_s1 + $0x10] sm:$0xf]  ;;  %vm1693_vm4 = vcmask 662528  }
  0xa8   : > { %538 = vmatpush.bf16.msra.mxu3 %v503_v12  ;;  %v497_v13 = vsel %vm279_vm0, %v491_v10, 0  ;;  %v500_v14 = vsel %vm279_vm0, %v492_v11, 0  ;;  %v1671_v9 = vld.sshfl [vmem:[#allocation1 + $0x10] sm:$0xff pattern:$0x75316420] }
  0xa9   : > { %4951 = vmatmul.msk.bf16.vlgmr.msrb.gmra.mxu2 %vm275_vm1, %v5417_v41  ;;  %512 = vmatpush.bf16.msra.mxu1 %v497_v13  ;;  %v5520_v10 = vld.sshfl [vmem:[#allocation1 + $0x18] sm:$0xff pattern:$0x75316420]  ;;  %v1679_v12 = vpack.c.bf16 %v1671_v9, %v1671_v9  ;;  %v1587_v13 = vpack.c.bf16 %v5474_v32, %v5474_v32 }
  0xaa   : > { %525 = vmatpush.bf16.msra.mxu2 %v500_v14  ;;  %v5507_v59 = vld.sshfl [vmem:[#allocation1] sm:$0xff pattern:$0x75316420]  ;;  %v1761_v60 = vld.sshfl [vmem:[#allocation1 + $0x8] sm:$0xff pattern:$0x75316420] }
  0xab   : > { %4957 = vmatmul.msk.bf16.vlgmr.msra.gmra.mxu3 %vm275_vm1, %v4954_v16  ;;  %v1769_v61 = vpack.c.bf16 %v1761_v60, %v1761_v60  ;;  %1848 = vst [vmem:[#allocation1] ss:$2 sm:$0xff] %v5347_v1  ;;  %v5525_v11 = vld [vmem:[%s6731_s1 + $0x18] sm:$0xf]  ;;  %v1768_v32 = vpack.c.bf16 %v5507_v59, %v5507_v59 }
  0xac   : > { %4949 = vmatmul.msk.bf16.vlgmr.msrb.gmra.mxu1 %vm275_vm1, %v5394_v17  ;;  %1685 = vrot.lane.b32.xlu0 %v1677_v3, %s5268_s27  ;;  %1759 = vst [vmem:[#allocation1 + $0x10] ss:$2 sm:$0xff] %v5434_v55  ;;  %v1680_v3 = vpack.c.bf16 %v5520_v10, %v5520_v10 }
  0xad   : > { %1687 = vrot.lane.b32.xlu1 %v1678_v57, %s5268_s27 }
  0xae   : > { %v569_v22 = vpop.permute.xlu1 %568  ;;  %v573_v23 = vpop.permute.xlu0 %572  ;;  %1596 = vrot.lane.b32.xlu2 %v1587_v13, %s5267_s21  ;;  %s5144_s21 = smul.u32 24, %s6751_s12 }
  0xaf   : > { %v575_v24 = vsel %vm574_vm5, %v569_v22, %v571_v4  ;;  %v576_v25 = vsel %vm574_vm5, %v571_v4, %v573_v23  ;;  %v587_v26 = vsel %vm279_vm0, %v573_v23, 0  ;;  %v741_v43 = vpop.permute.xlu2 %740 }
  0xb0   : > { %622 = vmatpush.bf16.msrb.mxu2 %v587_v26  ;;  %v584_v28 = vsel %vm279_vm0, %v576_v25, 0  ;;  %v581_v29 = vsel %vm279_vm0, %v575_v24, 0 }
  0xb1   : > { %609 = vmatpush.bf16.msrb.mxu1 %v584_v28 }
  0xb2   : > { %4948 = vmatmul.msk.bf16.vlgmr.msrb.gmra.mxu0 %vm275_vm1, %v5394_v17  ;;  %v1852_v18 = vld.sshfl [vmem:[#allocation1 + $0x8] sm:$0xff pattern:$0x75316420]  ;;  %v1851_v22 = vld.sshfl [vmem:[#allocation1] sm:$0xff pattern:$0x75316420] }
  0xb3   : > { %596 = vmatpush.bf16.msrb.mxu0 %v581_v29  ;;  %v1762_v19 = vld.sshfl [vmem:[#allocation1 + $0x10] sm:$0xff pattern:$0x75316420]  ;;  %v1860_v21 = vpack.c.bf16 %v1852_v18, %v1852_v18  ;;  %v1763_v23 = vld.sshfl [vmem:[#allocation1 + $0x18] sm:$0xff pattern:$0x75316420]  ;;  %v1859_v35 = vpack.c.bf16 %v1851_v22, %v1851_v22 }
  0xb4   : > { %1778 = vrot.lane.b32.xlu0 %v1769_v61, %s5269_s30  ;;  %v1770_v20 = vpack.c.bf16 %v1762_v19, %v1762_v19  ;;  %1850 = vst [vmem:[#allocation1 + $0x10] ss:$2 sm:$0xff] %v5434_v55  ;;  %v1771_v31 = vpack.c.bf16 %v1763_v23, %v1763_v23  ;;  %v5618_v18 = vld [vmem:[%s6731_s1 + $0x28] sm:$0xf] }
  0xb5   : > { %1689 = vrot.lane.b32.xlu1 %v1679_v12, %s5268_s27  ;;  %1939 = vst [vmem:[#allocation1] ss:$2 sm:$0xff] %v5347_v1 }
  0xb6   : > { %v655_v36 = vpop.permute.xlu1 %654  ;;  %v653_v37 = vpop.permute.xlu0 %652  ;;  %1776 = vrot.lane.b32.xlu2 %v1768_v32, %s5269_s30 }
  0xb7   : > { %v659_v38 = vsel %vm658_vm6, %v653_v37, %v655_v36  ;;  %v821_v58 = vpop.permute.xlu2 %820 }
  0xb8   : > { %v665_v17 = vsel %vm279_vm0, %v659_v38, 0 }
  0xb9   : > { %4956 = vmatmul.msk.bf16.vlgmr.msra.gmra.mxu2 %vm275_vm1, %v4954_v16  ;;  %680 = vmatpush.bf16.msrb.mxu3 %v665_v17 }
  0xbb   : > { %v1854_v38 = vld.sshfl [vmem:[#allocation1 + $0x18] sm:$0xff pattern:$0x75316420] }
  0xbc   : > { %4955 = vmatmul.msk.bf16.vlgmr.msra.gmra.mxu1 %vm275_vm1, %v4954_v16  ;;  %4963 = vmatmul.msk.bf16.vlgmr.msrb.gmra.mxu3 %vm275_vm1, %v5486_v39  ;;  %v755_v16 = vsel %vm279_vm0, %v741_v43, 0  ;;  %v5573_v45 = vld.sshfl [vmem:[#allocation1] sm:$0xff pattern:$0x75316420] }
  0xbd   : > { %1780 = vrot.lane.b32.xlu0 %v1770_v20, %s5269_s30  ;;  %1869 = vrot.lane.b32.xlu1 %v1860_v21, %s5270_s6 }
  0xbe   : > { %v657_v46 = vpop.permute.xlu1 %656  ;;  %v739_v47 = vpop.permute.xlu0 %738  ;;  %1691 = vrot.lane.b32.xlu2 %v1680_v3, %s5268_s27  ;;  %s5287_s27 = smov 17  }
  0xbf   : > { %v660_v48 = vsel %vm658_vm6, %v655_v36, %v657_v46  ;;  %v743_v49 = vsel %vm742_vm7, %v737_v30, %v739_v47  ;;  %v744_v50 = vsel %vm742_vm7, %v739_v47, %v741_v43  ;;  %v671_v51 = vsel %vm279_vm0, %v657_v46, 0  ;;  %v907_v4 = vpop.permute.xlu2 %906  ;;  %v1853_v36 = vld.sshfl [vmem:[#allocation1 + $0x10] sm:$0xff pattern:$0x75316420] }
  0xc0   : > { %v668_v52 = vsel %vm279_vm0, %v660_v48, 0  ;;  %v749_v53 = vsel %vm279_vm0, %v743_v49, 0  ;;  %v752_v54 = vsel %vm279_vm0, %v744_v50, 0  ;;  %706 = vmatpush.bf16.msra.mxu1 %v671_v51  ;;  %1941 = vst [vmem:[#allocation1 + $0x10] ss:$2 sm:$0xff] %v5434_v55 }
  0xc1   : > { %764 = vmatpush.bf16.msra.mxu2 %v749_v53  ;;  %777 = vmatpush.bf16.msra.mxu3 %v752_v54  ;;  %v1943_v46 = vld.sshfl [vmem:[#allocation1 + $0x8] sm:$0xff pattern:$0x75316420]  ;;  %v5585_v53 = vld [vmem:[%s6731_s1 + $0x24] sm:$0xf]  ;;  %v1861_v54 = vpack.c.bf16 %v1853_v36, %v1853_v36 }
  0xc2   : > { %4953 = vmatmul.msk.bf16.vlgmr.msra.gmra.mxu0 %vm275_vm1, %v5417_v41  ;;  %2030 = vst [vmem:[#allocation1] ss:$2 sm:$0xff] %v5347_v1  ;;  %v5644_v36 = vld [vmem:[%s5343_s19] sm:$0xff] }
  0xc3   : > { %693 = vmatpush.bf16.msra.mxu0 %v668_v52 }
  0xc5   : > { %1782 = vrot.lane.b32.xlu0 %v1771_v31, %s5269_s30  ;;  %1867 = vrot.lane.b32.xlu1 %v1859_v35, %s5270_s6 }
  0xc6   : > { %v825_v63 = vpop.permute.xlu1 %824  ;;  %v823_v41 = vpop.permute.xlu0 %822  ;;  %1871 = vrot.lane.b32.xlu2 %v1861_v54, %s5270_s6 }
  0xc7   : > { %v827_v0 = vsel %vm826_vm8, %v821_v58, %v823_v41  ;;  %v828_v2 = vsel %vm826_vm8, %v823_v41, %v825_v63  ;;  %v839_v6 = vsel %vm279_vm0, %v825_v63, 0  ;;  %v1073_v29 = vpop.permute.xlu2 %1072  ;;  %v1944_v48 = vld.sshfl [vmem:[#allocation1 + $0x10] sm:$0xff pattern:$0x75316420]  ;;  %v1951_v58 = vpack.c.bf16 %v1943_v46, %v1943_v46 }
  0xc8   : > { %874 = vmatpush.bf16.msrb.mxu3 %v839_v6  ;;  %v836_v7 = vsel %vm279_vm0, %v828_v2, 0  ;;  %v833_v8 = vsel %vm279_vm0, %v827_v0, 0  ;;  %v1945_v49 = vld.sshfl [vmem:[#allocation1 + $0x18] sm:$0xff pattern:$0x75316420]  ;;  %v1952_v50 = vpack.c.bf16 %v1944_v48, %v1944_v48  ;;  %v1862_v41 = vpack.c.bf16 %v1854_v38, %v1854_v38 }
  0xc9   : > { %4961 = vmatmul.msk.bf16.vlgmr.msrb.gmra.mxu2 %vm275_vm1, %v4958_v62  ;;  %v1953_v51 = vpack.c.bf16 %v1945_v49, %v1945_v49  ;;  %2032 = vst [vmem:[#allocation1 + $0x10] ss:$2 sm:$0xff] %v5434_v55  ;;  %v2033_v57 = vld.sshfl [vmem:[#allocation1] sm:$0xff pattern:$0x75316420]  ;;  %vm1784_vm8 = vcmask 654336  }
  0xca   : > { %861 = vmatpush.bf16.msrb.mxu2 %v836_v7  ;;  %v5588_v5 = vld.sshfl [vmem:[#allocation1 + $0x8] sm:$0xff pattern:$0x75316420]  ;;  %v2041_v59 = vpack.c.bf16 %v2033_v57, %v2033_v57 }
  0xcb   : > { %2121 = vst [vmem:[#allocation1] ss:$2 sm:$0xff] %v5347_v1 }
  0xcc   : > { %4960 = vmatmul.msk.bf16.vlgmr.msrb.gmra.mxu1 %vm275_vm1, %v4958_v62  ;;  %4968 = vmatmul.msk.bf16.vlgmr.msra.gmra.mxu3 %vm275_vm1, %v5525_v11 }
  0xcd   : > { %848 = vmatpush.bf16.msrb.mxu1 %v833_v8  ;;  %1962 = vrot.lane.b32.xlu0 %v1952_v50, %s5271_s9  ;;  %v4974_v8 = vld [vmem:[%s6731_s1 + $0x20] sm:$0xf] }
  0xce   : > { %v905_v14 = vpop.permute.xlu1 %904  ;;  %v909_v15 = vpop.permute.xlu0 %908  ;;  %1964 = vrot.lane.b32.xlu1 %v1953_v51, %s5271_s9  ;;  %1873 = vrot.lane.b32.xlu2 %v1862_v41, %s5270_s6 }
  0xcf   : > { %v912_v26 = vsel %vm910_vm9, %v907_v4, %v909_v15  ;;  %v923_v27 = vsel %vm279_vm0, %v909_v15, 0  ;;  %v911_v37 = vsel %vm910_vm9, %v905_v14, %v907_v4  ;;  %v5565_v40 = vpop.permute.xlu2 %1076  ;;  %vm1875_vm9 = vcmask 646144  }
  0xd0   : > { %v920_v33 = vsel %vm279_vm0, %v912_v26, 0  ;;  %v917_v17 = vsel %vm279_vm0, %v911_v37, 0  ;;  %v5596_v61 = vld.sshfl [vmem:[#allocation1 + $0x10] sm:$0xff pattern:$0x75316420]  ;;  %v1091_v23 = vsel %vm279_vm0, %v5565_v40, 0  ;;  %v5630_v26 = vpop.f32.mrf.mxu3 }
  0xd1   : > { %v2043_v51 = vpack.c.bf16 %v5596_v61, %v5596_v61  ;;  %v5688_v61 = vld [vmem:[%s6731_s1 + $0x34] sm:$0xf] }
  0xd2   : > { %4959 = vmatmul.msk.bf16.vlgmr.msrb.gmra.mxu0 %vm275_vm1, %v4958_v62  ;;  %v2036_v62 = vld.sshfl [vmem:[#allocation1 + $0x18] sm:$0xff pattern:$0x75316420]  ;;  %v2125_v1 = vld.sshfl [vmem:[#allocation1 + $0x8] sm:$0xff pattern:$0x75316420] }
  0xd3   : > { %790 = vmatpush.bf16.msrb.mxu0 %v755_v16  ;;  %2123 = vst [vmem:[#allocation1 + $0x10] ss:$2 sm:$0xff] %v5434_v55  ;;  %v2124_v0 = vld.sshfl [vmem:[#allocation1] sm:$0xff pattern:$0x75316420]  ;;  %v2133_v2 = vpack.c.bf16 %v2125_v1, %v2125_v1  ;;  %v2044_v20 = vpack.c.bf16 %v2036_v62, %v2036_v62 }
  0xd4   : > { %v2132_v7 = vpack.c.bf16 %v2124_v0, %v2124_v0  ;;  %2212 = vst [vmem:[#allocation1] ss:$2 sm:$0xff] %v5644_v36 }
  0xd5   : > { %1960 = vrot.lane.b32.xlu0 %v1951_v58, %s5271_s9 }
  0xd6   : > { %v5540_v24 = vpop.permute.xlu1 %990  ;;  %v989_v25 = vpop.permute.xlu0 %988  ;;  %2049 = vrot.lane.b32.xlu1 %v2041_v59, %s5272_s16 }
  0xd7   : > { %v995_v28 = vsel %vm994_vm10, %v989_v25, %v5540_v24  ;;  %v1157_v6 = vpop.permute.xlu2 %1156  ;;  %v1950_v25 = vpack.c.bf16 %v5573_v45, %v5573_v45 }
  0xd8   : > { %v1001_v30 = vsel %vm279_vm0, %v995_v28, 0  ;;  %v351_v35 = vpop.f32.mrf.mxu3 }
  0xd9   : > { %4967 = vmatmul.msk.bf16.vlgmr.msra.gmra.mxu2 %vm275_vm1, %v5525_v11  ;;  %1016 = vmatpush.bf16.msra.mxu3 %v1001_v30 }
  0xda   : > { %958 = vmatpush.bf16.msra.mxu2 %v923_v27  ;;  %v2126_v16 = vld.sshfl [vmem:[#allocation1 + $0x10] sm:$0xff pattern:$0x75316420]  ;;  %v2127_v4 = vld.sshfl [vmem:[#allocation1 + $0x18] sm:$0xff pattern:$0x75316420]  ;;  %1958 = vrot.lane.b32.xlu2 %v1950_v25, %s5271_s9 }
  0xdb   : > { %2214 = vst [vmem:[#allocation1 + $0x10] ss:$2 sm:$0xff] %v5434_v55  ;;  %v2134_v19 = vpack.c.bf16 %v2126_v16, %v2126_v16  ;;  %v2215_v49 = vld.sshfl [vmem:[#allocation1] sm:$0xff pattern:$0x75316420]  ;;  %s5283_s9 = smov 36  }
  0xdc   : > { %4965 = vmatmul.msk.bf16.vlgmr.msra.gmra.mxu1 %vm275_vm1, %v5486_v39  ;;  %4973 = vmatmul.msk.bf16.vlgmr.msrb.gmra.mxu3 %vm275_vm1, %v4970_v34 }
  0xdd   : > { %945 = vmatpush.bf16.msra.mxu1 %v920_v33  ;;  %2140 = vrot.lane.b32.xlu0 %v2132_v7, %s5273_s20 }
  0xde   : > { %v1075_v42 = vpop.permute.xlu0 %1074  ;;  %v993_v52 = vpop.permute.xlu1 %992  ;;  %2142 = vrot.lane.b32.xlu1 %v2133_v2, %s5273_s20 }
  0xdf   : > { %v1080_v43 = vsel %vm1078_vm11, %v1075_v42, %v5565_v40  ;;  %v1079_v47 = vsel %vm1078_vm11, %v1073_v29, %v1075_v42  ;;  %v1007_v56 = vsel %vm279_vm0, %v993_v52, 0  ;;  %v996_v60 = vsel %vm994_vm10, %v5540_v24, %v993_v52  ;;  %v1243_v21 = vpop.permute.xlu2 %1242  ;;  %v4986_v42 = vld [vmem:[%s6731_s1 + $0x2c] sm:$0xf] }
  0xe0   : > { %v1088_v44 = vsel %vm279_vm0, %v1080_v43, 0  ;;  %v1004_v63 = vsel %vm279_vm0, %v996_v60, 0  ;;  %v2135_v40 = vpack.c.bf16 %v2127_v4, %v2127_v4  ;;  %v2216_v52 = vld.sshfl [vmem:[#allocation1 + $0x8] sm:$0xff pattern:$0x75316420]  ;;  %vm1966_vm10 = vcmask 637952  }
  0xe1   : > { %1113 = vmatpush.bf16.msrb.mxu3 %v1088_v44  ;;  %2303 = vst [vmem:[#allocation1] ss:$2 sm:$0xff] %v5644_v36  ;;  %v2224_v62 = vpack.c.bf16 %v2216_v52, %v2216_v52  ;;  %vm2057_vm11 = vcmask 506880  }
  0xe2   : > { %4964 = vmatmul.msk.bf16.vlgmr.msra.gmra.mxu0 %vm275_vm1, %v5486_v39  ;;  %v1085_v39 = vsel %vm279_vm0, %v1079_v47, 0  ;;  %v2217_v27 = vld.sshfl [vmem:[#allocation1 + $0x10] sm:$0xff pattern:$0x75316420] }
  0xe3   : > { %932 = vmatpush.bf16.msra.mxu0 %v917_v17  ;;  %v2225_v28 = vpack.c.bf16 %v2217_v27, %v2217_v27  ;;  %v2042_v17 = vpack.c.bf16 %v5588_v5, %v5588_v5  ;;  %v2218_v3 = vld.sshfl [vmem:[#allocation1 + $0x18] sm:$0xff pattern:$0x75316420] }
  0xe4   : > { %2305 = vst [vmem:[#allocation1 + $0x10] ss:$2 sm:$0xff] %v5434_v55  ;;  %v2226_v44 = vpack.c.bf16 %v2218_v3, %v2218_v3 }
  0xe5   : > { %2055 = vrot.lane.b32.xlu0 %v2044_v20, %s5272_s16  ;;  %2051 = vrot.lane.b32.xlu2 %v2042_v17, %s5272_s16 }
  0xe6   : > { %v1161_v9 = vpop.permute.xlu1 %1160  ;;  %v1159_v12 = vpop.permute.xlu0 %1158  ;;  %2144 = vrot.lane.b32.xlu1 %v2134_v19, %s5273_s20 }
  0xe7   : > { %v1175_v10 = vsel %vm279_vm0, %v1161_v9, 0  ;;  %v1163_v13 = vsel %vm1162_vm12, %v1157_v6, %v1159_v12  ;;  %v1164_v14 = vsel %vm1162_vm12, %v1159_v12, %v1161_v9  ;;  %v1413_v29 = vpop.permute.xlu2 %1412  ;;  %vm2148_vm12 = vcmask 498688  }
  0xe8   : > { %v1172_v15 = vsel %vm279_vm0, %v1164_v14, 0  ;;  %v2307_v1 = vld.sshfl [vmem:[#allocation1 + $0x8] sm:$0xff pattern:$0x75316420] }
  0xe9   : > { %4972 = vmatmul.msk.bf16.vlgmr.msrb.gmra.mxu2 %vm275_vm1, %v4970_v34  ;;  %v2306_v0 = vld.sshfl [vmem:[#allocation1] sm:$0xff pattern:$0x75316420]  ;;  %v2315_v6 = vpack.c.bf16 %v2307_v1, %v2307_v1 }
  0xea   : > { %1100 = vmatpush.bf16.msrb.mxu2 %v1085_v39  ;;  %v2314_v7 = vpack.c.bf16 %v2306_v0, %v2306_v0  ;;  %2394 = vst [vmem:[#allocation1] ss:$2 sm:$0xff] %v5644_v36 }
  0xeb   : > { %v2308_v39 = vld.sshfl [vmem:[#allocation1 + $0x10] sm:$0xff pattern:$0x75316420]  ;;  %v5672_v54 = vld.sshfl [vmem:[#allocation1 + $0x18] sm:$0xff pattern:$0x75316420] }
  0xec   : > { %4971 = vmatmul.msk.bf16.vlgmr.msrb.gmra.mxu1 %vm275_vm1, %v4970_v34  ;;  %4979 = vmatmul.msk.bf16.vlgmr.msra.gmra.mxu3 %vm275_vm1, %v5585_v53  ;;  %v2316_v57 = vpack.c.bf16 %v2308_v39, %v2308_v39  ;;  %2396 = vst [vmem:[#allocation1 + $0x10] ss:$2 sm:$0xff] %v5434_v55 }
  0xed   : > { %1042 = vmatpush.bf16.msrb.mxu1 %v1007_v56  ;;  %1210 = vmatpush.bf16.msra.mxu3 %v1175_v10 }
  0xee   : > { %v1241_v22 = vpop.permute.xlu1 %1240  ;;  %v1245_v24 = vpop.permute.xlu0 %1244  ;;  %2235 = vrot.lane.b32.xlu0 %v2225_v28, %s5274_s26  ;;  %2146 = vrot.lane.b32.xlu1 %v2135_v40, %s5273_s20  ;;  %s5292_s20 = smov 12  }
  0xef   : > { %v1259_v30 = vsel %vm279_vm0, %v1245_v24, 0  ;;  %v1248_v31 = vsel %vm1246_vm13, %v1243_v21, %v1245_v24  ;;  %v1247_v43 = vsel %vm1246_vm13, %v1241_v22, %v1243_v21  ;;  %v5661_v45 = vpop.permute.xlu2 %1416  ;;  %2053 = vrot.lane.b32.xlu2 %v2043_v51, %s5272_s16  ;;  %v4990_v24 = vld [vmem:[%s6731_s1 + $0x30] sm:$0xf]  ;;  %vm2239_vm13 = vcmask 490496   ;;  %s5291_s16 = smov 13  }
  0xf0   : > { %v1256_v37 = vsel %vm279_vm0, %v1248_v31, 0  ;;  %v1253_v46 = vsel %vm279_vm0, %v1247_v43, 0 }
  0xf1   : > { %v5706_v19 = vld.sshfl [vmem:[#allocation1] sm:$0xff pattern:$0x75316420]  ;;  %v2398_v22 = vld.sshfl [vmem:[#allocation1 + $0x8] sm:$0xff pattern:$0x75316420] }
  0xf2   : > { %4969 = vmatmul.msk.bf16.vlgmr.msrb.gmra.mxu0 %vm275_vm1, %v5525_v11  ;;  %v1169_v11 = vsel %vm279_vm0, %v1163_v13, 0  ;;  %2485 = vst [vmem:[#allocation1] ss:$2 sm:$0xff] %v5644_v36 }
  0xf3   : > { %1029 = vmatpush.bf16.msrb.mxu0 %v1004_v63  ;;  %v2399_v27 = vld.sshfl [vmem:[#allocation1 + $0x10] sm:$0xff pattern:$0x75316420]  ;;  %v2400_v35 = vld.sshfl [vmem:[#allocation1 + $0x18] sm:$0xff pattern:$0x75316420] }
  0xf4   : > { %v2407_v17 = vpack.c.bf16 %v2399_v27, %v2399_v27  ;;  %2487 = vst [vmem:[#allocation1 + $0x10] ss:$2 sm:$0xff] %v5434_v55 }
  0xf6   : > { %v5636_v32 = vpop.permute.xlu1 %1326  ;;  %v1325_v33 = vpop.permute.xlu0 %1324  ;;  %2237 = vrot.lane.b32.xlu0 %v2226_v44, %s5274_s26  ;;  %2326 = vrot.lane.b32.xlu1 %v2316_v57, %s5275_s29  ;;  %v2405_v57 = vpack.c.bf16 %v5706_v19, %v5706_v19 }
  0xf7   : > { %v1331_v34 = vsel %vm1330_vm14, %v1325_v33, %v5636_v32  ;;  %2233 = vrot.lane.b32.xlu2 %v2224_v62, %s5274_s26 }
  0xf8   : > { %v1337_v38 = vsel %vm279_vm0, %v1331_v34, 0  ;;  %v1419_v41 = vpop.permute.xlu2 %1418  ;;  %v2317_v34 = vpack.c.bf16 %v5672_v54, %v5672_v54 }
  0xf9   : > { %4977 = vmatmul.msk.bf16.vlgmr.msra.gmra.mxu2 %vm275_vm1, %v4974_v8  ;;  %v5734_v3 = vld.sshfl [vmem:[#allocation1 + $0x8] sm:$0xff pattern:$0x75316420] }
  0xfa   : > { %1197 = vmatpush.bf16.msra.mxu2 %v1172_v15  ;;  %v2223_v15 = vpack.c.bf16 %v2215_v49, %v2215_v49 }
  0xfb   : > { %v5750_v54 = vld.sshfl [vmem:[#allocation1 + $0x10] sm:$0xff pattern:$0x75316420] }
  0xfc   : > { %4976 = vmatmul.msk.bf16.vlgmr.msra.gmra.mxu1 %vm275_vm1, %v4974_v8  ;;  %4984 = vmatmul.msk.bf16.vlgmr.msrb.gmra.mxu3 %vm275_vm1, %v5618_v18 }
  0xfd   : > { %1184 = vmatpush.bf16.msra.mxu1 %v1169_v11  ;;  %1352 = vmatpush.bf16.msrb.mxu3 %v1337_v38 }
  0xfe   : > { %v1415_v47 = vpop.permute.xlu0 %1414  ;;  %2324 = vrot.lane.b32.xlu1 %v2315_v6, %s5275_s29  ;;  %2322 = vrot.lane.b32.xlu0 %v2314_v7, %s5275_s29 }
  0xff   : > { %v1422_v48 = vsel %vm1420_vm15, %v1415_v47, %v5661_v45  ;;  %v1421_v56 = vsel %vm1420_vm15, %v1413_v29, %v1415_v47  ;;  %2231 = vrot.lane.b32.xlu2 %v2223_v15, %s5274_s26  ;;  %s5286_s26 = smov 18  }
 0x100   : > { %v1431_v50 = vsel %vm279_vm0, %v1422_v48, 0  ;;  %v1428_v5 = vsel %vm279_vm0, %v1421_v56, 0  ;;  %v5704_v4 = vpop.permute.xlu2 %1598  ;;  %v5752_v56 = vld.sshfl [vmem:[#allocation1 + $0x18] sm:$0xff pattern:$0x75316420] }
 0x101   : > { %2578 = vst [vmem:[#allocation1 + $0x10] ss:$2 sm:$0xff] %v5434_v55 }
 0x102   : > { %4975 = vmatmul.msk.bf16.vlgmr.msra.gmra.mxu0 %vm275_vm1, %v4974_v8 }
 0x103   : > { %1126 = vmatpush.bf16.msra.mxu0 %v1091_v23  ;;  %v2406_v23 = vpack.c.bf16 %v2398_v22, %v2398_v22 }
 0x106   : > { %v1506_v58 = vpop.permute.xlu0 %1505  ;;  %2415 = vrot.lane.b32.xlu0 %v2406_v23, %s5276_s7 }
 0x107   : > { %2328 = vrot.lane.b32.xlu2 %v2317_v34, %s5275_s29 }
 0x108   : > { %v5736_v43 = vpop.permute.xlu2 %1596  ;;  %v2582_v19 = vld.sshfl [vmem:[#allocation1 + $0x18] sm:$0xff pattern:$0x75316420] }
 0x109   : > { %4983 = vmatmul.msk.bf16.vlgmr.msrb.gmra.mxu2 %vm275_vm1, %v5618_v18  ;;  %v1604_v6 = vsel %vm1602_vm3, %v5736_v43, %v5704_v4 }
 0x10a   : > { %1294 = vmatpush.bf16.msrb.mxu2 %v1259_v30 }
 0x10c   : > { %4981 = vmatmul.msk.bf16.vlgmr.msrb.gmra.mxu1 %vm275_vm1, %v5585_v53  ;;  %4989 = vmatmul.msk.bf16.vlgmr.msra.gmra.mxu3 %vm275_vm1, %v4986_v42 }
 0x10d   : > { %1281 = vmatpush.bf16.msrb.mxu1 %v1256_v37  ;;  %1456 = vmatpush.bf16.msra.mxu3 %v1431_v50  ;;  %v5727_v37 = vld [vmem:[%s6731_s1 + $0x38] sm:$0xf] }
 0x10e   : > { %v1504_v16 = vpop.permute.xlu0 %1503  ;;  %2417 = vrot.lane.b32.xlu0 %v2407_v17, %s5276_s7 }
 0x10f   : > { %2413 = vrot.lane.b32.xlu2 %v2405_v57, %s5276_s7 }
 0x110   : > { %v1777_v1 = vpop.permute.xlu2 %1776 }
 0x112   : > { %4980 = vmatmul.msk.bf16.vlgmr.msrb.gmra.mxu0 %vm275_vm1, %v5585_v53  ;;  %v1329_v53 = vpop.permute.xlu1 %1328 }
 0x113   : > { %1268 = vmatpush.bf16.msrb.mxu0 %v1253_v46  ;;  %v1343_v63 = vsel %vm279_vm0, %v1329_v53, 0  ;;  %v1332_v8 = vsel %vm1330_vm14, %v5636_v32, %v1329_v53  ;;  %v1423_v46 = vsel %vm1420_vm15, %v5661_v45, %v1419_v41  ;;  %v2408_v53 = vpack.c.bf16 %v2400_v35, %v2400_v35 }
 0x114   : > { %v1340_v12 = vsel %vm279_vm0, %v1332_v8, 0  ;;  %v1434_v51 = vsel %vm279_vm0, %v1423_v46, 0  ;;  %vm2330_vm14 = vcmask 482304   ;;  %vm2421_vm15 = vcmask 474112  }
 0x116   : > { %v1601_v33 = vpop.permute.xlu0 %1600 }
 0x118   : > { %v5680_v59 = vpop.f32.mrf.mxu3 }
 0x119   : > { %v5682_v60 = vpop.f32.mrf.mxu1  ;;  %4988 = vmatmul.msk.bf16.vlgmr.msra.gmra.mxu2 %vm275_vm1, %v4986_v42 }
 0x11a   : > { %1443 = vmatpush.bf16.msra.mxu2 %v1428_v5  ;;  %v1508_v11 = vpop.permute.xlu1 %1507 }
 0x11b   : > { %v1513_v21 = vsel %vm1511_vm2, %v1506_v58, %v1508_v11 }
 0x11c   : > { %4987 = vmatmul.msk.bf16.vlgmr.msra.gmra.mxu1 %vm275_vm1, %v4986_v42  ;;  %v324_v2 = vpop.f32.mrf.mxu2  ;;  %4995 = vmatmul.msk.bf16.vlgmr.msrb.gmra.mxu3 %vm275_vm1, %v5688_v61  ;;  %v1522_v25 = vsel %vm279_vm0, %v1513_v21, 0  ;;  %v2488_v42 = vld.sshfl [vmem:[#allocation1] sm:$0xff pattern:$0x75316420] }
 0x11d   : > { %1378 = vmatpush.bf16.msra.mxu1 %v1343_v63  ;;  %v2496_v47 = vpack.c.bf16 %v2488_v42, %v2488_v42  ;;  %2576 = vst [vmem:[#allocation1] ss:$2 sm:$0xff] %v5644_v36 }
 0x11f   : > { %v298_v9 = vpop.f32.mrf.mxu0  ;;  %2504 = vrot.lane.b32.xlu1 %v2496_v47, %s5277_s10 }
 0x120   : > { %v350_v10 = vadd.f32 %v5630_v26, %v298_v9  ;;  %v445_v13 = vpop.f32.mrf.mxu3  ;;  %v1512_v26 = vsel %vm1511_vm2, %v1504_v16, %v1506_v58  ;;  %v1605_v58 = vsel %vm1602_vm3, %v5704_v4, %v1601_v33 }
 0x121   : > { %v313_v14 = vpop.f32.mrf.mxu1  ;;  %v1519_v31 = vsel %vm279_vm0, %v1512_v26, 0  ;;  %v2581_v13 = vld.sshfl [vmem:[#allocation1 + $0x10] sm:$0xff pattern:$0x75316420]  ;;  %v1692_v26 = vpop.permute.xlu2 %1691 }
 0x122   : > { %4985 = vmatmul.msk.bf16.vlgmr.msra.gmra.mxu0 %vm275_vm1, %v5618_v18  ;;  %v1510_v29 = vpop.permute.xlu1 %1509  ;;  %v2497_v14 = vpack.c.bf16 %v5734_v3, %v5734_v3  ;;  %v2589_v16 = vpack.c.bf16 %v2581_v13, %v2581_v13  ;;  %2669 = vst [vmem:[#allocation1 + $0x10] ss:$2 sm:$0xff] %v5434_v55 }
 0x123   : > { %1365 = vmatpush.bf16.msra.mxu0 %v1340_v12  ;;  %v1514_v32 = vsel %vm1511_vm2, %v1508_v11, %v1510_v29  ;;  %v5002_v11 = vld [vmem:[%s6731_s1 + $0x3c] sm:$0xf]  ;;  %vm2512_vm2 = vcmask 465920  }
 0x124   : > { %v326_v20 = vpop.f32.mrf.mxu2  ;;  %v1525_v38 = vsel %vm279_vm0, %v1514_v32, 0  ;;  %v2580_v62 = vld.sshfl [vmem:[#allocation1 + $0x8] sm:$0xff pattern:$0x75316420]  ;;  %2506 = vrot.lane.b32.xlu2 %v2497_v14, %s5277_s10  ;;  %v2590_v32 = vpack.c.bf16 %v2582_v19, %v2582_v19 }
 0x125   : > { %1560 = vmatpush.bf16.msrb.mxu3 %v1525_v38  ;;  %v2579_v63 = vld.sshfl [vmem:[#allocation1] sm:$0xff pattern:$0x75316420]  ;;  %v5845_v14 = vld [vmem:[%s5343_s19 + $0x8] sm:$0xff] }
 0x126   : > { %2667 = vst [vmem:[#allocation1] ss:$2 sm:$0xff] %v5644_v36  ;;  %v2587_v4 = vpack.c.bf16 %v2579_v63, %v2579_v63 }
 0x127   : > { %v300_v18 = vpop.f32.mrf.mxu0  ;;  %2419 = vrot.lane.b32.xlu1 %v2408_v53, %s5276_s7 }
 0x129   : > { %v375_v28 = vpop.f32.mrf.mxu1  ;;  %4993 = vmatmul.msk.bf16.vlgmr.msrb.gmra.mxu2 %vm275_vm1, %v4990_v24  ;;  %v2673_v33 = vld.sshfl [vmem:[#allocation1 + $0x18] sm:$0xff pattern:$0x75316420]  ;;  %v2672_v13 = vld.sshfl [vmem:[#allocation1 + $0x10] sm:$0xff pattern:$0x75316420] }
 0x12a   : > { %v5718_v30 = vadd.f32 %v375_v28, %v324_v2  ;;  %1547 = vmatpush.bf16.msrb.mxu2 %v1522_v25  ;;  %v1595_v52 = vpop.permute.xlu1 %1594  ;;  %v1616_v2 = vsel %vm279_vm0, %v1605_v58, 0  ;;  %v2681_v35 = vpack.c.bf16 %v2673_v33, %v2673_v33  ;;  %v2499_v58 = vpack.c.bf16 %v5752_v56, %v5752_v56  ;;  %2760 = vst [vmem:[#allocation1 + $0x10] ss:$2 sm:$0xff] %v5845_v14 }
 0x12b   : > { %v1603_v22 = vsel %vm1602_vm3, %v1595_v52, %v5736_v43  ;;  %vm2603_vm3 = vcmask 457728  }
 0x12c   : > { %4992 = vmatmul.msk.bf16.vlgmr.msrb.gmra.mxu1 %vm275_vm1, %v4990_v24  ;;  %v430_v40 = vpop.f32.mrf.mxu2  ;;  %5000 = vmatmul.msk.bf16.vlgmr.msra.gmra.mxu3 %vm275_vm1, %v5727_v37  ;;  %v1610_v55 = vsel %vm279_vm0, %v1603_v22, 0 }
 0x12d   : > { %v460_v44 = vadd.f32 %v430_v40, %v350_v10  ;;  %1534 = vmatpush.bf16.msrb.mxu1 %v1519_v31  ;;  %v1613_v10 = vsel %vm279_vm0, %v1604_v6, 0  ;;  %v2498_v31 = vpack.c.bf16 %v5750_v54, %v5750_v54  ;;  %v2670_v38 = vld.sshfl [vmem:[#allocation1] sm:$0xff pattern:$0x75316420] }
 0x12e   : > { %v5741_v48 = vpop.f32.mrf.mxu3  ;;  %v5801_v17 = vld.sshfl [vmem:[#allocation1 + $0x8] sm:$0xff pattern:$0x75316420]  ;;  %v2678_v52 = vpack.c.bf16 %v2670_v38, %v2670_v38 }
 0x12f   : > { %v362_v49 = vpop.f32.mrf.mxu0  ;;  %2599 = vrot.lane.b32.xlu1 %v2589_v16, %s5278_s11  ;;  %2758 = vst [vmem:[#allocation1] ss:$2 sm:$0xff] %v5644_v36  ;;  %2508 = vrot.lane.b32.xlu2 %v2498_v31, %s5277_s10  ;;  %v2680_v16 = vpack.c.bf16 %v2672_v13, %v2672_v13  ;;  %v2679_v33 = vpack.c.bf16 %v5801_v17, %v5801_v17 }
 0x130   : > { %v363_v50 = vadd.f32 %v362_v49, %v5682_v60  ;;  %v1686_v60 = vpop.permute.xlu0 %1685 }
 0x131   : > { %v377_v45 = vpop.f32.mrf.mxu1  ;;  %v2763_v31 = vld.sshfl [vmem:[#allocation1 + $0x10] sm:$0xff pattern:$0x75316420] }
 0x132   : > { %v461_v39 = vadd.f32 %v5680_v59, %v363_v50  ;;  %4991 = vmatmul.msk.bf16.vlgmr.msrb.gmra.mxu0 %vm275_vm1, %v4990_v24  ;;  %v2588_v59 = vpack.c.bf16 %v2580_v62, %v2580_v62  ;;  %v5769_v8 = vpop.permute.xlu1 %1687 }
 0x133   : > { %1469 = vmatpush.bf16.msrb.mxu0 %v1434_v51  ;;  %v1694_v12 = vsel %vm1693_vm4, %v1686_v60, %v5769_v8 }
 0x134   : > { %v432_v5 = vpop.f32.mrf.mxu2  ;;  %2597 = vrot.lane.b32.xlu0 %v2588_v59, %s5278_s11  ;;  %v1701_v15 = vsel %vm279_vm0, %v1694_v12, 0 }
 0x135   : > { %1716 = vmatpush.bf16.msra.mxu3 %v1701_v15 }
 0x136   : > { %v542_v41 = vpop.f32.mrf.mxu3  ;;  %v2761_v54 = vld.sshfl [vmem:[#allocation1] sm:$0xff pattern:$0x75316420]  ;;  %v2762_v60 = vld.sshfl [vmem:[#allocation1 + $0x8] sm:$0xff pattern:$0x75316420] }
 0x137   : > { %v364_v0 = vpop.f32.mrf.mxu0  ;;  %2601 = vrot.lane.b32.xlu1 %v2590_v32, %s5278_s11  ;;  %v2769_v5 = vpack.c.bf16 %v2761_v54, %v2761_v54  ;;  %2849 = vst [vmem:[#allocation1] ss:$2 sm:$0xff] %v5644_v36  ;;  %2510 = vrot.lane.b32.xlu2 %v2499_v58, %s5277_s10  ;;  %v5873_v32 = vld.sshfl [vmem:[#allocation1 + $0x18] sm:$0xff pattern:$0x75316420]  ;;  %s5284_s10 = smov 35  }
 0x138   : > { %v1779_v23 = vpop.permute.xlu0 %1778  ;;  %2851 = vst [vmem:[#allocation1 + $0x10] ss:$2 sm:$0xff] %v5845_v14 }
 0x139   : > { %v514_v7 = vpop.f32.mrf.mxu1  ;;  %4999 = vmatmul.msk.bf16.vlgmr.msra.gmra.mxu2 %vm275_vm1, %v5727_v37 }
 0x13a   : > { %v5771_v9 = vadd.f32 %v514_v7, %v460_v44  ;;  %1651 = vmatpush.bf16.msra.mxu2 %v1616_v2  ;;  %v1690_v28 = vpop.permute.xlu1 %1689  ;;  %v1872_v44 = vpop.permute.xlu2 %1871 }
 0x13b   : > { %v1696_v3 = vsel %vm1693_vm4, %v1690_v28, %v1692_v26  ;;  %v1695_v53 = vsel %vm1693_vm4, %v5769_v8, %v1690_v28  ;;  %v5866_v26 = vld [vmem:[%s6731_s1 + $0x48] sm:$0xf]  ;;  %vm2694_vm4 = vcmask 326656  }
 0x13c   : > { %4997 = vmatmul.msk.bf16.vlgmr.msra.gmra.mxu1 %vm275_vm1, %v5688_v61  ;;  %v527_v20 = vpop.f32.mrf.mxu2  ;;  %5005 = vmatmul.msk.bf16.vlgmr.msrb.gmra.mxu3 %vm275_vm1, %v5002_v11  ;;  %v1707_v51 = vsel %vm279_vm0, %v1696_v3, 0  ;;  %v1704_v41 = vsel %vm279_vm0, %v1695_v53, 0 }
 0x13d   : > { %v545_v21 = vadd.f32 %v527_v20, %v461_v39  ;;  %1638 = vmatpush.bf16.msra.mxu1 %v1613_v10  ;;  %2595 = vrot.lane.b32.xlu0 %v2587_v4, %s5278_s11 }
 0x13e   : > { %v2853_v15 = vld.sshfl [vmem:[#allocation1 + $0x8] sm:$0xff pattern:$0x75316420] }
 0x13f   : > { %v456_v24 = vpop.f32.mrf.mxu0  ;;  %v5789_v18 = vpop.f32.mrf.mxu3  ;;  %2686 = vrot.lane.b32.xlu1 %v2678_v52, %s5279_s18  ;;  %v2861_v4 = vpack.c.bf16 %v2853_v15, %v2853_v15  ;;  %2690 = vrot.lane.b32.xlu2 %v2680_v16, %s5279_s18 }
 0x140   : > { %v462_v25 = vadd.f32 %v456_v24, %v5718_v30  ;;  %v1785_v30 = vsel %vm1784_vm8, %v1777_v1, %v1779_v23  ;;  %v5809_v43 = vpop.permute.xlu0 %1780 }
 0x141   : > { %v516_v27 = vpop.f32.mrf.mxu1  ;;  %v1786_v47 = vsel %vm1784_vm8, %v1779_v23, %v5809_v43 }
 0x142   : > { %v546_v29 = vadd.f32 %v5741_v48, %v462_v25  ;;  %4996 = vmatmul.msk.bf16.vlgmr.msra.gmra.mxu0 %vm275_vm1, %v5688_v61  ;;  %v1792_v61 = vsel %vm279_vm0, %v1785_v30, 0  ;;  %v5817_v48 = vld [vmem:[%s6731_s1 + $0x44] sm:$0xf]  ;;  %v1870_v49 = vpop.permute.xlu1 %1869  ;;  %v1795_v45 = vsel %vm279_vm0, %v1786_v47, 0  ;;  %v1874_v0 = vpop.permute.xlu2 %1873 }
 0x143   : > { %1625 = vmatpush.bf16.msra.mxu0 %v1610_v55  ;;  %1820 = vmatpush.bf16.msrb.mxu3 %v1795_v45  ;;  %v1878_v2 = vsel %vm1875_vm9, %v1872_v44, %v1874_v0  ;;  %v1877_v12 = vsel %vm1875_vm9, %v1870_v49, %v1872_v44  ;;  %v2855_v45 = vld.sshfl [vmem:[#allocation1 + $0x18] sm:$0xff pattern:$0x75316420]  ;;  %v5018_v0 = vld [vmem:[%s6731_s1 + $0x4c] sm:$0xf] }
 0x144   : > { %v529_v34 = vpop.f32.mrf.mxu2  ;;  %v1889_v8 = vsel %vm279_vm0, %v1878_v2, 0  ;;  %v1886_v20 = vsel %vm279_vm0, %v1877_v12, 0 }
 0x145   : > { %2692 = vrot.lane.b32.xlu0 %v2681_v35, %s5279_s18  ;;  %v2771_v34 = vpack.c.bf16 %v2763_v31, %v2763_v31 }
 0x147   : > { %v458_v40 = vpop.f32.mrf.mxu0  ;;  %v684_v42 = vpop.f32.mrf.mxu3  ;;  %2688 = vrot.lane.b32.xlu2 %v2679_v33, %s5279_s18 }
 0x148   : > { %v1783_v1 = vpop.permute.xlu0 %1782 }
 0x149   : > { %v611_v46 = vpop.f32.mrf.mxu1  ;;  %5004 = vmatmul.msk.bf16.vlgmr.msrb.gmra.mxu2 %vm275_vm1, %v5002_v11 }
 0x14a   : > { %v5819_v50 = vadd.f32 %v611_v46, %v545_v21  ;;  %1807 = vmatpush.bf16.msrb.mxu2 %v1792_v61  ;;  %v1868_v7 = vpop.permute.xlu1 %1867  ;;  %v1959_v30 = vpop.permute.xlu2 %1958 }
 0x14b   : > { %v1876_v21 = vsel %vm1875_vm9, %v1868_v7, %v1870_v49  ;;  %v2863_v7 = vpack.c.bf16 %v2855_v45, %v2855_v45  ;;  %vm2876_vm9 = vcmask 310272  }
 0x14c   : > { %5003 = vmatmul.msk.bf16.vlgmr.msrb.gmra.mxu1 %vm275_vm1, %v5002_v11  ;;  %v624_v39 = vpop.f32.mrf.mxu2  ;;  %5011 = vmatmul.msk.bf16.vlgmr.msra.gmra.mxu3 %vm275_vm1, %v5817_v48  ;;  %v5847_v11 = vld.sshfl [vmem:[#allocation1] sm:$0xff pattern:$0x75316420] }
 0x14d   : > { %v630_v57 = vadd.f32 %v624_v39, %v546_v29  ;;  %1742 = vmatpush.bf16.msrb.mxu1 %v1707_v51  ;;  %2777 = vrot.lane.b32.xlu0 %v2769_v5, %s5280_s22  ;;  %2940 = vst [vmem:[#allocation1] ss:$2 sm:$0xff] %v5644_v36  ;;  %v1787_v29 = vsel %vm1784_vm8, %v5809_v43, %v1783_v1  ;;  %v2854_v51 = vld.sshfl [vmem:[#allocation1 + $0x10] sm:$0xff pattern:$0x75316420]  ;;  %vm2785_vm8 = vcmask 318464  }
 0x14e   : > { %1924 = vmatpush.bf16.msra.mxu3 %v1889_v8  ;;  %v1798_v61 = vsel %vm279_vm0, %v1787_v29, 0  ;;  %v2862_v52 = vpack.c.bf16 %v2854_v51, %v2854_v51  ;;  %2942 = vst [vmem:[#allocation1 + $0x10] ss:$2 sm:$0xff] %v5845_v14  ;;  %v2860_v1 = vpack.c.bf16 %v5847_v11, %v5847_v11 }
 0x14f   : > { %v598_v62 = vpop.f32.mrf.mxu0  ;;  %v5831_v59 = vpop.f32.mrf.mxu3 }
 0x150   : > { %v628_v63 = vadd.f32 %v598_v62, %v5771_v9  ;;  %v2770_v9 = vpack.c.bf16 %v2762_v60, %v2762_v60  ;;  %v1963_v25 = vpop.permute.xlu0 %1962  ;;  %2868 = vrot.lane.b32.xlu2 %v2860_v1, %s5281_s28 }
 0x151   : > { %v613_v56 = vpop.f32.mrf.mxu1 }
 0x152   : > { %v712_v6 = vadd.f32 %v5789_v18, %v628_v63  ;;  %5001 = vmatmul.msk.bf16.vlgmr.msrb.gmra.mxu0 %vm275_vm1, %v5727_v37  ;;  %v5006_v37 = vld [vmem:[%s6731_s1 + $0x40] sm:$0xf]  ;;  %2779 = vrot.lane.b32.xlu1 %v2770_v9, %s5280_s22  ;;  %v1883_v18 = vsel %vm279_vm0, %v1876_v21, 0  ;;  %v1965_v55 = vpop.permute.xlu1 %1964  ;;  %v5893_v5 = vpop.permute.xlu2 %2051  ;;  %v2772_v21 = vpack.c.bf16 %v5873_v32, %v5873_v32 }
 0x153   : > { %1729 = vmatpush.bf16.msrb.mxu0 %v1704_v41  ;;  %v1969_v47 = vsel %vm1966_vm10, %v1963_v25, %v1965_v55 }
 0x154   : > { %v626_v10 = vpop.f32.mrf.mxu2  ;;  %v2944_v3 = vld.sshfl [vmem:[#allocation1 + $0x8] sm:$0xff pattern:$0x75316420]  ;;  %v1980_v54 = vsel %vm279_vm0, %v1969_v47, 0 }
 0x155   : > { %2870 = vrot.lane.b32.xlu0 %v2861_v4, %s5281_s28  ;;  %v2952_v49 = vpack.c.bf16 %v2944_v3, %v2944_v3  ;;  %v2945_v10 = vld.sshfl [vmem:[#allocation1 + $0x10] sm:$0xff pattern:$0x75316420]  ;;  %v5913_v12 = vld.sshfl [vmem:[#allocation1 + $0x18] sm:$0xff pattern:$0x75316420] }
 0x156   : > { %3033 = vst [vmem:[#allocation1 + $0x10] ss:$2 sm:$0xff] %v5845_v14  ;;  %v2953_v3 = vpack.c.bf16 %v2945_v10, %v2945_v10 }
 0x157   : > { %v600_v19 = vpop.f32.mrf.mxu0  ;;  %v781_v22 = vpop.f32.mrf.mxu3 }
 0x158   : > { %v1961_v43 = vpop.permute.xlu0 %1960  ;;  %2783 = vrot.lane.b32.xlu2 %v2772_v21, %s5280_s22 }
 0x159   : > { %v708_v23 = vpop.f32.mrf.mxu1  ;;  %5009 = vmatmul.msk.bf16.vlgmr.msra.gmra.mxu2 %vm275_vm1, %v5006_v37  ;;  %v1967_v9 = vsel %vm1966_vm10, %v1959_v30, %v1961_v43 }
 0x15a   : > { %v5860_v24 = vadd.f32 %v708_v23, %v630_v57  ;;  %1911 = vmatpush.bf16.msra.mxu2 %v1886_v20  ;;  %2781 = vrot.lane.b32.xlu1 %v2771_v34, %s5280_s22  ;;  %v2050_v44 = vpop.permute.xlu1 %2049  ;;  %v1968_v57 = vsel %vm1966_vm10, %v1961_v43, %v1963_v25  ;;  %v1974_v16 = vsel %vm279_vm0, %v1967_v9, 0  ;;  %vm2967_vm10 = vcmask 302080  }
 0x15b   : > { %v2058_v60 = vsel %vm2057_vm11, %v2050_v44, %v5893_v5 }
 0x15c   : > { %5008 = vmatmul.msk.bf16.vlgmr.msra.gmra.mxu1 %vm275_vm1, %v5006_v37  ;;  %v766_v27 = vpop.f32.mrf.mxu2  ;;  %5016 = vmatmul.msk.bf16.vlgmr.msrb.gmra.mxu3 %vm275_vm1, %v5866_v26  ;;  %v2065_v63 = vsel %vm279_vm0, %v2058_v60, 0 }
 0x15d   : > { %v796_v28 = vadd.f32 %v766_v27, %v712_v6  ;;  %1898 = vmatpush.bf16.msra.mxu1 %v1883_v18  ;;  %2872 = vrot.lane.b32.xlu0 %v2862_v52, %s5281_s28  ;;  %v3036_v27 = vld.sshfl [vmem:[#allocation1 + $0x10] sm:$0xff pattern:$0x75316420] }
 0x15e   : > { %2080 = vmatpush.bf16.msrb.mxu3 %v2065_v63  ;;  %v3044_v34 = vpack.c.bf16 %v3036_v27, %v3036_v27 }
 0x15f   : > { %v695_v35 = vpop.f32.mrf.mxu0  ;;  %v5878_v38 = vpop.f32.mrf.mxu3 }
 0x160   : > { %v713_v40 = vadd.f32 %v695_v35, %v5819_v50  ;;  %v2943_v50 = vld.sshfl [vmem:[#allocation1] sm:$0xff pattern:$0x75316420]  ;;  %v2141_v56 = vpop.permute.xlu0 %2140  ;;  %2963 = vrot.lane.b32.xlu2 %v2953_v3, %s5282_s4 }
 0x161   : > { %v710_v42 = vpop.f32.mrf.mxu1  ;;  %3031 = vst [vmem:[#allocation1] ss:$2 sm:$0xff] %v5644_v36  ;;  %v2951_v6 = vpack.c.bf16 %v2943_v50, %v2943_v50 }
 0x162   : > { %v797_v17 = vadd.f32 %v5831_v59, %v713_v40  ;;  %5007 = vmatmul.msk.bf16.vlgmr.msra.gmra.mxu0 %vm275_vm1, %v5006_v37  ;;  %2961 = vrot.lane.b32.xlu1 %v2952_v49, %s5282_s4  ;;  %v1977_v59 = vsel %vm279_vm0, %v1968_v57, 0  ;;  %v2143_v41 = vpop.permute.xlu1 %2142  ;;  %v2054_v37 = vpop.permute.xlu2 %2053  ;;  %v5944_v40 = vld [vmem:[%s6731_s1 + $0x54] sm:$0xf] }
 0x163   : > { %1833 = vmatpush.bf16.msra.mxu0 %v1798_v61  ;;  %v2149_v18 = vsel %vm2148_vm12, %v2141_v56, %v2143_v41 }
 0x164   : > { %v768_v46 = vpop.f32.mrf.mxu2  ;;  %v2156_v31 = vsel %vm279_vm0, %v2149_v18, 0 }
 0x165   : > { %2874 = vrot.lane.b32.xlu0 %v2863_v7, %s5281_s28  ;;  %v2059_v46 = vsel %vm2057_vm11, %v5893_v5, %v2054_v37 }
 0x166   : > { %v2068_v57 = vsel %vm279_vm0, %v2059_v46, 0 }
 0x167   : > { %v697_v39 = vpop.f32.mrf.mxu0  ;;  %v878_v53 = vpop.f32.mrf.mxu3 }
 0x168   : > { %v2056_v23 = vpop.permute.xlu0 %2055  ;;  %v5934_v55 = vld.sshfl [vmem:[#allocation1] sm:$0xff pattern:$0x75316420] }
 0x169   : > { %v850_v58 = vpop.f32.mrf.mxu1  ;;  %5015 = vmatmul.msk.bf16.vlgmr.msrb.gmra.mxu2 %vm275_vm1, %v5866_v26  ;;  %v2060_v33 = vsel %vm2057_vm11, %v2054_v37, %v2056_v23  ;;  %v3042_v18 = vpack.c.bf16 %v5934_v55, %v5934_v55  ;;  %vm3058_vm11 = vcmask 293888  }
 0x16a   : > { %v5899_v62 = vadd.f32 %v850_v58, %v796_v28  ;;  %2015 = vmatpush.bf16.msrb.mxu2 %v1980_v54  ;;  %2959 = vrot.lane.b32.xlu1 %v2951_v6, %s5282_s4  ;;  %v5925_v20 = vpop.permute.xlu1 %2144  ;;  %v3037_v28 = vld.sshfl [vmem:[#allocation1 + $0x18] sm:$0xff pattern:$0x75316420]  ;;  %v2234_v35 = vpop.permute.xlu2 %2233  ;;  %v2071_v42 = vsel %vm279_vm0, %v2060_v33, 0 }
 0x16b   : > { %v2150_v22 = vsel %vm2148_vm12, %v2143_v41, %v5925_v20  ;;  %v3045_v30 = vpack.c.bf16 %v3037_v28, %v3037_v28  ;;  %3124 = vst [vmem:[#allocation1 + $0x10] ss:$2 sm:$0xff] %v5845_v14 }
 0x16c   : > { %5013 = vmatmul.msk.bf16.vlgmr.msrb.gmra.mxu1 %vm275_vm1, %v5817_v48  ;;  %v863_v2 = vpop.f32.mrf.mxu2  ;;  %5021 = vmatmul.msk.bf16.vlgmr.msra.gmra.mxu3 %vm275_vm1, %v5018_v0  ;;  %v2159_v25 = vsel %vm279_vm0, %v2150_v22, 0 }
 0x16d   : > { %v881_v8 = vadd.f32 %v863_v2, %v797_v17  ;;  %2002 = vmatpush.bf16.msrb.mxu1 %v1977_v59  ;;  %2184 = vmatpush.bf16.msra.mxu3 %v2159_v25 }
 0x16e   : > { %3054 = vrot.lane.b32.xlu0 %v3044_v34, %s5283_s9 }
 0x16f   : > { %v792_v13 = vpop.f32.mrf.mxu0  ;;  %v5915_v11 = vpop.f32.mrf.mxu3 }
 0x170   : > { %v798_v15 = vadd.f32 %v792_v13, %v5860_v24  ;;  %v2236_v17 = vpop.permute.xlu0 %2235 }
 0x171   : > { %v852_v4 = vpop.f32.mrf.mxu1  ;;  %v2241_v63 = vsel %vm2239_vm13, %v2234_v35, %v2236_v17 }
 0x172   : > { %v882_v19 = vadd.f32 %v5878_v38, %v798_v15  ;;  %5012 = vmatmul.msk.bf16.vlgmr.msrb.gmra.mxu0 %vm275_vm1, %v5817_v48  ;;  %v3035_v48 = vld.sshfl [vmem:[#allocation1 + $0x8] sm:$0xff pattern:$0x75316420]  ;;  %3056 = vrot.lane.b32.xlu1 %v3045_v30, %s5283_s9  ;;  %v5957_v49 = vld.sshfl [vmem:[#allocation1 + $0x10] sm:$0xff pattern:$0x75316420]  ;;  %v2232_v53 = vpop.permute.xlu2 %2231  ;;  %v2147_v5 = vpop.permute.xlu1 %2146 }
 0x173   : > { %1989 = vmatpush.bf16.msrb.mxu0 %v1974_v16  ;;  %3122 = vst [vmem:[#allocation1] ss:$2 sm:$0xff] %v5644_v36  ;;  %v3043_v47 = vpack.c.bf16 %v3035_v48, %v3035_v48  ;;  %v5959_v50 = vld.sshfl [vmem:[#allocation1 + $0x18] sm:$0xff pattern:$0x75316420]  ;;  %v2250_v56 = vsel %vm279_vm0, %v2241_v63, 0  ;;  %v2240_v6 = vsel %vm2239_vm13, %v2232_v53, %v2234_v35 }
 0x174   : > { %v865_v24 = vpop.f32.mrf.mxu2  ;;  %3215 = vst [vmem:[#allocation1 + $0x10] ss:$2 sm:$0xff] %v5845_v14  ;;  %v2247_v16 = vsel %vm279_vm0, %v2240_v6, 0  ;;  %v3136_v28 = vpack.c.bf16 %v5959_v50, %v5959_v50  ;;  %v5034_v53 = vld [vmem:[%s6731_s1 + $0x5c] sm:$0xf] }
 0x175   : > { %v2151_v24 = vsel %vm2148_vm12, %v5925_v20, %v2147_v5  ;;  %vm3149_vm12 = vcmask 285696  }
 0x176   : > { %3052 = vrot.lane.b32.xlu0 %v3043_v47, %s5283_s9 }
 0x177   : > { %v794_v29 = vpop.f32.mrf.mxu0  ;;  %v1020_v32 = vpop.f32.mrf.mxu3 }
 0x179   : > { %v947_v38 = vpop.f32.mrf.mxu1  ;;  %5020 = vmatmul.msk.bf16.vlgmr.msra.gmra.mxu2 %vm275_vm1, %v5018_v0 }
 0x17a   : > { %v5947_v61 = vadd.f32 %v947_v38, %v881_v8  ;;  %2171 = vmatpush.bf16.msra.mxu2 %v2156_v31  ;;  %v3125_v52 = vld.sshfl [vmem:[#allocation1] sm:$0xff pattern:$0x75316420]  ;;  %v5963_v39 = vld.sshfl [vmem:[#allocation1 + $0x8] sm:$0xff pattern:$0x75316420]  ;;  %v2329_v13 = vpop.permute.xlu2 %2328  ;;  %v2327_v37 = vpop.permute.xlu1 %2326 }
 0x17b   : > { %v3133_v58 = vpack.c.bf16 %v3125_v52, %v3125_v52  ;;  %3213 = vst [vmem:[#allocation1] ss:$2 sm:$0xff] %v5644_v36  ;;  %v2238_v36 = vpop.permute.xlu0 %2237  ;;  %v3218_v4 = vld.sshfl [vmem:[#allocation1 + $0x10] sm:$0xff pattern:$0x75316420]  ;;  %v2162_v31 = vsel %vm279_vm0, %v2151_v24, 0  ;;  %v2333_v30 = vsel %vm2330_vm14, %v2327_v37, %v2329_v13 }
 0x17c   : > { %5019 = vmatmul.msk.bf16.vlgmr.msra.gmra.mxu1 %vm275_vm1, %v5018_v0  ;;  %v960_v43 = vpop.f32.mrf.mxu2  ;;  %5027 = vmatmul.msk.bf16.vlgmr.msrb.gmra.mxu3 %vm275_vm1, %v5944_v40  ;;  %v2242_v1 = vsel %vm2239_vm13, %v2236_v17, %v2238_v36  ;;  %v3219_v21 = vld.sshfl [vmem:[#allocation1 + $0x18] sm:$0xff pattern:$0x75316420]  ;;  %v3226_v25 = vpack.c.bf16 %v3218_v4, %v3218_v4  ;;  %v2344_v17 = vsel %vm279_vm0, %v2333_v30, 0  ;;  %v6070_v24 = vld [vmem:[%s6731_s1 + $0x64] sm:$0xf] }
 0x17d   : > { %v966_v44 = vadd.f32 %v960_v43, %v882_v19  ;;  %2106 = vmatpush.bf16.msra.mxu1 %v2071_v42  ;;  %3141 = vrot.lane.b32.xlu1 %v3133_v58, %s5284_s10  ;;  %v2253_v0 = vsel %vm279_vm0, %v2242_v1, 0  ;;  %v5993_v19 = vld [vmem:[%s6731_s1 + $0x58] sm:$0xf]  ;;  %3306 = vst [vmem:[#allocation1 + $0x10] ss:$2 sm:$0xff] %v5845_v14  ;;  %v3227_v42 = vpack.c.bf16 %v3219_v21, %v3219_v21  ;;  %vm3240_vm13 = vcmask 277504  }
 0x17e   : > { %2288 = vmatpush.bf16.msrb.mxu3 %v2253_v0 }
 0x17f   : > { %v934_v51 = vpop.f32.mrf.mxu0  ;;  %v5961_v45 = vpop.f32.mrf.mxu3 }
 0x180   : > { %v964_v54 = vadd.f32 %v934_v51, %v5899_v62  ;;  %v2954_v62 = vpack.c.bf16 %v5913_v12, %v5913_v12  ;;  %v6024_v51 = vld [vmem:[%s5343_s19] sm:$0xff] }
 0x181   : > { %v949_v60 = vpop.f32.mrf.mxu1 }
 0x182   : > { %v1048_v59 = vadd.f32 %v5915_v11, %v964_v54  ;;  %5017 = vmatmul.msk.bf16.vlgmr.msra.gmra.mxu0 %vm275_vm1, %v5866_v26  ;;  %2965 = vrot.lane.b32.xlu2 %v2954_v62, %s5282_s4  ;;  %v5022_v26 = vld [vmem:[%s6731_s1 + $0x50] sm:$0xf]  ;;  %v3217_v8 = vld.sshfl [vmem:[#allocation1 + $0x8] sm:$0xff pattern:$0x75316420]  ;;  %v2414_v20 = vpop.permute.xlu2 %2413  ;;  %v2325_v35 = vpop.permute.xlu1 %2324  ;;  %v3135_v62 = vpack.c.bf16 %v5957_v49, %v5957_v49 }
 0x183   : > { %2093 = vmatpush.bf16.msra.mxu0 %v2068_v57  ;;  %v3216_v9 = vld.sshfl [vmem:[#allocation1] sm:$0xff pattern:$0x75316420]  ;;  %v3225_v10 = vpack.c.bf16 %v3217_v8, %v3217_v8  ;;  %v2323_v32 = vpop.permute.xlu0 %2322  ;;  %v2332_v43 = vsel %vm2330_vm14, %v2325_v35, %v2327_v37 }
 0x184   : > { %v962_v41 = vpop.f32.mrf.mxu2  ;;  %v3224_v12 = vpack.c.bf16 %v3216_v9, %v3216_v9  ;;  %v3309_v38 = vld.sshfl [vmem:[#allocation1 + $0x10] sm:$0xff pattern:$0x75316420]  ;;  %v2341_v52 = vsel %vm279_vm0, %v2332_v43, 0  ;;  %3304 = vst [vmem:[#allocation1] ss:$2 sm:$0xff] %v6024_v51 }
 0x185   : > { %3234 = vrot.lane.b32.xlu1 %v3225_v10, %s5285_s17  ;;  %v3317_v46 = vpack.c.bf16 %v3309_v38, %v3309_v38  ;;  %v3310_v57 = vld.sshfl [vmem:[#allocation1 + $0x18] sm:$0xff pattern:$0x75316420] }
 0x186   : > { %3232 = vrot.lane.b32.xlu0 %v3224_v12, %s5285_s17  ;;  %3397 = vst [vmem:[#allocation1 + $0x10] ss:$2 sm:$0xff] %v5845_v14  ;;  %v3318_v41 = vpack.c.bf16 %v3310_v57, %v3310_v57 }
 0x187   : > { %v936_v2 = vpop.f32.mrf.mxu0  ;;  %v1117_v7 = vpop.f32.mrf.mxu3 }
 0x189   : > { %v1044_v11 = vpop.f32.mrf.mxu1  ;;  %5025 = vmatmul.msk.bf16.vlgmr.msrb.gmra.mxu2 %vm275_vm1, %v5022_v26 }
 0x18a   : > { %v5986_v15 = vadd.f32 %v1044_v11, %v966_v44  ;;  %2275 = vmatpush.bf16.msrb.mxu2 %v2250_v56  ;;  %3050 = vrot.lane.b32.xlu2 %v3042_v18, %s5283_s9  ;;  %v2507_v54 = vpop.permute.xlu2 %2506  ;;  %s5290_s9 = smov 14  }
 0x18b   : > { %v6021_v50 = vpop.permute.xlu0 %2415  ;;  %v3307_v12 = vld.sshfl [vmem:[#allocation1] sm:$0xff pattern:$0x75316420] }
 0x18c   : > { %5024 = vmatmul.msk.bf16.vlgmr.msrb.gmra.mxu1 %vm275_vm1, %v5022_v26  ;;  %v1102_v22 = vpop.f32.mrf.mxu2  ;;  %5032 = vmatmul.msk.bf16.vlgmr.msra.gmra.mxu3 %vm275_vm1, %v5993_v19  ;;  %v3315_v30 = vpack.c.bf16 %v3307_v12, %v3307_v12 }
 0x18d   : > { %v1132_v23 = vadd.f32 %v1102_v22, %v1048_v59  ;;  %2262 = vmatpush.bf16.msrb.mxu1 %v2247_v16  ;;  %3236 = vrot.lane.b32.xlu1 %v3226_v25, %s5285_s17  ;;  %v2331_v59 = vsel %vm2330_vm14, %v2323_v32, %v2325_v35  ;;  %v3400_v49 = vld.sshfl [vmem:[#allocation1 + $0x10] sm:$0xff pattern:$0x75316420]  ;;  %v6057_v9 = vld.sshfl [vmem:[#allocation1 + $0x18] sm:$0xff pattern:$0x75316420] }
 0x18e   : > { %3147 = vrot.lane.b32.xlu0 %v3136_v28, %s5284_s10  ;;  %v2338_v0 = vsel %vm279_vm0, %v2331_v59, 0  ;;  %v3408_v10 = vpack.c.bf16 %v3400_v49, %v3400_v49  ;;  %3488 = vst [vmem:[#allocation1 + $0x10] ss:$2 sm:$0xff] %v5845_v14  ;;  %vm3331_vm14 = vcmask 146432  }
 0x18f   : > { %v1031_v48 = vpop.f32.mrf.mxu0  ;;  %v1212_v27 = vpop.f32.mrf.mxu3 }
 0x190   : > { %v1049_v29 = vadd.f32 %v1031_v48, %v5947_v61  ;;  %v3134_v61 = vpack.c.bf16 %v5963_v39, %v5963_v39  ;;  %v2422_v39 = vsel %vm2421_vm15, %v2414_v20, %v6021_v50 }
 0x191   : > { %v1046_v33 = vpop.f32.mrf.mxu1  ;;  %v2429_v5 = vsel %vm279_vm0, %v2422_v39, 0  ;;  %v2505_v56 = vpop.permute.xlu1 %2504  ;;  %v5038_v39 = vld [vmem:[%s6731_s1 + $0x60] sm:$0xf] }
 0x192   : > { %v1133_v34 = vadd.f32 %v5961_v45, %v1049_v29  ;;  %5023 = vmatmul.msk.bf16.vlgmr.msrb.gmra.mxu0 %vm275_vm1, %v5022_v26  ;;  %3143 = vrot.lane.b32.xlu2 %v3134_v61, %s5284_s10  ;;  %v6052_v7 = vpop.permute.xlu2 %2508  ;;  %v2513_v11 = vsel %vm2512_vm2, %v2505_v56, %v2507_v54 }
 0x193   : > { %2197 = vmatpush.bf16.msrb.mxu0 %v2162_v31  ;;  %2444 = vmatpush.bf16.msra.mxu3 %v2429_v5  ;;  %v2418_v6 = vpop.permute.xlu0 %2417  ;;  %v2514_v8 = vsel %vm2512_vm2, %v2507_v54, %v6052_v7  ;;  %v2520_v4 = vsel %vm279_vm0, %v2513_v11, 0 }
 0x194   : > { %v1104_v55 = vpop.f32.mrf.mxu2  ;;  %v2423_v31 = vsel %vm2421_vm15, %v6021_v50, %v2418_v6 }
 0x195   : > { %3238 = vrot.lane.b32.xlu1 %v3227_v42, %s5285_s17  ;;  %v2432_v42 = vsel %vm279_vm0, %v2423_v31, 0 }
 0x196   : > { %3327 = vrot.lane.b32.xlu0 %v3317_v46, %s5286_s26 }
 0x197   : > { %v1033_v3 = vpop.f32.mrf.mxu0  ;;  %v1214_v44 = vpop.f32.mrf.mxu3 }
 0x199   : > { %v1186_v47 = vpop.f32.mrf.mxu1  ;;  %5031 = vmatmul.msk.bf16.vlgmr.msra.gmra.mxu2 %vm275_vm1, %v5993_v19 }
 0x19a   : > { %v6026_v45 = vadd.f32 %v1186_v47, %v1132_v23  ;;  %2379 = vmatpush.bf16.msra.mxu2 %v2344_v17  ;;  %3145 = vrot.lane.b32.xlu2 %v3135_v62, %s5284_s10  ;;  %v2420_v23 = vpop.permute.xlu1 %2419  ;;  %s5295_s10 = smov 119  }
 0x19b   : > { %v2424_v25 = vsel %vm2421_vm15, %v2418_v6, %v2420_v23  ;;  %vm3422_vm15 = vcmask 138240  }
 0x19c   : > { %5029 = vmatmul.msk.bf16.vlgmr.msra.gmra.mxu1 %vm275_vm1, %v5944_v40  ;;  %v1199_v58 = vpop.f32.mrf.mxu2  ;;  %5037 = vmatmul.msk.bf16.vlgmr.msrb.gmra.mxu3 %vm275_vm1, %v5034_v53  ;;  %v2435_v28 = vsel %vm279_vm0, %v2424_v25, 0 }
 0x19d   : > { %v1217_v60 = vadd.f32 %v1199_v58, %v1133_v34  ;;  %2366 = vmatpush.bf16.msra.mxu1 %v2341_v52  ;;  %3418 = vrot.lane.b32.xlu1 %v3408_v10, %s5287_s27  ;;  %v3491_v58 = vld.sshfl [vmem:[#allocation1 + $0x10] sm:$0xff pattern:$0x75316420] }
 0x19e   : > { %3329 = vrot.lane.b32.xlu0 %v3318_v41, %s5286_s26  ;;  %v3409_v41 = vpack.c.bf16 %v6057_v9, %v6057_v9  ;;  %v3499_v6 = vpack.c.bf16 %v3491_v58, %v3491_v58 }
 0x19f   : > { %v1128_v63 = vpop.f32.mrf.mxu0  ;;  %v6045_v36 = vpop.f32.mrf.mxu3 }
 0x1a0   : > { %v1134_v1 = vadd.f32 %v1128_v63, %v5986_v15  ;;  %v2523_v15 = vsel %vm279_vm0, %v2514_v8, 0 }
 0x1a1   : > { %v1188_v26 = vpop.f32.mrf.mxu1  ;;  %2548 = vmatpush.bf16.msrb.mxu3 %v2523_v15 }
 0x1a2   : > { %v1218_v2 = vadd.f32 %v1212_v27, %v1134_v1  ;;  %5028 = vmatmul.msk.bf16.vlgmr.msra.gmra.mxu0 %vm275_vm1, %v5944_v40  ;;  %v3308_v40 = vld.sshfl [vmem:[#allocation1 + $0x8] sm:$0xff pattern:$0x75316420]  ;;  %v2511_v27 = vpop.permute.xlu2 %2510  ;;  %v2600_v17 = vpop.permute.xlu1 %2599  ;;  %v3492_v1 = vld.sshfl [vmem:[#allocation1 + $0x18] sm:$0xff pattern:$0x75316420] }
 0x1a3   : > { %2353 = vmatpush.bf16.msra.mxu0 %v2338_v0  ;;  %v3316_v16 = vpack.c.bf16 %v3308_v40, %v3308_v40  ;;  %3395 = vst [vmem:[#allocation1] ss:$2 sm:$0xff] %v6024_v51  ;;  %v6114_v0 = vld [vmem:[%s6731_s1 + $0x68] sm:$0xf]  ;;  %v2515_v8 = vsel %vm2512_vm2, %v6052_v7, %v2511_v27  ;;  %vm3513_vm2 = vcmask 130048  }
 0x1a4   : > { %v1201_v13 = vpop.f32.mrf.mxu2  ;;  %3579 = vst [vmem:[#allocation1 + $0x10] ss:$2 sm:$0xff] %v5845_v14 }
 0x1a5   : > { %3325 = vrot.lane.b32.xlu2 %v3316_v16, %s5286_s26  ;;  %v2526_v16 = vsel %vm279_vm0, %v2515_v8, 0 }
 0x1a6   : > { %v2598_v48 = vpop.permute.xlu0 %2597 }
 0x1a7   : > { %v1130_v37 = vpop.f32.mrf.mxu0  ;;  %v1356_v21 = vpop.f32.mrf.mxu3  ;;  %v2605_v47 = vsel %vm2603_vm3, %v2598_v48, %v2600_v17 }
 0x1a9   : > { %v1283_v22 = vpop.f32.mrf.mxu1  ;;  %5036 = vmatmul.msk.bf16.vlgmr.msrb.gmra.mxu2 %vm275_vm1, %v5034_v53 }
 0x1aa   : > { %v6072_v18 = vadd.f32 %v1283_v22, %v1217_v60  ;;  %2535 = vmatpush.bf16.msrb.mxu2 %v2520_v4  ;;  %v3399_v32 = vld.sshfl [vmem:[#allocation1 + $0x8] sm:$0xff pattern:$0x75316420]  ;;  %v3398_v33 = vld.sshfl [vmem:[#allocation1] sm:$0xff pattern:$0x75316420]  ;;  %v2602_v59 = vpop.permute.xlu1 %2601 }
 0x1ab   : > { %v3407_v34 = vpack.c.bf16 %v3399_v32, %v3399_v32  ;;  %v3406_v55 = vpack.c.bf16 %v3398_v33, %v3398_v33  ;;  %3486 = vst [vmem:[#allocation1] ss:$2 sm:$0xff] %v6024_v51  ;;  %v6133_v21 = vld.sshfl [vmem:[#allocation1 + $0x10] sm:$0xff pattern:$0x75316420] }
 0x1ac   : > { %5035 = vmatmul.msk.bf16.vlgmr.msrb.gmra.mxu1 %vm275_vm1, %v5034_v53  ;;  %v1296_v29 = vpop.f32.mrf.mxu2  ;;  %5043 = vmatmul.msk.bf16.vlgmr.msra.gmra.mxu3 %vm275_vm1, %v6070_v24  ;;  %v6135_v22 = vld.sshfl [vmem:[#allocation1 + $0x18] sm:$0xff pattern:$0x75316420] }
 0x1ad   : > { %v1302_v20 = vadd.f32 %v1296_v29, %v1218_v2  ;;  %2470 = vmatpush.bf16.msrb.mxu1 %v2435_v28  ;;  %3416 = vrot.lane.b32.xlu1 %v3407_v34, %s5287_s27  ;;  %3670 = vst [vmem:[#allocation1 + $0x10] ss:$2 sm:$0xff] %v5845_v14 }
 0x1ae   : > { %3414 = vrot.lane.b32.xlu0 %v3406_v55, %s5287_s27  ;;  %3323 = vrot.lane.b32.xlu2 %v3315_v30, %s5286_s26 }
 0x1af   : > { %v1270_v35 = vpop.f32.mrf.mxu0  ;;  %v6082_v38 = vpop.f32.mrf.mxu3 }
 0x1b0   : > { %v1300_v61 = vadd.f32 %v1270_v35, %v6026_v45  ;;  %v2596_v44 = vpop.permute.xlu0 %2595  ;;  %v6095_v45 = vpop.permute.xlu2 %2690 }
 0x1b1   : > { %v1285_v3 = vpop.f32.mrf.mxu1  ;;  %v2604_v53 = vsel %vm2603_vm3, %v2596_v44, %v2598_v48  ;;  %v3500_v48 = vpack.c.bf16 %v3492_v1, %v3492_v1 }
 0x1b2   : > { %v1384_v43 = vadd.f32 %v6045_v36, %v1300_v61  ;;  %5033 = vmatmul.msk.bf16.vlgmr.msrb.gmra.mxu0 %vm275_vm1, %v5993_v19  ;;  %v6093_v50 = vld.sshfl [vmem:[#allocation1] sm:$0xff pattern:$0x75316420]  ;;  %v3490_v52 = vld.sshfl [vmem:[#allocation1 + $0x8] sm:$0xff pattern:$0x75316420]  ;;  %v2606_v36 = vsel %vm2603_vm3, %v2600_v17, %v2602_v59  ;;  %v2687_v37 = vpop.permute.xlu1 %2686 }
 0x1b3   : > { %2457 = vmatpush.bf16.msrb.mxu0 %v2432_v42  ;;  %v3498_v54 = vpack.c.bf16 %v3490_v52, %v3490_v52  ;;  %3577 = vst [vmem:[#allocation1] ss:$2 sm:$0xff] %v6024_v51  ;;  %v2614_v19 = vsel %vm279_vm0, %v2605_v47, 0  ;;  %v2611_v63 = vsel %vm279_vm0, %v2604_v53, 0  ;;  %v2617_v26 = vsel %vm279_vm0, %v2606_v36, 0 }
 0x1b4   : > { %v1298_v46 = vpop.f32.mrf.mxu2  ;;  %2652 = vmatpush.bf16.msra.mxu3 %v2617_v26  ;;  %v3497_v23 = vpack.c.bf16 %v6093_v50, %v6093_v50  ;;  %v3673_v3 = vld.sshfl [vmem:[#allocation1 + $0x10] sm:$0xff pattern:$0x75316420]  ;;  %vm3604_vm3 = vcmask 121856  }
 0x1b5   : > { %v3674_v46 = vld.sshfl [vmem:[#allocation1 + $0x18] sm:$0xff pattern:$0x75316420]  ;;  %v3681_v50 = vpack.c.bf16 %v3673_v3, %v3673_v3 }
 0x1b6   : > { %3507 = vrot.lane.b32.xlu0 %v3498_v54, %s5288_s5  ;;  %3420 = vrot.lane.b32.xlu2 %v3409_v41, %s5287_s27  ;;  %3761 = vst [vmem:[#allocation1 + $0x10] ss:$2 sm:$0xff] %v5845_v14  ;;  %v3682_v1 = vpack.c.bf16 %v3674_v46, %v3674_v46  ;;  %s226_s27 = scalar_lea.vmem %s6733_s3, %s5144_s21 }
 0x1b7   : > { %v1272_v57 = vpop.f32.mrf.mxu0  ;;  %v1460_v5 = vpop.f32.mrf.mxu3 }
 0x1b8   : > { %v2693_v2 = vpop.permute.xlu0 %2692  ;;  %v2689_v13 = vpop.permute.xlu2 %2688 }
 0x1b9   : > { %v1380_v60 = vpop.f32.mrf.mxu1  ;;  %5041 = vmatmul.msk.bf16.vlgmr.msra.gmra.mxu2 %vm275_vm1, %v5038_v39  ;;  %v2697_v25 = vsel %vm2694_vm4, %v6095_v45, %v2693_v2 }
 0x1ba   : > { %v6105_v62 = vadd.f32 %v1380_v60, %v1302_v20  ;;  %2639 = vmatpush.bf16.msra.mxu2 %v2614_v19  ;;  %v3580_v9 = vld.sshfl [vmem:[#allocation1] sm:$0xff pattern:$0x75316420]  ;;  %v3581_v10 = vld.sshfl [vmem:[#allocation1 + $0x8] sm:$0xff pattern:$0x75316420]  ;;  %v2696_v20 = vsel %vm2694_vm4, %v2689_v13, %v6095_v45 }
 0x1bb   : > { %v3588_v12 = vpack.c.bf16 %v3580_v9, %v3580_v9  ;;  %3668 = vst [vmem:[#allocation1] ss:$2 sm:$0xff] %v6024_v51  ;;  %v2708_v33 = vsel %vm279_vm0, %v2697_v25, 0  ;;  %v2705_v61 = vsel %vm279_vm0, %v2696_v20, 0  ;;  %v3589_v17 = vpack.c.bf16 %v3581_v10, %v3581_v10 }
 0x1bc   : > { %5040 = vmatmul.msk.bf16.vlgmr.msra.gmra.mxu1 %vm275_vm1, %v5038_v39  ;;  %v1445_v56 = vpop.f32.mrf.mxu2  ;;  %5048 = vmatmul.msk.bf16.vlgmr.msrb.gmra.mxu3 %vm275_vm1, %v6114_v0 }
 0x1bd   : > { %v1475_v49 = vadd.f32 %v1445_v56, %v1384_v43  ;;  %2626 = vmatpush.bf16.msra.mxu1 %v2611_v63  ;;  %3596 = vrot.lane.b32.xlu1 %v3588_v12, %s5289_s8  ;;  %v5050_v43 = vld [vmem:[%s6731_s1 + $0x6c] sm:$0xf]  ;;  %v3590_v63 = vpack.c.bf16 %v6133_v21, %v6133_v21  ;;  %v6192_v12 = vld [vmem:[%s6731_s1 + $0x74] sm:$0xf] }
 0x1be   : > { %3509 = vrot.lane.b32.xlu0 %v3499_v6, %s5288_s5  ;;  %3505 = vrot.lane.b32.xlu2 %v3497_v23, %s5288_s5  ;;  %v3764_v3 = vld.sshfl [vmem:[#allocation1 + $0x10] sm:$0xff pattern:$0x75316420] }
 0x1bf   : > { %v1367_v11 = vpop.f32.mrf.mxu0  ;;  %v6125_v15 = vpop.f32.mrf.mxu3 }
 0x1c0   : > { %v1385_v40 = vadd.f32 %v1367_v11, %v6072_v18  ;;  %v2778_v29 = vpop.permute.xlu0 %2777  ;;  %v2869_v55 = vpop.permute.xlu2 %2868 }
 0x1c1   : > { %v1382_v7 = vpop.f32.mrf.mxu1 }
 0x1c2   : > { %v1476_v4 = vadd.f32 %v6082_v38, %v1385_v40  ;;  %5039 = vmatmul.msk.bf16.vlgmr.msra.gmra.mxu0 %vm275_vm1, %v5038_v39  ;;  %v3672_v27 = vld.sshfl [vmem:[#allocation1 + $0x8] sm:$0xff pattern:$0x75316420]  ;;  %v3671_v28 = vld.sshfl [vmem:[#allocation1] sm:$0xff pattern:$0x75316420]  ;;  %v2695_v39 = vsel %vm2694_vm4, %v2687_v37, %v2689_v13 }
 0x1c3   : > { %2561 = vmatpush.bf16.msra.mxu0 %v2526_v16  ;;  %v3680_v31 = vpack.c.bf16 %v3672_v27, %v3672_v27  ;;  %3759 = vst [vmem:[#allocation1] ss:$2 sm:$0xff] %v6024_v51  ;;  %v3679_v45 = vpack.c.bf16 %v3671_v28, %v3671_v28  ;;  %v2702_v53 = vsel %vm279_vm0, %v2695_v39, 0  ;;  %vm3695_vm4 = vcmask 113664  }
 0x1c4   : > { %v1447_v18 = vpop.f32.mrf.mxu2  ;;  %v6151_v35 = vpop.permute.xlu1 %2779 }
 0x1c5   : > { %3511 = vrot.lane.b32.xlu1 %v3500_v48, %s5288_s5  ;;  %v2786_v42 = vsel %vm2785_vm8, %v2778_v29, %v6151_v35  ;;  %v3591_v18 = vpack.c.bf16 %v6135_v22, %v6135_v22 }
 0x1c6   : > { %3689 = vrot.lane.b32.xlu0 %v3680_v31, %s5290_s9  ;;  %v2793_v44 = vsel %vm279_vm0, %v2786_v42, 0  ;;  %3598 = vrot.lane.b32.xlu2 %v3589_v17, %s5289_s8  ;;  %v3845_v17 = vld [vmem:[%s5343_s19 + $0x8] sm:$0xff] }
 0x1c7   : > { %v1369_v32 = vpop.f32.mrf.mxu0  ;;  %v1564_v34 = vpop.f32.mrf.mxu3  ;;  %2808 = vmatpush.bf16.msrb.mxu3 %v2793_v44 }
 0x1c8   : > { %v2871_v5 = vpop.permute.xlu0 %2870  ;;  %v2784_v14 = vpop.permute.xlu2 %2783 }
 0x1c9   : > { %v1536_v30 = vpop.f32.mrf.mxu1  ;;  %5047 = vmatmul.msk.bf16.vlgmr.msrb.gmra.mxu2 %vm275_vm1, %v6114_v0  ;;  %v2877_v41 = vsel %vm2876_vm9, %v2869_v55, %v2871_v5 }
 0x1ca   : > { %v6153_v38 = vadd.f32 %v1536_v30, %v1475_v49  ;;  %2743 = vmatpush.bf16.msrb.mxu2 %v2708_v33  ;;  %v3762_v56 = vld.sshfl [vmem:[#allocation1] sm:$0xff pattern:$0x75316420]  ;;  %v6180_v2 = vld.sshfl [vmem:[#allocation1 + $0x8] sm:$0xff pattern:$0x75316420] }
 0x1cb   : > { %3850 = vst [vmem:[#allocation1] ss:$2 sm:$0xff] %v6024_v51  ;;  %v3770_v37 = vpack.c.bf16 %v3762_v56, %v3762_v56  ;;  %v6222_v30 = vld [vmem:[%s5343_s19 + $0x4] sm:$0xff] }
 0x1cc   : > { %5045 = vmatmul.msk.bf16.vlgmr.msrb.gmra.mxu1 %vm275_vm1, %v6070_v24  ;;  %v1549_v47 = vpop.f32.mrf.mxu2  ;;  %5053 = vmatmul.msk.bf16.vlgmr.msra.gmra.mxu3 %vm275_vm1, %v5050_v43  ;;  %v2782_v59 = vpop.permute.xlu1 %2781 }
 0x1cd   : > { %v1567_v52 = vadd.f32 %v1549_v47, %v1476_v4  ;;  %2730 = vmatpush.bf16.msrb.mxu1 %v2705_v61  ;;  %3691 = vrot.lane.b32.xlu1 %v3681_v50, %s5290_s9  ;;  %v2788_v8 = vsel %vm2785_vm8, %v2782_v59, %v2784_v14  ;;  %v2787_v21 = vsel %vm2785_vm8, %v6151_v35, %v2782_v59  ;;  %vm3786_vm8 = vcmask 105472  }
 0x1ce   : > { %3687 = vrot.lane.b32.xlu0 %v3679_v45, %s5290_s9  ;;  %3600 = vrot.lane.b32.xlu2 %v3590_v63, %s5289_s8  ;;  %v2799_v13 = vsel %vm279_vm0, %v2788_v8, 0  ;;  %v2796_v29 = vsel %vm279_vm0, %v2787_v21, 0 }
 0x1cf   : > { %v1471_v54 = vpop.f32.mrf.mxu0  ;;  %v6168_v57 = vpop.f32.mrf.mxu3 }
 0x1d0   : > { %v1477_v19 = vadd.f32 %v1471_v54, %v6105_v62  ;;  %v3765_v62 = vld.sshfl [vmem:[#allocation1 + $0x18] sm:$0xff pattern:$0x75316420]  ;;  %v2964_v9 = vpop.permute.xlu2 %2963  ;;  %v6197_v11 = vpop.permute.xlu0 %2872 }
 0x1d1   : > { %v1538_v58 = vpop.f32.mrf.mxu1  ;;  %v3773_v26 = vpack.c.bf16 %v3765_v62, %v3765_v62  ;;  %v2878_v40 = vsel %vm2876_vm9, %v2871_v5, %v6197_v11  ;;  %3852 = vst [vmem:[#allocation1 + $0x10] ss:$2 sm:$0xff] %v3845_v17  ;;  %v6241_v54 = vld [vmem:[%s6731_s1 + $0x78] sm:$0xf] }
 0x1d2   : > { %v1568_v60 = vadd.f32 %v6125_v15, %v1477_v19  ;;  %5044 = vmatmul.msk.bf16.vlgmr.msrb.gmra.mxu0 %vm275_vm1, %v6070_v24  ;;  %v2884_v24 = vsel %vm279_vm0, %v2877_v41, 0  ;;  %v2887_v7 = vsel %vm279_vm0, %v2878_v40, 0  ;;  %v3853_v23 = vld.sshfl [vmem:[#allocation1] sm:$0xff pattern:$0x75316420] }
 0x1d3   : > { %2717 = vmatpush.bf16.msrb.mxu0 %v2702_v53  ;;  %2912 = vmatpush.bf16.msra.mxu3 %v2887_v7  ;;  %v3861_v25 = vpack.c.bf16 %v3853_v23, %v3853_v23  ;;  %v3854_v32 = vld.sshfl [vmem:[#allocation1 + $0x8] sm:$0xff pattern:$0x75316420] }
 0x1d4   : > { %v1551_v36 = vpop.f32.mrf.mxu2  ;;  %v2962_v15 = vpop.permute.xlu1 %2961  ;;  %3941 = vst [vmem:[#allocation1] ss:$2 sm:$0xff] %v6222_v30  ;;  %v3862_v42 = vpack.c.bf16 %v3854_v32, %v3854_v32  ;;  %v3936_v58 = vld [vmem:[%s5343_s19 + $0xc] sm:$0xf] }
 0x1d5   : > { %3693 = vrot.lane.b32.xlu1 %v3682_v1, %s5290_s9 }
 0x1d6   : > { %3784 = vrot.lane.b32.xlu0 %v3773_v26, %s5291_s16  ;;  %3602 = vrot.lane.b32.xlu2 %v3591_v18, %s5289_s8  ;;  %v3771_v26 = vpack.c.bf16 %v6180_v2, %v6180_v2  ;;  %s5294_s8 = smov 120  }
 0x1d7   : > { %v1473_v6 = vpop.f32.mrf.mxu0  ;;  %v1720_v49 = vpop.f32.mrf.mxu3 }
 0x1d8   : > { %v2875_v34 = vpop.permute.xlu0 %2874  ;;  %v3855_v63 = vld.sshfl [vmem:[#allocation1 + $0x10] sm:$0xff pattern:$0x75316420]  ;;  %v6251_v62 = vld.sshfl [vmem:[#allocation1 + $0x18] sm:$0xff pattern:$0x75316420] }
 0x1d9   : > { %v1640_v10 = vpop.f32.mrf.mxu1  ;;  %5052 = vmatmul.msk.bf16.vlgmr.msra.gmra.mxu2 %vm275_vm1, %v5050_v43  ;;  %v2879_v41 = vsel %vm2876_vm9, %v6197_v11, %v2875_v34  ;;  %v3863_v1 = vpack.c.bf16 %v3855_v63, %v3855_v63  ;;  %3943 = vst [vmem:[#allocation1 + $0x10] ss:$2 sm:$0xff] %v3936_v58  ;;  %v6314_v63 = vld [vmem:[%s6731_s1 + $0x84] sm:$0xf]  ;;  %vm3877_vm9 = vcmask 97280  }
 0x1da   : > { %v6194_v51 = vadd.f32 %v1640_v10, %v1567_v52  ;;  %2899 = vmatpush.bf16.msra.mxu2 %v2884_v24  ;;  %v2890_v49 = vsel %vm279_vm0, %v2879_v41, 0  ;;  %v4019_v10 = vld [vmem:[%s5343_s19 + $0xc] sm:$0xf] }
 0x1db   : > { %v6245_v5 = vld.sshfl [vmem:[#allocation1] sm:$0xff pattern:$0x75316420]  ;;  %v4185_v41 = vld [vmem:[%s5343_s19 + $0xc] sm:$0xf] }
 0x1dc   : > { %5051 = vmatmul.msk.bf16.vlgmr.msra.gmra.mxu1 %vm275_vm1, %v5050_v43  ;;  %v1653_v16 = vpop.f32.mrf.mxu2  ;;  %5059 = vmatmul.msk.bf16.vlgmr.msrb.gmra.mxu3 %vm275_vm1, %v6192_v12  ;;  %v2966_v31 = vpop.permute.xlu2 %2965  ;;  %v3772_v43 = vpack.c.bf16 %v3764_v3, %v3764_v3 }
 0x1dd   : > { %v1659_v4 = vadd.f32 %v1653_v16, %v1568_v60  ;;  %2834 = vmatpush.bf16.msra.mxu1 %v2799_v13  ;;  %3778 = vrot.lane.b32.xlu1 %v3770_v37, %s5291_s16  ;;  %v2970_v33 = vsel %vm2967_vm10, %v2964_v9, %v2966_v31  ;;  %v2960_v61 = vpop.permute.xlu1 %2959 }
 0x1de   : > { %3869 = vrot.lane.b32.xlu0 %v3861_v25, %s5292_s20  ;;  %v2981_v55 = vsel %vm279_vm0, %v2970_v33, 0  ;;  %v2968_v47 = vsel %vm2967_vm10, %v2960_v61, %v2962_v15  ;;  %3782 = vrot.lane.b32.xlu2 %v3772_v43, %s5291_s16  ;;  %v3950_v61 = vpack.c.bf16 %v6245_v5, %v6245_v5 }
 0x1df   : > { %v1627_v48 = vpop.f32.mrf.mxu0  ;;  %v6209_v27 = vpop.f32.mrf.mxu3  ;;  %3016 = vmatpush.bf16.msrb.mxu3 %v2981_v55  ;;  %v2975_v39 = vsel %vm279_vm0, %v2968_v47, 0 }
 0x1e0   : > { %v1657_v28 = vadd.f32 %v1627_v48, %v6153_v38  ;;  %v2969_v38 = vsel %vm2967_vm10, %v2962_v15, %v2964_v9  ;;  %v3055_v53 = vpop.permute.xlu0 %3054  ;;  %v3946_v15 = vld.sshfl [vmem:[#allocation1 + $0x10] sm:$0xff pattern:$0x75316420]  ;;  %vm4463_vm10 = vcmask 965632  }
 0x1e1   : > { %v1642_v22 = vpop.f32.mrf.mxu1  ;;  %v2978_v46 = vsel %vm279_vm0, %v2969_v38, 0  ;;  %v3952_v16 = vpack.c.bf16 %v3946_v15, %v3946_v15  ;;  %4026 = vst [vmem:[#allocation1 + $0x10] ss:$2 sm:$0xff] %v4019_v10 }
 0x1e2   : > { %v1748_v20 = vadd.f32 %v6168_v57, %v1657_v28  ;;  %5049 = vmatmul.msk.bf16.vlgmr.msra.gmra.mxu0 %vm275_vm1, %v6114_v0  ;;  %v5054_v0 = vld [vmem:[%s6731_s1 + $0x70] sm:$0xf]  ;;  %v3945_v57 = vld.sshfl [vmem:[#allocation1 + $0x8] sm:$0xff pattern:$0x75316420] }
 0x1e3   : > { %2821 = vmatpush.bf16.msra.mxu0 %v2796_v29  ;;  %v3951_v14 = vpack.c.bf16 %v3945_v57, %v3945_v57  ;;  %4024 = vst [vmem:[#allocation1] ss:$2 sm:$0xff] %v6222_v30  ;;  %v5066_v29 = vld [vmem:[%s6731_s1 + $0x7c] sm:$0xf] }
 0x1e4   : > { %v1655_v35 = vpop.f32.mrf.mxu2  ;;  %v6243_v19 = vpop.permute.xlu2 %3050 }
 0x1e5   : > { %3871 = vrot.lane.b32.xlu1 %v3862_v42, %s5292_s20  ;;  %v3057_v59 = vpop.permute.xlu1 %3056 }
 0x1e6   : > { %3958 = vrot.lane.b32.xlu0 %v3951_v14, %s5255_s23  ;;  %3780 = vrot.lane.b32.xlu2 %v3771_v26, %s5291_s16 }
 0x1e7   : > { %v1629_v44 = vpop.f32.mrf.mxu0  ;;  %v1824_v50 = vpop.f32.mrf.mxu3 }
 0x1e8   : > { %v3053_v13 = vpop.permute.xlu0 %3052 }
 0x1e9   : > { %v1744_v45 = vpop.f32.mrf.mxu1  ;;  %5057 = vmatmul.msk.bf16.vlgmr.msrb.gmra.mxu2 %vm275_vm1, %v5054_v0  ;;  %v3060_v23 = vsel %vm3058_vm11, %v3053_v13, %v3055_v53  ;;  %v3059_v35 = vsel %vm3058_vm11, %v6243_v19, %v3053_v13  ;;  %v4102_v19 = vld [vmem:[%s5343_s19 + $0xc] sm:$0xf] }
 0x1ea   : > { %v6235_v52 = vadd.f32 %v1744_v45, %v1659_v4  ;;  %3003 = vmatpush.bf16.msrb.mxu2 %v2978_v46  ;;  %v4028_v28 = vld.sshfl [vmem:[#allocation1 + $0x8] sm:$0xff pattern:$0x75316420]  ;;  %v4027_v22 = vld.sshfl [vmem:[#allocation1] sm:$0xff pattern:$0x75316420] }
 0x1eb   : > { %v4034_v32 = vpack.c.bf16 %v4028_v28, %v4028_v28  ;;  %v4033_v34 = vpack.c.bf16 %v4027_v22, %v4027_v22  ;;  %4107 = vst [vmem:[#allocation1] ss:$2 sm:$0xff] %v6222_v30  ;;  %v3066_v43 = vsel %vm279_vm0, %v3059_v35, 0  ;;  %v4029_v46 = vld.sshfl [vmem:[#allocation1 + $0x10] sm:$0xff pattern:$0x75316420] }
 0x1ec   : > { %5056 = vmatmul.msk.bf16.vlgmr.msrb.gmra.mxu1 %vm275_vm1, %v5054_v0  ;;  %v1809_v60 = vpop.f32.mrf.mxu2  ;;  %5064 = vmatmul.msk.bf16.vlgmr.msra.gmra.mxu3 %vm275_vm1, %v6241_v54  ;;  %v6266_v2 = vpop.permute.xlu2 %3143  ;;  %4109 = vst [vmem:[#allocation1 + $0x10] ss:$2 sm:$0xff] %v4102_v19 }
 0x1ed   : > { %v1839_v36 = vadd.f32 %v1809_v60, %v1748_v20  ;;  %2990 = vmatpush.bf16.msrb.mxu1 %v2975_v39  ;;  %3873 = vrot.lane.b32.xlu1 %v3863_v1, %s5292_s20  ;;  %v3864_v39 = vpack.c.bf16 %v6251_v62, %v6251_v62 }
 0x1ee   : > { %3960 = vrot.lane.b32.xlu0 %v3952_v16, %s5255_s23  ;;  %3956 = vrot.lane.b32.xlu2 %v3950_v61, %s5255_s23 }
 0x1ef   : > { %v1731_v56 = vpop.f32.mrf.mxu0  ;;  %v1926_v6 = vpop.f32.mrf.mxu3 }
 0x1f0   : > { %v1749_v24 = vadd.f32 %v1731_v56, %v6194_v51  ;;  %v3061_v51 = vsel %vm3058_vm11, %v3055_v53, %v3057_v59  ;;  %v3142_v40 = vpop.permute.xlu1 %3141 }
 0x1f1   : > { %v1746_v8 = vpop.f32.mrf.mxu1  ;;  %v3150_v7 = vsel %vm3149_vm12, %v3142_v40, %v6266_v2  ;;  %v3072_v21 = vsel %vm279_vm0, %v3061_v51, 0 }
 0x1f2   : > { %v1840_v9 = vadd.f32 %v6209_v27, %v1749_v24  ;;  %5055 = vmatmul.msk.bf16.vlgmr.msrb.gmra.mxu0 %vm275_vm1, %v5054_v0  ;;  %v3157_v37 = vsel %vm279_vm0, %v3150_v7, 0  ;;  %v3069_v27 = vsel %vm279_vm0, %v3060_v23, 0  ;;  %v6320_v1 = vld.sshfl [vmem:[#allocation1] sm:$0xff pattern:$0x75316420] }
 0x1f3   : > { %2925 = vmatpush.bf16.msrb.mxu0 %v2890_v49  ;;  %3172 = vmatpush.bf16.msra.mxu3 %v3157_v37  ;;  %v4111_v26 = vld.sshfl [vmem:[#allocation1 + $0x8] sm:$0xff pattern:$0x75316420]  ;;  %v4035_v37 = vpack.c.bf16 %v4029_v46, %v4029_v46 }
 0x1f4   : > { %v1811_v11 = vpop.f32.mrf.mxu2  ;;  %v3146_v31 = vpop.permute.xlu2 %3145  ;;  %4190 = vst [vmem:[#allocation1] ss:$2 sm:$0xff] %v6222_v30 }
 0x1f5   : > { %4041 = vrot.lane.b32.xlu1 %v4034_v32, %s5256_s24  ;;  %v3151_v49 = vsel %vm3149_vm12, %v6266_v2, %v3146_v31 }
 0x1f6   : > { %4039 = vrot.lane.b32.xlu0 %v4033_v34, %s5256_s24  ;;  %3875 = vrot.lane.b32.xlu2 %v3864_v39, %s5292_s20  ;;  %v3160_v15 = vsel %vm279_vm0, %v3151_v49, 0 }
 0x1f7   : > { %v1733_v4 = vpop.f32.mrf.mxu0  ;;  %v1928_v18 = vpop.f32.mrf.mxu3 }
 0x1f8   : > { %v3235_v20 = vpop.permute.xlu1 %3234  ;;  %v3233_v38 = vpop.permute.xlu0 %3232 }
 0x1f9   : > { %v1900_v25 = vpop.f32.mrf.mxu1  ;;  %5063 = vmatmul.msk.bf16.vlgmr.msra.gmra.mxu2 %vm275_vm1, %v6241_v54  ;;  %v3241_v50 = vsel %vm3240_vm13, %v3233_v38, %v3235_v20  ;;  %v6358_v38 = vld [vmem:[%s6731_s1 + $0x88] sm:$0xf] }
 0x1fa   : > { %v6277_v48 = vadd.f32 %v1900_v25, %v1839_v36  ;;  %3107 = vmatpush.bf16.msra.mxu2 %v3072_v21  ;;  %v3248_v14 = vsel %vm279_vm0, %v3241_v50, 0  ;;  %v4116_v50 = vpack.c.bf16 %v6320_v1, %v6320_v1 }
 0x1fb   : > { %v4193_v4 = vld.sshfl [vmem:[#allocation1] sm:$0xff pattern:$0x75316420]  ;;  %v6336_v21 = vld.sshfl [vmem:[#allocation1 + $0x8] sm:$0xff pattern:$0x75316420] }
 0x1fc   : > { %5061 = vmatmul.msk.bf16.vlgmr.msra.gmra.mxu1 %vm275_vm1, %v6192_v12  ;;  %v1913_v33 = vpop.f32.mrf.mxu2  ;;  %5069 = vmatmul.msk.bf16.vlgmr.msrb.gmra.mxu3 %vm275_vm1, %v5066_v29  ;;  %v4199_v25 = vpack.c.bf16 %v4193_v4, %v4193_v4  ;;  %4274 = vst [vmem:[#allocation1] ss:$2 sm:$0xff] %v6222_v30 }
 0x1fd   : > { %v1931_v55 = vadd.f32 %v1913_v33, %v1840_v9  ;;  %3094 = vmatpush.bf16.msra.mxu1 %v3069_v27  ;;  %v4112_v9 = vld.sshfl [vmem:[#allocation1 + $0x10] sm:$0xff pattern:$0x75316420]  ;;  %v5070_v27 = vld [vmem:[%s6731_s1 + $0x80] sm:$0xf] }
 0x1fe   : > { %v4118_v10 = vpack.c.bf16 %v4112_v9, %v4112_v9  ;;  %4192 = vst [vmem:[#allocation1 + $0x10] ss:$2 sm:$0xff] %v4185_v41  ;;  %4043 = vrot.lane.b32.xlu2 %v4035_v37, %s5256_s24  ;;  %s5293_s24 = smov 121  }
 0x1ff   : > { %v1835_v42 = vpop.f32.mrf.mxu0  ;;  %v2082_v3 = vpop.f32.mrf.mxu3 }
 0x200   : > { %v1841_v17 = vadd.f32 %v1835_v42, %v6235_v52  ;;  %v6299_v45 = vpop.permute.xlu1 %3236  ;;  %v3148_v57 = vpop.permute.xlu0 %3147  ;;  %4126 = vrot.lane.b32.xlu1 %v4118_v10, %s5257_s25  ;;  %v4269_v42 = vld [vmem:[%s5343_s19 + $0xc] sm:$0xf] }
 0x201   : > { %v1902_v0 = vpop.f32.mrf.mxu1  ;;  %v3242_v52 = vsel %vm3240_vm13, %v3235_v20, %v6299_v45  ;;  %v3326_v5 = vpop.permute.xlu2 %3325  ;;  %v3152_v60 = vsel %vm3149_vm12, %v3146_v31, %v3148_v57 }
 0x202   : > { %v1932_v44 = vadd.f32 %v1926_v6, %v1841_v17  ;;  %5060 = vmatmul.msk.bf16.vlgmr.msra.gmra.mxu0 %vm275_vm1, %v6192_v12  ;;  %v3251_v53 = vsel %vm279_vm0, %v3242_v52, 0  ;;  %v3163_v36 = vsel %vm279_vm0, %v3152_v60, 0  ;;  %v4117_v6 = vpack.c.bf16 %v4111_v26, %v4111_v26 }
 0x203   : > { %3081 = vmatpush.bf16.msra.mxu0 %v3066_v43  ;;  %3276 = vmatpush.bf16.msrb.mxu3 %v3251_v53  ;;  %v4278_v17 = vld.sshfl [vmem:[#allocation1 + $0x8] sm:$0xff pattern:$0x75316420] }
 0x204   : > { %v1915_v47 = vpop.f32.mrf.mxu2  ;;  %4124 = vrot.lane.b32.xlu0 %v4117_v6, %s5257_s25 }
 0x205   : > { %v6350_v34 = vld.sshfl [vmem:[#allocation1 + $0x10] sm:$0xff pattern:$0x75316420] }
 0x206   : > { %4276 = vst [vmem:[#allocation1 + $0x10] ss:$2 sm:$0xff] %v4269_v42  ;;  %4122 = vrot.lane.b32.xlu2 %v4116_v50, %s5257_s25  ;;  %v4437_v42 = vld [vmem:[%s5343_s19 + $0xc] sm:$0xf] }
 0x207   : > { %v1837_v12 = vpop.f32.mrf.mxu0  ;;  %v2084_v58 = vpop.f32.mrf.mxu3 }
 0x208   : > { %v3328_v8 = vpop.permute.xlu0 %3327  ;;  %v3239_v16 = vpop.permute.xlu1 %3238  ;;  %4205 = vrot.lane.b32.xlu1 %v4199_v25, %s5293_s24 }
 0x209   : > { %v2004_v59 = vpop.f32.mrf.mxu1  ;;  %5068 = vmatmul.msk.bf16.vlgmr.msrb.gmra.mxu2 %vm275_vm1, %v5066_v29  ;;  %v3324_v40 = vpop.permute.xlu2 %3323  ;;  %v3333_v18 = vsel %vm3331_vm14, %v3326_v5, %v3328_v8  ;;  %v3243_v47 = vsel %vm3240_vm13, %v6299_v45, %v3239_v16 }
 0x20a   : > { %v6316_v62 = vadd.f32 %v2004_v59, %v1931_v55  ;;  %3263 = vmatpush.bf16.msrb.mxu2 %v3248_v14  ;;  %v3332_v31 = vsel %vm3331_vm14, %v3324_v40, %v3326_v5  ;;  %v3254_v19 = vsel %vm279_vm0, %v3243_v47, 0  ;;  %v4353_v5 = vld [vmem:[%s5343_s19 + $0xc] sm:$0xf]  ;;  %s5296_s19 = smov 118  }
 0x20b   : > { %v3339_v35 = vsel %vm279_vm0, %v3332_v31, 0 }
 0x20c   : > { %5067 = vmatmul.msk.bf16.vlgmr.msrb.gmra.mxu1 %vm275_vm1, %v5066_v29  ;;  %v2017_v56 = vpop.f32.mrf.mxu2  ;;  %5075 = vmatmul.msk.bf16.vlgmr.msra.gmra.mxu3 %vm275_vm1, %v6314_v63  ;;  %v3342_v29 = vsel %vm279_vm0, %v3333_v18, 0 }
 0x20d   : > { %v2023_v24 = vadd.f32 %v2017_v56, %v1932_v44  ;;  %3198 = vmatpush.bf16.msrb.mxu1 %v3163_v36  ;;  %v4284_v44 = vpack.c.bf16 %v4278_v17, %v4278_v17  ;;  %v4279_v58 = vld.sshfl [vmem:[#allocation1 + $0x10] sm:$0xff pattern:$0x75316420] }
 0x20e   : > { %v4285_v41 = vpack.c.bf16 %v4279_v58, %v4279_v58  ;;  %4360 = vst [vmem:[#allocation1 + $0x10] ss:$2 sm:$0xff] %v4353_v5 }
 0x20f   : > { %v1991_v13 = vpop.f32.mrf.mxu0  ;;  %v6329_v11 = vpop.f32.mrf.mxu3 }
 0x210   : > { %v2021_v51 = vadd.f32 %v1991_v13, %v6277_v48  ;;  %v3330_v48 = vpop.permute.xlu0 %3329  ;;  %v3419_v61 = vpop.permute.xlu1 %3418  ;;  %4291 = vrot.lane.b32.xlu1 %v4284_v44, %s5294_s8 }
 0x211   : > { %v2006_v7 = vpop.f32.mrf.mxu1  ;;  %v3421_v33 = vpop.permute.xlu2 %3420 }
 0x212   : > { %v2112_v2 = vadd.f32 %v2082_v3, %v2021_v51  ;;  %5065 = vmatmul.msk.bf16.vlgmr.msrb.gmra.mxu0 %vm275_vm1, %v6241_v54  ;;  %v3334_v54 = vsel %vm3331_vm14, %v3328_v8, %v3330_v48  ;;  %v4277_v3 = vld.sshfl [vmem:[#allocation1] sm:$0xff pattern:$0x75316420]  ;;  %v3425_v59 = vsel %vm3422_vm15, %v3419_v61, %v3421_v33 }
 0x213   : > { %3185 = vmatpush.bf16.msrb.mxu0 %v3160_v15  ;;  %v3345_v22 = vsel %vm279_vm0, %v3334_v54, 0  ;;  %v4283_v0 = vpack.c.bf16 %v4277_v3, %v4277_v3  ;;  %4358 = vst [vmem:[#allocation1] ss:$2 sm:$0xff] %v6222_v30  ;;  %v3436_v26 = vsel %vm279_vm0, %v3425_v59, 0 }
 0x214   : > { %v2019_v23 = vpop.f32.mrf.mxu2  ;;  %3380 = vmatpush.bf16.msra.mxu3 %v3345_v22 }
 0x215   : > { %4289 = vrot.lane.b32.xlu0 %v4283_v0, %s5294_s8 }
 0x217   : > { %v1993_v28 = vpop.f32.mrf.mxu0  ;;  %v2188_v32 = vpop.f32.mrf.mxu3 }
 0x219   : > { %v2108_v20 = vpop.f32.mrf.mxu1  ;;  %5073 = vmatmul.msk.bf16.vlgmr.msra.gmra.mxu2 %vm275_vm1, %v5070_v27  ;;  %v3506_v53 = vpop.permute.xlu2 %3505 }
 0x21a   : > { %v6352_v55 = vadd.f32 %v2108_v20, %v2023_v24  ;;  %3367 = vmatpush.bf16.msra.mxu2 %v3342_v29  ;;  %v4362_v13 = vld.sshfl [vmem:[#allocation1 + $0x8] sm:$0xff pattern:$0x75316420]  ;;  %v4361_v40 = vld.sshfl [vmem:[#allocation1] sm:$0xff pattern:$0x75316420] }
 0x21b   : > { %v4368_v15 = vpack.c.bf16 %v4362_v13, %v4362_v13  ;;  %4442 = vst [vmem:[#allocation1] ss:$2 sm:$0xff] %v6222_v30 }
 0x21c   : > { %5072 = vmatmul.msk.bf16.vlgmr.msra.gmra.mxu1 %vm275_vm1, %v5070_v27  ;;  %v2173_v43 = vpop.f32.mrf.mxu2  ;;  %5080 = vmatmul.msk.bf16.vlgmr.msrb.gmra.mxu3 %vm275_vm1, %v6358_v38 }
 0x21d   : > { %v2203_v46 = vadd.f32 %v2173_v43, %v2112_v2  ;;  %3354 = vmatpush.bf16.msra.mxu1 %v3339_v35  ;;  %4293 = vrot.lane.b32.xlu0 %v4285_v41, %s5294_s8  ;;  %v4367_v2 = vpack.c.bf16 %v4361_v40, %v4361_v40 }
 0x21e   : > { %4375 = vrot.lane.b32.xlu1 %v4368_v15, %s5295_s10 }
 0x21f   : > { %v2095_v39 = vpop.f32.mrf.mxu0  ;;  %v6369_v52 = vpop.f32.mrf.mxu3 }
 0x220   : > { %v2113_v57 = vadd.f32 %v2095_v39, %v6316_v62  ;;  %v3415_v14 = vpop.permute.xlu0 %3414  ;;  %v3417_v36 = vpop.permute.xlu1 %3416  ;;  %v4200_v62 = vpack.c.bf16 %v6336_v21, %v6336_v21  ;;  %v4201_v21 = vpack.c.bf16 %v6350_v34, %v6350_v34  ;;  %v4363_v34 = vld.sshfl [vmem:[#allocation1 + $0x10] sm:$0xff pattern:$0x75316420] }
 0x221   : > { %v2110_v45 = vpop.f32.mrf.mxu1  ;;  %v3424_v56 = vsel %vm3422_vm15, %v3417_v36, %v3419_v61  ;;  %v3599_v24 = vpop.permute.xlu2 %3598  ;;  %v3423_v4 = vsel %vm3422_vm15, %v3415_v14, %v3417_v36  ;;  %4444 = vst [vmem:[#allocation1 + $0x10] ss:$2 sm:$0xff] %v4437_v42  ;;  %v4369_v36 = vpack.c.bf16 %v4363_v34, %v4363_v34 }
 0x222   : > { %v2204_v12 = vadd.f32 %v6329_v11, %v2113_v57  ;;  %5071 = vmatmul.msk.bf16.vlgmr.msra.gmra.mxu0 %vm275_vm1, %v5070_v27  ;;  %4207 = vrot.lane.b32.xlu2 %v4200_v62, %s5293_s24  ;;  %v3433_v9 = vsel %vm279_vm0, %v3424_v56, 0  ;;  %v5082_v11 = vld [vmem:[%s6731_s1 + $0x8c] sm:$0xf]  ;;  %v3430_v30 = vsel %vm279_vm0, %v3423_v4, 0 }
 0x223   : > { %3289 = vmatpush.bf16.msra.mxu0 %v3254_v19  ;;  %v4446_v50 = vld.sshfl [vmem:[#allocation1 + $0x8] sm:$0xff pattern:$0x75316420] }
 0x224   : > { %v2175_v60 = vpop.f32.mrf.mxu2  ;;  %v4452_v57 = vpack.c.bf16 %v4446_v50, %v4446_v50 }
 0x225   : > { %4373 = vrot.lane.b32.xlu0 %v4367_v2, %s5295_s10 }
 0x227   : > { %v2097_v1 = vpop.f32.mrf.mxu0  ;;  %v2292_v6 = vpop.f32.mrf.mxu3 }
 0x228   : > { %v3508_v10 = vpop.permute.xlu0 %3507  ;;  %v4447_v14 = vld.sshfl [vmem:[#allocation1 + $0x10] sm:$0xff pattern:$0x75316420] }
 0x229   : > { %v2264_v49 = vpop.f32.mrf.mxu1  ;;  %5079 = vmatmul.msk.bf16.vlgmr.msrb.gmra.mxu2 %vm275_vm1, %v6358_v38  ;;  %v3514_v51 = vsel %vm3513_vm2, %v3506_v53, %v3508_v10  ;;  %v6405_v48 = vpop.permute.xlu2 %3600  ;;  %v4453_v59 = vpack.c.bf16 %v4447_v14, %v4447_v14 }
 0x22a   : > { %v6385_v8 = vadd.f32 %v2264_v49, %v2203_v46  ;;  %3471 = vmatpush.bf16.msrb.mxu2 %v3436_v26  ;;  %v3521_v7 = vsel %vm279_vm0, %v3514_v51, 0  ;;  %4209 = vrot.lane.b32.xlu2 %v4201_v21, %s5293_s24  ;;  %v3606_v54 = vsel %vm3604_vm3, %v3599_v24, %v6405_v48  ;;  %v5086_v26 = vld [vmem:[%s6731_s1 + $0x90] sm:$0xf] }
 0x22b   : > { %3536 = vmatpush.bf16.msrb.mxu3 %v3521_v7  ;;  %v3615_v32 = vsel %vm279_vm0, %v3606_v54, 0  ;;  %4461 = vrot.lane.b32.xlu1 %v4453_v59, %s5296_s19 }
 0x22c   : > { %5077 = vmatmul.msk.bf16.vlgmr.msrb.gmra.mxu1 %vm275_vm1, %v6314_v63  ;;  %v2277_v16 = vpop.f32.mrf.mxu2  ;;  %5085 = vmatmul.msk.bf16.vlgmr.msra.gmra.mxu3 %vm275_vm1, %v5082_v11 }
 0x22d   : > { %v2295_v37 = vadd.f32 %v2277_v16, %v2204_v12  ;;  %3458 = vmatpush.bf16.msrb.mxu1 %v3433_v9  ;;  %4459 = vrot.lane.b32.xlu0 %v4452_v57, %s5296_s19 }
 0x22f   : > { %v2199_v23 = vpop.f32.mrf.mxu0  ;;  %v2446_v18 = vpop.f32.mrf.mxu3  ;;  %3640 = vmatpush.bf16.msra.mxu3 %v3615_v32 }
 0x230   : > { %v2205_v25 = vadd.f32 %v2199_v23, %v6352_v55  ;;  %v3597_v29 = vpop.permute.xlu1 %3596  ;;  %v3510_v31 = vpop.permute.xlu0 %3509 }
 0x231   : > { %v2266_v27 = vpop.f32.mrf.mxu1  ;;  %v3605_v33 = vsel %vm3604_vm3, %v3597_v29, %v3599_v24  ;;  %v3603_v47 = vpop.permute.xlu2 %3602  ;;  %v4445_v29 = vld.sshfl [vmem:[#allocation1] sm:$0xff pattern:$0x75316420] }
 0x232   : > { %v2296_v28 = vadd.f32 %v6369_v52, %v2205_v25  ;;  %5076 = vmatmul.msk.bf16.vlgmr.msrb.gmra.mxu0 %vm275_vm1, %v6314_v63  ;;  %v3612_v55 = vsel %vm279_vm0, %v3605_v33, 0  ;;  %v6419_v63 = vld [vmem:[%s6731_s1 + $0x94] sm:$0xf]  ;;  %v3515_v52 = vsel %vm3513_vm2, %v3508_v10, %v3510_v31  ;;  %4377 = vrot.lane.b32.xlu2 %v4369_v36, %s5295_s10  ;;  %v3607_v2 = vsel %vm3604_vm3, %v6405_v48, %v3603_v47 }
 0x233   : > { %3445 = vmatpush.bf16.msrb.mxu0 %v3430_v30  ;;  %v3524_v5 = vsel %vm279_vm0, %v3515_v52, 0  ;;  %v3618_v23 = vsel %vm279_vm0, %v3607_v2, 0  ;;  %v4451_v48 = vpack.c.bf16 %v4445_v29, %v4445_v29 }
 0x234   : > { %v2279_v22 = vpop.f32.mrf.mxu2 }
 0x237   : > { %v2201_v20 = vpop.f32.mrf.mxu0  ;;  %v2448_v35 = vpop.f32.mrf.mxu3 }
 0x238   : > { %v3512_v17 = vpop.permute.xlu1 %3511  ;;  %v3690_v43 = vpop.permute.xlu0 %3689 }
 0x239   : > { %v2368_v61 = vpop.f32.mrf.mxu1  ;;  %5084 = vmatmul.msk.bf16.vlgmr.msra.gmra.mxu2 %vm275_vm1, %v5082_v11  ;;  %v3516_v0 = vsel %vm3513_vm2, %v3510_v31, %v3512_v17  ;;  %v3783_v56 = vpop.permute.xlu2 %3782 }
 0x23a   : > { %v2386_v3 = vadd.f32 %v2368_v61, %v2295_v37  ;;  %3627 = vmatpush.bf16.msra.mxu2 %v3612_v55  ;;  %v3527_v46 = vsel %vm279_vm0, %v3516_v0, 0  ;;  %4457 = vrot.lane.b32.xlu2 %v4451_v48, %s5296_s19 }
 0x23c   : > { %5083 = vmatmul.msk.bf16.vlgmr.msra.gmra.mxu1 %vm275_vm1, %v5082_v11  ;;  %v2381_v44 = vpop.f32.mrf.mxu2  ;;  %5091 = vmatmul.msk.bf16.vlgmr.msrb.gmra.mxu3 %vm275_vm1, %v6419_v63  ;;  %v6446_v11 = vld [vmem:[%s6731_s1 + $0x98] sm:$0xf] }
 0x23d   : > { %v2387_v39 = vadd.f32 %v2381_v44, %v2296_v28  ;;  %3562 = vmatpush.bf16.msra.mxu1 %v3527_v46 }
 0x23f   : > { %v2355_v19 = vpop.f32.mrf.mxu0  ;;  %v2550_v53 = vpop.f32.mrf.mxu3 }
 0x240   : > { %v2385_v45 = vadd.f32 %v2355_v19, %v6385_v8  ;;  %v3692_v60 = vpop.permute.xlu1 %3691  ;;  %v3688_v1 = vpop.permute.xlu0 %3687 }
 0x241   : > { %v2370_v12 = vpop.f32.mrf.mxu1  ;;  %v3697_v62 = vsel %vm3695_vm4, %v3690_v43, %v3692_v60  ;;  %v3696_v24 = vsel %vm3695_vm4, %v3688_v1, %v3690_v43 }
 0x242   : > { %v2476_v58 = vadd.f32 %v2446_v18, %v2385_v45  ;;  %5081 = vmatmul.msk.bf16.vlgmr.msra.gmra.mxu0 %vm275_vm1, %v6358_v38  ;;  %v3706_v38 = vsel %vm279_vm0, %v3697_v62, 0  ;;  %v3703_v10 = vsel %vm279_vm0, %v3696_v24, 0  ;;  %v3781_v18 = vpop.permute.xlu2 %3780 }
 0x243   : > { %3549 = vmatpush.bf16.msra.mxu0 %v3524_v5  ;;  %v3788_v33 = vsel %vm3786_vm8, %v3781_v18, %v3783_v56 }
 0x244   : > { %v2383_v41 = vpop.f32.mrf.mxu2  ;;  %v3797_v35 = vsel %vm279_vm0, %v3788_v33, 0 }
 0x247   : > { %v2357_v6 = vpop.f32.mrf.mxu0  ;;  %v2552_v49 = vpop.f32.mrf.mxu3 }
 0x248   : > { %v3694_v13 = vpop.permute.xlu1 %3693  ;;  %v3785_v16 = vpop.permute.xlu0 %3784 }
 0x249   : > { %v2472_v8 = vpop.f32.mrf.mxu1  ;;  %5089 = vmatmul.msk.bf16.vlgmr.msrb.gmra.mxu2 %vm275_vm1, %v5086_v26  ;;  %v3698_v51 = vsel %vm3695_vm4, %v3692_v60, %v3694_v13  ;;  %v3789_v28 = vsel %vm3786_vm8, %v3783_v56, %v3785_v16 }
 0x24a   : > { %v2478_v9 = vadd.f32 %v2472_v8, %v2387_v39  ;;  %3731 = vmatpush.bf16.msrb.mxu2 %v3706_v38  ;;  %v3709_v40 = vsel %vm279_vm0, %v3698_v51, 0  ;;  %v3800_v22 = vsel %vm279_vm0, %v3789_v28, 0  ;;  %v3957_v42 = vpop.permute.xlu2 %3956  ;;  %v6507_v28 = vld [vmem:[%s6731_s1 + $0xa8] sm:$0xf] }
 0x24b   : > { %3744 = vmatpush.bf16.msrb.mxu3 %v3709_v40 }
 0x24c   : > { %5088 = vmatmul.msk.bf16.vlgmr.msrb.gmra.mxu1 %vm275_vm1, %v5086_v26  ;;  %v2537_v15 = vpop.f32.mrf.mxu2  ;;  %5096 = vmatmul.msk.bf16.vlgmr.msra.gmra.mxu3 %vm275_vm1, %v6446_v11 }
 0x24d   : > { %v2567_v7 = vadd.f32 %v2537_v15, %v2476_v58  ;;  %3718 = vmatpush.bf16.msrb.mxu1 %v3703_v10 }
 0x24f   : > { %v2459_v37 = vpop.f32.mrf.mxu0  ;;  %v2654_v4 = vpop.f32.mrf.mxu3 }
 0x250   : > { %v2477_v21 = vadd.f32 %v2459_v37, %v2386_v3  ;;  %v3779_v27 = vpop.permute.xlu1 %3778  ;;  %v3870_v31 = vpop.permute.xlu0 %3869  ;;  %v5098_v3 = vld [vmem:[%s6731_s1 + $0x9c] sm:$0xf] }
 0x251   : > { %v2474_v25 = vpop.f32.mrf.mxu1  ;;  %v3787_v46 = vsel %vm3786_vm8, %v3779_v27, %v3781_v18 }
 0x252   : > { %v2568_v30 = vadd.f32 %v2550_v53, %v2477_v21  ;;  %5087 = vmatmul.msk.bf16.vlgmr.msrb.gmra.mxu0 %vm275_vm1, %v5086_v26  ;;  %v3794_v52 = vsel %vm279_vm0, %v3787_v46, 0  ;;  %v3876_v14 = vpop.permute.xlu2 %3875  ;;  %v5102_v21 = vld [vmem:[%s6731_s1 + $0xa0] sm:$0xf] }
 0x253   : > { %3653 = vmatpush.bf16.msrb.mxu0 %v3618_v23 }
 0x254   : > { %v2539_v54 = vpop.f32.mrf.mxu2 }
 0x257   : > { %v2461_v32 = vpop.f32.mrf.mxu0  ;;  %v2656_v20 = vpop.f32.mrf.mxu3 }
 0x258   : > { %v3872_v61 = vpop.permute.xlu1 %3871  ;;  %v3959_v57 = vpop.permute.xlu0 %3958 }
 0x259   : > { %v2628_v34 = vpop.f32.mrf.mxu1  ;;  %5095 = vmatmul.msk.bf16.vlgmr.msra.gmra.mxu2 %vm275_vm1, %v6446_v11  ;;  %v3878_v17 = vsel %vm3877_vm9, %v3870_v31, %v3872_v61  ;;  %v3962_v12 = vsel %vm574_vm5, %v3957_v42, %v3959_v57 }
 0x25a   : > { %v2658_v55 = vadd.f32 %v2628_v34, %v2567_v7  ;;  %3835 = vmatpush.bf16.msra.mxu2 %v3800_v22  ;;  %v3885_v0 = vsel %vm279_vm0, %v3878_v17, 0  ;;  %v3968_v60 = vsel %vm279_vm0, %v3962_v12, 0  ;;  %v4044_v8 = vpop.permute.xlu2 %4043 }
 0x25b   : > { %3900 = vmatpush.bf16.msra.mxu3 %v3885_v0  ;;  %v4057_v13 = vsel %vm279_vm0, %v4044_v8, 0 }
 0x25c   : > { %5093 = vmatmul.msk.bf16.vlgmr.msra.gmra.mxu1 %vm275_vm1, %v6419_v63  ;;  %v2641_v43 = vpop.f32.mrf.mxu2  ;;  %5101 = vmatmul.msk.bf16.vlgmr.msrb.gmra.mxu3 %vm275_vm1, %v5098_v3 }
 0x25d   : > { %v2659_v44 = vadd.f32 %v2641_v43, %v2568_v30  ;;  %3822 = vmatpush.bf16.msra.mxu1 %v3797_v35 }
 0x25f   : > { %v2563_v47 = vpop.f32.mrf.mxu0  ;;  %v2810_v50 = vpop.f32.mrf.mxu3 }
 0x260   : > { %v2569_v39 = vadd.f32 %v2563_v47, %v2478_v9  ;;  %v3874_v45 = vpop.permute.xlu1 %3873  ;;  %v3961_v62 = vpop.permute.xlu0 %3960 }
 0x261   : > { %v2630_v19 = vpop.f32.mrf.mxu1  ;;  %v3880_v36 = vsel %vm3877_vm9, %v3874_v45, %v3876_v14  ;;  %v3963_v26 = vsel %vm574_vm5, %v3959_v57, %v3961_v62  ;;  %v3879_v49 = vsel %vm3877_vm9, %v3872_v61, %v3874_v45  ;;  %v3974_v33 = vsel %vm279_vm0, %v3961_v62, 0 }
 0x262   : > { %v2660_v53 = vadd.f32 %v2654_v4, %v2569_v39  ;;  %5092 = vmatmul.msk.bf16.vlgmr.msra.gmra.mxu0 %vm275_vm1, %v6419_v63  ;;  %v6483_v63 = vld [vmem:[%s6731_s1 + $0xa4] sm:$0xf]  ;;  %v3891_v56 = vsel %vm279_vm0, %v3880_v36, 0  ;;  %v3971_v6 = vsel %vm279_vm0, %v3963_v26, 0  ;;  %v3888_v15 = vsel %vm279_vm0, %v3879_v49, 0  ;;  %v4123_v31 = vpop.permute.xlu2 %4122 }
 0x263   : > { %3809 = vmatpush.bf16.msra.mxu0 %v3794_v52  ;;  %3996 = vmatpush.bf16.msrb.mxu3 %v3971_v6  ;;  %vm4211_vm5 = vcmask 990208   ;;  %v5114_v52 = vld [vmem:[%s6731_s1 + $0xac] sm:$0xf] }
 0x264   : > { %v2643_v5 = vpop.f32.mrf.mxu2 }
 0x267   : > { %v2565_v58 = vpop.f32.mrf.mxu0  ;;  %v2812_v59 = vpop.f32.mrf.mxu3 }
 0x268   : > { %v4042_v16 = vpop.permute.xlu1 %4041  ;;  %v4040_v4 = vpop.permute.xlu0 %4039 }
 0x269   : > { %v2732_v41 = vpop.f32.mrf.mxu1  ;;  %5100 = vmatmul.msk.bf16.vlgmr.msrb.gmra.mxu2 %vm275_vm1, %v5098_v3  ;;  %v4046_v37 = vsel %vm658_vm6, %v4042_v16, %v4044_v8  ;;  %v4045_v30 = vsel %vm658_vm6, %v4040_v4, %v4042_v16  ;;  %vm4295_vm6 = vcmask 982016  }
 0x26a   : > { %v2750_v1 = vadd.f32 %v2732_v41, %v2659_v44  ;;  %3983 = vmatpush.bf16.msrb.mxu2 %v3968_v60  ;;  %v4054_v25 = vsel %vm279_vm0, %v4046_v37, 0 }
 0x26c   : > { %5099 = vmatmul.msk.bf16.vlgmr.msrb.gmra.mxu1 %vm275_vm1, %v5098_v3  ;;  %v2745_v38 = vpop.f32.mrf.mxu2  ;;  %5107 = vmatmul.msk.bf16.vlgmr.msra.gmra.mxu3 %vm275_vm1, %v6483_v63 }
 0x26d   : > { %v2751_v24 = vadd.f32 %v2745_v38, %v2660_v53  ;;  %3926 = vmatpush.bf16.msrb.mxu1 %v3891_v56  ;;  %4092 = vmatpush.bf16.msra.mxu3 %v4057_v13 }
 0x26f   : > { %v2719_v9 = vpop.f32.mrf.mxu0  ;;  %v2914_v10 = vpop.f32.mrf.mxu3 }
 0x270   : > { %v2749_v51 = vadd.f32 %v2719_v9, %v2658_v55 }
 0x271   : > { %v2734_v40 = vpop.f32.mrf.mxu1 }
 0x272   : > { %v2840_v7 = vadd.f32 %v2810_v50, %v2749_v51  ;;  %5097 = vmatmul.msk.bf16.vlgmr.msrb.gmra.mxu0 %vm275_vm1, %v6446_v11  ;;  %v4051_v11 = vsel %vm279_vm0, %v4045_v30, 0  ;;  %v4127_v35 = vpop.permute.xlu1 %4126 }
 0x273   : > { %3913 = vmatpush.bf16.msrb.mxu0 %v3888_v15  ;;  %v4140_v43 = vsel %vm279_vm0, %v4127_v35, 0 }
 0x274   : > { %v2747_v2 = vpop.f32.mrf.mxu2 }
 0x276   : > { %v4125_v42 = vpop.permute.xlu0 %4124 }
 0x277   : > { %v2721_v23 = vpop.f32.mrf.mxu0  ;;  %v2916_v18 = vpop.f32.mrf.mxu3  ;;  %v4129_v0 = vsel %vm742_vm7, %v4125_v42, %v4127_v35  ;;  %v4128_v5 = vsel %vm742_vm7, %v4123_v31, %v4125_v42  ;;  %vm4379_vm7 = vcmask 973824  }
 0x278   : > { %v4137_v50 = vsel %vm279_vm0, %v4129_v0, 0  ;;  %v4134_v60 = vsel %vm279_vm0, %v4128_v5, 0 }
 0x279   : > { %v2836_v27 = vpop.f32.mrf.mxu1  ;;  %5105 = vmatmul.msk.bf16.vlgmr.msra.gmra.mxu2 %vm275_vm1, %v5102_v21 }
 0x27a   : > { %v2842_v54 = vadd.f32 %v2836_v27, %v2751_v24  ;;  %4079 = vmatpush.bf16.msra.mxu2 %v4054_v25  ;;  %v4206_v39 = vpop.permute.xlu1 %4205 }
 0x27c   : > { %5104 = vmatmul.msk.bf16.vlgmr.msra.gmra.mxu1 %vm275_vm1, %v5102_v21  ;;  %v2901_v29 = vpop.f32.mrf.mxu2  ;;  %5112 = vmatmul.msk.bf16.vlgmr.msrb.gmra.mxu3 %vm275_vm1, %v6507_v28  ;;  %v4208_v44 = vpop.permute.xlu2 %4207 }
 0x27d   : > { %v2931_v48 = vadd.f32 %v2901_v29, %v2840_v7  ;;  %4066 = vmatpush.bf16.msra.mxu1 %v4051_v11  ;;  %v4212_v57 = vsel %vm4211_vm5, %v4206_v39, %v4208_v44  ;;  %v5118_v29 = vld [vmem:[%s6731_s1 + $0xb0] sm:$0xf] }
 0x27e   : > { %v4218_v53 = vsel %vm279_vm0, %v4212_v57, 0 }
 0x27f   : > { %v2823_v32 = vpop.f32.mrf.mxu0  ;;  %v3018_v22 = vpop.f32.mrf.mxu3  ;;  %4233 = vmatpush.bf16.msrb.mxu3 %v4218_v53 }
 0x280   : > { %v2841_v20 = vadd.f32 %v2823_v32, %v2750_v1 }
 0x281   : > { %v2838_v34 = vpop.f32.mrf.mxu1 }
 0x282   : > { %v2932_v55 = vadd.f32 %v2914_v10, %v2841_v20  ;;  %5103 = vmatmul.msk.bf16.vlgmr.msra.gmra.mxu0 %vm275_vm1, %v5102_v21  ;;  %v4292_v62 = vpop.permute.xlu1 %4291  ;;  %v6536_v10 = vld [vmem:[%s6731_s1 + $0xb4] sm:$0xf] }
 0x283   : > { %4009 = vmatpush.bf16.msra.mxu0 %v3974_v33 }
 0x284   : > { %v2903_v61 = vpop.f32.mrf.mxu2  ;;  %v4210_v56 = vpop.permute.xlu2 %4209 }
 0x285   : > { %v4224_v13 = vsel %vm279_vm0, %v4210_v56, 0  ;;  %v4213_v16 = vsel %vm4211_vm5, %v4208_v44, %v4210_v56 }
 0x286   : > { %v4221_v23 = vsel %vm279_vm0, %v4213_v16, 0 }
 0x287   : > { %v2825_v3 = vpop.f32.mrf.mxu0  ;;  %v3020_v17 = vpop.f32.mrf.mxu3 }
 0x288   : > { %v4290_v59 = vpop.permute.xlu0 %4289 }
 0x289   : > { %v2992_v46 = vpop.f32.mrf.mxu1  ;;  %5111 = vmatmul.msk.bf16.vlgmr.msrb.gmra.mxu2 %vm275_vm1, %v6507_v28  ;;  %v4296_v26 = vsel %vm4295_vm6, %v4290_v59, %v4292_v62 }
 0x28a   : > { %v3022_v47 = vadd.f32 %v2992_v46, %v2931_v48  ;;  %4175 = vmatpush.bf16.msrb.mxu2 %v4140_v43  ;;  %v4302_v24 = vsel %vm279_vm0, %v4296_v26, 0 }
 0x28c   : > { %5109 = vmatmul.msk.bf16.vlgmr.msrb.gmra.mxu1 %vm275_vm1, %v6483_v63  ;;  %v3005_v19 = vpop.f32.mrf.mxu2  ;;  %5117 = vmatmul.msk.bf16.vlgmr.msra.gmra.mxu3 %vm275_vm1, %v5114_v52  ;;  %v4378_v7 = vpop.permute.xlu2 %4377 }
 0x28d   : > { %v3023_v45 = vadd.f32 %v3005_v19, %v2932_v55  ;;  %4162 = vmatpush.bf16.msrb.mxu1 %v4137_v50  ;;  %v4392_v4 = vsel %vm279_vm0, %v4378_v7, 0 }
 0x28f   : > { %v2927_v12 = vpop.f32.mrf.mxu0  ;;  %v3174_v14 = vpop.f32.mrf.mxu3 }
 0x290   : > { %v2933_v58 = vadd.f32 %v2927_v12, %v2842_v54  ;;  %v4294_v49 = vpop.permute.xlu0 %4293  ;;  %v4376_v25 = vpop.permute.xlu1 %4375  ;;  %v5130_v12 = vld [vmem:[%s6731_s1 + $0xbc] sm:$0xf] }
 0x291   : > { %v2994_v36 = vpop.f32.mrf.mxu1  ;;  %v4297_v9 = vsel %vm4295_vm6, %v4292_v62, %v4294_v49  ;;  %v4381_v54 = vsel %vm4379_vm7, %v4376_v25, %v4378_v7  ;;  %v4308_v3 = vsel %vm279_vm0, %v4294_v49, 0 }
 0x292   : > { %v3024_v41 = vadd.f32 %v3018_v22, %v2933_v58  ;;  %5108 = vmatmul.msk.bf16.vlgmr.msrb.gmra.mxu0 %vm275_vm1, %v6483_v63  ;;  %v4305_v51 = vsel %vm279_vm0, %v4297_v9, 0  ;;  %v4389_v32 = vsel %vm279_vm0, %v4381_v54, 0 }
 0x293   : > { %4149 = vmatpush.bf16.msrb.mxu0 %v4134_v60  ;;  %4330 = vmatpush.bf16.msra.mxu3 %v4305_v51 }
 0x294   : > { %v3007_v1 = vpop.f32.mrf.mxu2  ;;  %v4458_v5 = vpop.permute.xlu2 %4457 }
 0x297   : > { %v2929_v6 = vpop.f32.mrf.mxu0  ;;  %v3176_v38 = vpop.f32.mrf.mxu3 }
 0x298   : > { %v4374_v11 = vpop.permute.xlu0 %4373  ;;  %v4520_v6 = vld [vmem:[%s6732_s2] sm:$0xff]  ;;  %v5297_v38 = vmov 0  }
 0x299   : > { %v3096_v8 = vpop.f32.mrf.mxu1  ;;  %5116 = vmatmul.msk.bf16.vlgmr.msra.gmra.mxu2 %vm275_vm1, %v5114_v52  ;;  %v4380_v22 = vsel %vm4379_vm7, %v4374_v11, %v4376_v25  ;;  %5216 = vset.pattern.permute.xlu1 %v5297_v38 }
 0x29a   : > { %v3114_v63 = vadd.f32 %v3096_v8, %v3023_v45  ;;  %4317 = vmatpush.bf16.msra.mxu2 %v4302_v24  ;;  %v4386_v34 = vsel %vm279_vm0, %v4380_v22, 0  ;;  %5217 = vset.pattern.permute.xlu0 %v5297_v38 }
 0x29b   : > { %4523 = vperm.xlu1 %5216, %v4520_v6  }
 0x29c   : > { %5115 = vmatmul.msk.bf16.vlgmr.msra.gmra.mxu1 %vm275_vm1, %v5114_v52  ;;  %v3109_v15 = vpop.f32.mrf.mxu2  ;;  %5123 = vmatmul.msk.bf16.vlgmr.msrb.gmra.mxu3 %vm275_vm1, %v6536_v10 }
 0x29d   : > { %v3115_v40 = vadd.f32 %v3109_v15, %v3024_v41  ;;  %4259 = vmatpush.bf16.msra.mxu1 %v4224_v13  ;;  %4427 = vmatpush.bf16.msrb.mxu3 %v4392_v4 }
 0x29f   : > { %v3083_v2 = vpop.f32.mrf.mxu0  ;;  %v3278_v37 = vpop.f32.mrf.mxu3 }
 0x2a0   : > { %v3113_v21 = vadd.f32 %v3083_v2, %v3022_v47  ;;  %v4460_v46 = vpop.permute.xlu0 %4459  ;;  %v4462_v47 = vpop.permute.xlu1 %4461  ;;  %v5134_v2 = vld [vmem:[%s6731_s1 + $0xc0] sm:$0xf] }
 0x2a1   : > { %v3098_v18 = vpop.f32.mrf.mxu1  ;;  %v4476_v52 = vsel %vm279_vm0, %v4462_v47, 0  ;;  %v4465_v57 = vsel %vm4463_vm10, %v4460_v46, %v4462_v47  ;;  %v4464_v60 = vsel %vm4463_vm10, %v4458_v5, %v4460_v46 }
 0x2a2   : > { %v3204_v30 = vadd.f32 %v3174_v14, %v3113_v21  ;;  %5113 = vmatmul.msk.bf16.vlgmr.msra.gmra.mxu0 %vm275_vm1, %v6507_v28  ;;  %v5126_v28 = vld [vmem:[%s6731_s1 + $0xb8] sm:$0xf]  ;;  %v4473_v45 = vsel %vm279_vm0, %v4465_v57, 0  ;;  %v4470_v62 = vsel %vm279_vm0, %v4464_v60, 0 }
 0x2a3   : > { %4246 = vmatpush.bf16.msra.mxu0 %v4221_v23 }
 0x2a4   : > { %v3111_v27 = vpop.f32.mrf.mxu2 }
 0x2a7   : > { %v3085_v48 = vpop.f32.mrf.mxu0  ;;  %v3280_v31 = vpop.f32.mrf.mxu3 }
 0x2a9   : > { %v3200_v33 = vpop.f32.mrf.mxu1  ;;  %5121 = vmatmul.msk.bf16.vlgmr.msrb.gmra.mxu2 %vm275_vm1, %v5118_v29 }
 0x2aa   : > { %v3206_v20 = vadd.f32 %v3200_v33, %v3115_v40  ;;  %4414 = vmatpush.bf16.msrb.mxu2 %v4389_v32 }
 0x2ac   : > { %5120 = vmatmul.msk.bf16.vlgmr.msrb.gmra.mxu1 %vm275_vm1, %v5118_v29  ;;  %v3265_v55 = vpop.f32.mrf.mxu2  ;;  %5128 = vmatmul.msk.bf16.vlgmr.msra.gmra.mxu3 %vm275_vm1, %v5126_v28 }
 0x2ad   : > { %v3295_v35 = vadd.f32 %v3265_v55, %v3204_v30  ;;  %4401 = vmatpush.bf16.msrb.mxu1 %v4386_v34 }
 0x2af   : > { %v3187_v61 = vpop.f32.mrf.mxu0  ;;  %v3382_v42 = vpop.f32.mrf.mxu3 }
 0x2b0   : > { %v3205_v17 = vadd.f32 %v3187_v61, %v3114_v63 }
 0x2b1   : > { %v3202_v43 = vpop.f32.mrf.mxu1 }
 0x2b2   : > { %v3296_v0 = vadd.f32 %v3278_v37, %v3205_v17  ;;  %5119 = vmatmul.msk.bf16.vlgmr.msrb.gmra.mxu0 %vm275_vm1, %v5118_v29 }
 0x2b3   : > { %4343 = vmatpush.bf16.msrb.mxu0 %v4308_v3 }
 0x2b4   : > { %v3267_v44 = vpop.f32.mrf.mxu2 }
 0x2b7   : > { %v3189_v50 = vpop.f32.mrf.mxu0  ;;  %v3384_v39 = vpop.f32.mrf.mxu3 }
 0x2b9   : > { %v3356_v19 = vpop.f32.mrf.mxu1  ;;  %5127 = vmatmul.msk.bf16.vlgmr.msra.gmra.mxu2 %vm275_vm1, %v5126_v28 }
 0x2ba   : > { %v3386_v53 = vadd.f32 %v3356_v19, %v3295_v35  ;;  %4511 = vmatpush.bf16.msra.mxu2 %v4476_v52 }
 0x2bc   : > { %5125 = vmatmul.msk.bf16.vlgmr.msra.gmra.mxu1 %vm275_vm1, %v6536_v10  ;;  %v3369_v14 = vpop.f32.mrf.mxu2  ;;  %5133 = vmatmul.msk.bf16.vlgmr.msrb.gmra.mxu3 %vm275_vm1, %v5130_v12 }
 0x2bd   : > { %v3387_v58 = vadd.f32 %v3369_v14, %v3296_v0  ;;  %4498 = vmatpush.bf16.msra.mxu1 %v4473_v45 }
 0x2bf   : > { %v3291_v59 = vpop.f32.mrf.mxu0  ;;  %v3538_v36 = vpop.f32.mrf.mxu3 }
 0x2c0   : > { %v3297_v41 = vadd.f32 %v3291_v59, %v3206_v20 }
 0x2c1   : > { %v3358_v1 = vpop.f32.mrf.mxu1 }
 0x2c2   : > { %v3388_v26 = vadd.f32 %v3382_v42, %v3297_v41  ;;  %5124 = vmatmul.msk.bf16.vlgmr.msra.gmra.mxu0 %vm275_vm1, %v6536_v10 }
 0x2c3   : > { %4485 = vmatpush.bf16.msra.mxu0 %v4470_v62 }
 0x2c4   : > { %v3371_v56 = vpop.f32.mrf.mxu2 }
 0x2c7   : > { %v3293_v24 = vpop.f32.mrf.mxu0  ;;  %v3540_v49 = vpop.f32.mrf.mxu3 }
 0x2c9   : > { %v3460_v8 = vpop.f32.mrf.mxu1  ;;  %5132 = vmatmul.msk.bf16.vlgmr.msrb.gmra.mxu2 %vm275_vm1, %v5130_v12 }
 0x2ca   : > { %v3478_v9 = vadd.f32 %v3460_v8, %v3387_v58  ;;  %v4529_v8 = vlaneseq }
 0x2cc   : > { %5131 = vmatmul.msk.bf16.vlgmr.msrb.gmra.mxu1 %vm275_vm1, %v5130_v12  ;;  %v3473_v10 = vpop.f32.mrf.mxu2 }
 0x2cd   : > { %v3479_v63 = vadd.f32 %v3473_v10, %v3388_v26 }
 0x2cf   : > { %v3447_v13 = vpop.f32.mrf.mxu0  ;;  %v3642_v51 = vpop.f32.mrf.mxu3 }
 0x2d0   : > { %v3477_v15 = vadd.f32 %v3447_v13, %v3386_v53  ;;  %v6599_v13 = vand.u32 127, %v4529_v8 }
 0x2d1   : > { %v3462_v40 = vpop.f32.mrf.mxu1 }
 0x2d2   : > { %v3568_v16 = vadd.f32 %v3538_v36, %v3477_v15  ;;  %5129 = vmatmul.msk.bf16.vlgmr.msrb.gmra.mxu0 %vm275_vm1, %v5126_v28 }
 0x2d4   : > { %v3475_v7 = vpop.f32.mrf.mxu2 }
 0x2d7   : > { %v3449_v37 = vpop.f32.mrf.mxu0  ;;  %v3644_v4 = vpop.f32.mrf.mxu3 }
 0x2d8   : > { %v6607_v37 = vadd.s32 256, %v6599_v13 }
 0x2d9   : > { %v3564_v21 = vpop.f32.mrf.mxu1  ;;  %5137 = vmatmul.msk.bf16.vlgmr.msra.gmra.mxu2 %vm275_vm1, %v5134_v2 }
 0x2da   : > { %v3570_v23 = vadd.f32 %v3564_v21, %v3479_v63 }
 0x2dc   : > { %5136 = vmatmul.msk.bf16.vlgmr.msra.gmra.mxu1 %vm275_vm1, %v5134_v2  ;;  %v3629_v18 = vpop.f32.mrf.mxu2 }
 0x2dd   : > { %v3659_v25 = vadd.f32 %v3629_v18, %v3568_v16  ;;  %v6604_v16 = vadd.s32 128, %v6599_v13 }
 0x2df   : > { %v3551_v30 = vpop.f32.mrf.mxu0  ;;  %v3746_v27 = vpop.f32.mrf.mxu3  ;;  %v4565_v4 = vand.u32 65535, %v6604_v16 }
 0x2e0   : > { %v3569_v54 = vadd.f32 %v3551_v30, %v3478_v9 }
 0x2e1   : > { %v3566_v11 = vpop.f32.mrf.mxu1  ;;  %v4569_v30 = vmul.u32 47662, %v4565_v4 }
 0x2e2   : > { %v3660_v29 = vadd.f32 %v3642_v51, %v3569_v54  ;;  %5135 = vmatmul.msk.bf16.vlgmr.msra.gmra.mxu0 %vm275_vm1, %v5134_v2  ;;  %v4595_v54 = vshrl.u32 %v6607_v37, 16 }
 0x2e4   : > { %v3631_v48 = vpop.f32.mrf.mxu2 }
 0x2e7   : > { %v3553_v31 = vpop.f32.mrf.mxu0  ;;  %v3748_v32 = vpop.f32.mrf.mxu3 }
 0x2e9   : > { %v3720_v22 = vpop.f32.mrf.mxu1 }
 0x2ea   : > { %v3750_v33 = vadd.f32 %v3720_v22, %v3659_v25  ;;  %v4566_v25 = vshrl.u32 %v6604_v16, 16  ;;  %v4568_v22 = vmul.u32 35747, %v4565_v4 }
 0x2ec   : > { %v3733_v20 = vpop.f32.mrf.mxu2 }
 0x2ed   : > { %v3751_v34 = vadd.f32 %v3733_v20, %v3660_v29  ;;  %v4537_v29 = vshrl.u32 %v6599_v13, 16  ;;  %v4572_v20 = vshll.u32 %v4569_v30, 16 }
 0x2ef   : > { %v3655_v28 = vpop.f32.mrf.mxu0  ;;  %v3902_v55 = vpop.f32.mrf.mxu3  ;;  %vm4576_vm0 = vc.u32 %v4568_v22, %v4572_v20 }
 0x2f0   : > { %v3661_v35 = vadd.f32 %v3655_v28, %v3570_v23  ;;  %v4594_v23 = vand.u32 65535, %v6607_v37 }
 0x2f1   : > { %v3722_v61 = vpop.f32.mrf.mxu1 }
 0x2f2   : > { %v3752_v42 = vadd.f32 %v3746_v27, %v3661_v35  ;;  %v4536_v27 = vand.u32 65535, %v6599_v13  ;;  %v4598_v11 = vmul.u32 47662, %v4594_v23  ;;  %v4597_v28 = vmul.u32 35747, %v4594_v23 }
 0x2f4   : > { %v3735_v3 = vpop.f32.mrf.mxu2  ;;  %v4540_v32 = vmul.u32 47662, %v4536_v27  ;;  %v4601_v35 = vshll.u32 %v4598_v11, 16  ;;  %v4539_v61 = vmul.u32 35747, %v4536_v27 }
 0x2f6   : > { %v4543_v3 = vshll.u32 %v4540_v32, 16  ;;  %vm4605_vm1 = vc.u32 %v4597_v28, %v4601_v35 }
 0x2f7   : > { %v3657_v17 = vpop.f32.mrf.mxu0  ;;  %v3904_v43 = vpop.f32.mrf.mxu3 }
 0x2f8   : > { %vm4547_vm11 = vc.u32 %v4539_v61, %v4543_v3 }
 0x2f9   : > { %v3824_v0 = vpop.f32.mrf.mxu1 }
 0x2fa   : > { %v3842_v44 = vadd.f32 %v3824_v0, %v3751_v34  ;;  %v4578_v0 = vadd.s32 %v4572_v20, %v4568_v22 }
 0x2fc   : > { %v3837_v46 = vpop.f32.mrf.mxu2 }
 0x2fd   : > { %v3843_v47 = vadd.f32 %v3837_v46, %v3752_v42  ;;  %v4541_v42 = vmul.u32 35747, %v4537_v29  ;;  %v4607_v46 = vadd.s32 %v4601_v35, %v4597_v28 }
 0x2ff   : > { %v3811_v50 = vpop.f32.mrf.mxu0  ;;  %v3998_v39 = vpop.f32.mrf.mxu3  ;;  %v4546_v22 = vshrl.u32 %v4541_v42, 16 }
 0x300   : > { %v3841_v52 = vadd.f32 %v3811_v50, %v3750_v33  ;;  %v4570_v33 = vmul.u32 35747, %v4566_v25  ;;  %v4545_v50 = vshll.u32 %v4541_v42, 16 }
 0x301   : > { %v3826_v57 = vpop.f32.mrf.mxu1 }
 0x302   : > { %v3932_v19 = vadd.f32 %v3902_v55, %v3841_v52  ;;  %v4599_v55 = vmul.u32 35747, %v4595_v54  ;;  %v4574_v43 = vshll.u32 %v4570_v33, 16  ;;  %v4575_v23 = vshrl.u32 %v4570_v33, 16 }
 0x304   : > { %v3839_v53 = vpop.f32.mrf.mxu2  ;;  %vm4580_vm12 = vc.u32 %v4578_v0, %v4574_v43  ;;  %v4604_v27 = vshrl.u32 %v4599_v55, 16 }
 0x305   : > { %v4600_v53 = vmul.u32 47662, %v4595_v54 }
 0x307   : > { %v3813_v45 = vpop.f32.mrf.mxu0  ;;  %v4000_v5 = vpop.f32.mrf.mxu3 }
 0x308   : > { %v4606_v45 = vsel %vm4605_vm1, 1, %v5297_v38  ;;  %v4542_v5 = vmul.u32 47662, %v4537_v29 }
 0x309   : > { %v3928_v12 = vpop.f32.mrf.mxu1 }
 0x30a   : > { %v3934_v14 = vadd.f32 %v3928_v12, %v3843_v47  ;;  %v4571_v47 = vmul.u32 47662, %v4566_v25 }
 0x30c   : > { %v3985_v58 = vpop.f32.mrf.mxu2 }
 0x30d   : > { %v6589_v60 = vadd.f32 %v3985_v58, %v3932_v19  ;;  %v4577_v19 = vsel %vm4576_vm0, 1, %v5297_v38 }
 0x30e   : > { %v4579_v58 = vadd.s32 %v4577_v19, %v4571_v47 }
 0x30f   : > { %v3915_v59 = vpop.f32.mrf.mxu0  ;;  %v4094_v36 = vpop.f32.mrf.mxu3 }
 0x310   : > { %v3933_v41 = vadd.f32 %v3915_v59, %v3842_v44  ;;  %v4603_v44 = vshll.u32 %v4599_v55, 16  ;;  %v4581_v59 = vsel %vm4580_vm12, 1, %v5297_v38 }
 0x311   : > { %v3930_v62 = vpop.f32.mrf.mxu1  ;;  %v4583_v8 = vadd.s32 %v4581_v59, %v4579_v58 }
 0x312   : > { %v6591_v1 = vadd.f32 %v3998_v39, %v3933_v41  ;;  %v4549_v39 = vadd.s32 %v4543_v3, %v4539_v61  ;;  %vm4609_vm13 = vc.u32 %v4607_v46, %v4603_v44 }
 0x313   : > { %v4610_v62 = vsel %vm4609_vm13, 1, %v5297_v38 }
 0x314   : > { %v3987_v26 = vpop.f32.mrf.mxu2  ;;  %vm4551_vm14 = vc.u32 %v4549_v39, %v4545_v50 }
 0x317   : > { %v3917_v56 = vpop.f32.mrf.mxu0  ;;  %v4096_v6 = vpop.f32.mrf.mxu3 }
 0x318   : > { %v4552_v56 = vsel %vm4551_vm14, 1, %v5297_v38  ;;  %v4573_v6 = vshrl.u32 %v4569_v30, 16 }
 0x319   : > { %v6593_v24 = vpop.f32.mrf.mxu1 }
 0x31a   : > { %v4584_v25 = vadd.s32 %v4583_v8, %v4573_v6 }
 0x31c   : > { %v6595_v49 = vpop.f32.mrf.mxu2 }
 0x31d   : > { %v4099_v33 = vadd.f32 %v6595_v49, %v6591_v1 }
 0x31f   : > { %v4011_v9 = vpop.f32.mrf.mxu0  ;;  %v6597_v10 = vpop.f32.mrf.mxu3 }
 0x320   : > { %v4017_v63 = vadd.f32 %v4011_v9, %v3934_v14  ;;  %v4548_v14 = vsel %vm4547_vm11, 1, %v5297_v38  ;;  %vm4642_vm11 = vcmask 785408  }
 0x321   : > { %v4070_v51 = vpop.f32.mrf.mxu1  ;;  %v4550_v26 = vadd.s32 %v4548_v14, %v4542_v5 }
 0x322   : > { %v6601_v15 = vadd.f32 %v4094_v36, %v4017_v63  ;;  %v4608_v36 = vadd.s32 %v4606_v45, %v4600_v53  ;;  %v4602_v51 = vshrl.u32 %v4598_v11, 16 }
 0x324   : > { %v4083_v40 = vpop.f32.mrf.mxu2 }
 0x325   : > { %v4612_v40 = vadd.s32 %v4610_v62, %v4608_v36  ;;  %v4524_v36 = vpop.permute.xlu1 %4523 }
 0x327   : > { %v4013_v7 = vpop.f32.mrf.mxu0  ;;  %v4237_v2 = vpop.f32.mrf.mxu3  ;;  %v4613_v54 = vadd.s32 %v4612_v40, %v4602_v51 }
 0x328   : > { %v4544_v7 = vshrl.u32 %v4540_v32, 16  ;;  %v4554_v2 = vadd.s32 %v4552_v56, %v4550_v26 }
 0x329   : > { %v6610_v21 = vpop.f32.mrf.mxu1  ;;  %v4614_v35 = vadd.s32 %v4613_v54, %v4604_v27 }
 0x32a   : > { %v4555_v20 = vadd.s32 %v4554_v2, %v4544_v7  ;;  %v4182_v42 = vadd.f32 %v6610_v21, %v4099_v33 }
 0x32c   : > { %v6613_v18 = vpop.f32.mrf.mxu2  ;;  %v4556_v30 = vadd.s32 %v4555_v20, %v4546_v22 }
 0x32d   : > { %v4183_v50 = vadd.f32 %v6613_v18, %v6601_v15 }
 0x32e   : > { %v4557_v43 = vshrl.u32 %v4556_v30, 4 }
 0x32f   : > { %v6619_v48 = vpop.f32.mrf.mxu0  ;;  %v6621_v31 = vpop.f32.mrf.mxu3 }
 0x330   : > { %v4558_v55 = vmul.u32 22, %v4557_v43 }
 0x331   : > { %v4166_v34 = vpop.f32.mrf.mxu1 }
 0x332   : > { %v4585_v34 = vadd.s32 %v4584_v25, %v4575_v23  ;;  %v4559_v53 = vsub.s32 %v6599_v13, %v4558_v55 }
 0x334   : > { %v4179_v17 = vpop.f32.mrf.mxu2  ;;  %v4586_v3 = vshrl.u32 %v4585_v34, 4  ;;  %vm4620_vm8 = vcmp.ne.s32.totalorder %v4559_v53, 0  ;;  %vm4623_vm9 = vcmp.lt.s32.totalorder %v4559_v53, 0  ;;  %v4629_v5 = vadd.s32 22, %v4559_v53 }
 0x335   : > { %v4615_v17 = vshrl.u32 %v4614_v35, 4  ;;  %vm6652_vm7 = vmand %vm4623_vm9, %vm4620_vm8 }
 0x336   : > { %v4587_v32 = vmul.u32 22, %v4586_v3  ;;  %v4632_v6 = vsel %vm6652_vm7, %v4629_v5, %v4559_v53 }
 0x337   : > { %v4153_v52 = vpop.f32.mrf.mxu0  ;;  %v4334_v57 = vpop.f32.mrf.mxu3  ;;  %v4616_v44 = vmul.u32 22, %v4615_v17  ;;  %vm6671_vm1 = vcmp.lt.s32.totalorder %v4632_v6, 16 }
 0x338   : > { %v4588_v47 = vsub.s32 %v6604_v16, %v4587_v32  ;;  %v4098_v52 = vadd.f32 %v6593_v24, %v6589_v60 }
 0x339   : > { %v4261_v12 = vpop.f32.mrf.mxu1  ;;  %v4617_v39 = vsub.s32 %v6607_v37, %v4616_v44 }
 0x33a   : > { %v4267_v45 = vadd.f32 %v4261_v12, %v4183_v50  ;;  %v4181_v1 = vadd.f32 %v6619_v48, %v4098_v52  ;;  %vm4621_vm15 = vcmp.ne.s32.totalorder %v4588_v47, 0  ;;  %vm4624_vm2 = vcmp.lt.s32.totalorder %v4588_v47, 0 }
 0x33b   : > { %vm4622_vm3 = vcmp.ne.s32.totalorder %v4617_v39, 0  ;;  %vm4625_vm4 = vcmp.lt.s32.totalorder %v4617_v39, 0  ;;  %vm6643_vm5 = vmand %vm4624_vm2, %vm4621_vm15  ;;  %v4631_v24 = vadd.s32 22, %v4617_v39  ;;  %v4630_v18 = vadd.s32 22, %v4588_v47 }
 0x33c   : > { %v6627_v41 = vpop.f32.mrf.mxu2  ;;  %v4265_v13 = vadd.f32 %v6597_v10, %v4181_v1  ;;  %vm6648_vm6 = vmand %vm4625_vm4, %vm4622_vm3 }
 0x33d   : > { %v4634_v10 = vsel %vm6648_vm6, %v4631_v24, %v4617_v39  ;;  %v4633_v56 = vsel %vm6643_vm5, %v4630_v18, %v4588_v47 }
 0x33e   : > { %v4349_v14 = vadd.f32 %v6627_v41, %v4265_v13  ;;  %vm6663_vm10 = vcmp.lt.s32.totalorder %v4634_v10, 16  ;;  %vm6667_vm0 = vcmp.lt.s32.totalorder %v4633_v56, 16 }
 0x33f   : > { %v4248_v9 = vpop.f32.mrf.mxu0  ;;  %v4429_v63 = vpop.f32.mrf.mxu3 }
 0x340   : > { %v4266_v57 = vadd.f32 %v4248_v9, %v4182_v42 }
 0x341   : > { %v4263_v4 = vpop.f32.mrf.mxu1 }
 0x342   : > { %v4350_v15 = vadd.f32 %v6621_v31, %v4266_v57 }
 0x344   : > { %v4321_v29 = vpop.f32.mrf.mxu2 }
 0x347   : > { %v4250_v28 = vpop.f32.mrf.mxu0  ;;  %v4431_v38 = vpop.f32.mrf.mxu3 }
 0x348   : > { %v5298_v28 = vmov 256.0  }
 0x349   : > { %v4403_v61 = vpop.f32.mrf.mxu1  ;;  %5218 = vrcp.f32 %v5298_v28 }
 0x34a   : > { %v4433_v26 = vadd.f32 %v4403_v61, %v4349_v14 }
 0x34c   : > { %v4416_v11 = vpop.f32.mrf.mxu2 }
 0x34d   : > { %v4434_v37 = vadd.f32 %v4416_v11, %v4350_v15 }
 0x34f   : > { %v4345_v0 = vpop.f32.mrf.mxu0  ;;  %v5219_v35 = vpop.eup %5218 }
 0x350   : > { %v4351_v49 = vadd.f32 %v4345_v0, %v4267_v45  ;;  %v4648_v38 = vmul.f32 256.0, %v5219_v35  ;;  %vm4652_vm12 = vweird.f32 %v5219_v35 }
 0x351   : > { %v4405_v46 = vpop.f32.mrf.mxu1 }
 0x352   : > { %v4435_v12 = vadd.f32 %v4429_v63, %v4351_v49  ;;  %v4649_v30 = vsub.f32 1.0, %v4648_v38 }
 0x354   : > { %v4418_v19 = vpop.f32.mrf.mxu2  ;;  %v4650_v61 = vmul.f32 %v5219_v35, %v4649_v30 }
 0x356   : > { %v4651_v3 = vadd.f32 %v5219_v35, %v4650_v61 }
 0x357   : > { %v4347_v21 = vpop.f32.mrf.mxu0 }
 0x358   : > { %v4653_v17 = vsel %vm4652_vm12, %v5219_v35, %v4651_v3 }
 0x359   : > { %v4500_v16 = vpop.f32.mrf.mxu1 }
 0x35a   : > { %v4518_v58 = vadd.f32 %v4500_v16, %v4434_v37 }
 0x35c   : > { %v4513_v59 = vpop.f32.mrf.mxu2  ;;  %v4527_v63 = vadd.f32 %v4524_v36, %v4518_v58 }
 0x35d   : > { %v4519_v62 = vadd.f32 %v4513_v59, %v4435_v12 }
 0x35e   : > { %v4639_v25 = vsel %vm6667_vm0, %v4527_v63, 0.0 }
 0x35f   : > { %v4528_v8 = vadd.f32 %v4524_v36, %v4519_v62  ;;  %v4487_v9 = vpop.f32.mrf.mxu0 }
 0x360   : > { %v4517_v41 = vadd.f32 %v4487_v9, %v4433_v26 }
 0x361   : > { %v4502_v2 = vpop.f32.mrf.mxu1  ;;  %v4640_v23 = vsel %vm6663_vm10, %v4528_v8, 0.0 }
 0x362   : > { %v4526_v4 = vadd.f32 %v4524_v36, %v4517_v41  ;;  %v4643_v22 = vsel %vm4642_vm11, %v4640_v23, 0.0 }
 0x364   : > { %v4638_v27 = vsel %vm6671_vm1, %v4526_v4, 0.0  ;;  %v4515_v54 = vpop.f32.mrf.mxu2 }
 0x365   : > { %v4641_v29 = vadd.f32 %v4639_v25, %v4638_v27 }
 0x367   : > { %v4489_v20 = vpop.f32.mrf.mxu0  ;;  %v4644_v34 = vadd.f32 %v4643_v22, %v4641_v29 }
 0x369   : > { %4645 = vadd.xlane.f32.xlu2 %v4644_v34 }
 0x3dc   : > { %v4646_v11 = vpop.xlane.xlu2 %4645 }
 0x3dd   : > { %v4654_v43 = vmul.f32 %v4653_v17, %v4646_v11 }
 0x3df   : > { %v4655_v32 = vsub.f32 %v4526_v4, %v4654_v43  ;;  %v4656_v0 = vsub.f32 %v4527_v63, %v4654_v43  ;;  %v4657_v44 = vsub.f32 %v4528_v8, %v4654_v43 }
 0x3e1   : > { %v4658_v33 = vsel %vm6671_vm1, %v4655_v32, 0.0  ;;  %v4659_v55 = vsel %vm6667_vm0, %v4656_v0, 0.0  ;;  %v4660_v46 = vsel %vm6663_vm10, %v4657_v44, 0.0 }
 0x3e2   : > { %v4661_v42 = vmul.f32 %v4658_v33, %v4658_v33  ;;  %v4662_v47 = vmul.f32 %v4659_v55, %v4659_v55  ;;  %v4663_v50 = vmul.f32 %v4660_v46, %v4660_v46 }
 0x3e4   : > { %v4664_v39 = vadd.f32 %v4662_v47, %v4661_v42  ;;  %v4665_v52 = vsel %vm4642_vm11, %v4663_v50, 0.0 }
 0x3e6   : > { %v4666_v57 = vadd.f32 %v4665_v52, %v4664_v39 }
 0x3e8   : > { %4667 = vadd.xlane.f32.xlu0 %v4666_v57 }
 0x45b   : > { %v4668_v19 = vpop.xlane.xlu0 %4667 }
 0x45c   : > { %v4669_v53 = vmul.f32 %v4668_v19, %v4653_v17 }
 0x45e   : > { %v4670_v45 = vadd.f32 1e-05, %v4669_v53 }
 0x460   : > { %5220 = vrsqrt.f32 %v4670_v45  ;;  %vm4677_vm14 = vweird.f32 %v4670_v45 }
 0x466   : > { %v5221_v1 = vpop.eup %5220 }
 0x467   : > { %v4672_v49 = vmul.f32 %v5221_v1, %v4670_v45  ;;  %vm4678_vm13 = vweird.f32 %v5221_v1 }
 0x468   : > { %vm4679_vm15 = vmor %vm4677_vm14, %vm4678_vm13 }
 0x469   : > { %v4673_v21 = vmul.f32 %v5221_v1, %v4672_v49 }
 0x46b   : > { %v4674_v15 = vmul.f32 0.5, %v4673_v21 }
 0x46d   : > { %v4675_v16 = vsub.f32 1.5, %v4674_v15 }
 0x46f   : > { %v4676_v60 = vmul.f32 %v5221_v1, %v4675_v16 }
 0x471   : > { %v4680_v24 = vsel %vm4679_vm15, %v5221_v1, %v4676_v60 }
 0x472   : > { %v6689_v13 = vmul.f32 %v4680_v24, %v4655_v32  ;;  %v6691_v37 = vmul.f32 %v4680_v24, %v4656_v0  ;;  %v6693_v18 = vmul.f32 %v4680_v24, %v4657_v44 }
 0x474   : > { %v6696_v48 = vmul.f32 0.70710677, %v6689_v13  ;;  %v6699_v5 = vmul.f32 0.70710677, %v6691_v37  ;;  %v6702_v12 = vmul.f32 0.70710677, %v6693_v18 }
 0x476   : > { %v4690_v31 = vmul.f32 %v6696_v48, %v6696_v48  ;;  %v4730_v14 = vmul.f32 %v6699_v5, %v6699_v5  ;;  %v4770_v58 = vmul.f32 %v6702_v12, %v6702_v12 }
 0x478   : > { %v4691_v59 = vmin.f32 %v4690_v31, 16.0  ;;  %v4731_v36 = vmin.f32 %v4730_v14, 16.0  ;;  %v4771_v62 = vmin.f32 %v4770_v58, 16.0 }
 0x47a   : > { %v4692_v10 = vmul.f32 2.1237322e-06, %v4691_v59  ;;  %v4703_v26 = vmul.f32 3.8918573e-05, %v4691_v59  ;;  %v4732_v56 = vmul.f32 2.1237322e-06, %v4731_v36 }
 0x47b   : > { %v4743_v6 = vmul.f32 3.8918573e-05, %v4731_v36  ;;  %v4772_v8 = vmul.f32 2.1237322e-06, %v4771_v62  ;;  %v4783_v51 = vmul.f32 3.8918573e-05, %v4771_v62 }
 0x47c   : > { %v4693_v9 = vadd.f32 0.00028619796, %v4692_v10  ;;  %v4704_v63 = vadd.f32 0.001143296, %v4703_v26  ;;  %v4733_v41 = vadd.f32 0.00028619796, %v4732_v56 }
 0x47d   : > { %v4744_v40 = vadd.f32 0.001143296, %v4743_v6  ;;  %v4773_v7 = vadd.f32 0.00028619796, %v4772_v8  ;;  %v4784_v23 = vadd.f32 0.001143296, %v4783_v51 }
 0x47e   : > { %v4694_v2 = vmul.f32 %v4693_v9, %v4691_v59  ;;  %v4705_v4 = vmul.f32 %v4704_v63, %v4691_v59  ;;  %v4734_v25 = vmul.f32 %v4733_v41, %v4731_v36 }
 0x47f   : > { %v4745_v27 = vmul.f32 %v4744_v40, %v4731_v36  ;;  %v4774_v54 = vmul.f32 %v4773_v7, %v4771_v62  ;;  %v4785_v20 = vmul.f32 %v4784_v23, %v4771_v62 }
 0x480   : > { %v4695_v29 = vadd.f32 0.0036580483, %v4694_v2  ;;  %v4706_v22 = vadd.f32 0.014752088, %v4705_v4  ;;  %v4735_v34 = vadd.f32 0.0036580483, %v4734_v25 }
 0x481   : > { %v4746_v28 = vadd.f32 0.014752088, %v4745_v27  ;;  %v4775_v35 = vadd.f32 0.0036580483, %v4774_v54  ;;  %v4786_v61 = vadd.f32 0.014752088, %v4785_v20 }
 0x482   : > { %v4696_v38 = vmul.f32 %v4695_v29, %v4691_v59  ;;  %v4707_v30 = vmul.f32 %v4706_v22, %v4691_v59  ;;  %v4736_v3 = vmul.f32 %v4735_v34, %v4731_v36 }
 0x483   : > { %v4747_v17 = vmul.f32 %v4746_v28, %v4731_v36  ;;  %v4776_v43 = vmul.f32 %v4775_v35, %v4771_v62  ;;  %v4787_v32 = vmul.f32 %v4786_v61, %v4771_v62 }
 0x484   : > { %v4708_v11 = vadd.f32 0.112945676, %v4707_v30  ;;  %v4697_v0 = vadd.f32 0.05243302, %v4696_v38  ;;  %v4737_v46 = vadd.f32 0.05243302, %v4736_v3 }
 0x485   : > { %v4748_v44 = vadd.f32 0.112945676, %v4747_v17  ;;  %v4788_v55 = vadd.f32 0.112945676, %v4787_v32  ;;  %v4777_v50 = vadd.f32 0.05243302, %v4776_v43 }
 0x486   : > { %v4709_v33 = vmul.f32 %v4708_v11, %v4691_v59  ;;  %v4698_v52 = vmul.f32 %v4697_v0, %v4691_v59  ;;  %v4738_v45 = vmul.f32 %v4737_v46, %v4731_v36 }
 0x487   : > { %v4749_v42 = vmul.f32 %v4748_v44, %v4731_v36  ;;  %v4789_v39 = vmul.f32 %v4788_v55, %v4771_v62  ;;  %v4778_v21 = vmul.f32 %v4777_v50, %v4771_v62 }
 0x488   : > { %v4710_v47 = vadd.f32 0.4994258, %v4709_v33  ;;  %v4699_v15 = vadd.f32 0.18741608, %v4698_v52  ;;  %v4739_v24 = vadd.f32 0.18741608, %v4738_v45 }
 0x489   : > { %v4750_v57 = vadd.f32 0.4994258, %v4749_v42  ;;  %v4790_v53 = vadd.f32 0.4994258, %v4789_v39  ;;  %v4779_v31 = vadd.f32 0.18741608, %v4778_v21 }
 0x48a   : > { %v4711_v19 = vmul.f32 %v4710_v47, %v4691_v59  ;;  %v4700_v14 = vmul.f32 %v4699_v15, %v4691_v59  ;;  %v4740_v10 = vmul.f32 %v4739_v24, %v4731_v36  ;;  %v4684_v42 = vmul.f32 0.5, %v6689_v13 }
 0x48b   : > { %v4751_v1 = vmul.f32 %v4750_v57, %v4731_v36  ;;  %v4791_v60 = vmul.f32 %v4790_v53, %v4771_v62  ;;  %v4780_v56 = vmul.f32 %v4779_v31, %v4771_v62  ;;  %v4685_v39 = vmul.f32 0.5, %v6691_v37 }
 0x48c   : > { %v4712_v49 = vadd.f32 1.0, %v4711_v19  ;;  %v4701_v8 = vadd.f32 1.1283791, %v4700_v14  ;;  %v4741_v40 = vadd.f32 1.1283791, %v4740_v10 }
 0x48d   : > { %v4752_v16 = vadd.f32 1.0, %v4751_v1  ;;  %v4792_v58 = vadd.f32 1.0, %v4791_v60  ;;  %v4781_v23 = vadd.f32 1.1283791, %v4780_v56 }
 0x48e   : > { %5222 = vrcp.f32 %v4712_v49  ;;  %v4722_v41 = vand.u32 2147483647, %v4712_v49  ;;  %v4724_v7 = vand.u32 2147483648, %v4712_v49  ;;  %v4702_v27 = vmul.f32 %v4701_v8, %v6696_v48 }
 0x48f   : > { %5224 = vrcp.f32 %v4752_v16  ;;  %v4762_v4 = vand.u32 2147483647, %v4752_v16  ;;  %v4764_v36 = vand.u32 2147483648, %v4752_v16  ;;  %vm4718_vm3 = vweird.f32 %v4712_v49 }
 0x490   : > { %5226 = vrcp.f32 %v4792_v58  ;;  %vm4723_vm8 = vcmp.eq.f32.partialorder %v4722_v41, 8.507059e+37  ;;  %v4742_v22 = vmul.f32 %v4741_v40, %v6699_v5  ;;  %vm4758_vm9 = vweird.f32 %v4752_v16 }
 0x491   : > { %v4725_v20 = vor.u32 1.1754944e-38, %v4724_v7  ;;  %vm4763_vm6 = vcmp.eq.f32.partialorder %v4762_v4, 8.507059e+37  ;;  %v4765_v48 = vor.u32 1.1754944e-38, %v4764_v36  ;;  %v4802_v38 = vand.u32 2147483647, %v4792_v58 }
 0x492   : > { %v4804_v30 = vand.u32 2147483648, %v4792_v58  ;;  %vm4798_vm0 = vweird.f32 %v4792_v58  ;;  %v4782_v55 = vmul.f32 %v4781_v23, %v6702_v12  ;;  %v4686_v12 = vmul.f32 0.5, %v6693_v18 }
 0x493   : > { %vm4803_vm12 = vcmp.eq.f32.partialorder %v4802_v38, 8.507059e+37 }
 0x494   : > { %v5223_v26 = vpop.eup %5222  ;;  %v4805_v44 = vor.u32 1.1754944e-38, %v4804_v30 }
 0x495   : > { %v5225_v6 = vpop.eup %5224  ;;  %v4714_v9 = vmul.f32 %v5223_v26, %v4712_v49  ;;  %vm4719_vm2 = vweird.f32 %v5223_v26 }
 0x496   : > { %v4754_v63 = vmul.f32 %v5225_v6, %v4752_v16  ;;  %v5227_v25 = vpop.eup %5226  ;;  %vm4759_vm4 = vweird.f32 %v5225_v6  ;;  %vm4720_vm5 = vmor %vm4718_vm3, %vm4719_vm2 }
 0x497   : > { %v4715_v51 = vsub.f32 1.0, %v4714_v9  ;;  %v4794_v62 = vmul.f32 %v5227_v25, %v4792_v58  ;;  %vm4760_vm7 = vmor %vm4758_vm9, %vm4759_vm4  ;;  %vm4799_vm10 = vweird.f32 %v5227_v25 }
 0x498   : > { %v4755_v2 = vsub.f32 1.0, %v4754_v63  ;;  %vm4800_vm1 = vmor %vm4798_vm0, %vm4799_vm10 }
 0x499   : > { %v4716_v59 = vmul.f32 %v5223_v26, %v4715_v51  ;;  %v4795_v28 = vsub.f32 1.0, %v4794_v62 }
 0x49a   : > { %v4756_v54 = vmul.f32 %v5225_v6, %v4755_v2 }
 0x49b   : > { %v4717_v29 = vadd.f32 %v5223_v26, %v4716_v59  ;;  %v4796_v17 = vmul.f32 %v5227_v25, %v4795_v28 }
 0x49c   : > { %v4757_v34 = vadd.f32 %v5225_v6, %v4756_v54 }
 0x49d   : > { %v4721_v35 = vsel %vm4720_vm5, %v5223_v26, %v4717_v29  ;;  %v4797_v32 = vadd.f32 %v5227_v25, %v4796_v17 }
 0x49e   : > { %v4726_v61 = vsel %vm4723_vm8, %v4725_v20, %v4721_v35  ;;  %v4761_v3 = vsel %vm4760_vm7, %v5225_v6, %v4757_v34 }
 0x49f   : > { %v4727_v11 = vmul.f32 %v4726_v61, %v4702_v27  ;;  %v4766_v43 = vsel %vm4763_vm6, %v4765_v48, %v4761_v3  ;;  %v4801_v46 = vsel %vm4800_vm1, %v5227_v25, %v4797_v32 }
 0x4a0   : > { %v4767_v5 = vmul.f32 %v4766_v43, %v4742_v22  ;;  %v4806_v47 = vsel %vm4803_vm12, %v4805_v44, %v4801_v46 }
 0x4a1   : > { %v5138_v0 = vclamps-f32 %v4727_v11, 1.0  ;;  %v4807_v52 = vmul.f32 %v4806_v47, %v4782_v55 }
 0x4a2   : > { %v5139_v33 = vclamps-f32 %v4767_v5, 1.0 }
 0x4a3   : > { %v4810_v50 = vadd.f32 1.0, %v5138_v0  ;;  %v5140_v53 = vclamps-f32 %v4807_v52, 1.0 }
 0x4a4   : > { %v4811_v57 = vadd.f32 1.0, %v5139_v33 }
 0x4a5   : > { %v4813_v19 = vmul.f32 %v4810_v50, %v4684_v42  ;;  %v4812_v1 = vadd.f32 1.0, %v5140_v53 }
 0x4a6   : > { %v4814_v45 = vmul.f32 %v4811_v57, %v4685_v39 }
 0x4a7   : > { %4816 = vst [vmem:[%s226_s27] sm:$0xff] %v4813_v19  ;;  %v4815_v49 = vmul.f32 %v4812_v1, %v4686_v12 }
 0x4a8   : > { %4817 = vst [vmem:[%s226_s27 + $0x8] sm:$0xff] %v4814_v45 }
 0x4a9   : > { %4818 = vst.msk [vmem:[%s226_s27 + $0x10] sm:$0xff] %vm4642_vm11, %v4815_v49 }
 0x4aa PF: > { %s13_s14 = sadd.s32 1, %s5250_s14   ;;  %s6746_s12 = smov %s5246_s13 }
 0x4ab   : > { %p10_p5 = scmp.ge.s32.totalorder %s13_s14, 4   ;;  %s6747_s13 = smov %s6749_s15 }
 0x4ad   :  { %12 = sbr.rel (!%p10_p5) target bundleno = 2 (0x2), region = 165 }

// kernel: ittr_stem_forward.5
= control target key start
LH: loop header
LB: loop body
LE: loop exit
PB: predicated region body
PF: predicated region fallthrough
CT: control target
= control target key end

     0   :  { %s1376_s12 = smov 0   ;;  %s1378_s13 = smov 0   ;;  %s1651_s0 = inlined_call_operand.vmem [shape: f32[2,64,26], index: 0, kind: input, shape index: {}]   ;;  %s1652_s1 = inlined_call_operand.vmem [shape: bf16[9,32,16], index: 1, kind: input, shape index: {}]   ;;  %s1653_s2 = inlined_call_operand.vmem [shape: f32[32,1], index: 2, kind: input, shape index: {}]   ;;  %s1654_s3 = inlined_call_operand.vmem [shape: f32[2,32,20], index: 3, kind: output, shape index: {}]  }
   0x1   :  { %s1380_s14 = smov 0  }
   0x2 LB: > { %s25_s15 = sadd.s32 1, %s1345_s13  ;;  %p1123_p0 = scmp.ge.s32.totalorder %s1349_s14, 1  ;;  %s1349_s14 = sphi %s1380_s14, %s13_s14   ;;  %s1345_s13 = sphi %s1378_s13, %s1658_s13   ;;  %s1341_s12 = sphi %s1376_s12, %s1657_s12  }
   0x3   : > { %p27_p1 = scmp.ge.s32.totalorder %s25_s15, 2  ;;  %p173_p2 = scmp.lt.s32.totalorder %s1349_s14, 3 }
   0x5   : > { %s1660_s15 = smov (%p27_p1, %s25_s15), 0  ;;  %p174_p3 = pnand %p1123_p0, %p173_p2 }
   0x6   : > { %p211_p4 = scmp.lt.s32.totalorder (!%p174_p3), %s1341_s12, 1  ;;  %s1351_s20 = smov (!%p174_p3), 127  }
   0x7   : > { %177 = sbr.rel (%p174_p3) target bundleno = 652 (0x28c), region = 32  ;;  %s1352_s21 = smov (!%p174_p3), 122  }
   0x8   : > { %s1353_s24 = smov (!%p174_p3), 123  }
   0xc   : > { %s1662_s12 = smov (!%p211_p4, %s1341_s12), 1  ;;  %v1261_v8 = vld [vmem:[%s1652_s1 + $0x18] sm:$0xff]  ;;  %vm264_vm0 = vcmask 130048   ;;  %v1260_v10 = vld [vmem:[%s1652_s1 + $0x10] sm:$0xff]  ;;  %v1258_v11 = vld [vmem:[%s1652_s1] sm:$0xff]  ;;  %v1354_v33 = vmov 0   ;;  %v685_v43 = vlaneseq }
   0xd   : > { %s1256_s16 = sshll.u32 %s1662_s12, 6  ;;  %v1259_v12 = vld [vmem:[%s1652_s1 + $0x8] sm:$0xff]  ;;  %v1264_v13 = vld [vmem:[%s1652_s1 + $0x30] sm:$0xff]  ;;  %v1266_v17 = vld [vmem:[%s1652_s1 + $0x40] sm:$0xff]  ;;  %1307 = vset.pattern.permute.xlu0 %v1354_v33  ;;  %1308 = vset.pattern.permute.xlu1 %v1354_v33  ;;  %vm726_vm7 = vcmask 162816  }
   0xe   : > { %s1400_s19 = scalar_lea.vmem %s1651_s0, %s1256_s16  ;;  %v1265_v18 = vld [vmem:[%s1652_s1 + $0x38] sm:$0xff]  ;;  %v1267_v20 = vld [vmem:[%s1652_s1 + $0x48] sm:$0xff]  ;;  %v1262_v22 = vld [vmem:[%s1652_s1 + $0x20] sm:$0xff]  ;;  %1306 = vset.pattern.permute.xlu2 %v1354_v33  ;;  %v686_v44 = vand.u32 127, %v685_v43 }
   0xf   : > { %v239_v0 = vld [vmem:[%s1400_s19] sm:$0xff]  ;;  %v240_v1 = vld [vmem:[%s1400_s19 + $0x8] sm:$0xff]  ;;  %v246_v2 = vld [vmem:[%s1400_s19 + $0x10] sm:$0xff] }
  0x10   : > { %v245_v3 = vpack.c.bf16 %v240_v1, %v239_v0  ;;  %v247_v4 = vld [vmem:[%s1400_s19 + $0x18] sm:$0xff]  ;;  %v373_v5 = vld [vmem:[%s1400_s19 + $0x20] sm:$0xff]  ;;  %v374_v6 = vld [vmem:[%s1400_s19 + $0x28] sm:$0xff]  ;;  %v690_v46 = vand.u32 65535, %v686_v44  ;;  %v691_v48 = vshrl.u32 %v686_v44, 16 }
  0x11   : > { %v253_v7 = vpack.c.bf16 %v247_v4, %v246_v2  ;;  %v380_v9 = vpack.c.bf16 %v374_v6, %v373_v5  ;;  %v420_v14 = vld [vmem:[%s1400_s19 + $0x30] sm:$0xff]  ;;  %v421_v15 = vld [vmem:[%s1400_s19 + $0x38] sm:$0xff]  ;;  %v1274_v25 = vld [vmem:[%s1652_s1 + $0x80] sm:$0xff] }
  0x12   : > { %341 = vrot.lane.b32.xlu0 %v245_v3, %s1351_s20  ;;  %625 = vrot.lane.b32.xlu2 %v245_v3, %s1352_s21  ;;  %v427_v16 = vpack.c.bf16 %v421_v15, %v420_v14  ;;  %v1272_v24 = vld [vmem:[%s1652_s1 + $0x70] sm:$0xff]  ;;  %v1263_v29 = vld [vmem:[%s1652_s1 + $0x28] sm:$0xff]  ;;  %v694_v49 = vmul.u32 52428, %v690_v46  ;;  %v693_v52 = vmul.u32 52429, %v690_v46  ;;  %v695_v53 = vmul.u32 52429, %v691_v48  ;;  %s1257_s21 = sshll.u32 %s1662_s12, 5 }
  0x13   : > { %578 = vrot.lane.b32.xlu1 %v253_v7, %s1353_s24  ;;  %1276 = vmatpush.bf16.msra.mxu1 %v253_v7  ;;  %v1268_v28 = vld [vmem:[%s1652_s1 + $0x50] sm:$0xff]  ;;  %v1273_v30 = vld [vmem:[%s1652_s1 + $0x78] sm:$0xff]  ;;  %v1275_v31 = vld [vmem:[%s1652_s1 + $0x88] sm:$0xff]  ;;  %v696_v58 = vmul.u32 52428, %v691_v48  ;;  %s1620_s12 = scalar_lea.vmem %s1654_s3, %s1257_s21 }
  0x14   : > { %278 = vmatpush.bf16.msra.mxu0 %v253_v7  ;;  %404 = vmatpush.bf16.msra.mxu3 %v380_v9  ;;  %v658_v32 = vld [vmem:[%s1653_s2 + $0x8] sm:$0xff]  ;;  %v659_v34 = vld [vmem:[%s1653_s2 + $0x10] sm:$0xff]  ;;  %v657_v35 = vld [vmem:[%s1653_s2] sm:$0xff]  ;;  %v697_v54 = vshll.u32 %v694_v49, 16  ;;  %v699_v56 = vshll.u32 %v695_v53, 16  ;;  %v698_v2 = vshrl.u32 %v694_v49, 16 }
  0x15   : > { %v1269_v36 = vld [vmem:[%s1652_s1 + $0x58] sm:$0xff]  ;;  %v1270_v38 = vld [vmem:[%s1652_s1 + $0x60] sm:$0xff]  ;;  %v1271_v39 = vld [vmem:[%s1652_s1 + $0x68] sm:$0xff]  ;;  %v700_v6 = vshrl.u32 %v695_v53, 16 }
  0x16   : > { %1141 = vmatmul.msk.bf16.vlgmr.msra.gmra.mxu1 %vm264_vm0, %v1261_v8  ;;  %v660_v37 = vld [vmem:[%s1653_s2 + $0x18] sm:$0xff]  ;;  %vm701_vm1 = vc.u32 %v693_v52, %v697_v54  ;;  %v703_v57 = vadd.s32 %v697_v54, %v693_v52 }
  0x17   : > { %313 = vmatpush.bf16.msrb.mxu1 %v245_v3  ;;  %1140 = vmatmul.msk.bf16.vlgmr.msra.gmra.mxu0 %vm264_vm0, %v1260_v10  ;;  %v702_v59 = vsel %vm701_vm1, 1, %v1354_v33 }
  0x18   : > { %1178 = vmatmul.msk.bf16.vlgmr.msra.gmra.mxu3 %vm264_vm0, %v1264_v13  ;;  %451 = vmatpush.bf16.msrb.mxu0 %v427_v16  ;;  %vm705_vm2 = vc.u32 %v703_v57, %v699_v56  ;;  %v704_v63 = vadd.s32 %v702_v59, %v696_v58 }
  0x19   : > { %v706_v0 = vsel %vm705_vm2, 1, %v1354_v33 }
  0x1a   : > { %530 = vrot.lane.b32.xlu0 %v245_v3, %s1353_s24  ;;  %663 = vperm.xlu2 %1306, %v657_v35   ;;  %v708_v3 = vadd.s32 %v706_v0, %v704_v63 }
  0x1b   : > { %483 = vrot.lane.b32.xlu1 %v380_v9, %s1351_s20 }
  0x1c   : > { %v709_v7 = vadd.s32 %v708_v3, %v698_v2 }
  0x1e   : > { %v710_v9 = vadd.s32 %v709_v7, %v700_v6 }
  0x22   : > { %668 = vperm.xlu0 %1307, %v658_v32   ;;  %678 = vperm.xlu2 %1306, %v660_v37  }
  0x23   : > { %673 = vperm.xlu1 %1308, %v659_v34  }
  0x26   : > { %1150 = vmatmul.msk.bf16.vlgmr.msrb.gmra.mxu1 %vm264_vm0, %v1258_v11 }
  0x27   : > { %1192 = vmatmul.msk.bf16.vlgmr.msrb.gmra.mxu0 %vm264_vm0, %v1266_v17 }
  0x28   : > { %1179 = vmatmul.msk.bf16.gmra.mxu3 %vm264_vm0, %v1265_v18 }
  0x36   : > { %1151 = vmatmul.msk.bf16.gmra.mxu1 %vm264_vm0, %v1259_v12  ;;  %v711_v12 = vshrl.u32 %v710_v9, 2 }
  0x37   : > { %1193 = vmatmul.msk.bf16.gmra.mxu0 %vm264_vm0, %v1267_v20 }
  0x38   : > { %v712_v17 = vmul.u32 5, %v711_v12 }
  0x6c   : > { %v626_v19 = vpop.permute.xlu2 %625 }
  0x6d   : > { %641 = vmatpush.bf16.msra.mxu0 %v626_v19 }
  0x70   : > { %1248 = vmatmul.msk.bf16.vlgmr.msra.gmra.mxu0 %vm264_vm0, %v1274_v25 }
  0x80   : > { %1249 = vmatmul.msk.bf16.gmra.mxu0 %vm264_vm0, %v1275_v31 }
  0x84   : > { %v342_v21 = vpop.permute.xlu0 %341 }
  0x85   : > { %357 = vmatpush.bf16.msra.mxu2 %v342_v21  ;;  %v579_v23 = vpop.permute.xlu1 %578  ;;  %v713_v21 = vsub.s32 %v686_v44, %v712_v17 }
  0x86   : > { %594 = vmatpush.bf16.msrb.mxu3 %v579_v23 }
  0x87   : > { %vm716_vm3 = vcmp.ne.s32.totalorder %v713_v21, 0  ;;  %vm717_vm4 = vcmp.lt.s32.totalorder %v713_v21, 0 }
  0x88   : > { %1164 = vmatmul.msk.bf16.vlgmr.msra.gmra.mxu2 %vm264_vm0, %v1262_v22  ;;  %vm718_vm5 = vmand %vm717_vm4, %vm716_vm3 }
  0x89   : > { %1234 = vmatmul.msk.bf16.vlgmr.msrb.gmra.mxu3 %vm264_vm0, %v1272_v24 }
  0x8c   : > { %v531_v26 = vpop.permute.xlu0 %530 }
  0x8d   : > { %546 = vmatpush.bf16.msrb.mxu2 %v531_v26  ;;  %v484_v27 = vpop.permute.xlu1 %483 }
  0x8e   : > { %499 = vmatpush.bf16.msra.mxu1 %v484_v27 }
  0x91   : > { %1206 = vmatmul.msk.bf16.vlgmr.msra.gmra.mxu1 %vm264_vm0, %v1268_v28 }
  0x93   : > { %v285_v40 = vpop.f32.mrf.mxu1 }
  0x94   : > { %v280_v41 = vpop.f32.mrf.mxu0  ;;  %v669_v56 = vpop.permute.xlu0 %668 }
  0x98   : > { %1165 = vmatmul.msk.bf16.gmra.mxu2 %vm264_vm0, %v1263_v29  ;;  %v719_v29 = vadd.s32 5, %v713_v21 }
  0x99   : > { %1235 = vmatmul.msk.bf16.gmra.mxu3 %vm264_vm0, %v1273_v30 }
  0x9a   : > { %v720_v37 = vsel %vm718_vm5, %v719_v29, %v713_v21  ;;  %v1355_v21 = vmov 16.0  }
  0x9b   : > { %v1494_v42 = vpop.f32.mrf.mxu1  ;;  %v406_v50 = vpop.f32.mrf.mxu3  ;;  %vm1496_vm6 = vcmp.lt.s32.totalorder %v720_v37, 4  ;;  %1309 = vrcp.f32 %v1355_v21 }
  0x9c   : > { %v282_v45 = vpop.f32.mrf.mxu0 }
  0xa1   : > { %1207 = vmatmul.msk.bf16.gmra.mxu1 %vm264_vm0, %v1269_v36 }
  0xa3   : > { %v315_v47 = vpop.f32.mrf.mxu1  ;;  %v408_v60 = vpop.f32.mrf.mxu3 }
  0xa4   : > { %v453_v51 = vpop.f32.mrf.mxu0  ;;  %v316_v13 = vadd.f32 %v315_v47, %v280_v41 }
  0xa8   : > { %1220 = vmatmul.msk.bf16.vlgmr.msrb.gmra.mxu2 %vm264_vm0, %v1270_v38  ;;  %v664_v38 = vpop.permute.xlu2 %663 }
  0xab   : > { %v317_v55 = vpop.f32.mrf.mxu1  ;;  %v411_v5 = vpop.f32.mrf.mxu3 }
  0xac   : > { %v455_v62 = vpop.f32.mrf.mxu0  ;;  %v318_v22 = vadd.f32 %v317_v55, %v282_v45 }
  0xb3   : > { %v320_v1 = vpop.f32.mrf.mxu1  ;;  %v413_v14 = vpop.f32.mrf.mxu3 }
  0xb4   : > { %v458_v8 = vpop.f32.mrf.mxu0  ;;  %v321_v32 = vadd.f32 %v320_v1, %v285_v40 }
  0xb8   : > { %1221 = vmatmul.msk.bf16.gmra.mxu2 %vm264_vm0, %v1271_v39 }
  0xbb   : > { %v322_v10 = vpop.f32.mrf.mxu1 }
  0xbc   : > { %v460_v16 = vpop.f32.mrf.mxu0  ;;  %v323_v40 = vadd.f32 %v322_v10, %v1494_v42 }
  0xed   : > { %v643_v26 = vpop.f32.mrf.mxu0 }
  0xf5   : > { %v645_v48 = vpop.f32.mrf.mxu0 }
  0xfd   : > { %v648_v0 = vpop.f32.mrf.mxu0 }
 0x10b   : > { %v359_v61 = vpop.f32.mrf.mxu2 }
 0x10c   : > { %v369_v15 = vadd.f32 %v359_v61, %v316_v13  ;;  %v596_v25 = vpop.f32.mrf.mxu3 }
 0x10e   : > { %v501_v18 = vpop.f32.mrf.mxu1  ;;  %v416_v19 = vadd.f32 %v406_v50, %v369_v15  ;;  %v650_v15 = vpop.f32.mrf.mxu0 }
 0x110   : > { %v463_v23 = vadd.f32 %v453_v51, %v416_v19 }
 0x112   : > { %v511_v27 = vadd.f32 %v501_v18, %v463_v23 }
 0x113   : > { %v361_v4 = vpop.f32.mrf.mxu2 }
 0x114   : > { %v370_v24 = vadd.f32 %v361_v4, %v318_v22  ;;  %v598_v41 = vpop.f32.mrf.mxu3  ;;  %v1310_v22 = vpop.eup %1309 }
 0x115   : > { %v740_v23 = vmul.f32 16.0, %v1310_v22  ;;  %vm744_vm8 = vweird.f32 %v1310_v22 }
 0x116   : > { %v417_v28 = vadd.f32 %v408_v60, %v370_v24  ;;  %v503_v30 = vpop.f32.mrf.mxu1 }
 0x117   : > { %v741_v24 = vsub.f32 1.0, %v740_v23 }
 0x118   : > { %v464_v34 = vadd.f32 %v455_v62, %v417_v28 }
 0x11a   : > { %v512_v44 = vadd.f32 %v503_v30, %v464_v34 }
 0x11b   : > { %v364_v11 = vpop.f32.mrf.mxu2 }
 0x11c   : > { %v371_v35 = vadd.f32 %v364_v11, %v321_v32  ;;  %v601_v61 = vpop.f32.mrf.mxu3 }
 0x11e   : > { %v418_v45 = vadd.f32 %v411_v5, %v371_v35  ;;  %v506_v51 = vpop.f32.mrf.mxu1  ;;  %v674_v5 = vpop.permute.xlu1 %673 }
 0x120   : > { %v465_v53 = vadd.f32 %v458_v8, %v418_v45 }
 0x122   : > { %v513_v58 = vadd.f32 %v506_v51, %v465_v53 }
 0x123   : > { %v366_v20 = vpop.f32.mrf.mxu2 }
 0x124   : > { %v372_v54 = vadd.f32 %v366_v20, %v323_v40  ;;  %v603_v12 = vpop.f32.mrf.mxu3 }
 0x126   : > { %v419_v59 = vadd.f32 %v413_v14, %v372_v54  ;;  %v508_v4 = vpop.f32.mrf.mxu1 }
 0x128   : > { %v466_v2 = vadd.f32 %v460_v16, %v419_v59  ;;  %v679_v16 = vpop.permute.xlu2 %678 }
 0x12a   : > { %v514_v7 = vadd.f32 %v508_v4, %v466_v2 }
 0x12b   : > { %v548_v31 = vpop.f32.mrf.mxu2 }
 0x12c   : > { %v558_v33 = vadd.f32 %v548_v31, %v511_v27 }
 0x12e   : > { %v606_v36 = vadd.f32 %v596_v25, %v558_v33  ;;  %v742_v25 = vmul.f32 %v1310_v22, %v741_v24 }
 0x130   : > { %v653_v39 = vadd.f32 %v643_v26, %v606_v36  ;;  %v743_v26 = vadd.f32 %v1310_v22, %v742_v25 }
 0x132   : > { %v681_v46 = vadd.f32 %v664_v38, %v653_v39  ;;  %v745_v27 = vsel %vm744_vm8, %v1310_v22, %v743_v26 }
 0x133   : > { %v550_v47 = vpop.f32.mrf.mxu2 }
 0x134   : > { %v559_v49 = vadd.f32 %v550_v47, %v512_v44  ;;  %v722_v50 = vsel %vm1496_vm6, %v681_v46, 0.0 }
 0x135   : > { %v727_v52 = vsel %vm726_vm7, %v722_v50, 0.0 }
 0x136   : > { %v607_v55 = vadd.f32 %v598_v41, %v559_v49  ;;  %728 = vadd.xlane.f32.xlu1 %v727_v52 }
 0x138   : > { %v654_v57 = vadd.f32 %v645_v48, %v607_v55 }
 0x13a   : > { %v682_v60 = vadd.f32 %v669_v56, %v654_v57 }
 0x13b   : > { %v553_v62 = vpop.f32.mrf.mxu2 }
 0x13c   : > { %v560_v63 = vadd.f32 %v553_v62, %v513_v58  ;;  %v723_v42 = vsel %vm1496_vm6, %v682_v60, 0.0 }
 0x13d   : > { %v730_v1 = vsel %vm726_vm7, %v723_v42, 0.0 }
 0x13e   : > { %v608_v3 = vadd.f32 %v601_v61, %v560_v63  ;;  %731 = vadd.xlane.f32.xlu2 %v730_v1 }
 0x140   : > { %v655_v6 = vadd.f32 %v648_v0, %v608_v3 }
 0x142   : > { %v683_v8 = vadd.f32 %v674_v5, %v655_v6 }
 0x143   : > { %v555_v9 = vpop.f32.mrf.mxu2 }
 0x144   : > { %v561_v10 = vadd.f32 %v555_v9, %v514_v7  ;;  %v724_v11 = vsel %vm1496_vm6, %v683_v8, 0.0 }
 0x145   : > { %v733_v13 = vsel %vm726_vm7, %v724_v11, 0.0 }
 0x146   : > { %v609_v14 = vadd.f32 %v603_v12, %v561_v10  ;;  %734 = vadd.xlane.f32.xlu0 %v733_v13 }
 0x148   : > { %v656_v17 = vadd.f32 %v650_v15, %v609_v14 }
 0x14a   : > { %v684_v18 = vadd.f32 %v679_v16, %v656_v17 }
 0x14c   : > { %v725_v19 = vsel %vm1496_vm6, %v684_v18, 0.0 }
 0x14d   : > { %v736_v20 = vsel %vm726_vm7, %v725_v19, 0.0 }
 0x14e   : > { %737 = vadd.xlane.f32.xlu2 %v736_v20 }
 0x1a9   : > { %v729_v28 = vpop.xlane.xlu1 %728 }
 0x1aa   : > { %v746_v29 = vmul.f32 %v745_v27, %v729_v28 }
 0x1ac   : > { %v750_v30 = vsub.f32 %v681_v46, %v746_v29 }
 0x1ae   : > { %v754_v31 = vsel %vm1496_vm6, %v750_v30, 0.0 }
 0x1af   : > { %v758_v32 = vmul.f32 %v754_v31, %v754_v31 }
 0x1b1   : > { %v732_v33 = vpop.xlane.xlu2 %731  ;;  %v762_v34 = vsel %vm726_vm7, %v758_v32, 0.0 }
 0x1b2   : > { %v747_v35 = vmul.f32 %v745_v27, %v732_v33  ;;  %763 = vadd.xlane.f32.xlu1 %v762_v34 }
 0x1b4   : > { %v1516_v36 = vsub.f32 %v682_v60, %v747_v35 }
 0x1b6   : > { %v755_v37 = vsel %vm1496_vm6, %v1516_v36, 0.0 }
 0x1b7   : > { %v759_v38 = vmul.f32 %v755_v37, %v755_v37 }
 0x1b9   : > { %v735_v39 = vpop.xlane.xlu0 %734  ;;  %v765_v41 = vsel %vm726_vm7, %v759_v38, 0.0 }
 0x1ba   : > { %v748_v44 = vmul.f32 %v745_v27, %v735_v39  ;;  %766 = vadd.xlane.f32.xlu2 %v765_v41 }
 0x1bc   : > { %v1522_v45 = vsub.f32 %v683_v8, %v748_v44 }
 0x1be   : > { %v756_v46 = vsel %vm1496_vm6, %v1522_v45, 0.0 }
 0x1bf   : > { %v760_v47 = vmul.f32 %v756_v46, %v756_v46 }
 0x1c1   : > { %v738_v48 = vpop.xlane.xlu2 %737  ;;  %v768_v40 = vsel %vm726_vm7, %v760_v47, 0.0 }
 0x1c2   : > { %v749_v49 = vmul.f32 %v745_v27, %v738_v48  ;;  %769 = vadd.xlane.f32.xlu0 %v768_v40 }
 0x1c4   : > { %v1528_v50 = vsub.f32 %v684_v18, %v749_v49 }
 0x1c6   : > { %v757_v51 = vsel %vm1496_vm6, %v1528_v50, 0.0 }
 0x1c7   : > { %v761_v52 = vmul.f32 %v757_v51, %v757_v51 }
 0x1c9   : > { %v771_v53 = vsel %vm726_vm7, %v761_v52, 0.0 }
 0x1ca   : > { %772 = vadd.xlane.f32.xlu1 %v771_v53 }
 0x225   : > { %v764_v54 = vpop.xlane.xlu1 %763 }
 0x226   : > { %v774_v55 = vmul.f32 %v764_v54, %v745_v27 }
 0x228   : > { %v778_v56 = vadd.f32 1e-05, %v774_v55 }
 0x22a   : > { %1311 = vrsqrt.f32 %v778_v56  ;;  %vm788_vm10 = vweird.f32 %v778_v56 }
 0x22d   : > { %v767_v57 = vpop.xlane.xlu2 %766 }
 0x22e   : > { %v775_v58 = vmul.f32 %v767_v57, %v745_v27 }
 0x230   : > { %v1312_v59 = vpop.eup %1311  ;;  %v779_v60 = vadd.f32 1e-05, %v775_v58 }
 0x231   : > { %v783_v61 = vmul.f32 %v1312_v59, %v778_v56  ;;  %vm789_vm9 = vweird.f32 %v1312_v59 }
 0x232   : > { %1313 = vrsqrt.f32 %v779_v60  ;;  %vm790_vm11 = vmor %vm788_vm10, %vm789_vm9  ;;  %vm798_vm13 = vweird.f32 %v779_v60 }
 0x233   : > { %v784_v62 = vmul.f32 %v1312_v59, %v783_v61 }
 0x235   : > { %v785_v63 = vmul.f32 0.5, %v784_v62  ;;  %v770_v42 = vpop.xlane.xlu0 %769 }
 0x236   : > { %v776_v0 = vmul.f32 %v770_v42, %v745_v27 }
 0x237   : > { %v786_v43 = vsub.f32 1.5, %v785_v63 }
 0x238   : > { %v1314_v1 = vpop.eup %1313  ;;  %v780_v2 = vadd.f32 1e-05, %v776_v0 }
 0x239   : > { %v787_v3 = vmul.f32 %v1312_v59, %v786_v43  ;;  %v793_v4 = vmul.f32 %v1314_v1, %v779_v60  ;;  %vm799_vm12 = vweird.f32 %v1314_v1 }
 0x23a   : > { %1315 = vrsqrt.f32 %v780_v2  ;;  %vm800_vm14 = vmor %vm798_vm13, %vm799_vm12  ;;  %vm808_vm0 = vweird.f32 %v780_v2 }
 0x23b   : > { %v791_v5 = vsel %vm790_vm11, %v1312_v59, %v787_v3  ;;  %v794_v6 = vmul.f32 %v1314_v1, %v793_v4 }
 0x23c   : > { %v1534_v7 = vmul.f32 %v791_v5, %v750_v30 }
 0x23d   : > { %v795_v8 = vmul.f32 0.5, %v794_v6  ;;  %v773_v9 = vpop.xlane.xlu1 %772 }
 0x23e   : > { %v1537_v10 = vmul.f32 0.70710677, %v1534_v7  ;;  %v777_v11 = vmul.f32 %v773_v9, %v745_v27 }
 0x23f   : > { %v796_v12 = vsub.f32 1.5, %v795_v8 }
 0x240   : > { %v1316_v13 = vpop.eup %1315  ;;  %v834_v14 = vmul.f32 %v1537_v10, %v1537_v10  ;;  %v781_v15 = vadd.f32 1e-05, %v777_v11 }
 0x241   : > { %v797_v17 = vmul.f32 %v1314_v1, %v796_v12  ;;  %v803_v16 = vmul.f32 %v1316_v13, %v780_v2  ;;  %vm809_vm15 = vweird.f32 %v1316_v13 }
 0x242   : > { %v1541_v18 = vmin.f32 %v834_v14, 16.0  ;;  %1317 = vrsqrt.f32 %v781_v15  ;;  %vm810_vm1 = vmor %vm808_vm0, %vm809_vm15  ;;  %vm818_vm3 = vweird.f32 %v781_v15 }
 0x243   : > { %v801_v19 = vsel %vm800_vm14, %v1314_v1, %v797_v17  ;;  %v804_v20 = vmul.f32 %v1316_v13, %v803_v16 }
 0x244   : > { %v836_v21 = vmul.f32 2.1237322e-06, %v1541_v18  ;;  %v847_v22 = vmul.f32 3.8918573e-05, %v1541_v18  ;;  %v1546_v23 = vmul.f32 %v801_v19, %v1516_v36 }
 0x245   : > { %v805_v24 = vmul.f32 0.5, %v804_v20 }
 0x246   : > { %v837_v25 = vadd.f32 0.00028619796, %v836_v21  ;;  %v848_v26 = vadd.f32 0.001143296, %v847_v22  ;;  %v1549_v27 = vmul.f32 0.70710677, %v1546_v23 }
 0x247   : > { %v806_v28 = vsub.f32 1.5, %v805_v24 }
 0x248   : > { %v1318_v29 = vpop.eup %1317  ;;  %v838_v30 = vmul.f32 %v837_v25, %v1541_v18  ;;  %v849_v31 = vmul.f32 %v848_v26, %v1541_v18  ;;  %v874_v32 = vmul.f32 %v1549_v27, %v1549_v27 }
 0x249   : > { %v807_v33 = vmul.f32 %v1316_v13, %v806_v28  ;;  %v813_v34 = vmul.f32 %v1318_v29, %v781_v15  ;;  %vm819_vm2 = vweird.f32 %v1318_v29 }
 0x24a   : > { %v839_v35 = vadd.f32 0.0036580483, %v838_v30  ;;  %v850_v36 = vadd.f32 0.014752088, %v849_v31  ;;  %v1555_v37 = vmin.f32 %v874_v32, 16.0  ;;  %vm820_vm4 = vmor %vm818_vm3, %vm819_vm2 }
 0x24b   : > { %v811_v38 = vsel %vm810_vm1, %v1316_v13, %v807_v33  ;;  %v814_v39 = vmul.f32 %v1318_v29, %v813_v34 }
 0x24c   : > { %v851_v41 = vmul.f32 %v850_v36, %v1541_v18  ;;  %v1559_v44 = vmul.f32 %v811_v38, %v1522_v45  ;;  %v840_v46 = vmul.f32 %v839_v35, %v1541_v18  ;;  %v876_v47 = vmul.f32 2.1237322e-06, %v1555_v37 }
 0x24d   : > { %v887_v48 = vmul.f32 3.8918573e-05, %v1555_v37  ;;  %v815_v40 = vmul.f32 0.5, %v814_v39 }
 0x24e   : > { %v852_v49 = vadd.f32 0.112945676, %v851_v41  ;;  %v877_v51 = vadd.f32 0.00028619796, %v876_v47  ;;  %v1565_v53 = vmul.f32 0.70710677, %v1559_v44 }
 0x24f   : > { %v888_v52 = vadd.f32 0.001143296, %v887_v48  ;;  %v816_v55 = vsub.f32 1.5, %v815_v40  ;;  %v841_v56 = vadd.f32 0.05243302, %v840_v46 }
 0x250   : > { %v853_v54 = vmul.f32 %v852_v49, %v1541_v18  ;;  %v878_v45 = vmul.f32 %v877_v51, %v1555_v37  ;;  %v914_v58 = vmul.f32 %v1565_v53, %v1565_v53 }
 0x251   : > { %v889_v57 = vmul.f32 %v888_v52, %v1555_v37  ;;  %v817_v60 = vmul.f32 %v1318_v29, %v816_v55  ;;  %v842_v43 = vmul.f32 %v841_v56, %v1541_v18 }
 0x252   : > { %v854_v59 = vadd.f32 0.4994258, %v853_v54  ;;  %v1572_v62 = vmin.f32 %v914_v58, 16.0  ;;  %v879_v42 = vadd.f32 0.0036580483, %v878_v45 }
 0x253   : > { %v890_v61 = vadd.f32 0.014752088, %v889_v57  ;;  %v821_v0 = vsel %vm820_vm4, %v1318_v29, %v817_v60  ;;  %v843_v11 = vadd.f32 0.18741608, %v842_v43 }
 0x254   : > { %v855_v63 = vmul.f32 %v854_v59, %v1541_v18  ;;  %v916_v2 = vmul.f32 2.1237322e-06, %v1572_v62  ;;  %v927_v4 = vmul.f32 3.8918573e-05, %v1572_v62  ;;  %v1580_v5 = vmul.f32 %v821_v0, %v1528_v50 }
 0x255   : > { %v891_v1 = vmul.f32 %v890_v61, %v1555_v37  ;;  %v880_v9 = vmul.f32 %v879_v42, %v1555_v37  ;;  %v844_v20 = vmul.f32 %v843_v11, %v1541_v18 }
 0x256   : > { %v856_v3 = vadd.f32 1.0, %v855_v63  ;;  %v917_v8 = vadd.f32 0.00028619796, %v916_v2  ;;  %v928_v14 = vadd.f32 0.001143296, %v927_v4 }
 0x257   : > { %v892_v6 = vadd.f32 0.112945676, %v891_v1  ;;  %v1586_v15 = vmul.f32 0.70710677, %v1580_v5  ;;  %v881_v16 = vadd.f32 0.05243302, %v880_v9 }
 0x258   : > { %1319 = vrcp.f32 %v856_v3  ;;  %v918_v13 = vmul.f32 %v917_v8, %v1572_v62  ;;  %v929_v19 = vmul.f32 %v928_v14, %v1572_v62  ;;  %v845_v34 = vadd.f32 1.1283791, %v844_v20 }
 0x259   : > { %v893_v12 = vmul.f32 %v892_v6, %v1555_v37  ;;  %v954_v50 = vmul.f32 %v1586_v15, %v1586_v15  ;;  %v882_v30 = vmul.f32 %v881_v16, %v1555_v37  ;;  %v866_v35 = vand.u32 2147483647, %v856_v3 }
 0x25a   : > { %v919_v24 = vadd.f32 0.0036580483, %v918_v13  ;;  %v930_v25 = vadd.f32 0.014752088, %v929_v19  ;;  %v868_v36 = vand.u32 2147483648, %v856_v3  ;;  %vm862_vm6 = vweird.f32 %v856_v3 }
 0x25b   : > { %v894_v17 = vadd.f32 0.4994258, %v893_v12  ;;  %v1593_v26 = vmin.f32 %v954_v50, 16.0  ;;  %v883_v48 = vadd.f32 0.18741608, %v882_v30  ;;  %v846_v54 = vmul.f32 %v845_v34, %v1537_v10 }
 0x25c   : > { %v931_v31 = vmul.f32 %v930_v25, %v1572_v62  ;;  %v920_v38 = vmul.f32 %v919_v24, %v1572_v62  ;;  %v869_v55 = vor.u32 1.1754944e-38, %v868_v36  ;;  %vm867_vm9 = vcmp.eq.f32.partialorder %v866_v35, 8.507059e+37 }
 0x25d   : > { %v895_v21 = vmul.f32 %v894_v17, %v1555_v37  ;;  %v956_v32 = vmul.f32 2.1237322e-06, %v1593_v26  ;;  %v967_v33 = vmul.f32 3.8918573e-05, %v1593_v26  ;;  %v884_v61 = vmul.f32 %v883_v48, %v1555_v37 }
 0x25e   : > { %v1320_v22 = vpop.eup %1319  ;;  %v932_v39 = vadd.f32 0.112945676, %v931_v31  ;;  %v921_v58 = vadd.f32 0.05243302, %v920_v38  ;;  %v826_v12 = vmul.f32 0.5, %v1534_v7 }
 0x25f   : > { %v858_v28 = vmul.f32 %v1320_v22, %v856_v3  ;;  %v1595_v29 = vadd.f32 1.0, %v895_v21  ;;  %vm863_vm5 = vweird.f32 %v1320_v22  ;;  %v957_v46 = vadd.f32 0.00028619796, %v956_v32 }
 0x260   : > { %v968_v47 = vadd.f32 0.001143296, %v967_v33  ;;  %v933_v40 = vmul.f32 %v932_v39, %v1572_v62  ;;  %vm864_vm8 = vmor %vm862_vm6, %vm863_vm5  ;;  %v922_v4 = vmul.f32 %v921_v58, %v1572_v62  ;;  %v885_v9 = vadd.f32 1.1283791, %v884_v61 }
 0x261   : > { %v859_v18 = vsub.f32 1.0, %v858_v28  ;;  %1321 = vrcp.f32 %v1595_v29  ;;  %v958_v51 = vmul.f32 %v957_v46, %v1593_v26  ;;  %v908_v2 = vand.u32 2147483648, %v1595_v29 }
 0x262   : > { %v969_v52 = vmul.f32 %v968_v47, %v1593_v26  ;;  %v934_v56 = vadd.f32 0.4994258, %v933_v40  ;;  %v906_v37 = vand.u32 2147483647, %v1595_v29  ;;  %vm902_vm11 = vweird.f32 %v1595_v29 }
 0x263   : > { %v860_v41 = vmul.f32 %v1320_v22, %v859_v18  ;;  %v959_v43 = vadd.f32 0.0036580483, %v958_v51  ;;  %v909_v50 = vor.u32 1.1754944e-38, %v908_v2  ;;  %v923_v20 = vadd.f32 0.18741608, %v922_v4 }
 0x264   : > { %v970_v59 = vadd.f32 0.014752088, %v969_v52  ;;  %v935_v0 = vmul.f32 %v934_v56, %v1572_v62  ;;  %v886_v7 = vmul.f32 %v885_v9, %v1549_v27  ;;  %vm907_vm13 = vcmp.eq.f32.partialorder %v906_v37, 8.507059e+37 }
 0x265   : > { %v861_v49 = vadd.f32 %v1320_v22, %v860_v41  ;;  %v960_v14 = vmul.f32 %v959_v43, %v1593_v26  ;;  %v827_v27 = vmul.f32 0.5, %v1546_v23  ;;  %v828_v58 = vmul.f32 0.5, %v1559_v44 }
 0x266   : > { %v971_v10 = vmul.f32 %v970_v59, %v1593_v26  ;;  %v936_v6 = vadd.f32 1.0, %v935_v0 }
 0x267   : > { %v1322_v45 = vpop.eup %1321  ;;  %v865_v57 = vsel %vm864_vm8, %v1320_v22, %v861_v49  ;;  %v961_v25 = vadd.f32 0.05243302, %v960_v14 }
 0x268   : > { %v870_v60 = vsel %vm867_vm9, %v869_v55, %v865_v57  ;;  %v898_v63 = vmul.f32 %v1322_v45, %v1595_v29  ;;  %v972_v8 = vadd.f32 0.112945676, %v971_v10  ;;  %vm903_vm10 = vweird.f32 %v1322_v45 }
 0x269   : > { %v871_v42 = vmul.f32 %v870_v60, %v846_v54  ;;  %1323 = vrcp.f32 %v936_v6  ;;  %vm904_vm12 = vmor %vm902_vm11, %vm903_vm10  ;;  %v924_v29 = vmul.f32 %v923_v20, %v1572_v62  ;;  %v962_v34 = vmul.f32 %v961_v25, %v1593_v26 }
 0x26a   : > { %v899_v1 = vsub.f32 1.0, %v898_v63  ;;  %v973_v16 = vmul.f32 %v972_v8, %v1593_v26  ;;  %v948_v39 = vand.u32 2147483648, %v936_v6  ;;  %v946_v47 = vand.u32 2147483647, %v936_v6 }
 0x26b   : > { %v1250_v3 = vclamps-f32 %v871_v42, 1.0  ;;  %v925_v38 = vadd.f32 1.1283791, %v924_v29  ;;  %v963_v48 = vadd.f32 0.18741608, %v962_v34  ;;  %vm942_vm15 = vweird.f32 %v936_v6 }
 0x26c   : > { %v900_v11 = vmul.f32 %v1322_v45, %v899_v1  ;;  %v974_v22 = vadd.f32 0.4994258, %v973_v16  ;;  %v949_v40 = vor.u32 1.1754944e-38, %v948_v39  ;;  %vm947_vm1 = vcmp.eq.f32.partialorder %v946_v47, 8.507059e+37 }
 0x26d   : > { %v994_v13 = vadd.f32 1.0, %v1250_v3  ;;  %v926_v49 = vmul.f32 %v925_v38, %v1565_v53  ;;  %v964_v54 = vmul.f32 %v963_v48, %v1593_v26  ;;  %v829_v3 = vmul.f32 0.5, %v1580_v5 }
 0x26e   : > { %v901_v17 = vadd.f32 %v1322_v45, %v900_v11  ;;  %v975_v30 = vmul.f32 %v974_v22, %v1593_v26 }
 0x26f   : > { %v998_v19 = vmul.f32 %v994_v13, %v826_v12  ;;  %v1324_v31 = vpop.eup %1323  ;;  %v965_v59 = vadd.f32 1.1283791, %v964_v54 }
 0x270   : > { %v905_v21 = vsel %vm904_vm12, %v1322_v45, %v901_v17  ;;  %v938_v33 = vmul.f32 %v1324_v31, %v936_v6  ;;  %v976_v18 = vadd.f32 1.0, %v975_v30  ;;  %vm943_vm14 = vweird.f32 %v1324_v31 }
 0x271   : > { %1002 = vst.msk [vmem:[%s1620_s12] sm:$0xff] %vm726_vm7, %v998_v19  ;;  %v910_v24 = vsel %vm907_vm13, %v909_v50, %v905_v21  ;;  %vm944_vm0 = vmor %vm942_vm15, %vm943_vm14  ;;  %v966_v26 = vmul.f32 %v965_v59, %v1586_v15 }
 0x272   : > { %v911_v28 = vmul.f32 %v910_v24, %v886_v7  ;;  %v939_v36 = vsub.f32 1.0, %v938_v33  ;;  %1325 = vrcp.f32 %v976_v18  ;;  %v988_v60 = vand.u32 2147483648, %v976_v18 }
 0x273   : > { %v986_v42 = vand.u32 2147483647, %v976_v18  ;;  %vm982_vm3 = vweird.f32 %v976_v18 }
 0x274   : > { %v1251_v32 = vclamps-f32 %v911_v28, 1.0  ;;  %v940_v46 = vmul.f32 %v1324_v31, %v939_v36  ;;  %v989_v43 = vor.u32 1.1754944e-38, %v988_v60 }
 0x275   : > { %vm987_vm5 = vcmp.eq.f32.partialorder %v986_v42, 8.507059e+37 }
 0x276   : > { %v995_v35 = vadd.f32 1.0, %v1251_v32  ;;  %v941_v62 = vadd.f32 %v1324_v31, %v940_v46 }
 0x278   : > { %v999_v41 = vmul.f32 %v995_v35, %v827_v27  ;;  %v945_v51 = vsel %vm944_vm0, %v1324_v31, %v941_v62  ;;  %v1326_v23 = vpop.eup %1325 }
 0x279   : > { %v950_v52 = vsel %vm947_vm1, %v949_v40, %v945_v51  ;;  %v978_v56 = vmul.f32 %v1326_v23, %v976_v18  ;;  %vm983_vm2 = vweird.f32 %v1326_v23 }
 0x27a   : > { %1003 = vst.msk [vmem:[%s1620_s12 + $0x8] sm:$0xff] %vm726_vm7, %v999_v41  ;;  %v951_v55 = vmul.f32 %v950_v52, %v926_v49  ;;  %vm984_vm4 = vmor %vm982_vm3, %vm983_vm2 }
 0x27b   : > { %v979_v57 = vsub.f32 1.0, %v978_v56 }
 0x27c   : > { %v1252_v45 = vclamps-f32 %v951_v55, 1.0 }
 0x27d   : > { %v980_v63 = vmul.f32 %v1326_v23, %v979_v57 }
 0x27e   : > { %v996_v61 = vadd.f32 1.0, %v1252_v45 }
 0x27f   : > { %v981_v0 = vadd.f32 %v1326_v23, %v980_v63 }
 0x280   : > { %v1000_v53 = vmul.f32 %v996_v61, %v828_v58 }
 0x281   : > { %v985_v10 = vsel %vm984_vm4, %v1326_v23, %v981_v0 }
 0x282   : > { %1004 = vst.msk [vmem:[%s1620_s12 + $0x10] sm:$0xff] %vm726_vm7, %v1000_v53  ;;  %v990_v1 = vsel %vm987_vm5, %v989_v43, %v985_v10 }
 0x283   : > { %v991_v44 = vmul.f32 %v990_v1, %v966_v26 }
 0x285   : > { %v1253_v2 = vclamps-f32 %v991_v44, 1.0 }
 0x287   : > { %v997_v4 = vadd.f32 1.0, %v1253_v2 }
 0x289   : > { %v1001_v6 = vmul.f32 %v997_v4, %v829_v3 }
 0x28b   : > { %1005 = vst.msk [vmem:[%s1620_s12 + $0x18] sm:$0xff] %vm726_vm7, %v1001_v6 }
 0x28c PF: > { %s13_s14 = sadd.s32 1, %s1349_s14   ;;  %s1657_s12 = smov %s1345_s13 }
 0x28d   : > { %p10_p5 = scmp.ge.s32.totalorder %s13_s14, 4   ;;  %s1658_s13 = smov %s1660_s15 }
 0x28f   :  { %12 = sbr.rel (!%p10_p5) target bundleno = 2 (0x2), region = 76 }

</bundles_post_ra>
